<compile_context>
chip_gen: v7x
topology: tpu7x:2x2x1
jax: 0.10.0
libtpu: 0.0.40
codegen_flags: <defaults>
</compile_context>

<pallas_src>
import jax
import jax.numpy as jnp
from jax import lax
from jax.experimental import pallas as pl
from jax.experimental.pallas import tpu as pltpu


# ----------------------------- conv helper (in-kernel) ------------------------------

def _conv3x3_bn_relu(plane, w_ref, scale, shift, oh, ow, cin, cout):
    """3x3 'SAME' conv + folded BN(eval) + ReLU.

    plane: (oh+2, ow+2, cin) f32 array with a zero halo already in place.
    w_ref: (3, 3*cin, cout) bf16 ref laid out as (dy, dx*cin + ci, co).
    Returns a lane-dense (oh*ow, cout) f32 array.
    """
    padw = ow + 2
    fold_taps = (cin % 128 == 0)  # lane-aligned concat is free only for aligned cin
    acc = None
    for dy in range(3):
        slab = plane[dy:dy + oh]                 # (oh, ow+2, cin) leading-dim slice
        w_dy = w_ref[dy]                         # (3*cin, cout) bf16
        if fold_taps:
            # K-folded path: one MXU dot per dy with K = 3*cin.  dx shifts come from
            # pltpu.roll (XLU slot) instead of sublane-misaligned slice copies.
            parts = []
            for dx in range(3):
                sh = slab if dx == 0 else pltpu.roll(slab, padw - dx, axis=1)
                parts.append(sh[:, :ow, :])
            patch = jnp.concatenate(parts, axis=-1)            # (oh, ow, 3*cin)
            patch = patch.reshape(oh * ow, 3 * cin).astype(jnp.bfloat16)
            term = jnp.dot(patch, w_dy, preferred_element_type=jnp.float32)
            acc = term if acc is None else acc + term
        else:
            # Small / unaligned channel fallback: per-tap dots (K = cin).
            for dx in range(3):
                patch = slab[:, dx:dx + ow, :].reshape(oh * ow, cin)
                patch = patch.astype(jnp.bfloat16)
                term = jnp.dot(patch, w_dy[dx * cin:(dx + 1) * cin, :],
                               preferred_element_type=jnp.float32)
                acc = term if acc is None else acc + term
    return jnp.maximum(acc * scale + shift, 0.0)


# ----------------------------- fused kernel body ------------------------------------

def _segnet_up3_kernel(x_ref, idx_ref,
                       w1_ref, s1_ref, b1_ref,
                       w2_ref, s2_ref, b2_ref,
                       w3_ref, s3_ref, b3_ref,
                       o_ref,
                       buf_a, buf_b, buf_c):
    # x_ref/idx_ref: (H, W, Cin) pooled tile + pooling indices.
    # buf_a: (H+1, 2, OW+2, Cin)  unpooled plane, padded row r stored at (r//2, r%2).
    # buf_b/buf_c: (OH+2, OW+2, Cout) intermediate activations, zero halo.
    # o_ref: (OH*OW, Cout) lane-dense output block.
    H, W, Cin = x_ref.shape
    OH, OW = 2 * H, 2 * W
    Cout = o_ref.shape[-1]
    f32 = jnp.float32

    # ---- keep the 1-pixel zero halo valid (cheap; interiors are fully rewritten) ----
    row_a = jnp.zeros((1, 1, OW + 2, Cin), f32)
    buf_a[0:1, 0:1, :, :] = row_a                 # padded row 0
    buf_a[H:H + 1, 1:2, :, :] = row_a             # padded row OH+1
    col_a = jnp.zeros((H + 1, 2, 1, Cin), f32)
    buf_a[:, :, 0:1, :] = col_a                   # padded col 0
    buf_a[:, :, OW + 1:OW + 2, :] = col_a         # padded col OW+1
    row_bc = jnp.zeros((1, OW + 2, Cout), f32)
    col_bc = jnp.zeros((OH + 2, 1, Cout), f32)
    for buf in (buf_b, buf_c):
        buf[0:1, :, :] = row_bc
        buf[OH + 1:OH + 2, :, :] = row_bc
        buf[:, 0:1, :] = col_bc
        buf[:, OW + 1:OW + 2, :] = col_bc

    # ---- MaxUnpool2d(2,2): compare-and-select against the pooling indices ----------
    # MaxPool2d(2,2) index semantics: each index points inside its own 2x2 window,
    # flattened per-channel over the (OH, OW) output plane.
    x = x_ref[...]
    idx = idx_ref[...]
    row = lax.broadcasted_iota(jnp.int32, (H, W, Cin), 0)
    col = lax.broadcasted_iota(jnp.int32, (H, W, Cin), 1)
    base = 2 * row * OW + 2 * col                 # flat index of each window's (0,0)
    zeros = jnp.zeros_like(x)
    q00 = jnp.where(idx == base, x, zeros)
    q01 = jnp.where(idx == base + 1, x, zeros)
    q10 = jnp.where(idx == base + OW, x, zeros)
    q11 = jnp.where(idx == base + OW + 1, x, zeros)

    # W-interleave each row parity; the H interleave is free via buf_a's (pair, parity)
    # leading-dim split (padded row 2p+q lives at buf_a[p, q]).
    top = jnp.stack([q00, q01], axis=2).reshape(H, OW, Cin)   # unpooled rows 2i
    bot = jnp.stack([q10, q11], axis=2).reshape(H, OW, Cin)   # unpooled rows 2i+1
    buf_a[0:H, 1:2, 1:OW + 1, :] = top.reshape(H, 1, OW, Cin)   # padded rows 1,3,..
    buf_a[1:H + 1, 0:1, 1:OW + 1, :] = bot.reshape(H, 1, OW, Cin)  # padded rows 2,4,..
    # TODO(synk): with sublane-strided stores the four quadrants could be written
    #             directly (no W-interleave relayout at all).

    s1 = s1_ref[...]; b1 = b1_ref[...]
    s2 = s2_ref[...]; b2 = b2_ref[...]
    s3 = s3_ref[...]; b3 = b3_ref[...]

    # ---- conv1 + BN + ReLU -> padded VMEM scratch -----------------------------------
    plane_a = buf_a[...].reshape(OH + 2, OW + 2, Cin)   # free leading-dim merge
    y1 = _conv3x3_bn_relu(plane_a, w1_ref, s1, b1, OH, OW, Cin, Cout)
    buf_b[1:OH + 1, 1:OW + 1, :] = y1.reshape(OH, OW, Cout)

    # ---- conv2 + BN + ReLU -> padded VMEM scratch -----------------------------------
    y2 = _conv3x3_bn_relu(buf_b[...], w2_ref, s2, b2, OH, OW, Cout, Cout)
    buf_c[1:OH + 1, 1:OW + 1, :] = y2.reshape(OH, OW, Cout)

    # ---- conv3 + BN + ReLU -> lane-dense 2-D output block ---------------------------
    y3 = _conv3x3_bn_relu(buf_c[...], w3_ref, s3, b3, OH, OW, Cout, Cout)
    o_ref[...] = y3.astype(o_ref.dtype)


# --------------------------------- wrapper -------------------------------------------

def _vmem_bytes_estimate(H, W, cin, cout):
    """Rough per-core VMEM footprint (scratch + pipelined blocks + held temporaries)."""
    OH, OW = 2 * H, 2 * W
    f32, bf16 = 4, 2
    scratch = ((H + 1) * 2 * (OW + 2) * cin + 2 * (OH + 2) * (OW + 2) * cout) * f32
    io = 2 * (2 * H * W * cin * f32) + 2 * (OH * OW * cout * f32)   # double-buffered
    weights = 2 * (9 * cin * cout + 2 * 9 * cout * cout) * bf16 + 12 * cout * f32
    temps = 8 * OH * OW * max(3 * cin, 3 * cout, cout) * f32        # patches / acc / y_i
    return scratch + io + weights + temps


def segnet_up3_fused(x_nhwc, idx_nhwc, params):
    """x_nhwc: (N,H,W,Cin) pooled activations; idx_nhwc: (N,H,W,Cin) int32 indices."""
    (w1, s1, b1), (w2, s2, b2), (w3, s3, b3) = params
    N, H, W, Cin = x_nhwc.shape
    Cout = w1.shape[-1]
    OH, OW = 2 * H, 2 * W

    # Weights: (3, 3, ci, co) -> (3, 3*ci, co), bf16 for the MXU (f32 accumulation).
    def prep_w(w):
        kh, kw, ci, co = w.shape
        return w.reshape(kh, kw * ci, co).astype(jnp.bfloat16)

    w1p, w2p, w3p = prep_w(w1), prep_w(w2), prep_w(w3)

    def const_spec(shape):
        # TODO(synk): on v7x add pipeline_mode=pl.Buffered(1) here (constant index map
        #             => double buffering only doubles the weight VMEM footprint).
        return pl.BlockSpec(shape, lambda n: (0,) * len(shape))

    vmem_limit = int(min(max(int(1.5 * _vmem_bytes_estimate(H, W, Cin, Cout))
                             + (8 << 20), 32 << 20), 96 << 20))

    out2d = pl.pallas_call(
        _segnet_up3_kernel,
        out_shape=jax.ShapeDtypeStruct((N, OH * OW, Cout), x_nhwc.dtype),
        grid=(N,),
        in_specs=[
            pl.BlockSpec((None, H, W, Cin), lambda n: (n, 0, 0, 0)),
            pl.BlockSpec((None, H, W, Cin), lambda n: (n, 0, 0, 0)),
            const_spec((3, 3 * Cin, Cout)), const_spec((1, Cout)), const_spec((1, Cout)),
            const_spec((3, 3 * Cout, Cout)), const_spec((1, Cout)), const_spec((1, Cout)),
            const_spec((3, 3 * Cout, Cout)), const_spec((1, Cout)), const_spec((1, Cout)),
        ],
        out_specs=pl.BlockSpec((None, OH * OW, Cout), lambda n: (n, 0, 0)),
        scratch_shapes=[
            pltpu.VMEM((H + 1, 2, OW + 2, Cin), jnp.float32),
            pltpu.VMEM((OH + 2, OW + 2, Cout), jnp.float32),
            pltpu.VMEM((OH + 2, OW + 2, Cout), jnp.float32),
        ],
        compiler_params=pltpu.CompilerParams(
            dimension_semantics=("parallel",),
            vmem_limit_bytes=vmem_limit,
        ),
    )(x_nhwc, idx_nhwc,
      w1p, s1.reshape(1, Cout), b1.reshape(1, Cout),
      w2p, s2.reshape(1, Cout), b2.reshape(1, Cout),
      w3p, s3.reshape(1, Cout), b3.reshape(1, Cout))
    # Contiguous (free) reshape of the lane-dense 2-D block back to NHWC.
    return out2d.reshape(N, OH, OW, Cout)


# ------------------------------ parameter init ----------------------------------------

def init_segnet_up3_params(key, in_channels, out_channels):
    """3 conv layers; fold conv bias + eval-mode BatchNorm into per-channel scale/shift."""
    params = []
    cin = in_channels
    eps = 1e-5
    for _ in range(3):
        key, k1, k2, k3, k4 = jax.random.split(key, 5)
        fan_in = cin * 3 * 3
        bound = 1.0 / (fan_in ** 0.5)
        # weight layout: (kh, kw, Cin, Cout)  (PyTorch is (Cout, Cin, kh, kw))
        w = jax.random.uniform(k1, (3, 3, cin, out_channels), jnp.float32, -bound, bound)
        b = jax.random.uniform(k2, (out_channels,), jnp.float32, -bound, bound)
        gamma = jnp.ones((out_channels,), jnp.float32)
        beta = jnp.zeros((out_channels,), jnp.float32)
        running_mean = 0.1 * jax.random.normal(k3, (out_channels,), jnp.float32)
        running_var = 1.0 + 0.1 * jax.random.uniform(k4, (out_channels,), jnp.float32)
        scale = gamma / jnp.sqrt(running_var + eps)
        shift = (b - running_mean) * scale + beta
        params.append((w, scale, shift))
        cin = out_channels
    return params


# ---------------------------------- forward -------------------------------------------

@jax.jit
def segnet_up3_forward(inputs_nchw, indices_nchw,
                       w1, s1, b1, w2, s2, b2, w3, s3, b3):
    x = jnp.transpose(inputs_nchw, (0, 2, 3, 1))                  # NCHW -> NHWC
    idx = jnp.transpose(indices_nchw, (0, 2, 3, 1)).astype(jnp.int32)
    y = segnet_up3_fused(x, idx, ((w1, s1, b1), (w2, s2, b2), (w3, s3, b3)))
    return jnp.transpose(y, (0, 3, 1, 2))                         # NHWC -> NCHW


# ------------------------------ pure-JAX reference -------------------------------------

def _reference_forward(inputs_nchw, indices_nchw, params):
    x = jnp.transpose(inputs_nchw, (0, 2, 3, 1))
    idx = jnp.transpose(indices_nchw, (0, 2, 3, 1)).astype(jnp.int32)
    N, H, W, C = x.shape
    OH, OW = 2 * H, 2 * W
    flat = jnp.zeros((N, OH * OW, C), x.dtype)
    n_ix = jnp.arange(N)[:, None, None, None]
    c_ix = jnp.arange(C)[None, None, None, :]
    flat = flat.at[n_ix, idx, c_ix].set(x)
    y = flat.reshape(N, OH, OW, C)
    for w, s, b in params:
        y = jax.lax.conv_general_dilated(
            y, w, window_strides=(1, 1), padding="SAME",
            dimension_numbers=("NHWC", "HWIO", "NHWC"),
            precision=jax.lax.Precision.HIGHEST)
        y = jnp.maximum(y * s.reshape(1, 1, 1, -1) + b.reshape(1, 1, 1, -1), 0.0)
    return jnp.transpose(y, (0, 3, 1, 2))


# ------------------------------------ main ---------------------------------------------

if __name__ == "__main__":
    N, C_IN, C_OUT = 2, 4, 4
    H, W = 8, 8                     # pooled spatial size; unpooled output is 16x16

    key = jax.random.PRNGKey(0)
    key, kx, kdy, kdx, kp = jax.random.split(key, 5)

    inputs = jax.random.normal(kx, (N, C_IN, H, W), jnp.float32)

    # Valid MaxPool2d(2,2) indices: each index points inside its own 2x2 window of the
    # (2H, 2W) unpooled output, flattened per-channel over the output plane.
    dy = jax.random.randint(kdy, (N, C_IN, H, W), 0, 2)
    dx = jax.random.randint(kdx, (N, C_IN, H, W), 0, 2)
    row = jnp.arange(H).reshape(1, 1, H, 1)
    col = jnp.arange(W).reshape(1, 1, 1, W)
    indices = ((2 * row + dy) * (2 * W) + (2 * col + dx)).astype(jnp.int32)

    params = init_segnet_up3_params(kp, C_IN, C_OUT)
    flat_params = [p for layer in params for p in layer]

    out = segnet_up3_forward(inputs, indices, *flat_params)
    out = jax.block_until_ready(out)

    assert out.shape == (N, C_OUT, 2 * H, 2 * W), out.shape
    assert bool(jnp.all(jnp.isfinite(out)))

    ref = _reference_forward(inputs, indices, params)
    max_err = float(jnp.max(jnp.abs(out - ref)))
    assert max_err < 5e-2, f"max abs error vs reference: {max_err}"

    print("KERNEL_OK")
</pallas_src>

<mosaic_0001>
module attributes {stable_mosaic.version = 11 : i64} {
  func.func @_segnet_up3_kernel(%arg0: i32, %arg1: memref<1x8x8x4xf32, #tpu.memory_space<vmem>>, %arg2: memref<1x8x8x4xi32, #tpu.memory_space<vmem>>, %arg3: memref<3x12x4xbf16, #tpu.memory_space<vmem>>, %arg4: memref<1x4xf32, #tpu.memory_space<vmem>>, %arg5: memref<1x4xf32, #tpu.memory_space<vmem>>, %arg6: memref<3x12x4xbf16, #tpu.memory_space<vmem>>, %arg7: memref<1x4xf32, #tpu.memory_space<vmem>>, %arg8: memref<1x4xf32, #tpu.memory_space<vmem>>, %arg9: memref<3x12x4xbf16, #tpu.memory_space<vmem>>, %arg10: memref<1x4xf32, #tpu.memory_space<vmem>>, %arg11: memref<1x4xf32, #tpu.memory_space<vmem>>, %arg12: memref<1x256x4xf32, #tpu.memory_space<vmem>>, %arg13: memref<9x2x18x4xf32, #tpu.memory_space<vmem>>, %arg14: memref<18x18x4xf32, #tpu.memory_space<vmem>>, %arg15: memref<18x18x4xf32, #tpu.memory_space<vmem>>) attributes {dimension_semantics = [#tpu.dimension_semantics<parallel>], iteration_bounds = array<i64: 2>, scalar_prefetch = 0 : i64, scratch_operands = 3 : i64, tpu.core_type = #tpu.core_type<tc>, window_params = [{transform_indices = @transform_0, window_bounds = array<i64: 1, 8, 8, 4>}, {transform_indices = @transform_1, window_bounds = array<i64: 1, 8, 8, 4>}, {pipeline_mode = #tpu.pipeline_mode<synchronous>, transform_indices = @transform_2, window_bounds = array<i64: 3, 12, 4>}, {pipeline_mode = #tpu.pipeline_mode<synchronous>, transform_indices = @transform_3, window_bounds = array<i64: 1, 4>}, {pipeline_mode = #tpu.pipeline_mode<synchronous>, transform_indices = @transform_4, window_bounds = array<i64: 1, 4>}, {pipeline_mode = #tpu.pipeline_mode<synchronous>, transform_indices = @transform_5, window_bounds = array<i64: 3, 12, 4>}, {pipeline_mode = #tpu.pipeline_mode<synchronous>, transform_indices = @transform_6, window_bounds = array<i64: 1, 4>}, {pipeline_mode = #tpu.pipeline_mode<synchronous>, transform_indices = @transform_7, window_bounds = array<i64: 1, 4>}, {pipeline_mode = #tpu.pipeline_mode<synchronous>, transform_indices = @transform_8, window_bounds = array<i64: 3, 12, 4>}, {pipeline_mode = #tpu.pipeline_mode<synchronous>, transform_indices = @transform_9, window_bounds = array<i64: 1, 4>}, {pipeline_mode = #tpu.pipeline_mode<synchronous>, transform_indices = @transform_10, window_bounds = array<i64: 1, 4>}, {transform_indices = @transform_11, window_bounds = array<i64: 1, 256, 4>}]} {
    %cst = arith.constant 0.000000e+00 : f32
    %0 = vector.broadcast %cst : f32 to vector<1x1x18x4xf32>
    %c0 = arith.constant 0 : index
    %c0_0 = arith.constant 0 : index
    %c0_1 = arith.constant 0 : index
    %c0_2 = arith.constant 0 : index
    %1 = vector.load %arg13[%c0, %c0_0, %c0_1, %c0_2] : memref<9x2x18x4xf32, #tpu.memory_space<vmem>>, vector<1x1x18x4xf32>
    tpu.vector_store %arg13[%c0, %c0_0, %c0_1, %c0_2], %0 {strides = array<i32>} : memref<9x2x18x4xf32, #tpu.memory_space<vmem>>, vector<1x1x18x4xf32>,
    %c8 = arith.constant 8 : index
    %c1 = arith.constant 1 : index
    %c0_3 = arith.constant 0 : index
    %c0_4 = arith.constant 0 : index
    %2 = vector.load %arg13[%c8, %c1, %c0_3, %c0_4] : memref<9x2x18x4xf32, #tpu.memory_space<vmem>>, vector<1x1x18x4xf32>
    tpu.vector_store %arg13[%c8, %c1, %c0_3, %c0_4], %0 {strides = array<i32>} : memref<9x2x18x4xf32, #tpu.memory_space<vmem>>, vector<1x1x18x4xf32>,
    %cst_5 = arith.constant 0.000000e+00 : f32
    %3 = vector.broadcast %cst_5 : f32 to vector<9x2x1x4xf32>
    %c0_6 = arith.constant 0 : index
    %c0_7 = arith.constant 0 : index
    %c0_8 = arith.constant 0 : index
    %c0_9 = arith.constant 0 : index
    %4 = vector.load %arg13[%c0_6, %c0_7, %c0_8, %c0_9] : memref<9x2x18x4xf32, #tpu.memory_space<vmem>>, vector<9x2x1x4xf32>
    tpu.vector_store %arg13[%c0_6, %c0_7, %c0_8, %c0_9], %3 {strides = array<i32>} : memref<9x2x18x4xf32, #tpu.memory_space<vmem>>, vector<9x2x1x4xf32>,
    %c0_10 = arith.constant 0 : index
    %c0_11 = arith.constant 0 : index
    %c17 = arith.constant 17 : index
    %c0_12 = arith.constant 0 : index
    %5 = vector.load %arg13[%c0_10, %c0_11, %c17, %c0_12] : memref<9x2x18x4xf32, #tpu.memory_space<vmem>>, vector<9x2x1x4xf32>
    tpu.vector_store %arg13[%c0_10, %c0_11, %c17, %c0_12], %3 {strides = array<i32>} : memref<9x2x18x4xf32, #tpu.memory_space<vmem>>, vector<9x2x1x4xf32>,
    %cst_13 = arith.constant 0.000000e+00 : f32
    %6 = vector.broadcast %cst_13 : f32 to vector<1x18x4xf32>
    %cst_14 = arith.constant 0.000000e+00 : f32
    %7 = vector.broadcast %cst_14 : f32 to vector<18x1x4xf32>
    %c0_15 = arith.constant 0 : index
    %c0_16 = arith.constant 0 : index
    %c0_17 = arith.constant 0 : index
    %8 = vector.load %arg14[%c0_15, %c0_16, %c0_17] : memref<18x18x4xf32, #tpu.memory_space<vmem>>, vector<1x18x4xf32>
    tpu.vector_store %arg14[%c0_15, %c0_16, %c0_17], %6 {strides = array<i32>} : memref<18x18x4xf32, #tpu.memory_space<vmem>>, vector<1x18x4xf32>,
    %c17_18 = arith.constant 17 : index
    %c0_19 = arith.constant 0 : index
    %c0_20 = arith.constant 0 : index
    %9 = vector.load %arg14[%c17_18, %c0_19, %c0_20] : memref<18x18x4xf32, #tpu.memory_space<vmem>>, vector<1x18x4xf32>
    tpu.vector_store %arg14[%c17_18, %c0_19, %c0_20], %6 {strides = array<i32>} : memref<18x18x4xf32, #tpu.memory_space<vmem>>, vector<1x18x4xf32>,
    %c0_21 = arith.constant 0 : index
    %c0_22 = arith.constant 0 : index
    %c0_23 = arith.constant 0 : index
    %10 = vector.load %arg14[%c0_21, %c0_22, %c0_23] : memref<18x18x4xf32, #tpu.memory_space<vmem>>, vector<18x1x4xf32>
    tpu.vector_store %arg14[%c0_21, %c0_22, %c0_23], %7 {strides = array<i32>} : memref<18x18x4xf32, #tpu.memory_space<vmem>>, vector<18x1x4xf32>,
    %c0_24 = arith.constant 0 : index
    %c17_25 = arith.constant 17 : index
    %c0_26 = arith.constant 0 : index
    %11 = vector.load %arg14[%c0_24, %c17_25, %c0_26] : memref<18x18x4xf32, #tpu.memory_space<vmem>>, vector<18x1x4xf32>
    tpu.vector_store %arg14[%c0_24, %c17_25, %c0_26], %7 {strides = array<i32>} : memref<18x18x4xf32, #tpu.memory_space<vmem>>, vector<18x1x4xf32>,
    %c0_27 = arith.constant 0 : index
    %c0_28 = arith.constant 0 : index
    %c0_29 = arith.constant 0 : index
    %12 = vector.load %arg15[%c0_27, %c0_28, %c0_29] : memref<18x18x4xf32, #tpu.memory_space<vmem>>, vector<1x18x4xf32>
    tpu.vector_store %arg15[%c0_27, %c0_28, %c0_29], %6 {strides = array<i32>} : memref<18x18x4xf32, #tpu.memory_space<vmem>>, vector<1x18x4xf32>,
    %c17_30 = arith.constant 17 : index
    %c0_31 = arith.constant 0 : index
    %c0_32 = arith.constant 0 : index
    %13 = vector.load %arg15[%c17_30, %c0_31, %c0_32] : memref<18x18x4xf32, #tpu.memory_space<vmem>>, vector<1x18x4xf32>
    tpu.vector_store %arg15[%c17_30, %c0_31, %c0_32], %6 {strides = array<i32>} : memref<18x18x4xf32, #tpu.memory_space<vmem>>, vector<1x18x4xf32>,
    %c0_33 = arith.constant 0 : index
    %c0_34 = arith.constant 0 : index
    %c0_35 = arith.constant 0 : index
    %14 = vector.load %arg15[%c0_33, %c0_34, %c0_35] : memref<18x18x4xf32, #tpu.memory_space<vmem>>, vector<18x1x4xf32>
    tpu.vector_store %arg15[%c0_33, %c0_34, %c0_35], %7 {strides = array<i32>} : memref<18x18x4xf32, #tpu.memory_space<vmem>>, vector<18x1x4xf32>,
    %c0_36 = arith.constant 0 : index
    %c17_37 = arith.constant 17 : index
    %c0_38 = arith.constant 0 : index
    %15 = vector.load %arg15[%c0_36, %c17_37, %c0_38] : memref<18x18x4xf32, #tpu.memory_space<vmem>>, vector<18x1x4xf32>
    tpu.vector_store %arg15[%c0_36, %c17_37, %c0_38], %7 {strides = array<i32>} : memref<18x18x4xf32, #tpu.memory_space<vmem>>, vector<18x1x4xf32>,
    %c0_39 = arith.constant 0 : index
    %c0_40 = arith.constant 0 : index
    %c0_41 = arith.constant 0 : index
    %c0_42 = arith.constant 0 : index
    %16 = vector.load %arg1[%c0_39, %c0_40, %c0_41, %c0_42] : memref<1x8x8x4xf32, #tpu.memory_space<vmem>>, vector<1x8x8x4xf32>
    %17 = vector.shape_cast %16 : vector<1x8x8x4xf32> to vector<8x8x4xf32>
    %c0_43 = arith.constant 0 : index
    %c0_44 = arith.constant 0 : index
    %c0_45 = arith.constant 0 : index
    %c0_46 = arith.constant 0 : index
    %18 = vector.load %arg2[%c0_43, %c0_44, %c0_45, %c0_46] : memref<1x8x8x4xi32, #tpu.memory_space<vmem>>, vector<1x8x8x4xi32>
    %19 = vector.shape_cast %18 : vector<1x8x8x4xi32> to vector<8x8x4xi32>
    %20 = tpu.iota {dimensions = array<i32: 0>} : vector<8x8x4xi32>
    %21 = tpu.iota {dimensions = array<i32: 1>} : vector<8x8x4xi32>
    %c2_i32 = arith.constant 2 : i32
    %22 = vector.broadcast %c2_i32 : i32 to vector<8x8x4xi32>
    %23 = arith.muli %22, %20 : vector<8x8x4xi32>
    %c16_i32 = arith.constant 16 : i32
    %24 = vector.broadcast %c16_i32 : i32 to vector<8x8x4xi32>
    %25 = arith.muli %23, %24 : vector<8x8x4xi32>
    %c2_i32_47 = arith.constant 2 : i32
    %26 = vector.broadcast %c2_i32_47 : i32 to vector<8x8x4xi32>
    %27 = arith.muli %26, %21 : vector<8x8x4xi32>
    %28 = arith.addi %25, %27 : vector<8x8x4xi32>
    %cst_48 = arith.constant 0.000000e+00 : f32
    %29 = vector.broadcast %cst_48 : f32 to vector<8x8x4xf32>
    %30 = arith.cmpi eq, %19, %28 : vector<8x8x4xi32>
    %31 = arith.select %30, %17, %29 : vector<8x8x4xi1>, vector<8x8x4xf32>
    %c1_i32 = arith.constant 1 : i32
    %32 = vector.broadcast %c1_i32 : i32 to vector<8x8x4xi32>
    %33 = arith.addi %28, %32 : vector<8x8x4xi32>
    %34 = arith.cmpi eq, %19, %33 : vector<8x8x4xi32>
    %35 = arith.select %34, %17, %29 : vector<8x8x4xi1>, vector<8x8x4xf32>
    %c16_i32_49 = arith.constant 16 : i32
    %36 = vector.broadcast %c16_i32_49 : i32 to vector<8x8x4xi32>
    %37 = arith.addi %28, %36 : vector<8x8x4xi32>
    %38 = arith.cmpi eq, %19, %37 : vector<8x8x4xi32>
    %39 = arith.select %38, %17, %29 : vector<8x8x4xi1>, vector<8x8x4xf32>
    %c16_i32_50 = arith.constant 16 : i32
    %40 = vector.broadcast %c16_i32_50 : i32 to vector<8x8x4xi32>
    %41 = arith.addi %28, %40 : vector<8x8x4xi32>
    %c1_i32_51 = arith.constant 1 : i32
    %42 = vector.broadcast %c1_i32_51 : i32 to vector<8x8x4xi32>
    %43 = arith.addi %41, %42 : vector<8x8x4xi32>
    %44 = arith.cmpi eq, %19, %43 : vector<8x8x4xi32>
    %45 = arith.select %44, %17, %29 : vector<8x8x4xi1>, vector<8x8x4xf32>
    %46 = vector.shape_cast %31 : vector<8x8x4xf32> to vector<8x8x1x4xf32>
    %47 = vector.shape_cast %35 : vector<8x8x4xf32> to vector<8x8x1x4xf32>
    %48 = tpu.concatenate %46, %47 in 2 : vector<8x8x1x4xf32>, vector<8x8x1x4xf32> -> vector<8x8x2x4xf32>
    %49 = vector.shape_cast %48 : vector<8x8x2x4xf32> to vector<8x16x4xf32>
    %50 = vector.shape_cast %39 : vector<8x8x4xf32> to vector<8x8x1x4xf32>
    %51 = vector.shape_cast %45 : vector<8x8x4xf32> to vector<8x8x1x4xf32>
    %52 = tpu.concatenate %50, %51 in 2 : vector<8x8x1x4xf32>, vector<8x8x1x4xf32> -> vector<8x8x2x4xf32>
    %53 = vector.shape_cast %52 : vector<8x8x2x4xf32> to vector<8x16x4xf32>
    %54 = vector.shape_cast %49 : vector<8x16x4xf32> to vector<8x1x16x4xf32>
    %c0_52 = arith.constant 0 : index
    %c1_53 = arith.constant 1 : index
    %c1_54 = arith.constant 1 : index
    %c0_55 = arith.constant 0 : index
    %55 = vector.load %arg13[%c0_52, %c1_53, %c1_54, %c0_55] : memref<9x2x18x4xf32, #tpu.memory_space<vmem>>, vector<8x1x16x4xf32>
    tpu.vector_store %arg13[%c0_52, %c1_53, %c1_54, %c0_55], %54 {strides = array<i32>} : memref<9x2x18x4xf32, #tpu.memory_space<vmem>>, vector<8x1x16x4xf32>,
    %56 = vector.shape_cast %53 : vector<8x16x4xf32> to vector<8x1x16x4xf32>
    %c1_56 = arith.constant 1 : index
    %c0_57 = arith.constant 0 : index
    %c1_58 = arith.constant 1 : index
    %c0_59 = arith.constant 0 : index
    %57 = vector.load %arg13[%c1_56, %c0_57, %c1_58, %c0_59] : memref<9x2x18x4xf32, #tpu.memory_space<vmem>>, vector<8x1x16x4xf32>
    tpu.vector_store %arg13[%c1_56, %c0_57, %c1_58, %c0_59], %56 {strides = array<i32>} : memref<9x2x18x4xf32, #tpu.memory_space<vmem>>, vector<8x1x16x4xf32>,
    %c0_60 = arith.constant 0 : index
    %c0_61 = arith.constant 0 : index
    %58 = vector.load %arg4[%c0_60, %c0_61] : memref<1x4xf32, #tpu.memory_space<vmem>>, vector<1x4xf32>
    %c0_62 = arith.constant 0 : index
    %c0_63 = arith.constant 0 : index
    %59 = vector.load %arg5[%c0_62, %c0_63] : memref<1x4xf32, #tpu.memory_space<vmem>>, vector<1x4xf32>
    %c0_64 = arith.constant 0 : index
    %c0_65 = arith.constant 0 : index
    %60 = vector.load %arg7[%c0_64, %c0_65] : memref<1x4xf32, #tpu.memory_space<vmem>>, vector<1x4xf32>
    %c0_66 = arith.constant 0 : index
    %c0_67 = arith.constant 0 : index
    %61 = vector.load %arg8[%c0_66, %c0_67] : memref<1x4xf32, #tpu.memory_space<vmem>>, vector<1x4xf32>
    %c0_68 = arith.constant 0 : index
    %c0_69 = arith.constant 0 : index
    %62 = vector.load %arg10[%c0_68, %c0_69] : memref<1x4xf32, #tpu.memory_space<vmem>>, vector<1x4xf32>
    %c0_70 = arith.constant 0 : index
    %c0_71 = arith.constant 0 : index
    %63 = vector.load %arg11[%c0_70, %c0_71] : memref<1x4xf32, #tpu.memory_space<vmem>>, vector<1x4xf32>
    %c0_72 = arith.constant 0 : index
    %c0_73 = arith.constant 0 : index
    %c0_74 = arith.constant 0 : index
    %c0_75 = arith.constant 0 : index
    %64 = vector.load %arg13[%c0_72, %c0_73, %c0_74, %c0_75] : memref<9x2x18x4xf32, #tpu.memory_space<vmem>>, vector<9x2x18x4xf32>
    %65 = vector.shape_cast %64 : vector<9x2x18x4xf32> to vector<18x18x4xf32>
    %66 = vector.extract_strided_slice %65 {offsets = [0, 0, 0], sizes = [16, 18, 4], strides = [1, 1, 1]} : vector<18x18x4xf32> to vector<16x18x4xf32>
    %c0_76 = arith.constant 0 : index
    %c0_77 = arith.constant 0 : index
    %c0_78 = arith.constant 0 : index
    %67 = vector.load %arg3[%c0_76, %c0_77, %c0_78] : memref<3x12x4xbf16, #tpu.memory_space<vmem>>, vector<1x12x4xbf16>
    %68 = vector.shape_cast %67 : vector<1x12x4xbf16> to vector<12x4xbf16>
    %69 = vector.extract_strided_slice %66 {offsets = [0, 0, 0], sizes = [16, 16, 4], strides = [1, 1, 1]} : vector<16x18x4xf32> to vector<16x16x4xf32>
    %70 = vector.shape_cast %69 : vector<16x16x4xf32> to vector<256x4xf32>
    %71 = arith.truncf %70 : vector<256x4xf32> to vector<256x4xbf16>
    %72 = vector.extract_strided_slice %68 {offsets = [0, 0], sizes = [4, 4], strides = [1, 1]} : vector<12x4xbf16> to vector<4x4xbf16>
    %cst_79 = arith.constant dense<0.000000e+00> : vector<256x4xf32>
    %73 = tpu.matmul %71, %72, %cst_79 {dimension_numbers = #tpu.dot_dimension_numbers<[1], [0], [0], [1], [0, 0, 1, 1], [], []>} : vector<256x4xbf16>, vector<4x4xbf16>, vector<256x4xf32> -> vector<256x4xf32>
    %74 = vector.extract_strided_slice %66 {offsets = [0, 1, 0], sizes = [16, 16, 4], strides = [1, 1, 1]} : vector<16x18x4xf32> to vector<16x16x4xf32>
    %75 = vector.shape_cast %74 : vector<16x16x4xf32> to vector<256x4xf32>
    %76 = arith.truncf %75 : vector<256x4xf32> to vector<256x4xbf16>
    %77 = vector.extract_strided_slice %68 {offsets = [4, 0], sizes = [4, 4], strides = [1, 1]} : vector<12x4xbf16> to vector<4x4xbf16>
    %cst_80 = arith.constant dense<0.000000e+00> : vector<256x4xf32>
    %78 = tpu.matmul %76, %77, %cst_80 {dimension_numbers = #tpu.dot_dimension_numbers<[1], [0], [0], [1], [0, 0, 1, 1], [], []>} : vector<256x4xbf16>, vector<4x4xbf16>, vector<256x4xf32> -> vector<256x4xf32>
    %79 = arith.addf %73, %78 : vector<256x4xf32>
    %80 = vector.extract_strided_slice %66 {offsets = [0, 2, 0], sizes = [16, 16, 4], strides = [1, 1, 1]} : vector<16x18x4xf32> to vector<16x16x4xf32>
    %81 = vector.shape_cast %80 : vector<16x16x4xf32> to vector<256x4xf32>
    %82 = arith.truncf %81 : vector<256x4xf32> to vector<256x4xbf16>
    %83 = vector.extract_strided_slice %68 {offsets = [8, 0], sizes = [4, 4], strides = [1, 1]} : vector<12x4xbf16> to vector<4x4xbf16>
    %cst_81 = arith.constant dense<0.000000e+00> : vector<256x4xf32>
    %84 = tpu.matmul %82, %83, %cst_81 {dimension_numbers = #tpu.dot_dimension_numbers<[1], [0], [0], [1], [0, 0, 1, 1], [], []>} : vector<256x4xbf16>, vector<4x4xbf16>, vector<256x4xf32> -> vector<256x4xf32>
    %85 = arith.addf %79, %84 : vector<256x4xf32>
    %86 = vector.extract_strided_slice %65 {offsets = [1, 0, 0], sizes = [16, 18, 4], strides = [1, 1, 1]} : vector<18x18x4xf32> to vector<16x18x4xf32>
    %c1_82 = arith.constant 1 : index
    %c0_83 = arith.constant 0 : index
    %c0_84 = arith.constant 0 : index
    %87 = vector.load %arg3[%c1_82, %c0_83, %c0_84] : memref<3x12x4xbf16, #tpu.memory_space<vmem>>, vector<1x12x4xbf16>
    %88 = vector.shape_cast %87 : vector<1x12x4xbf16> to vector<12x4xbf16>
    %89 = vector.extract_strided_slice %86 {offsets = [0, 0, 0], sizes = [16, 16, 4], strides = [1, 1, 1]} : vector<16x18x4xf32> to vector<16x16x4xf32>
    %90 = vector.shape_cast %89 : vector<16x16x4xf32> to vector<256x4xf32>
    %91 = arith.truncf %90 : vector<256x4xf32> to vector<256x4xbf16>
    %92 = vector.extract_strided_slice %88 {offsets = [0, 0], sizes = [4, 4], strides = [1, 1]} : vector<12x4xbf16> to vector<4x4xbf16>
    %cst_85 = arith.constant dense<0.000000e+00> : vector<256x4xf32>
    %93 = tpu.matmul %91, %92, %cst_85 {dimension_numbers = #tpu.dot_dimension_numbers<[1], [0], [0], [1], [0, 0, 1, 1], [], []>} : vector<256x4xbf16>, vector<4x4xbf16>, vector<256x4xf32> -> vector<256x4xf32>
    %94 = arith.addf %85, %93 : vector<256x4xf32>
    %95 = vector.extract_strided_slice %86 {offsets = [0, 1, 0], sizes = [16, 16, 4], strides = [1, 1, 1]} : vector<16x18x4xf32> to vector<16x16x4xf32>
    %96 = vector.shape_cast %95 : vector<16x16x4xf32> to vector<256x4xf32>
    %97 = arith.truncf %96 : vector<256x4xf32> to vector<256x4xbf16>
    %98 = vector.extract_strided_slice %88 {offsets = [4, 0], sizes = [4, 4], strides = [1, 1]} : vector<12x4xbf16> to vector<4x4xbf16>
    %cst_86 = arith.constant dense<0.000000e+00> : vector<256x4xf32>
    %99 = tpu.matmul %97, %98, %cst_86 {dimension_numbers = #tpu.dot_dimension_numbers<[1], [0], [0], [1], [0, 0, 1, 1], [], []>} : vector<256x4xbf16>, vector<4x4xbf16>, vector<256x4xf32> -> vector<256x4xf32>
    %100 = arith.addf %94, %99 : vector<256x4xf32>
    %101 = vector.extract_strided_slice %86 {offsets = [0, 2, 0], sizes = [16, 16, 4], strides = [1, 1, 1]} : vector<16x18x4xf32> to vector<16x16x4xf32>
    %102 = vector.shape_cast %101 : vector<16x16x4xf32> to vector<256x4xf32>
    %103 = arith.truncf %102 : vector<256x4xf32> to vector<256x4xbf16>
    %104 = vector.extract_strided_slice %88 {offsets = [8, 0], sizes = [4, 4], strides = [1, 1]} : vector<12x4xbf16> to vector<4x4xbf16>
    %cst_87 = arith.constant dense<0.000000e+00> : vector<256x4xf32>
    %105 = tpu.matmul %103, %104, %cst_87 {dimension_numbers = #tpu.dot_dimension_numbers<[1], [0], [0], [1], [0, 0, 1, 1], [], []>} : vector<256x4xbf16>, vector<4x4xbf16>, vector<256x4xf32> -> vector<256x4xf32>
    %106 = arith.addf %100, %105 : vector<256x4xf32>
    %107 = vector.extract_strided_slice %65 {offsets = [2, 0, 0], sizes = [16, 18, 4], strides = [1, 1, 1]} : vector<18x18x4xf32> to vector<16x18x4xf32>
    %c2 = arith.constant 2 : index
    %c0_88 = arith.constant 0 : index
    %c0_89 = arith.constant 0 : index
    %108 = vector.load %arg3[%c2, %c0_88, %c0_89] : memref<3x12x4xbf16, #tpu.memory_space<vmem>>, vector<1x12x4xbf16>
    %109 = vector.shape_cast %108 : vector<1x12x4xbf16> to vector<12x4xbf16>
    %110 = vector.extract_strided_slice %107 {offsets = [0, 0, 0], sizes = [16, 16, 4], strides = [1, 1, 1]} : vector<16x18x4xf32> to vector<16x16x4xf32>
    %111 = vector.shape_cast %110 : vector<16x16x4xf32> to vector<256x4xf32>
    %112 = arith.truncf %111 : vector<256x4xf32> to vector<256x4xbf16>
    %113 = vector.extract_strided_slice %109 {offsets = [0, 0], sizes = [4, 4], strides = [1, 1]} : vector<12x4xbf16> to vector<4x4xbf16>
    %cst_90 = arith.constant dense<0.000000e+00> : vector<256x4xf32>
    %114 = tpu.matmul %112, %113, %cst_90 {dimension_numbers = #tpu.dot_dimension_numbers<[1], [0], [0], [1], [0, 0, 1, 1], [], []>} : vector<256x4xbf16>, vector<4x4xbf16>, vector<256x4xf32> -> vector<256x4xf32>
    %115 = arith.addf %106, %114 : vector<256x4xf32>
    %116 = vector.extract_strided_slice %107 {offsets = [0, 1, 0], sizes = [16, 16, 4], strides = [1, 1, 1]} : vector<16x18x4xf32> to vector<16x16x4xf32>
    %117 = vector.shape_cast %116 : vector<16x16x4xf32> to vector<256x4xf32>
    %118 = arith.truncf %117 : vector<256x4xf32> to vector<256x4xbf16>
    %119 = vector.extract_strided_slice %109 {offsets = [4, 0], sizes = [4, 4], strides = [1, 1]} : vector<12x4xbf16> to vector<4x4xbf16>
    %cst_91 = arith.constant dense<0.000000e+00> : vector<256x4xf32>
    %120 = tpu.matmul %118, %119, %cst_91 {dimension_numbers = #tpu.dot_dimension_numbers<[1], [0], [0], [1], [0, 0, 1, 1], [], []>} : vector<256x4xbf16>, vector<4x4xbf16>, vector<256x4xf32> -> vector<256x4xf32>
    %121 = arith.addf %115, %120 : vector<256x4xf32>
    %122 = vector.extract_strided_slice %107 {offsets = [0, 2, 0], sizes = [16, 16, 4], strides = [1, 1, 1]} : vector<16x18x4xf32> to vector<16x16x4xf32>
    %123 = vector.shape_cast %122 : vector<16x16x4xf32> to vector<256x4xf32>
    %124 = arith.truncf %123 : vector<256x4xf32> to vector<256x4xbf16>
    %125 = vector.extract_strided_slice %109 {offsets = [8, 0], sizes = [4, 4], strides = [1, 1]} : vector<12x4xbf16> to vector<4x4xbf16>
    %cst_92 = arith.constant dense<0.000000e+00> : vector<256x4xf32>
    %126 = tpu.matmul %124, %125, %cst_92 {dimension_numbers = #tpu.dot_dimension_numbers<[1], [0], [0], [1], [0, 0, 1, 1], [], []>} : vector<256x4xbf16>, vector<4x4xbf16>, vector<256x4xf32> -> vector<256x4xf32>
    %127 = arith.addf %121, %126 : vector<256x4xf32>
    %128 = vector.broadcast %58 : vector<1x4xf32> to vector<256x4xf32>
    %129 = arith.mulf %127, %128 : vector<256x4xf32>
    %130 = vector.broadcast %59 : vector<1x4xf32> to vector<256x4xf32>
    %131 = arith.addf %129, %130 : vector<256x4xf32>
    %cst_93 = arith.constant 0.000000e+00 : f32
    %132 = vector.broadcast %cst_93 : f32 to vector<256x4xf32>
    %133 = arith.maximumf %131, %132 : vector<256x4xf32>
    %134 = vector.shape_cast %133 : vector<256x4xf32> to vector<16x16x4xf32>
    %c1_94 = arith.constant 1 : index
    %c1_95 = arith.constant 1 : index
    %c0_96 = arith.constant 0 : index
    %135 = vector.load %arg14[%c1_94, %c1_95, %c0_96] : memref<18x18x4xf32, #tpu.memory_space<vmem>>, vector<16x16x4xf32>
    tpu.vector_store %arg14[%c1_94, %c1_95, %c0_96], %134 {strides = array<i32>} : memref<18x18x4xf32, #tpu.memory_space<vmem>>, vector<16x16x4xf32>,
    %c0_97 = arith.constant 0 : index
    %c0_98 = arith.constant 0 : index
    %c0_99 = arith.constant 0 : index
    %136 = vector.load %arg14[%c0_97, %c0_98, %c0_99] : memref<18x18x4xf32, #tpu.memory_space<vmem>>, vector<18x18x4xf32>
    %137 = vector.extract_strided_slice %136 {offsets = [0, 0, 0], sizes = [16, 18, 4], strides = [1, 1, 1]} : vector<18x18x4xf32> to vector<16x18x4xf32>
    %c0_100 = arith.constant 0 : index
    %c0_101 = arith.constant 0 : index
    %c0_102 = arith.constant 0 : index
    %138 = vector.load %arg6[%c0_100, %c0_101, %c0_102] : memref<3x12x4xbf16, #tpu.memory_space<vmem>>, vector<1x12x4xbf16>
    %139 = vector.shape_cast %138 : vector<1x12x4xbf16> to vector<12x4xbf16>
    %140 = vector.extract_strided_slice %137 {offsets = [0, 0, 0], sizes = [16, 16, 4], strides = [1, 1, 1]} : vector<16x18x4xf32> to vector<16x16x4xf32>
    %141 = vector.shape_cast %140 : vector<16x16x4xf32> to vector<256x4xf32>
    %142 = arith.truncf %141 : vector<256x4xf32> to vector<256x4xbf16>
    %143 = vector.extract_strided_slice %139 {offsets = [0, 0], sizes = [4, 4], strides = [1, 1]} : vector<12x4xbf16> to vector<4x4xbf16>
    %cst_103 = arith.constant dense<0.000000e+00> : vector<256x4xf32>
    %144 = tpu.matmul %142, %143, %cst_103 {dimension_numbers = #tpu.dot_dimension_numbers<[1], [0], [0], [1], [0, 0, 1, 1], [], []>} : vector<256x4xbf16>, vector<4x4xbf16>, vector<256x4xf32> -> vector<256x4xf32>
    %145 = vector.extract_strided_slice %137 {offsets = [0, 1, 0], sizes = [16, 16, 4], strides = [1, 1, 1]} : vector<16x18x4xf32> to vector<16x16x4xf32>
    %146 = vector.shape_cast %145 : vector<16x16x4xf32> to vector<256x4xf32>
    %147 = arith.truncf %146 : vector<256x4xf32> to vector<256x4xbf16>
    %148 = vector.extract_strided_slice %139 {offsets = [4, 0], sizes = [4, 4], strides = [1, 1]} : vector<12x4xbf16> to vector<4x4xbf16>
    %cst_104 = arith.constant dense<0.000000e+00> : vector<256x4xf32>
    %149 = tpu.matmul %147, %148, %cst_104 {dimension_numbers = #tpu.dot_dimension_numbers<[1], [0], [0], [1], [0, 0, 1, 1], [], []>} : vector<256x4xbf16>, vector<4x4xbf16>, vector<256x4xf32> -> vector<256x4xf32>
    %150 = arith.addf %144, %149 : vector<256x4xf32>
    %151 = vector.extract_strided_slice %137 {offsets = [0, 2, 0], sizes = [16, 16, 4], strides = [1, 1, 1]} : vector<16x18x4xf32> to vector<16x16x4xf32>
    %152 = vector.shape_cast %151 : vector<16x16x4xf32> to vector<256x4xf32>
    %153 = arith.truncf %152 : vector<256x4xf32> to vector<256x4xbf16>
    %154 = vector.extract_strided_slice %139 {offsets = [8, 0], sizes = [4, 4], strides = [1, 1]} : vector<12x4xbf16> to vector<4x4xbf16>
    %cst_105 = arith.constant dense<0.000000e+00> : vector<256x4xf32>
    %155 = tpu.matmul %153, %154, %cst_105 {dimension_numbers = #tpu.dot_dimension_numbers<[1], [0], [0], [1], [0, 0, 1, 1], [], []>} : vector<256x4xbf16>, vector<4x4xbf16>, vector<256x4xf32> -> vector<256x4xf32>
    %156 = arith.addf %150, %155 : vector<256x4xf32>
    %157 = vector.extract_strided_slice %136 {offsets = [1, 0, 0], sizes = [16, 18, 4], strides = [1, 1, 1]} : vector<18x18x4xf32> to vector<16x18x4xf32>
    %c1_106 = arith.constant 1 : index
    %c0_107 = arith.constant 0 : index
    %c0_108 = arith.constant 0 : index
    %158 = vector.load %arg6[%c1_106, %c0_107, %c0_108] : memref<3x12x4xbf16, #tpu.memory_space<vmem>>, vector<1x12x4xbf16>
    %159 = vector.shape_cast %158 : vector<1x12x4xbf16> to vector<12x4xbf16>
    %160 = vector.extract_strided_slice %157 {offsets = [0, 0, 0], sizes = [16, 16, 4], strides = [1, 1, 1]} : vector<16x18x4xf32> to vector<16x16x4xf32>
    %161 = vector.shape_cast %160 : vector<16x16x4xf32> to vector<256x4xf32>
    %162 = arith.truncf %161 : vector<256x4xf32> to vector<256x4xbf16>
    %163 = vector.extract_strided_slice %159 {offsets = [0, 0], sizes = [4, 4], strides = [1, 1]} : vector<12x4xbf16> to vector<4x4xbf16>
    %cst_109 = arith.constant dense<0.000000e+00> : vector<256x4xf32>
    %164 = tpu.matmul %162, %163, %cst_109 {dimension_numbers = #tpu.dot_dimension_numbers<[1], [0], [0], [1], [0, 0, 1, 1], [], []>} : vector<256x4xbf16>, vector<4x4xbf16>, vector<256x4xf32> -> vector<256x4xf32>
    %165 = arith.addf %156, %164 : vector<256x4xf32>
    %166 = vector.extract_strided_slice %157 {offsets = [0, 1, 0], sizes = [16, 16, 4], strides = [1, 1, 1]} : vector<16x18x4xf32> to vector<16x16x4xf32>
    %167 = vector.shape_cast %166 : vector<16x16x4xf32> to vector<256x4xf32>
    %168 = arith.truncf %167 : vector<256x4xf32> to vector<256x4xbf16>
    %169 = vector.extract_strided_slice %159 {offsets = [4, 0], sizes = [4, 4], strides = [1, 1]} : vector<12x4xbf16> to vector<4x4xbf16>
    %cst_110 = arith.constant dense<0.000000e+00> : vector<256x4xf32>
    %170 = tpu.matmul %168, %169, %cst_110 {dimension_numbers = #tpu.dot_dimension_numbers<[1], [0], [0], [1], [0, 0, 1, 1], [], []>} : vector<256x4xbf16>, vector<4x4xbf16>, vector<256x4xf32> -> vector<256x4xf32>
    %171 = arith.addf %165, %170 : vector<256x4xf32>
    %172 = vector.extract_strided_slice %157 {offsets = [0, 2, 0], sizes = [16, 16, 4], strides = [1, 1, 1]} : vector<16x18x4xf32> to vector<16x16x4xf32>
    %173 = vector.shape_cast %172 : vector<16x16x4xf32> to vector<256x4xf32>
    %174 = arith.truncf %173 : vector<256x4xf32> to vector<256x4xbf16>
    %175 = vector.extract_strided_slice %159 {offsets = [8, 0], sizes = [4, 4], strides = [1, 1]} : vector<12x4xbf16> to vector<4x4xbf16>
    %cst_111 = arith.constant dense<0.000000e+00> : vector<256x4xf32>
    %176 = tpu.matmul %174, %175, %cst_111 {dimension_numbers = #tpu.dot_dimension_numbers<[1], [0], [0], [1], [0, 0, 1, 1], [], []>} : vector<256x4xbf16>, vector<4x4xbf16>, vector<256x4xf32> -> vector<256x4xf32>
    %177 = arith.addf %171, %176 : vector<256x4xf32>
    %178 = vector.extract_strided_slice %136 {offsets = [2, 0, 0], sizes = [16, 18, 4], strides = [1, 1, 1]} : vector<18x18x4xf32> to vector<16x18x4xf32>
    %c2_112 = arith.constant 2 : index
    %c0_113 = arith.constant 0 : index
    %c0_114 = arith.constant 0 : index
    %179 = vector.load %arg6[%c2_112, %c0_113, %c0_114] : memref<3x12x4xbf16, #tpu.memory_space<vmem>>, vector<1x12x4xbf16>
    %180 = vector.shape_cast %179 : vector<1x12x4xbf16> to vector<12x4xbf16>
    %181 = vector.extract_strided_slice %178 {offsets = [0, 0, 0], sizes = [16, 16, 4], strides = [1, 1, 1]} : vector<16x18x4xf32> to vector<16x16x4xf32>
    %182 = vector.shape_cast %181 : vector<16x16x4xf32> to vector<256x4xf32>
    %183 = arith.truncf %182 : vector<256x4xf32> to vector<256x4xbf16>
    %184 = vector.extract_strided_slice %180 {offsets = [0, 0], sizes = [4, 4], strides = [1, 1]} : vector<12x4xbf16> to vector<4x4xbf16>
    %cst_115 = arith.constant dense<0.000000e+00> : vector<256x4xf32>
    %185 = tpu.matmul %183, %184, %cst_115 {dimension_numbers = #tpu.dot_dimension_numbers<[1], [0], [0], [1], [0, 0, 1, 1], [], []>} : vector<256x4xbf16>, vector<4x4xbf16>, vector<256x4xf32> -> vector<256x4xf32>
    %186 = arith.addf %177, %185 : vector<256x4xf32>
    %187 = vector.extract_strided_slice %178 {offsets = [0, 1, 0], sizes = [16, 16, 4], strides = [1, 1, 1]} : vector<16x18x4xf32> to vector<16x16x4xf32>
    %188 = vector.shape_cast %187 : vector<16x16x4xf32> to vector<256x4xf32>
    %189 = arith.truncf %188 : vector<256x4xf32> to vector<256x4xbf16>
    %190 = vector.extract_strided_slice %180 {offsets = [4, 0], sizes = [4, 4], strides = [1, 1]} : vector<12x4xbf16> to vector<4x4xbf16>
    %cst_116 = arith.constant dense<0.000000e+00> : vector<256x4xf32>
    %191 = tpu.matmul %189, %190, %cst_116 {dimension_numbers = #tpu.dot_dimension_numbers<[1], [0], [0], [1], [0, 0, 1, 1], [], []>} : vector<256x4xbf16>, vector<4x4xbf16>, vector<256x4xf32> -> vector<256x4xf32>
    %192 = arith.addf %186, %191 : vector<256x4xf32>
    %193 = vector.extract_strided_slice %178 {offsets = [0, 2, 0], sizes = [16, 16, 4], strides = [1, 1, 1]} : vector<16x18x4xf32> to vector<16x16x4xf32>
    %194 = vector.shape_cast %193 : vector<16x16x4xf32> to vector<256x4xf32>
    %195 = arith.truncf %194 : vector<256x4xf32> to vector<256x4xbf16>
    %196 = vector.extract_strided_slice %180 {offsets = [8, 0], sizes = [4, 4], strides = [1, 1]} : vector<12x4xbf16> to vector<4x4xbf16>
    %cst_117 = arith.constant dense<0.000000e+00> : vector<256x4xf32>
    %197 = tpu.matmul %195, %196, %cst_117 {dimension_numbers = #tpu.dot_dimension_numbers<[1], [0], [0], [1], [0, 0, 1, 1], [], []>} : vector<256x4xbf16>, vector<4x4xbf16>, vector<256x4xf32> -> vector<256x4xf32>
    %198 = arith.addf %192, %197 : vector<256x4xf32>
    %199 = vector.broadcast %60 : vector<1x4xf32> to vector<256x4xf32>
    %200 = arith.mulf %198, %199 : vector<256x4xf32>
    %201 = vector.broadcast %61 : vector<1x4xf32> to vector<256x4xf32>
    %202 = arith.addf %200, %201 : vector<256x4xf32>
    %cst_118 = arith.constant 0.000000e+00 : f32
    %203 = vector.broadcast %cst_118 : f32 to vector<256x4xf32>
    %204 = arith.maximumf %202, %203 : vector<256x4xf32>
    %205 = vector.shape_cast %204 : vector<256x4xf32> to vector<16x16x4xf32>
    %c1_119 = arith.constant 1 : index
    %c1_120 = arith.constant 1 : index
    %c0_121 = arith.constant 0 : index
    %206 = vector.load %arg15[%c1_119, %c1_120, %c0_121] : memref<18x18x4xf32, #tpu.memory_space<vmem>>, vector<16x16x4xf32>
    tpu.vector_store %arg15[%c1_119, %c1_120, %c0_121], %205 {strides = array<i32>} : memref<18x18x4xf32, #tpu.memory_space<vmem>>, vector<16x16x4xf32>,
    %c0_122 = arith.constant 0 : index
    %c0_123 = arith.constant 0 : index
    %c0_124 = arith.constant 0 : index
    %207 = vector.load %arg15[%c0_122, %c0_123, %c0_124] : memref<18x18x4xf32, #tpu.memory_space<vmem>>, vector<18x18x4xf32>
    %208 = vector.extract_strided_slice %207 {offsets = [0, 0, 0], sizes = [16, 18, 4], strides = [1, 1, 1]} : vector<18x18x4xf32> to vector<16x18x4xf32>
    %c0_125 = arith.constant 0 : index
    %c0_126 = arith.constant 0 : index
    %c0_127 = arith.constant 0 : index
    %209 = vector.load %arg9[%c0_125, %c0_126, %c0_127] : memref<3x12x4xbf16, #tpu.memory_space<vmem>>, vector<1x12x4xbf16>
    %210 = vector.shape_cast %209 : vector<1x12x4xbf16> to vector<12x4xbf16>
    %211 = vector.extract_strided_slice %208 {offsets = [0, 0, 0], sizes = [16, 16, 4], strides = [1, 1, 1]} : vector<16x18x4xf32> to vector<16x16x4xf32>
    %212 = vector.shape_cast %211 : vector<16x16x4xf32> to vector<256x4xf32>
    %213 = arith.truncf %212 : vector<256x4xf32> to vector<256x4xbf16>
    %214 = vector.extract_strided_slice %210 {offsets = [0, 0], sizes = [4, 4], strides = [1, 1]} : vector<12x4xbf16> to vector<4x4xbf16>
    %cst_128 = arith.constant dense<0.000000e+00> : vector<256x4xf32>
    %215 = tpu.matmul %213, %214, %cst_128 {dimension_numbers = #tpu.dot_dimension_numbers<[1], [0], [0], [1], [0, 0, 1, 1], [], []>} : vector<256x4xbf16>, vector<4x4xbf16>, vector<256x4xf32> -> vector<256x4xf32>
    %216 = vector.extract_strided_slice %208 {offsets = [0, 1, 0], sizes = [16, 16, 4], strides = [1, 1, 1]} : vector<16x18x4xf32> to vector<16x16x4xf32>
    %217 = vector.shape_cast %216 : vector<16x16x4xf32> to vector<256x4xf32>
    %218 = arith.truncf %217 : vector<256x4xf32> to vector<256x4xbf16>
    %219 = vector.extract_strided_slice %210 {offsets = [4, 0], sizes = [4, 4], strides = [1, 1]} : vector<12x4xbf16> to vector<4x4xbf16>
    %cst_129 = arith.constant dense<0.000000e+00> : vector<256x4xf32>
    %220 = tpu.matmul %218, %219, %cst_129 {dimension_numbers = #tpu.dot_dimension_numbers<[1], [0], [0], [1], [0, 0, 1, 1], [], []>} : vector<256x4xbf16>, vector<4x4xbf16>, vector<256x4xf32> -> vector<256x4xf32>
    %221 = arith.addf %215, %220 : vector<256x4xf32>
    %222 = vector.extract_strided_slice %208 {offsets = [0, 2, 0], sizes = [16, 16, 4], strides = [1, 1, 1]} : vector<16x18x4xf32> to vector<16x16x4xf32>
    %223 = vector.shape_cast %222 : vector<16x16x4xf32> to vector<256x4xf32>
    %224 = arith.truncf %223 : vector<256x4xf32> to vector<256x4xbf16>
    %225 = vector.extract_strided_slice %210 {offsets = [8, 0], sizes = [4, 4], strides = [1, 1]} : vector<12x4xbf16> to vector<4x4xbf16>
    %cst_130 = arith.constant dense<0.000000e+00> : vector<256x4xf32>
    %226 = tpu.matmul %224, %225, %cst_130 {dimension_numbers = #tpu.dot_dimension_numbers<[1], [0], [0], [1], [0, 0, 1, 1], [], []>} : vector<256x4xbf16>, vector<4x4xbf16>, vector<256x4xf32> -> vector<256x4xf32>
    %227 = arith.addf %221, %226 : vector<256x4xf32>
    %228 = vector.extract_strided_slice %207 {offsets = [1, 0, 0], sizes = [16, 18, 4], strides = [1, 1, 1]} : vector<18x18x4xf32> to vector<16x18x4xf32>
    %c1_131 = arith.constant 1 : index
    %c0_132 = arith.constant 0 : index
    %c0_133 = arith.constant 0 : index
    %229 = vector.load %arg9[%c1_131, %c0_132, %c0_133] : memref<3x12x4xbf16, #tpu.memory_space<vmem>>, vector<1x12x4xbf16>
    %230 = vector.shape_cast %229 : vector<1x12x4xbf16> to vector<12x4xbf16>
    %231 = vector.extract_strided_slice %228 {offsets = [0, 0, 0], sizes = [16, 16, 4], strides = [1, 1, 1]} : vector<16x18x4xf32> to vector<16x16x4xf32>
    %232 = vector.shape_cast %231 : vector<16x16x4xf32> to vector<256x4xf32>
    %233 = arith.truncf %232 : vector<256x4xf32> to vector<256x4xbf16>
    %234 = vector.extract_strided_slice %230 {offsets = [0, 0], sizes = [4, 4], strides = [1, 1]} : vector<12x4xbf16> to vector<4x4xbf16>
    %cst_134 = arith.constant dense<0.000000e+00> : vector<256x4xf32>
    %235 = tpu.matmul %233, %234, %cst_134 {dimension_numbers = #tpu.dot_dimension_numbers<[1], [0], [0], [1], [0, 0, 1, 1], [], []>} : vector<256x4xbf16>, vector<4x4xbf16>, vector<256x4xf32> -> vector<256x4xf32>
    %236 = arith.addf %227, %235 : vector<256x4xf32>
    %237 = vector.extract_strided_slice %228 {offsets = [0, 1, 0], sizes = [16, 16, 4], strides = [1, 1, 1]} : vector<16x18x4xf32> to vector<16x16x4xf32>
    %238 = vector.shape_cast %237 : vector<16x16x4xf32> to vector<256x4xf32>
    %239 = arith.truncf %238 : vector<256x4xf32> to vector<256x4xbf16>
    %240 = vector.extract_strided_slice %230 {offsets = [4, 0], sizes = [4, 4], strides = [1, 1]} : vector<12x4xbf16> to vector<4x4xbf16>
    %cst_135 = arith.constant dense<0.000000e+00> : vector<256x4xf32>
    %241 = tpu.matmul %239, %240, %cst_135 {dimension_numbers = #tpu.dot_dimension_numbers<[1], [0], [0], [1], [0, 0, 1, 1], [], []>} : vector<256x4xbf16>, vector<4x4xbf16>, vector<256x4xf32> -> vector<256x4xf32>
    %242 = arith.addf %236, %241 : vector<256x4xf32>
    %243 = vector.extract_strided_slice %228 {offsets = [0, 2, 0], sizes = [16, 16, 4], strides = [1, 1, 1]} : vector<16x18x4xf32> to vector<16x16x4xf32>
    %244 = vector.shape_cast %243 : vector<16x16x4xf32> to vector<256x4xf32>
    %245 = arith.truncf %244 : vector<256x4xf32> to vector<256x4xbf16>
    %246 = vector.extract_strided_slice %230 {offsets = [8, 0], sizes = [4, 4], strides = [1, 1]} : vector<12x4xbf16> to vector<4x4xbf16>
    %cst_136 = arith.constant dense<0.000000e+00> : vector<256x4xf32>
    %247 = tpu.matmul %245, %246, %cst_136 {dimension_numbers = #tpu.dot_dimension_numbers<[1], [0], [0], [1], [0, 0, 1, 1], [], []>} : vector<256x4xbf16>, vector<4x4xbf16>, vector<256x4xf32> -> vector<256x4xf32>
    %248 = arith.addf %242, %247 : vector<256x4xf32>
    %249 = vector.extract_strided_slice %207 {offsets = [2, 0, 0], sizes = [16, 18, 4], strides = [1, 1, 1]} : vector<18x18x4xf32> to vector<16x18x4xf32>
    %c2_137 = arith.constant 2 : index
    %c0_138 = arith.constant 0 : index
    %c0_139 = arith.constant 0 : index
    %250 = vector.load %arg9[%c2_137, %c0_138, %c0_139] : memref<3x12x4xbf16, #tpu.memory_space<vmem>>, vector<1x12x4xbf16>
    %251 = vector.shape_cast %250 : vector<1x12x4xbf16> to vector<12x4xbf16>
    %252 = vector.extract_strided_slice %249 {offsets = [0, 0, 0], sizes = [16, 16, 4], strides = [1, 1, 1]} : vector<16x18x4xf32> to vector<16x16x4xf32>
    %253 = vector.shape_cast %252 : vector<16x16x4xf32> to vector<256x4xf32>
    %254 = arith.truncf %253 : vector<256x4xf32> to vector<256x4xbf16>
    %255 = vector.extract_strided_slice %251 {offsets = [0, 0], sizes = [4, 4], strides = [1, 1]} : vector<12x4xbf16> to vector<4x4xbf16>
    %cst_140 = arith.constant dense<0.000000e+00> : vector<256x4xf32>
    %256 = tpu.matmul %254, %255, %cst_140 {dimension_numbers = #tpu.dot_dimension_numbers<[1], [0], [0], [1], [0, 0, 1, 1], [], []>} : vector<256x4xbf16>, vector<4x4xbf16>, vector<256x4xf32> -> vector<256x4xf32>
    %257 = arith.addf %248, %256 : vector<256x4xf32>
    %258 = vector.extract_strided_slice %249 {offsets = [0, 1, 0], sizes = [16, 16, 4], strides = [1, 1, 1]} : vector<16x18x4xf32> to vector<16x16x4xf32>
    %259 = vector.shape_cast %258 : vector<16x16x4xf32> to vector<256x4xf32>
    %260 = arith.truncf %259 : vector<256x4xf32> to vector<256x4xbf16>
    %261 = vector.extract_strided_slice %251 {offsets = [4, 0], sizes = [4, 4], strides = [1, 1]} : vector<12x4xbf16> to vector<4x4xbf16>
    %cst_141 = arith.constant dense<0.000000e+00> : vector<256x4xf32>
    %262 = tpu.matmul %260, %261, %cst_141 {dimension_numbers = #tpu.dot_dimension_numbers<[1], [0], [0], [1], [0, 0, 1, 1], [], []>} : vector<256x4xbf16>, vector<4x4xbf16>, vector<256x4xf32> -> vector<256x4xf32>
    %263 = arith.addf %257, %262 : vector<256x4xf32>
    %264 = vector.extract_strided_slice %249 {offsets = [0, 2, 0], sizes = [16, 16, 4], strides = [1, 1, 1]} : vector<16x18x4xf32> to vector<16x16x4xf32>
    %265 = vector.shape_cast %264 : vector<16x16x4xf32> to vector<256x4xf32>
    %266 = arith.truncf %265 : vector<256x4xf32> to vector<256x4xbf16>
    %267 = vector.extract_strided_slice %251 {offsets = [8, 0], sizes = [4, 4], strides = [1, 1]} : vector<12x4xbf16> to vector<4x4xbf16>
    %cst_142 = arith.constant dense<0.000000e+00> : vector<256x4xf32>
    %268 = tpu.matmul %266, %267, %cst_142 {dimension_numbers = #tpu.dot_dimension_numbers<[1], [0], [0], [1], [0, 0, 1, 1], [], []>} : vector<256x4xbf16>, vector<4x4xbf16>, vector<256x4xf32> -> vector<256x4xf32>
    %269 = arith.addf %263, %268 : vector<256x4xf32>
    %270 = vector.broadcast %62 : vector<1x4xf32> to vector<256x4xf32>
    %271 = arith.mulf %269, %270 : vector<256x4xf32>
    %272 = vector.broadcast %63 : vector<1x4xf32> to vector<256x4xf32>
    %273 = arith.addf %271, %272 : vector<256x4xf32>
    %cst_143 = arith.constant 0.000000e+00 : f32
    %274 = vector.broadcast %cst_143 : f32 to vector<256x4xf32>
    %275 = arith.maximumf %273, %274 : vector<256x4xf32>
    %c0_144 = arith.constant 0 : index
    %c0_145 = arith.constant 0 : index
    %c0_146 = arith.constant 0 : index
    %276 = vector.load %arg12[%c0_144, %c0_145, %c0_146] : memref<1x256x4xf32, #tpu.memory_space<vmem>>, vector<1x256x4xf32>
    %277 = vector.shape_cast %276 : vector<1x256x4xf32> to vector<256x4xf32>
    %278 = vector.shape_cast %275 : vector<256x4xf32> to vector<1x256x4xf32>
    tpu.vector_store %arg12[%c0_144, %c0_145, %c0_146], %278 {strides = array<i32>} : memref<1x256x4xf32, #tpu.memory_space<vmem>>, vector<1x256x4xf32>,
    return
  }
  func.func @transform_0(%arg0: i32) -> (i32, i32, i32, i32) {
    %c0_i32 = arith.constant 0 : i32
    %c0_i32_0 = arith.constant 0 : i32
    %c0_i32_1 = arith.constant 0 : i32
    %c0_i32_2 = arith.constant 0 : i32
    return %arg0, %c0_i32, %c0_i32_0, %c0_i32_1 : i32, i32, i32, i32
  }
  func.func @transform_1(%arg0: i32) -> (i32, i32, i32, i32) {
    %c0_i32 = arith.constant 0 : i32
    %c0_i32_0 = arith.constant 0 : i32
    %c0_i32_1 = arith.constant 0 : i32
    %c0_i32_2 = arith.constant 0 : i32
    return %arg0, %c0_i32, %c0_i32_0, %c0_i32_1 : i32, i32, i32, i32
  }
  func.func @transform_2(%arg0: i32) -> (i32, i32, i32) {
    %c0_i32 = arith.constant 0 : i32
    %c0_i32_0 = arith.constant 0 : i32
    %c0_i32_1 = arith.constant 0 : i32
    %c0_i32_2 = arith.constant 0 : i32
    return %c0_i32, %c0_i32_0, %c0_i32_1 : i32, i32, i32
  }
  func.func @transform_3(%arg0: i32) -> (i32, i32) {
    %c0_i32 = arith.constant 0 : i32
    %c0_i32_0 = arith.constant 0 : i32
    %c0_i32_1 = arith.constant 0 : i32
    return %c0_i32, %c0_i32_0 : i32, i32
  }
  func.func @transform_4(%arg0: i32) -> (i32, i32) {
    %c0_i32 = arith.constant 0 : i32
    %c0_i32_0 = arith.constant 0 : i32
    %c0_i32_1 = arith.constant 0 : i32
    return %c0_i32, %c0_i32_0 : i32, i32
  }
  func.func @transform_5(%arg0: i32) -> (i32, i32, i32) {
    %c0_i32 = arith.constant 0 : i32
    %c0_i32_0 = arith.constant 0 : i32
    %c0_i32_1 = arith.constant 0 : i32
    %c0_i32_2 = arith.constant 0 : i32
    return %c0_i32, %c0_i32_0, %c0_i32_1 : i32, i32, i32
  }
  func.func @transform_6(%arg0: i32) -> (i32, i32) {
    %c0_i32 = arith.constant 0 : i32
    %c0_i32_0 = arith.constant 0 : i32
    %c0_i32_1 = arith.constant 0 : i32
    return %c0_i32, %c0_i32_0 : i32, i32
  }
  func.func @transform_7(%arg0: i32) -> (i32, i32) {
    %c0_i32 = arith.constant 0 : i32
    %c0_i32_0 = arith.constant 0 : i32
    %c0_i32_1 = arith.constant 0 : i32
    return %c0_i32, %c0_i32_0 : i32, i32
  }
  func.func @transform_8(%arg0: i32) -> (i32, i32, i32) {
    %c0_i32 = arith.constant 0 : i32
    %c0_i32_0 = arith.constant 0 : i32
    %c0_i32_1 = arith.constant 0 : i32
    %c0_i32_2 = arith.constant 0 : i32
    return %c0_i32, %c0_i32_0, %c0_i32_1 : i32, i32, i32
  }
  func.func @transform_9(%arg0: i32) -> (i32, i32) {
    %c0_i32 = arith.constant 0 : i32
    %c0_i32_0 = arith.constant 0 : i32
    %c0_i32_1 = arith.constant 0 : i32
    return %c0_i32, %c0_i32_0 : i32, i32
  }
  func.func @transform_10(%arg0: i32) -> (i32, i32) {
    %c0_i32 = arith.constant 0 : i32
    %c0_i32_0 = arith.constant 0 : i32
    %c0_i32_1 = arith.constant 0 : i32
    return %c0_i32, %c0_i32_0 : i32, i32
  }
  func.func @transform_11(%arg0: i32) -> (i32, i32, i32) {
    %c0_i32 = arith.constant 0 : i32
    %c0_i32_0 = arith.constant 0 : i32
    %c0_i32_1 = arith.constant 0 : i32
    return %arg0, %c0_i32, %c0_i32_0 : i32, i32, i32
  }
}

</mosaic_0001>

<bundles_post_ra>
// kernel: segnet_up3_forward.1
= control target key start
LH: loop header
LB: loop body
LE: loop exit
PB: predicated region body
PF: predicated region fallthrough
CT: control target
= control target key end

     0   :  { %s14041_s17 = smov 0   ;;  %s17761_s0 = inlined_call_operand.vmem [shape: f32[2,8,8,4], index: 0, kind: input, shape index: {}]   ;;  %s17762_s1 = inlined_call_operand.vmem [shape: s32[2,8,8,4], index: 1, kind: input, shape index: {}]   ;;  %s17763_s2 = inlined_call_operand.vmem [shape: bf16[3,12,4], index: 2, kind: input, shape index: {}]   ;;  %s17764_s3 = inlined_call_operand.vmem [shape: f32[1,4], index: 3, kind: input, shape index: {}]   ;;  %s17765_s4 = inlined_call_operand.vmem [shape: f32[1,4], index: 4, kind: input, shape index: {}]   ;;  %s17766_s5 = inlined_call_operand.vmem [shape: bf16[3,12,4], index: 5, kind: input, shape index: {}]   ;;  %s17767_s6 = inlined_call_operand.vmem [shape: f32[1,4], index: 6, kind: input, shape index: {}]   ;;  %s17768_s7 = inlined_call_operand.vmem [shape: f32[1,4], index: 7, kind: input, shape index: {}]   ;;  %s17769_s8 = inlined_call_operand.vmem [shape: bf16[3,12,4], index: 8, kind: input, shape index: {}]   ;;  %s17770_s9 = inlined_call_operand.vmem [shape: f32[1,4], index: 9, kind: input, shape index: {}]   ;;  %s17771_s10 = inlined_call_operand.vmem [shape: f32[1,4], index: 10, kind: input, shape index: {}]   ;;  %s17772_s11 = inlined_call_operand.vmem [shape: f32[2,256,4], index: 11, kind: output, shape index: {}]  }
   0x1 LB: > { %s11275_s18 = sadd.s32 4294967295, %s13976_s17   ;;  %p11279_p0 = scmp.ge.s32.totalorder %s13976_s17, 1  ;;  %s13976_s17 = sphi %s14041_s17, %s21_s17  }
   0x2   : > { %p347_p1 = scmp.lt.s32.totalorder %s13976_s17, 3 }
   0x4   : > { %p348_p2 = pnand %p11279_p0, %p347_p1 }
   0x6   : > { %351 = sbr.rel (%p348_p2) target bundleno = 2273 (0x8e1), region = 64 }
   0xd   : > { %v14052_v0 = vld [vmem:[%s17763_s2] sm:$0xf]  ;;  %v11335_v1 = vld [vmem:[%s17763_s2 + $0x8] sm:$0xf]  ;;  %vm408_vm0 = vcmask 31744   ;;  %v556_v2 = vlaneseq  ;;  %vm411_vm1 = vcmask 25600  }
   0xe   : > { %v11286_v3 = vcombine.low %v14052_v0, %v14052_v0  ;;  %v11353_v4 = vcombine.low %v11335_v1, %v11335_v1  ;;  %p14061_p3 = scmp.lt.s32.totalorder %s11275_s18, 1  ;;  %vm4196_vm2 = vcmask 1041408   ;;  %v13978_v5 = vmov 0.0   ;;  %v14335_v12 = vld [vmem:[%s17763_s2 + $0xc] sm:$0x3] }
   0xf   : > { %409 = vst.msk [vmem:[#allocation2] sm:$0xff] %vm408_vm0, %v13978_v5  ;;  %410 = vst.msk [vmem:[#allocation2 + $0x8] sm:$0xff] %vm408_vm0, %v13978_v5  ;;  %vm417_vm3 = vcmask 24576   ;;  %v14101_v6 = vshrl.u32 %v556_v2, 7  ;;  %v13979_v9 = vmov 1966171168  }
  0x10   : > { %412 = vst.msk [vmem:[#allocation2 + $0x10] sm:$0x3] %vm411_vm1, %v13978_v5  ;;  %416 = vst.msk [vmem:[#allocation2 + $0x1a8] sm:$0x3] %vm411_vm1, %v13978_v5  ;;  %v14103_v7 = vrot.slane %v11286_v3, 2  ;;  %v14105_v8 = vrot.slane %v11353_v4, 2  ;;  %v664_v10 = vunpack.c.l.s4 %v13979_v9 }
  0x11   : > { %414 = vst.msk [vmem:[#allocation2 + $0x198] sm:$0xff] %vm408_vm0, %v13978_v5  ;;  %415 = vst.msk [vmem:[#allocation2 + $0x1a0] sm:$0xff] %vm408_vm0, %v13978_v5  ;;  %s17978_s18 = smov (!%p14061_p3, %s11275_s18), 1  ;;  %v14330_v11 = vmul.u32 2, %v14101_v6  ;;  %v13980_v16 = vmov 1983009808  }
  0x12   : > { %454 = vst.msk [vmem:[#allocation3] sm:$0xff] %vm408_vm0, %v13978_v5  ;;  %455 = vst.msk [vmem:[#allocation3 + $0x8] sm:$0xff] %vm408_vm0, %v13978_v5  ;;  %13897 = vmatprep.subr.msk.bf16.mxu1 %vm4196_vm2, %v14103_v7  ;;  %v4198_v13 = vsel %vm4196_vm2, %v14103_v7, 0  ;;  %13901 = vmatprep.subr.msk.bf16.mxu0 %vm4196_vm2, %v14105_v8  ;;  %v14345_v14 = vsel %vm4196_vm2, %v14105_v8, 0  ;;  %s11747_s26 = sshll.u32 %s17978_s18, 6  ;;  %v665_v15 = vunpack.c.0.s8 %v664_v10  ;;  %v3218_v17 = vunpack.c.l.s4 %v13980_v16 }
  0x13   : > { %456 = vst.msk [vmem:[#allocation3 + $0x10] sm:$0x3] %vm411_vm1, %v13978_v5  ;;  %460 = vst.msk [vmem:[#allocation3 + $0x1a8] sm:$0x3] %vm411_vm1, %v13978_v5  ;;  %12210 = vmatpush3.bf16.msra.mxu1 %v4198_v13  ;;  %12346 = vmatpush3.bf16.msra.mxu0 %v14345_v14  ;;  %s14352_s29 = scalar_lea.vmem %s17761_s0, %s11747_s26  ;;  %s14357_s13 = scalar_lea.vmem %s17762_s1, %s11747_s26  ;;  %v582_v18 = vadd.s32 1, %v14330_v11  ;;  %v606_v19 = vadd.s32 16, %v14330_v11 }
  0x14   : > { %458 = vst.msk [vmem:[#allocation3 + $0x198] sm:$0xff] %vm408_vm0, %v13978_v5  ;;  %459 = vst.msk [vmem:[#allocation3 + $0x1a0] sm:$0xff] %vm408_vm0, %v13978_v5  ;;  %vm4015_vm4 = vcmask 1046528   ;;  %v540_v20 = vld [vmem:[%s14352_s29] sm:$0xff]  ;;  %v3219_v22 = vunpack.c.0.s8 %v3218_v17  ;;  %13898 = vmatprep.subr.msk.bf16.mxu1 %vm4196_vm2, %v14052_v0  ;;  %13903 = vmatprep.subr.msk.bf16.mxu0 %vm4196_vm2, %v14335_v12  ;;  %v14369_v23 = vsub.s32 %v665_v15, %v14101_v6  ;;  %v14372_v27 = vsub.s32 0, %v14101_v6  ;;  %s11749_s26 = sshll.u32 %s17978_s18, 8 }
  0x15   : > { %497 = vst.msk [vmem:[#allocation4] sm:$0xff] %vm408_vm0, %v13978_v5  ;;  %498 = vst.msk [vmem:[#allocation4 + $0x8] sm:$0xff] %vm408_vm0, %v13978_v5  ;;  %v548_v21 = vld [vmem:[%s14357_s13] sm:$0xff]  ;;  %vm1838_vm8 = vcmask 1040384   ;;  %v630_v28 = vadd.s32 1, %v606_v19  ;;  %v14376_v34 = vadd.s32 32, %v14330_v11 }
  0x16   : > { %499 = vst.msk [vmem:[#allocation4 + $0x10] sm:$0x3] %vm411_vm1, %v13978_v5  ;;  %503 = vst.msk [vmem:[#allocation4 + $0x1a8] sm:$0x3] %vm411_vm1, %v13978_v5  ;;  %vm566_vm5 = vcmp.eq.s32.totalorder %v548_v21, %v14330_v11  ;;  %vm590_vm6 = vcmp.eq.s32.totalorder %v548_v21, %v582_v18  ;;  %vm614_vm7 = vcmp.eq.s32.totalorder %v548_v21, %v606_v19  ;;  %v3896_v24 = vld [vmem:[#allocation2 + $0x8] sm:$0xff] }
  0x17   : > { %501 = vst.msk [vmem:[#allocation4 + $0x198] sm:$0xff] %vm408_vm0, %v13978_v5  ;;  %502 = vst.msk [vmem:[#allocation4 + $0x1a0] sm:$0xff] %vm408_vm0, %v13978_v5  ;;  %v574_v25 = vsel %vm566_vm5, %v540_v20, 0.0  ;;  %v598_v26 = vsel %vm590_vm6, %v540_v20, 0.0  ;;  %v4017_v31 = vrot.slane %v3896_v24, 1  ;;  %v14379_v37 = vsub.s32 %v3219_v22, %v14101_v6 }
  0x18   : > { %17855 = vst [vmem:[#allocation5_spill] sm:$0xff] %v14105_v8  ;;  %418 = vst.msk [vmem:[#allocation2] sm:$0x1] %vm417_vm3, %v13978_v5  ;;  %v662_v32 = vcombine.high %v574_v25, %v574_v25  ;;  %v669_v33 = vrot.slane %v574_v25, %v14369_v23  ;;  %v622_v38 = vsel %vm614_vm7, %v540_v20, 0.0  ;;  %v1126_v42 = vcombine.high %v598_v26, %v598_v26 }
  0x19   : > { %436 = vst.msk [vmem:[#allocation2 + $0x11] sm:$0x1] %vm417_vm3, %v13978_v5  ;;  %419 = vst.msk [vmem:[#allocation2 + $0x18] sm:$0x1] %vm417_vm3, %v13978_v5  ;;  %v1133_v45 = vrot.slane %v598_v26, %v14369_v23  ;;  %vm638_vm9 = vcmp.eq.s32.totalorder %v548_v21, %v630_v28  ;;  %v1911_v1 = vcombine.high %v622_v38, %v622_v38 }
  0x1a   : > { %420 = vst.msk [vmem:[#allocation2 + $0x30] sm:$0x1] %vm417_vm3, %v13978_v5  ;;  %421 = vst.msk [vmem:[#allocation2 + $0x48] sm:$0x1] %vm417_vm3, %v13978_v5  ;;  %v676_v39 = vrot.slane %v662_v32, %v14369_v23  ;;  %v677_v40 = vcombine.high %v669_v33, %v669_v33  ;;  %v685_v41 = vrot.slane %v669_v33, %v14369_v23  ;;  %v646_v57 = vsel %vm638_vm9, %v540_v20, 0.0 }
  0x1b   : > { %422 = vst.msk [vmem:[#allocation2 + $0x60] sm:$0x1] %vm417_vm3, %v13978_v5  ;;  %423 = vst.msk [vmem:[#allocation2 + $0x78] sm:$0x1] %vm417_vm3, %v13978_v5  ;;  %v1140_v51 = vrot.slane %v1126_v42, %v14369_v23  ;;  %v1141_v52 = vcombine.high %v1133_v45, %v1133_v45  ;;  %v1149_v53 = vrot.slane %v1133_v45, %v14369_v23 }
  0x1c   : > { %424 = vst.msk [vmem:[#allocation2 + $0x90] sm:$0x1] %vm417_vm3, %v13978_v5  ;;  %425 = vst.msk [vmem:[#allocation2 + $0xa8] sm:$0x1] %vm417_vm3, %v13978_v5  ;;  %v678_v47 = vcombine.high %v676_v39, %v676_v39  ;;  %v692_v48 = vrot.slane %v676_v39, %v14369_v23  ;;  %v699_v49 = vrot.slane %v677_v40, %v14369_v23 }
  0x1d   : > { %426 = vst.msk [vmem:[#allocation2 + $0xc0] sm:$0x1] %vm417_vm3, %v13978_v5  ;;  %427 = vst.msk [vmem:[#allocation2 + $0xd8] sm:$0x1] %vm417_vm3, %v13978_v5  ;;  %v707_v50 = vcombine.high %v685_v41, %v685_v41  ;;  %v1142_v58 = vcombine.high %v1140_v51, %v1140_v51  ;;  %v1156_v59 = vrot.slane %v1140_v51, %v14369_v23  ;;  %v14434_v51 = vld [vmem:[%s14357_s13 + $0x8] sm:$0xff] }
  0x1e   : > { %428 = vst.msk [vmem:[#allocation2 + $0xf0] sm:$0x1] %vm417_vm3, %v13978_v5  ;;  %429 = vst.msk [vmem:[#allocation2 + $0x108] sm:$0x1] %vm417_vm3, %v13978_v5  ;;  %v706_v54 = vrot.slane %v678_v47, %v14369_v23  ;;  %v708_v55 = vcombine.high %v692_v48, %v692_v48  ;;  %v709_v56 = vcombine.high %v699_v49, %v699_v49 }
  0x1f   : > { %430 = vst.msk [vmem:[#allocation2 + $0x120] sm:$0x1] %vm417_vm3, %v13978_v5  ;;  %431 = vst.msk [vmem:[#allocation2 + $0x138] sm:$0x1] %vm417_vm3, %v13978_v5  ;;  %v3895_v29 = vld [vmem:[#allocation2] sm:$0xff]  ;;  %v1163_v60 = vrot.slane %v1141_v52, %v14369_v23  ;;  %v1171_v61 = vcombine.high %v1149_v53, %v1149_v53  ;;  %v1521_v63 = vrot.slane %v1149_v53, %v14372_v27  ;;  %v14440_v53 = vadd.s32 16, %v14376_v34 }
  0x20   : > { %432 = vst.msk [vmem:[#allocation2 + $0x150] sm:$0x1] %vm417_vm3, %v13978_v5  ;;  %433 = vst.msk [vmem:[#allocation2 + $0x168] sm:$0x1] %vm417_vm3, %v13978_v5  ;;  %v3897_v30 = vld [vmem:[#allocation2 + $0x10] sm:$0x3]  ;;  %v710_v62 = vcombine.high %v706_v54, %v706_v54  ;;  %v1918_v2 = vrot.slane %v622_v38, %v14369_v23  ;;  %v1170_v3 = vrot.slane %v1142_v58, %v14369_v23 }
  0x21   : > { %434 = vst.msk [vmem:[#allocation2 + $0x180] sm:$0x1] %vm417_vm3, %v13978_v5  ;;  %437 = vst.msk [vmem:[#allocation2 + $0x29] sm:$0x1] %vm417_vm3, %v13978_v5  ;;  %v4016_v35 = vrot.slane %v3895_v29, 1  ;;  %v4019_v36 = vrot.slane %v3897_v30, 1  ;;  %v1172_v4 = vcombine.high %v1156_v59, %v1156_v59  ;;  %v1525_v6 = vrot.slane %v1163_v60, %v14372_v27 }
  0x22   : > { %438 = vst.msk [vmem:[#allocation2 + $0x41] sm:$0x1] %vm417_vm3, %v13978_v5  ;;  %439 = vst.msk [vmem:[#allocation2 + $0x59] sm:$0x1] %vm417_vm3, %v13978_v5  ;;  %v1529_v7 = vrot.slane %v1171_v61, %v14372_v27  ;;  %v1537_v9 = vrot.slane %v1156_v59, %v14372_v27  ;;  %v1839_v10 = vsel %vm1838_vm8, %v685_v41, %v1521_v63 }
  0x23   : > { %440 = vst.msk [vmem:[#allocation2 + $0x71] sm:$0x1] %vm417_vm3, %v13978_v5  ;;  %441 = vst.msk [vmem:[#allocation2 + $0x89] sm:$0x1] %vm417_vm3, %v13978_v5  ;;  %v4018_v43 = vsel %vm4015_vm4, %v4016_v35, %v4017_v31  ;;  %v4020_v44 = vsel %vm4015_vm4, %v4017_v31, %v4019_v36  ;;  %v1925_v13 = vrot.slane %v1911_v1, %v14369_v23 }
  0x24   : > { %442 = vst.msk [vmem:[#allocation2 + $0xa1] sm:$0x1] %vm417_vm3, %v13978_v5  ;;  %443 = vst.msk [vmem:[#allocation2 + $0xb9] sm:$0x1] %vm417_vm3, %v13978_v5  ;;  %v4128_v46 = vpack.c.bf16 %v4020_v44, %v4018_v43  ;;  %v1174_v15 = vcombine.high %v1170_v3, %v1170_v3  ;;  %v1541_v17 = vrot.slane %v1170_v3, %v14372_v27  ;;  %v14424_v43 = vsel %vm4196_vm2, %v14052_v0, 0 }
  0x25   : > { %444 = vst.msk [vmem:[#allocation2 + $0xd1] sm:$0x1] %vm417_vm3, %v13978_v5  ;;  %445 = vst.msk [vmem:[#allocation2 + $0xe9] sm:$0x1] %vm417_vm3, %v13978_v5  ;;  %v1545_v18 = vrot.slane %v1172_v4, %v14372_v27  ;;  %v1840_v19 = vsel %vm1838_vm8, %v699_v49, %v1525_v6  ;;  %v1841_v20 = vsel %vm1838_vm8, %v707_v50, %v1529_v7  ;;  %v583_v0 = vadd.s32 1, %v14376_v34 }
  0x26   : > { %446 = vst.msk [vmem:[#allocation2 + $0x101] sm:$0x1] %vm417_vm3, %v13978_v5  ;;  %447 = vst.msk [vmem:[#allocation2 + $0x119] sm:$0x1] %vm417_vm3, %v13978_v5  ;;  %12211 = vmatprep.mubr.msk.bf16.mxu1 %vm408_vm0, %v4128_v46  ;;  %v1843_v21 = vsel %vm1838_vm8, %v692_v48, %v1537_v9  ;;  %v1926_v22 = vcombine.high %v1918_v2, %v1918_v2  ;;  %v1549_v24 = vrot.slane %v1174_v15, %v14372_v27 }
  0x27   : > { %448 = vst.msk [vmem:[#allocation2 + $0x131] sm:$0x1] %vm417_vm3, %v13978_v5  ;;  %449 = vst.msk [vmem:[#allocation2 + $0x149] sm:$0x1] %vm417_vm3, %v13978_v5  ;;  %v1844_v26 = vsel %vm1838_vm8, %v706_v54, %v1541_v17  ;;  %v1845_v28 = vsel %vm1838_vm8, %v708_v55, %v1545_v18  ;;  %v3215_v29 = vcombine.low %v1839_v10, %v1840_v19 }
  0x28   : > { %450 = vst.msk [vmem:[#allocation2 + $0x161] sm:$0x1] %vm417_vm3, %v13978_v5  ;;  %451 = vst.msk [vmem:[#allocation2 + $0x179] sm:$0x1] %vm417_vm3, %v13978_v5  ;;  %v3232_v31 = vcombine.low %v1843_v21, %v1844_v26  ;;  %v1927_v32 = vcombine.high %v1925_v13, %v1925_v13  ;;  %v1846_v33 = vsel %vm1838_vm8, %v710_v62, %v1549_v24 }
  0x29   : > { %452 = vst.msk [vmem:[#allocation2 + $0x191] sm:$0x1] %vm417_vm3, %v13978_v5  ;;  %462 = vst.msk [vmem:[#allocation3 + $0x18] sm:$0x1] %vm417_vm3, %v13978_v5  ;;  %v1934_v35 = vrot.slane %v1918_v2, %v14369_v23  ;;  %v14416_v36 = vrot.slane %v1925_v13, %v14369_v23  ;;  %v1948_v38 = vrot.slane %v1926_v22, %v14369_v23 }
  0x2a   : > { %463 = vst.msk [vmem:[#allocation3 + $0x30] sm:$0x1] %vm417_vm3, %v13978_v5  ;;  %464 = vst.msk [vmem:[#allocation3 + $0x48] sm:$0x1] %vm417_vm3, %v13978_v5  ;;  %v3223_v39 = vrot.slane %v3215_v29, %v14379_v37  ;;  %v3233_v41 = vcombine.low %v1845_v28, %v1846_v33  ;;  %v3240_v42 = vrot.slane %v3232_v31, %v14379_v37 }
  0x2b   : > { %465 = vst.msk [vmem:[#allocation3 + $0x60] sm:$0x1] %vm417_vm3, %v13978_v5  ;;  %466 = vst.msk [vmem:[#allocation3 + $0x78] sm:$0x1] %vm417_vm3, %v13978_v5  ;;  %v14427_v44 = vrot.slane %v1927_v32, %v14369_v23  ;;  %v1956_v45 = vcombine.high %v1934_v35, %v1934_v35  ;;  %v1957_v46 = vcombine.high %v14416_v36, %v14416_v36 }
  0x2c   : > { %467 = vst.msk [vmem:[#allocation3 + $0x90] sm:$0x1] %vm417_vm3, %v13978_v5  ;;  %468 = vst.msk [vmem:[#allocation3 + $0xa8] sm:$0x1] %vm417_vm3, %v13978_v5  ;;  %v3247_v48 = vrot.slane %v3233_v41, %v14379_v37  ;;  %v2375_v49 = vcombine.high %v646_v57, %v646_v57  ;;  %v2382_v50 = vrot.slane %v646_v57, %v14369_v23  ;;  %v14446_v57 = vld [vmem:[%s14352_s29 + $0x8] sm:$0xff] }
  0x2d   : > { %469 = vst.msk [vmem:[#allocation3 + $0xc0] sm:$0x1] %vm417_vm3, %v13978_v5  ;;  %470 = vst.msk [vmem:[#allocation3 + $0xd8] sm:$0x1] %vm417_vm3, %v13978_v5  ;;  %v1958_v52 = vcombine.high %v1948_v38, %v1948_v38  ;;  %vm567_vm10 = vcmp.eq.s32.totalorder %v14434_v51, %v14376_v34  ;;  %v1959_v59 = vcombine.high %v14427_v44, %v14427_v44  ;;  %v14453_v34 = vadd.s32 1, %v14440_v53 }
  0x2e   : > { %471 = vst.msk [vmem:[#allocation3 + $0xf0] sm:$0x1] %vm417_vm3, %v13978_v5  ;;  %472 = vst.msk [vmem:[#allocation3 + $0x108] sm:$0x1] %vm417_vm3, %v13978_v5  ;;  %v3248_v54 = vcombine.low %v3240_v42, %v3247_v48  ;;  %v2389_v55 = vrot.slane %v2375_v49, %v14369_v23  ;;  %v2398_v58 = vrot.slane %v2382_v50, %v14369_v23 }
  0x2f   : > { %473 = vst.msk [vmem:[#allocation3 + $0x120] sm:$0x1] %vm417_vm3, %v13978_v5  ;;  %474 = vst.msk [vmem:[#allocation3 + $0x138] sm:$0x1] %vm417_vm3, %v13978_v5  ;;  %vm591_vm11 = vcmp.eq.s32.totalorder %v14434_v51, %v583_v0  ;;  %vm615_vm12 = vcmp.eq.s32.totalorder %v14434_v51, %v14440_v53  ;;  %vm639_vm13 = vcmp.eq.s32.totalorder %v14434_v51, %v14453_v34 }
  0x30   : > { %475 = vst.msk [vmem:[#allocation3 + $0x150] sm:$0x1] %vm417_vm3, %v13978_v5  ;;  %476 = vst.msk [vmem:[#allocation3 + $0x168] sm:$0x1] %vm417_vm3, %v13978_v5  ;;  %v2391_v61 = vcombine.high %v2389_v55, %v2389_v55  ;;  %v2405_v62 = vrot.slane %v2389_v55, %v14369_v23  ;;  %v2420_v1 = vcombine.high %v2398_v58, %v2398_v58  ;;  %v599_v3 = vsel %vm591_vm11, %v14446_v57, 0.0 }
  0x31   : > { %477 = vst.msk [vmem:[#allocation3 + $0x180] sm:$0x1] %vm417_vm3, %v13978_v5  ;;  %480 = vst.msk [vmem:[#allocation3 + $0x29] sm:$0x1] %vm417_vm3, %v13978_v5  ;;  %v2770_v2 = vrot.slane %v2398_v58, %v14372_v27 }
  0x32   : > { %481 = vst.msk [vmem:[#allocation3 + $0x41] sm:$0x1] %vm417_vm3, %v13978_v5  ;;  %482 = vst.msk [vmem:[#allocation3 + $0x59] sm:$0x1] %vm417_vm3, %v13978_v5  ;;  %v2419_v6 = vrot.slane %v2391_v61, %v14369_v23  ;;  %v2421_v7 = vcombine.high %v2405_v62, %v2405_v62  ;;  %v2778_v13 = vrot.slane %v2420_v1, %v14372_v27 }
  0x33   : > { %483 = vst.msk [vmem:[#allocation3 + $0x71] sm:$0x1] %vm417_vm3, %v13978_v5  ;;  %484 = vst.msk [vmem:[#allocation3 + $0x89] sm:$0x1] %vm417_vm3, %v13978_v5  ;;  %v2786_v15 = vrot.slane %v2405_v62, %v14372_v27  ;;  %v1175_v62 = vcombine.high %v599_v3, %v599_v3 }
  0x34   : > { %485 = vst.msk [vmem:[#allocation3 + $0xa1] sm:$0x1] %vm417_vm3, %v13978_v5  ;;  %486 = vst.msk [vmem:[#allocation3 + $0xb9] sm:$0x1] %vm417_vm3, %v13978_v5  ;;  %v2423_v18 = vcombine.high %v2419_v6, %v2419_v6  ;;  %v2794_v21 = vrot.slane %v2421_v7, %v14372_v27 }
  0x35   : > { %487 = vst.msk [vmem:[#allocation3 + $0xd1] sm:$0x1] %vm417_vm3, %v13978_v5  ;;  %488 = vst.msk [vmem:[#allocation3 + $0xe9] sm:$0x1] %vm417_vm3, %v13978_v5  ;;  %v3091_v26 = vsel %vm1838_vm8, %v14416_v36, %v2786_v15 }
  0x36   : > { %489 = vst.msk [vmem:[#allocation3 + $0x101] sm:$0x1] %vm417_vm3, %v13978_v5  ;;  %490 = vst.msk [vmem:[#allocation3 + $0x119] sm:$0x1] %vm417_vm3, %v13978_v5 }
  0x37   : > { %491 = vst.msk [vmem:[#allocation3 + $0x131] sm:$0x1] %vm417_vm3, %v13978_v5  ;;  %492 = vst.msk [vmem:[#allocation3 + $0x149] sm:$0x1] %vm417_vm3, %v13978_v5 }
  0x38   : > { %493 = vst.msk [vmem:[#allocation3 + $0x161] sm:$0x1] %vm417_vm3, %v13978_v5  ;;  %494 = vst.msk [vmem:[#allocation3 + $0x179] sm:$0x1] %vm417_vm3, %v13978_v5 }
  0x39   : > { %495 = vst.msk [vmem:[#allocation3 + $0x191] sm:$0x1] %vm417_vm3, %v13978_v5  ;;  %505 = vst.msk [vmem:[#allocation4 + $0x18] sm:$0x1] %vm417_vm3, %v13978_v5 }
  0x3a   : > { %506 = vst.msk [vmem:[#allocation4 + $0x30] sm:$0x1] %vm417_vm3, %v13978_v5  ;;  %507 = vst.msk [vmem:[#allocation4 + $0x48] sm:$0x1] %vm417_vm3, %v13978_v5 }
  0x3b   : > { %508 = vst.msk [vmem:[#allocation4 + $0x60] sm:$0x1] %vm417_vm3, %v13978_v5  ;;  %509 = vst.msk [vmem:[#allocation4 + $0x78] sm:$0x1] %vm417_vm3, %v13978_v5 }
  0x3c   : > { %510 = vst.msk [vmem:[#allocation4 + $0x90] sm:$0x1] %vm417_vm3, %v13978_v5  ;;  %511 = vst.msk [vmem:[#allocation4 + $0xa8] sm:$0x1] %vm417_vm3, %v13978_v5 }
  0x3d   : > { %512 = vst.msk [vmem:[#allocation4 + $0xc0] sm:$0x1] %vm417_vm3, %v13978_v5  ;;  %513 = vst.msk [vmem:[#allocation4 + $0xd8] sm:$0x1] %vm417_vm3, %v13978_v5 }
  0x3e   : > { %514 = vst.msk [vmem:[#allocation4 + $0xf0] sm:$0x1] %vm417_vm3, %v13978_v5  ;;  %515 = vst.msk [vmem:[#allocation4 + $0x108] sm:$0x1] %vm417_vm3, %v13978_v5 }
  0x3f   : > { %516 = vst.msk [vmem:[#allocation4 + $0x120] sm:$0x1] %vm417_vm3, %v13978_v5  ;;  %517 = vst.msk [vmem:[#allocation4 + $0x138] sm:$0x1] %vm417_vm3, %v13978_v5 }
  0x40   : > { %518 = vst.msk [vmem:[#allocation4 + $0x150] sm:$0x1] %vm417_vm3, %v13978_v5  ;;  %519 = vst.msk [vmem:[#allocation4 + $0x168] sm:$0x1] %vm417_vm3, %v13978_v5 }
  0x41   : > { %520 = vst.msk [vmem:[#allocation4 + $0x180] sm:$0x1] %vm417_vm3, %v13978_v5  ;;  %523 = vst.msk [vmem:[#allocation4 + $0x29] sm:$0x1] %vm417_vm3, %v13978_v5 }
  0x42   : > { %524 = vst.msk [vmem:[#allocation4 + $0x41] sm:$0x1] %vm417_vm3, %v13978_v5  ;;  %525 = vst.msk [vmem:[#allocation4 + $0x59] sm:$0x1] %vm417_vm3, %v13978_v5 }
  0x43   : > { %526 = vst.msk [vmem:[#allocation4 + $0x71] sm:$0x1] %vm417_vm3, %v13978_v5  ;;  %527 = vst.msk [vmem:[#allocation4 + $0x89] sm:$0x1] %vm417_vm3, %v13978_v5 }
  0x44   : > { %528 = vst.msk [vmem:[#allocation4 + $0xa1] sm:$0x1] %vm417_vm3, %v13978_v5  ;;  %529 = vst.msk [vmem:[#allocation4 + $0xb9] sm:$0x1] %vm417_vm3, %v13978_v5 }
  0x45   : > { %530 = vst.msk [vmem:[#allocation4 + $0xd1] sm:$0x1] %vm417_vm3, %v13978_v5  ;;  %531 = vst.msk [vmem:[#allocation4 + $0xe9] sm:$0x1] %vm417_vm3, %v13978_v5 }
  0x46   : > { %532 = vst.msk [vmem:[#allocation4 + $0x101] sm:$0x1] %vm417_vm3, %v13978_v5  ;;  %533 = vst.msk [vmem:[#allocation4 + $0x119] sm:$0x1] %vm417_vm3, %v13978_v5 }
  0x47   : > { %534 = vst.msk [vmem:[#allocation4 + $0x131] sm:$0x1] %vm417_vm3, %v13978_v5  ;;  %535 = vst.msk [vmem:[#allocation4 + $0x149] sm:$0x1] %vm417_vm3, %v13978_v5 }
  0x48   : > { %536 = vst.msk [vmem:[#allocation4 + $0x161] sm:$0x1] %vm417_vm3, %v13978_v5  ;;  %537 = vst.msk [vmem:[#allocation4 + $0x179] sm:$0x1] %vm417_vm3, %v13978_v5 }
  0x49   : > { %538 = vst.msk [vmem:[#allocation4 + $0x191] sm:$0x1] %vm417_vm3, %v13978_v5  ;;  %435 = vst.msk [vmem:[#allocation2 + $0x198] sm:$0x1] %vm417_vm3, %v13978_v5 }
  0x4a   : > { %453 = vst.msk [vmem:[#allocation2 + $0x1a9] sm:$0x1] %vm417_vm3, %v13978_v5  ;;  %461 = vst.msk [vmem:[#allocation3] sm:$0x1] %vm417_vm3, %v13978_v5 }
  0x4b   : > { %478 = vst.msk [vmem:[#allocation3 + $0x198] sm:$0x1] %vm417_vm3, %v13978_v5  ;;  %479 = vst.msk [vmem:[#allocation3 + $0x11] sm:$0x1] %vm417_vm3, %v13978_v5 }
  0x4c   : > { %496 = vst.msk [vmem:[#allocation3 + $0x1a9] sm:$0x1] %vm417_vm3, %v13978_v5  ;;  %504 = vst.msk [vmem:[#allocation4] sm:$0x1] %vm417_vm3, %v13978_v5 }
  0x4d   : > { %521 = vst.msk [vmem:[#allocation4 + $0x198] sm:$0x1] %vm417_vm3, %v13978_v5  ;;  %522 = vst.msk [vmem:[#allocation4 + $0x11] sm:$0x1] %vm417_vm3, %v13978_v5 }
  0x4e   : > { %539 = vst.msk [vmem:[#allocation4 + $0x1a9] sm:$0x1] %vm417_vm3, %v13978_v5  ;;  %17856 = vst [vmem:[#allocation6_spill] sm:$0xff] %v14345_v14  ;;  %v1173_v5 = vcombine.high %v1163_v60, %v1163_v60  ;;  %v575_v60 = vsel %vm567_vm10, %v14446_v57, 0.0 }
  0x4f   : > { %3505 = vst.msk [vmem:[#allocation2 + $0x21] sm:$0xff] %vm408_vm0, %v3248_v54  ;;  %v711_v4 = vcombine.high %v575_v60, %v575_v60 }
  0x50   : > { %v1533_v16 = vrot.slane %v1173_v5, %v14372_v27  ;;  %v718_v5 = vrot.slane %v575_v60, %v14369_v23  ;;  %v14502_v60 = vsel %vm4196_vm2, %v14335_v12, 0  ;;  %v623_v12 = vsel %vm615_vm12, %v14446_v57, 0.0 }
  0x51   : > { %v725_v17 = vrot.slane %v711_v4, %v14369_v23  ;;  %v14517_v4 = vadd.s32 96, %v14330_v11  ;;  %v1960_v7 = vcombine.high %v623_v12, %v623_v12  ;;  %v1967_v34 = vrot.slane %v623_v12, %v14369_v23 }
  0x52   : > { %v1842_v25 = vsel %vm1838_vm8, %v709_v56, %v1533_v16  ;;  %v2390_v56 = vcombine.high %v2382_v50, %v2382_v50  ;;  %v3087_v16 = vsel %vm1838_vm8, %v1934_v35, %v2770_v2  ;;  %v726_v28 = vcombine.high %v718_v5, %v718_v5 }
  0x53   : > { %v3216_v30 = vcombine.low %v1841_v20, %v1842_v25  ;;  %v2790_v20 = vrot.slane %v2419_v6, %v14372_v27  ;;  %v3089_v25 = vsel %vm1838_vm8, %v1956_v45, %v2778_v13  ;;  %v734_v0 = vrot.slane %v718_v5, %v14369_v23 }
  0x54   : > { %v2412_v63 = vrot.slane %v2390_v56, %v14369_v23  ;;  %v741_v54 = vrot.slane %v725_v17, %v14369_v23  ;;  %v1182_v2 = vrot.slane %v599_v3, %v14369_v23  ;;  %v1189_v6 = vrot.slane %v1175_v62, %v14369_v23 }
  0x55   : > { %v3230_v40 = vrot.slane %v3216_v30, %v14379_v37  ;;  %v2798_v30 = vrot.slane %v2423_v18, %v14372_v27  ;;  %v3092_v32 = vsel %vm1838_vm8, %v14427_v44, %v2790_v20  ;;  %v756_v5 = vcombine.high %v734_v0, %v734_v0 }
  0x56   : > { %v2422_v9 = vcombine.high %v2412_v63, %v2412_v63  ;;  %v2774_v10 = vrot.slane %v2412_v63, %v14372_v27  ;;  %v14485_v35 = vld [vmem:[#allocation2 + $0x28] sm:$0x3]  ;;  %v3601_v41 = vcombine.low %v3091_v26, %v3092_v32  ;;  %v14506_v63 = vadd.s32 64, %v14330_v11 }
  0x57   : > { %v3231_v47 = vcombine.low %v3223_v39, %v3230_v40  ;;  %v4024_v42 = vrot.slane %v14485_v35, 1  ;;  %v3094_v45 = vsel %vm1838_vm8, %v1959_v59, %v2798_v30  ;;  %v748_v59 = vrot.slane %v726_v28, %v14369_v23 }
  0x58   : > { %v2782_v19 = vrot.slane %v2422_v9, %v14372_v27  ;;  %v3088_v24 = vsel %vm1838_vm8, %v1948_v38, %v2774_v10  ;;  %v3093_v38 = vsel %vm1838_vm8, %v1957_v46, %v2794_v21  ;;  %v3609_v50 = vrot.slane %v3601_v41, %v14379_v37 }
  0x59   : > { %3504 = vst.msk [vmem:[#allocation2 + $0x19] sm:$0xff] %vm408_vm0, %v3231_v47  ;;  %v3584_v39 = vcombine.low %v3087_v16, %v3088_v24  ;;  %v727_v47 = vcombine.high %v725_v17, %v725_v17  ;;  %v3602_v49 = vcombine.low %v3093_v38, %v3094_v45  ;;  %v757_v3 = vcombine.high %v741_v54, %v741_v54 }
  0x5a   : > { %v3090_v31 = vsel %vm1838_vm8, %v1958_v52, %v2782_v19  ;;  %v758_v9 = vcombine.high %v748_v59, %v748_v59  ;;  %v1190_v10 = vcombine.high %v1182_v2, %v1182_v2  ;;  %v1198_v53 = vrot.slane %v1182_v2, %v14369_v23 }
  0x5b   : > { %v3585_v40 = vcombine.low %v3089_v25, %v3090_v31  ;;  %v3592_v48 = vrot.slane %v3584_v39, %v14379_v37  ;;  %v3616_v58 = vrot.slane %v3602_v49, %v14379_v37  ;;  %v755_v61 = vrot.slane %v727_v47, %v14369_v23 }
  0x5c   : > { %v1191_v15 = vcombine.high %v1189_v6, %v1189_v6  ;;  %v1205_v16 = vrot.slane %v1189_v6, %v14369_v23  ;;  %v1212_v17 = vrot.slane %v1190_v10, %v14369_v23  ;;  %v1220_v18 = vcombine.high %v1198_v53, %v1198_v53 }
  0x5d   : > { %v3599_v44 = vrot.slane %v3585_v40, %v14379_v37  ;;  %v3617_v1 = vcombine.low %v3609_v50, %v3616_v58  ;;  %v759_v13 = vcombine.high %v755_v61, %v755_v61  ;;  %v1553_v51 = vrot.slane %v1198_v53, %v14372_v27  ;;  %v14574_v53 = vld [vmem:[%s17763_s2 + $0x10] sm:$0xf] }
  0x5e   : > { %v1219_v19 = vrot.slane %v1191_v15, %v14369_v23  ;;  %v1221_v20 = vcombine.high %v1205_v16, %v1205_v16  ;;  %v1569_v21 = vrot.slane %v1205_v16, %v14372_v27  ;;  %v1974_v24 = vrot.slane %v1960_v7, %v14369_v23 }
  0x5f   : > { %v3600_v56 = vcombine.low %v3592_v48, %v3599_v44  ;;  %3874 = vst.msk [vmem:[#allocation2 + $0x39] sm:$0xff] %vm408_vm0, %v3617_v1  ;;  %v1222_v25 = vcombine.high %v1212_v17, %v1212_v17  ;;  %v1557_v26 = vrot.slane %v1212_v17, %v14372_v27  ;;  %v1847_v38 = vsel %vm1838_vm8, %v734_v0, %v1553_v51  ;;  %v14585_v17 = vld [vmem:[%s14357_s13 + $0x10] sm:$0xff] }
  0x60   : > { %v14472_v22 = vld [vmem:[#allocation2 + $0x18] sm:$0xff]  ;;  %v14483_v33 = vld [vmem:[#allocation2 + $0x20] sm:$0xff]  ;;  %v1223_v30 = vcombine.high %v1219_v19, %v1219_v19  ;;  %v1573_v31 = vrot.slane %v1219_v19, %v14372_v27  ;;  %v1577_v32 = vrot.slane %v1221_v20, %v14372_v27  ;;  %v1976_v0 = vcombine.high %v1974_v24, %v1974_v24 }
  0x61   : > { %v4021_v29 = vrot.slane %v14472_v22, 1  ;;  %v4022_v36 = vrot.slane %v14483_v33, 1  ;;  %3873 = vst.msk [vmem:[#allocation2 + $0x31] sm:$0xff] %vm408_vm0, %v3600_v56  ;;  %v1565_v40 = vrot.slane %v1222_v25, %v14372_v27  ;;  %v1848_v41 = vsel %vm1838_vm8, %v748_v59, %v1557_v26 }
  0x62   : > { %v1581_v47 = vrot.slane %v1223_v30, %v14372_v27  ;;  %v1852_v44 = vsel %vm1838_vm8, %v755_v61, %v1573_v31  ;;  %v1853_v49 = vsel %vm1838_vm8, %v757_v3, %v1577_v32  ;;  %v3249_v56 = vcombine.low %v1847_v38, %v1848_v41 }
  0x63   : > { %v4023_v52 = vsel %vm4015_vm4, %v4021_v29, %v4022_v36  ;;  %v4025_v46 = vsel %vm4015_vm4, %v4022_v36, %v4024_v42  ;;  %v1851_v36 = vsel %vm1838_vm8, %v741_v54, %v1569_v21  ;;  %v1850_v54 = vsel %vm1838_vm8, %v758_v9, %v1565_v40 }
  0x64   : > { %v4129_v55 = vpack.c.bf16 %v4025_v46, %v4023_v52  ;;  %v1975_v46 = vcombine.high %v1967_v34, %v1967_v34  ;;  %v3266_v58 = vcombine.low %v1851_v36, %v1852_v44  ;;  %v3257_v12 = vrot.slane %v3249_v56, %v14379_v37 }
  0x65   : > { %v1983_v6 = vrot.slane %v1967_v34, %v14369_v23  ;;  %v1990_v9 = vrot.slane %v1974_v24, %v14369_v23  ;;  %v2004_v15 = vrot.slane %v1976_v0, %v14369_v23  ;;  %vm568_vm14 = vcmp.eq.s32.totalorder %v14585_v17, %v14506_v63 }
  0x66   : > { %12212 = vmatmul.mubr.msk.bf16.vlgmr.msra.gmra.mrb[0].mxu1 %vm408_vm0, %v4129_v55  ;;  %12347 = vmatprep.mubr.msk.bf16.mxu0 %vm408_vm0, %v4129_v55  ;;  %v14550_v45 = vld [vmem:[#allocation2 + $0x40] sm:$0x3]  ;;  %v1854_v55 = vsel %vm1838_vm8, %v759_v13, %v1581_v47  ;;  %v1997_v10 = vrot.slane %v1975_v46, %v14369_v23  ;;  %vm4573_vm12 = vcmask 1045504  }
  0x67   : > { %12244 = vmatpush3.bf16.msra.mxu1 %v14424_v43  ;;  %v14527_v43 = vsel %vm639_vm13, %v14446_v57, 0.0  ;;  %v1561_v57 = vrot.slane %v1220_v18, %v14372_v27  ;;  %v4029_v52 = vrot.slane %v14550_v45, 1  ;;  %v3267_v61 = vcombine.low %v1853_v49, %v1854_v55 }
  0x68   : > { %v2424_v28 = vcombine.high %v14527_v43, %v14527_v43  ;;  %v14539_v29 = vld [vmem:[#allocation2 + $0x30] sm:$0xff]  ;;  %v14548_v42 = vld [vmem:[#allocation2 + $0x38] sm:$0xff]  ;;  %v2431_v16 = vrot.slane %v14527_v43, %v14369_v23  ;;  %v584_v18 = vadd.s32 1, %v14506_v63  ;;  %v2005_v19 = vcombine.high %v1983_v6, %v1983_v6 }
  0x69   : > { %v4026_v39 = vrot.slane %v14539_v29, 1  ;;  %v1849_v48 = vsel %vm1838_vm8, %v756_v5, %v1561_v57  ;;  %v4027_v50 = vrot.slane %v14548_v42, 1  ;;  %v3274_v5 = vrot.slane %v3266_v58, %v14379_v37  ;;  %v14592_v57 = vld [vmem:[%s14352_s29 + $0x10] sm:$0xff] }
  0x6a   : > { %v3250_v1 = vcombine.low %v1849_v48, %v1850_v54  ;;  %v3281_v3 = vrot.slane %v3267_v61, %v14379_v37  ;;  %v2006_v20 = vcombine.high %v1990_v9, %v1990_v9  ;;  %v2007_v21 = vcombine.high %v1997_v10, %v1997_v10 }
  0x6b   : > { %v4028_v59 = vsel %vm4015_vm4, %v4026_v39, %v4027_v50  ;;  %v4030_v62 = vsel %vm4015_vm4, %v4027_v50, %v4029_v52  ;;  %v2438_v24 = vrot.slane %v2424_v28, %v14369_v23  ;;  %v2439_v25 = vcombine.high %v2431_v16, %v2431_v16  ;;  %v14617_v52 = vld [vmem:[%s14357_s13 + $0x18] sm:$0xff] }
  0x6c   : > { %v14562_v2 = vpack.c.bf16 %v4030_v62, %v4028_v59  ;;  %v3264_v7 = vrot.slane %v3250_v1, %v14379_v37  ;;  %v3282_v34 = vcombine.low %v3274_v5, %v3281_v3  ;;  %v2447_v26 = vrot.slane %v2431_v16, %v14369_v23 }
  0x6d   : > { %vm592_vm15 = vcmp.eq.s32.totalorder %v14585_v17, %v584_v18  ;;  %v14602_v43 = vadd.s32 16, %v14506_v63  ;;  %v2440_v28 = vcombine.high %v2438_v24, %v2438_v24  ;;  %v2454_v30 = vrot.slane %v2438_v24, %v14369_v23 }
  0x6e   : > { %17857 = vst [vmem:[#allocation7_spill] sm:$0xff] %v14562_v2  ;;  %12348 = vmatmul.mubr.msk.bf16.vlgmr.msra.gmra.mrb[0].mxu0 %vm408_vm0, %v14562_v2  ;;  %12215 = vmatprep.mubr.msk.bf16.mxu1 %vm408_vm0, %v14562_v2  ;;  %v3265_v51 = vcombine.low %v3257_v12, %v3264_v7  ;;  %3507 = vst.msk [vmem:[#allocation2 + $0x51] sm:$0xff] %vm408_vm0, %v3282_v34  ;;  %v2461_v31 = vrot.slane %v2439_v25, %v14369_v23  ;;  %v576_v39 = vsel %vm568_vm14, %v14592_v57, 0.0 }
  0x6f   : > { %12380 = vmatpush3.bf16.msra.mxu0 %v14502_v60  ;;  %v2008_v60 = vcombine.high %v2004_v15, %v2004_v15  ;;  %v2469_v32 = vcombine.high %v2447_v26, %v2447_v26  ;;  %v2802_v38 = vrot.slane %v2447_v26, %v14372_v27  ;;  %v600_v40 = vsel %vm592_vm15, %v14592_v57, 0.0 }
  0x70   : > { %13904 = vmatprep.subr.msk.bf16.mxu0 %vm4196_vm2, %v14574_v53  ;;  %3506 = vst.msk [vmem:[#allocation2 + $0x49] sm:$0xff] %vm408_vm0, %v3265_v51  ;;  %vm616_vm1 = vcmp.eq.s32.totalorder %v14585_v17, %v14602_v43  ;;  %v2468_v41 = vrot.slane %v2440_v28, %v14369_v23  ;;  %v2470_v63 = vcombine.high %v2454_v30, %v2454_v30 }
  0x71   : > { %v2471_v36 = vcombine.high %v2461_v31, %v2461_v31  ;;  %v2806_v47 = vrot.slane %v2461_v31, %v14372_v27  ;;  %v2810_v48 = vrot.slane %v2469_v32, %v14372_v27  ;;  %v2818_v44 = vrot.slane %v2454_v30, %v14372_v27 }
  0x72   : > { %v3095_v49 = vsel %vm1838_vm8, %v1983_v6, %v2802_v38  ;;  %v760_v50 = vcombine.high %v576_v39, %v576_v39  ;;  %v2472_v46 = vcombine.high %v2468_v41, %v2468_v41  ;;  %v2822_v54 = vrot.slane %v2468_v41, %v14372_v27 }
  0x73   : > { %v2814_v0 = vrot.slane %v2471_v36, %v14372_v27  ;;  %v2826_v55 = vrot.slane %v2470_v63, %v14372_v27  ;;  %vm569_vm3 = vcmp.eq.s32.totalorder %v14617_v52, %v14517_v4  ;;  %v3096_v56 = vsel %vm1838_vm8, %v1997_v10, %v2806_v47 }
  0x74   : > { %v3097_v58 = vsel %vm1838_vm8, %v2005_v19, %v2810_v48  ;;  %v3099_v59 = vsel %vm1838_vm8, %v1990_v9, %v2818_v44  ;;  %v767_v62 = vrot.slane %v576_v39, %v14369_v23  ;;  %v2830_v5 = vrot.slane %v2472_v46, %v14372_v27 }
  0x75   : > { %v14632_v12 = vld [vmem:[#allocation2 + $0x58] sm:$0x3]  ;;  %v3098_v6 = vsel %vm1838_vm8, %v2007_v21, %v2814_v0  ;;  %v3100_v7 = vsel %vm1838_vm8, %v2004_v15, %v2822_v54  ;;  %v3101_v3 = vsel %vm1838_vm8, %v2006_v20, %v2826_v55  ;;  %v3618_v18 = vcombine.low %v3095_v49, %v3096_v56 }
  0x76   : > { %v4034_v16 = vrot.slane %v14632_v12, 1  ;;  %v3102_v51 = vsel %vm1838_vm8, %v2008_v60, %v2830_v5  ;;  %v3619_v34 = vcombine.low %v3097_v58, %v3098_v6  ;;  %v3635_v19 = vcombine.low %v3099_v59, %v3100_v7  ;;  %v14668_v56 = vld [vmem:[%s14352_s29 + $0x18] sm:$0xff] }
  0x77   : > { %v14628_v1 = vld [vmem:[#allocation2 + $0x48] sm:$0xff]  ;;  %v14630_v61 = vld [vmem:[#allocation2 + $0x50] sm:$0xff]  ;;  %v774_v24 = vrot.slane %v760_v50, %v14369_v23  ;;  %v3626_v15 = vrot.slane %v3618_v18, %v14379_v37  ;;  %v3636_v20 = vcombine.low %v3101_v3, %v3102_v51  ;;  %v775_v31 = vcombine.high %v767_v62, %v767_v62 }
  0x78   : > { %v4031_v10 = vrot.slane %v14628_v1, 1  ;;  %v4032_v9 = vrot.slane %v14630_v61, 1  ;;  %v3633_v28 = vrot.slane %v3619_v34, %v14379_v37  ;;  %v3643_v30 = vrot.slane %v3635_v19, %v14379_v37 }
  0x79   : > { %v3650_v60 = vrot.slane %v3636_v20, %v14379_v37  ;;  %v776_v32 = vcombine.high %v774_v24, %v774_v24  ;;  %v783_v38 = vrot.slane %v767_v62, %v14369_v23  ;;  %v790_v39 = vrot.slane %v774_v24, %v14369_v23 }
  0x7a   : > { %v4033_v25 = vsel %vm4015_vm4, %v4031_v10, %v4032_v9  ;;  %v4035_v21 = vsel %vm4015_vm4, %v4032_v9, %v4034_v16  ;;  %v3634_v41 = vcombine.low %v3626_v15, %v3633_v28  ;;  %v797_v63 = vrot.slane %v775_v31, %v14369_v23 }
  0x7b   : > { %v14646_v26 = vpack.c.bf16 %v4035_v21, %v4033_v25  ;;  %v1224_v36 = vcombine.high %v600_v40, %v600_v40  ;;  %v624_v47 = vsel %vm616_vm1, %v14592_v57, 0.0  ;;  %v3651_v48 = vcombine.low %v3643_v30, %v3650_v60 }
  0x7c   : > { %v804_v44 = vrot.slane %v776_v32, %v14369_v23  ;;  %v805_v49 = vcombine.high %v783_v38, %v783_v38  ;;  %v806_v50 = vcombine.high %v790_v39, %v790_v39  ;;  %3875 = vst.msk [vmem:[#allocation2 + $0x61] sm:$0xff] %vm408_vm0, %v3634_v41  ;;  %v807_v46 = vcombine.high %v797_v63, %v797_v63 }
  0x7d   : > { %17858 = vst [vmem:[#allocation8_spill] sm:$0xff] %v14646_v26  ;;  %12216 = vmatmul.mubr.msk.bf16.gmra.mrb[4].mxu1 %vm408_vm0, %v14646_v26  ;;  %12351 = vmatprep.mubr.msk.bf16.mxu0 %vm408_vm0, %v14646_v26  ;;  %v1231_v0 = vrot.slane %v600_v40, %v14369_v23  ;;  %v1238_v54 = vrot.slane %v1224_v36, %v14369_v23  ;;  %v632_v55 = vadd.s32 1, %v14602_v43  ;;  %3876 = vst.msk [vmem:[#allocation2 + $0x69] sm:$0xff] %vm408_vm0, %v3651_v48 }
  0x7e   : > { %v808_v58 = vcombine.high %v804_v44, %v804_v44  ;;  %v2009_v59 = vcombine.high %v624_v47, %v624_v47  ;;  %v2016_v62 = vrot.slane %v624_v47, %v14369_v23  ;;  %v14676_v5 = vsel %vm569_vm3, %v14668_v56, 0.0 }
  0x7f   : > { %v1239_v6 = vcombine.high %v1231_v0, %v1231_v0  ;;  %v1240_v40 = vcombine.high %v1238_v54, %v1238_v54  ;;  %v1247_v7 = vrot.slane %v1231_v0, %v14369_v23  ;;  %v1254_v43 = vrot.slane %v1238_v54, %v14369_v23 }
  0x80   : > { %vm640_vm5 = vcmp.eq.s32.totalorder %v14585_v17, %v632_v55  ;;  %v2023_v3 = vrot.slane %v2009_v59, %v14369_v23  ;;  %v2024_v10 = vcombine.high %v2016_v62, %v2016_v62  ;;  %v14683_v9 = vrot.slane %v2016_v62, %v14369_v23 }
  0x81   : > { %v1261_v16 = vrot.slane %v1239_v6, %v14369_v23  ;;  %v1268_v18 = vrot.slane %v1240_v40, %v14369_v23  ;;  %v1269_v51 = vcombine.high %v1247_v7, %v1247_v7  ;;  %v1270_v34 = vcombine.high %v1254_v43, %v1254_v43 }
  0x82   : > { %v1585_v19 = vrot.slane %v1247_v7, %v14372_v27  ;;  %v1601_v24 = vrot.slane %v1254_v43, %v14372_v27  ;;  %v648_v25 = vsel %vm640_vm5, %v14592_v57, 0.0  ;;  %v2025_v21 = vcombine.high %v2023_v3, %v2023_v3 }
  0x83   : > { %v1271_v17 = vcombine.high %v1261_v16, %v1261_v16  ;;  %v1272_v15 = vcombine.high %v1268_v18, %v1268_v18  ;;  %v1589_v20 = vrot.slane %v1261_v16, %v14372_v27  ;;  %v1593_v28 = vrot.slane %v1269_v51, %v14372_v27  ;;  %v14692_v30 = vld [vmem:[#allocation2 + $0x60] sm:$0xff] }
  0x84   : > { %v1605_v31 = vrot.slane %v1268_v18, %v14372_v27  ;;  %v1609_v60 = vrot.slane %v1270_v34, %v14372_v27  ;;  %v1855_v32 = vsel %vm1838_vm8, %v783_v38, %v1585_v19  ;;  %v1859_v41 = vsel %vm1838_vm8, %v790_v39, %v1601_v24  ;;  %v14698_v36 = vld [vmem:[#allocation2 + $0x68] sm:$0xff]  ;;  %v14700_v57 = vld [vmem:[#allocation2 + $0x70] sm:$0x3] }
  0x85   : > { %v4036_v47 = vrot.slane %v14692_v30, 1  ;;  %v1597_v48 = vrot.slane %v1271_v17, %v14372_v27  ;;  %v1613_v0 = vrot.slane %v1272_v15, %v14372_v27  ;;  %v1856_v54 = vsel %vm1838_vm8, %v797_v63, %v1589_v20 }
  0x86   : > { %v4037_v55 = vrot.slane %v14698_v36, 1  ;;  %v4039_v59 = vrot.slane %v14700_v57, 1  ;;  %v1857_v38 = vsel %vm1838_vm8, %v805_v49, %v1593_v28  ;;  %v1860_v39 = vsel %vm1838_vm8, %v804_v44, %v1605_v31 }
  0x87   : > { %v1858_v62 = vsel %vm1838_vm8, %v807_v46, %v1597_v48  ;;  %v1861_v6 = vsel %vm1838_vm8, %v806_v50, %v1609_v60  ;;  %v1862_v40 = vsel %vm1838_vm8, %v808_v58, %v1613_v0  ;;  %v3283_v7 = vcombine.low %v1855_v32, %v1856_v54 }
  0x88   : > { %v4038_v43 = vsel %vm4015_vm4, %v4036_v47, %v4037_v55  ;;  %v4040_v16 = vsel %vm4015_vm4, %v4037_v55, %v4039_v59  ;;  %v3284_v63 = vcombine.low %v1857_v38, %v1858_v62  ;;  %v3300_v18 = vcombine.low %v1859_v41, %v1860_v39 }
  0x89   : > { %v14715_v51 = vpack.c.bf16 %v4040_v16, %v4038_v43  ;;  %v3291_v34 = vrot.slane %v3283_v7, %v14379_v37  ;;  %v3301_v49 = vcombine.low %v1861_v6, %v1862_v40  ;;  %v2039_v44 = vrot.slane %v2023_v3, %v14369_v23 }
  0x8a   : > { %v3298_v46 = vrot.slane %v3284_v63, %v14379_v37  ;;  %v3308_v50 = vrot.slane %v3300_v18, %v14379_v37  ;;  %v2046_v58 = vrot.slane %v2024_v10, %v14369_v23  ;;  %v2053_v19 = vrot.slane %v2025_v21, %v14369_v23 }
  0x8b   : > { %17859 = vst [vmem:[#allocation9_spill] sm:$0xff] %v14715_v51  ;;  %12352 = vmatmul.mubr.msk.bf16.gmra.mrb[4].mxu0 %vm408_vm0, %v14715_v51  ;;  %12219 = vmatprep.mubr.msk.bf16.mxu1 %vm408_vm0, %v14715_v51  ;;  %v3315_v17 = vrot.slane %v3301_v49, %v14379_v37  ;;  %v2054_v3 = vcombine.high %v14683_v9, %v14683_v9  ;;  %v585_v15 = vadd.s32 1, %v14517_v4  ;;  %v14747_v59 = vadd.s32 16, %v14517_v4 }
  0x8c   : > { %v3299_v20 = vcombine.low %v3291_v34, %v3298_v46  ;;  %v2055_v28 = vcombine.high %v2039_v44, %v2039_v44  ;;  %v2056_v10 = vcombine.high %v2046_v58, %v2046_v58  ;;  %v2473_v31 = vcombine.high %v648_v25, %v648_v25 }
  0x8d   : > { %v3316_v21 = vcombine.low %v3308_v50, %v3315_v17  ;;  %v2480_v60 = vrot.slane %v648_v25, %v14369_v23  ;;  %vm593_vm6 = vcmp.eq.s32.totalorder %v14617_v52, %v585_v15  ;;  %v809_v32 = vcombine.high %v14676_v5, %v14676_v5 }
  0x8e   : > { %3508 = vst.msk [vmem:[#allocation2 + $0x79] sm:$0xff] %vm408_vm0, %v3299_v20  ;;  %v2057_v41 = vcombine.high %v2053_v19, %v2053_v19  ;;  %v2487_v47 = vrot.slane %v2473_v31, %v14369_v23  ;;  %v14739_v48 = vsel %vm593_vm6, %v14668_v56, 0.0  ;;  %v816_v0 = vrot.slane %v14676_v5, %v14369_v23 }
  0x8f   : > { %3509 = vst.msk [vmem:[#allocation2 + $0x81] sm:$0xff] %vm408_vm0, %v3316_v21  ;;  %v2488_v54 = vcombine.high %v2480_v60, %v2480_v60  ;;  %v2496_v25 = vrot.slane %v2480_v60, %v14369_v23  ;;  %v823_v55 = vrot.slane %v809_v32, %v14369_v23  ;;  %v1273_v6 = vcombine.high %v14739_v48, %v14739_v48 }
  0x90   : > { %v2489_v38 = vcombine.high %v2487_v47, %v2487_v47  ;;  %v2503_v39 = vrot.slane %v2487_v47, %v14369_v23  ;;  %v824_v62 = vcombine.high %v816_v0, %v816_v0  ;;  %v14755_v43 = vrot.slane %v816_v0, %v14369_v23 }
  0x91   : > { %v2510_v40 = vrot.slane %v2488_v54, %v14369_v23  ;;  %v2518_v5 = vcombine.high %v2496_v25, %v2496_v25  ;;  %v2834_v7 = vrot.slane %v2496_v25, %v14372_v27  ;;  %v825_v18 = vcombine.high %v823_v55, %v823_v55 }
  0x92   : > { %v2517_v16 = vrot.slane %v2489_v38, %v14369_v23  ;;  %v2519_v63 = vcombine.high %v2503_v39, %v2503_v39  ;;  %v2850_v4 = vrot.slane %v2503_v39, %v14372_v27  ;;  %v14762_v50 = vrot.slane %v823_v55, %v14369_v23 }
  0x93   : > { %v2520_v34 = vcombine.high %v2510_v40, %v2510_v40  ;;  %v2838_v49 = vrot.slane %v2510_v40, %v14372_v27  ;;  %v2842_v46 = vrot.slane %v2518_v5, %v14372_v27  ;;  %v3103_v31 = vsel %vm1838_vm8, %v14683_v9, %v2834_v7 }
  0x94   : > { %v2521_v17 = vcombine.high %v2517_v16, %v2517_v16  ;;  %v2854_v15 = vrot.slane %v2517_v16, %v14372_v27  ;;  %v2858_v20 = vrot.slane %v2519_v63, %v14372_v27  ;;  %v3107_v0 = vsel %vm1838_vm8, %v2039_v44, %v2850_v4 }
  0x95   : > { %v14768_v21 = vld [vmem:[#allocation2 + $0x78] sm:$0xff]  ;;  %v2846_v60 = vrot.slane %v2520_v34, %v14372_v27  ;;  %v3104_v32 = vsel %vm1838_vm8, %v2046_v58, %v2838_v49  ;;  %v3105_v47 = vsel %vm1838_vm8, %v2054_v3, %v2842_v46  ;;  %v14787_v63 = vrot.slane %v824_v62, %v14369_v23 }
  0x96   : > { %v14774_v54 = vld [vmem:[#allocation2 + $0x80] sm:$0xff]  ;;  %v14776_v25 = vld [vmem:[#allocation2 + $0x88] sm:$0x3]  ;;  %v4041_v55 = vrot.slane %v14768_v21, 1  ;;  %v2862_v38 = vrot.slane %v2521_v17, %v14372_v27  ;;  %v3108_v9 = vsel %vm1838_vm8, %v2053_v19, %v2854_v15  ;;  %v3109_v39 = vsel %vm1838_vm8, %v2055_v28, %v2858_v20 }
  0x97   : > { %v4042_v40 = vrot.slane %v14774_v54, 1  ;;  %v4044_v58 = vrot.slane %v14776_v25, 1  ;;  %v3106_v3 = vsel %vm1838_vm8, %v2056_v10, %v2846_v60  ;;  %v3652_v5 = vcombine.low %v3103_v31, %v3104_v32 }
  0x98   : > { %v3110_v44 = vsel %vm1838_vm8, %v2057_v41, %v2862_v38  ;;  %v3653_v7 = vcombine.low %v3105_v47, %v3106_v3  ;;  %v3669_v16 = vcombine.low %v3107_v0, %v3108_v9  ;;  %v853_v62 = vrot.slane %v825_v18, %v14369_v23 }
  0x99   : > { %v4043_v4 = vsel %vm4015_vm4, %v4041_v55, %v4042_v40  ;;  %v4045_v19 = vsel %vm4015_vm4, %v4042_v40, %v4044_v58  ;;  %v3660_v28 = vrot.slane %v3652_v5, %v14379_v37  ;;  %v3670_v34 = vcombine.low %v3109_v39, %v3110_v44 }
  0x9a   : > { %v14793_v46 = vpack.c.bf16 %v4045_v19, %v4043_v4  ;;  %v3667_v10 = vrot.slane %v3653_v7, %v14379_v37  ;;  %v3677_v41 = vrot.slane %v3669_v16, %v14379_v37  ;;  %v854_v15 = vcombine.high %v14755_v43, %v14755_v43  ;;  %v14830_v7 = vld [vmem:[%s14357_s13 + $0x20] sm:$0xff] }
  0x9b   : > { %v3684_v17 = vrot.slane %v3670_v34, %v14379_v37  ;;  %v855_v20 = vcombine.high %v14762_v50, %v14762_v50  ;;  %v1280_v60 = vrot.slane %v14739_v48, %v14369_v23  ;;  %v1287_v32 = vrot.slane %v1273_v6, %v14369_v23 }
  0x9c   : > { %17860 = vst [vmem:[#allocation10_spill] sm:$0xff] %v14793_v46  ;;  %12220 = vmatmul.mubr.msk.bf16.gmra.mrb[8].mxu1 %vm408_vm0, %v14793_v46  ;;  %12355 = vmatprep.mubr.msk.bf16.mxu0 %vm408_vm0, %v14793_v46  ;;  %v3668_v31 = vcombine.low %v3660_v28, %v3667_v10  ;;  %v633_v18 = vadd.s32 1, %v14747_v59  ;;  %v856_v0 = vcombine.high %v14787_v63, %v14787_v63  ;;  %v14816_v55 = vadd.s32 128, %v14330_v11 }
  0x9d   : > { %v3685_v47 = vcombine.low %v3677_v41, %v3684_v17  ;;  %vm617_vm7 = vcmp.eq.s32.totalorder %v14617_v52, %v14747_v59  ;;  %v1288_v38 = vcombine.high %v1280_v60, %v1280_v60  ;;  %v1289_v9 = vcombine.high %v1287_v32, %v1287_v32 }
  0x9e   : > { %3877 = vst.msk [vmem:[#allocation2 + $0x91] sm:$0xff] %vm408_vm0, %v3668_v31  ;;  %v1296_v48 = vrot.slane %v1280_v60, %v14369_v23  ;;  %v1303_v6 = vrot.slane %v1287_v32, %v14369_v23  ;;  %v857_v39 = vcombine.high %v853_v62, %v853_v62  ;;  %v625_v40 = vsel %vm617_vm7, %v14668_v56, 0.0 }
  0x9f   : > { %3878 = vst.msk [vmem:[#allocation2 + $0x99] sm:$0xff] %vm408_vm0, %v3685_v47  ;;  %vm641_vm9 = vcmp.eq.s32.totalorder %v14617_v52, %v633_v18  ;;  %v14825_v59 = vadd.s32 1, %v14816_v55  ;;  %v1310_v58 = vrot.slane %v1288_v38, %v14369_v23  ;;  %v1317_v3 = vrot.slane %v1289_v9, %v14369_v23 }
  0xa0   : > { %v1318_v5 = vcombine.high %v1296_v48, %v1296_v48  ;;  %v1319_v44 = vcombine.high %v1303_v6, %v1303_v6  ;;  %v1617_v16 = vrot.slane %v1296_v48, %v14372_v27  ;;  %v1633_v4 = vrot.slane %v1303_v6, %v14372_v27 }
  0xa1   : > { %v649_v19 = vsel %vm641_vm9, %v14668_v56, 0.0  ;;  %v2058_v28 = vcombine.high %v625_v40, %v625_v40  ;;  %vm570_vm10 = vcmp.eq.s32.totalorder %v14830_v7, %v14816_v55  ;;  %v1320_v52 = vcombine.high %v1310_v58, %v1310_v58 }
  0xa2   : > { %v1321_v34 = vcombine.high %v1317_v3, %v1317_v3  ;;  %v1621_v10 = vrot.slane %v1310_v58, %v14372_v27  ;;  %v1625_v41 = vrot.slane %v1318_v5, %v14372_v27  ;;  %v1637_v17 = vrot.slane %v1317_v3, %v14372_v27 }
  0xa3   : > { %v1641_v31 = vrot.slane %v1319_v44, %v14372_v27  ;;  %v1863_v60 = vsel %vm1838_vm8, %v14755_v43, %v1617_v16  ;;  %v1867_v56 = vsel %vm1838_vm8, %v14762_v50, %v1633_v4  ;;  %v1629_v32 = vrot.slane %v1320_v52, %v14372_v27 }
  0xa4   : > { %v1645_v18 = vrot.slane %v1321_v34, %v14372_v27  ;;  %v1864_v47 = vsel %vm1838_vm8, %v14787_v63, %v1621_v10  ;;  %v1865_v38 = vsel %vm1838_vm8, %v854_v15, %v1625_v41  ;;  %v1868_v48 = vsel %vm1838_vm8, %v853_v62, %v1637_v17 }
  0xa5   : > { %v14850_v9 = vld [vmem:[#allocation2 + $0x90] sm:$0xff]  ;;  %v1869_v6 = vsel %vm1838_vm8, %v855_v20, %v1641_v31  ;;  %v3317_v58 = vcombine.low %v1863_v60, %v1864_v47  ;;  %v2065_v43 = vrot.slane %v625_v40, %v14369_v23  ;;  %v1866_v44 = vsel %vm1838_vm8, %v856_v0, %v1629_v32 }
  0xa6   : > { %v14855_v3 = vld [vmem:[#allocation2 + $0x98] sm:$0xff]  ;;  %v14857_v50 = vld [vmem:[#allocation2 + $0xa0] sm:$0x3]  ;;  %v4046_v5 = vrot.slane %v14850_v9, 1  ;;  %v1870_v63 = vsel %vm1838_vm8, %v857_v39, %v1645_v18  ;;  %v3334_v15 = vcombine.low %v1867_v56, %v1868_v48  ;;  %v3318_v4 = vcombine.low %v1865_v38, %v1866_v44 }
  0xa7   : > { %v4047_v16 = vrot.slane %v14855_v3, 1  ;;  %v4049_v62 = vrot.slane %v14857_v50, 1  ;;  %v3325_v20 = vrot.slane %v3317_v58, %v14379_v37  ;;  %v3335_v52 = vcombine.low %v1869_v6, %v1870_v63  ;;  %v14877_v48 = vld [vmem:[%s14352_s29 + $0x20] sm:$0xff] }
  0xa8   : > { %v3342_v40 = vrot.slane %v3334_v15, %v14379_v37  ;;  %v2072_v34 = vrot.slane %v2058_v28, %v14369_v23  ;;  %v2073_v10 = vcombine.high %v2065_v43, %v2065_v43  ;;  %v3332_v39 = vrot.slane %v3318_v4, %v14379_v37 }
  0xa9   : > { %v4048_v41 = vsel %vm4015_vm4, %v4046_v5, %v4047_v16  ;;  %v4050_v0 = vsel %vm4015_vm4, %v4047_v16, %v4049_v62  ;;  %v2081_v17 = vrot.slane %v2065_v43, %v14369_v23  ;;  %v3349_v60 = vrot.slane %v3335_v52, %v14379_v37 }
  0xaa   : > { %v14871_v31 = vpack.c.bf16 %v4050_v0, %v4048_v41  ;;  %v2074_v56 = vcombine.high %v2072_v34, %v2072_v34  ;;  %v2088_v32 = vrot.slane %v2072_v34, %v14369_v23  ;;  %v3333_v18 = vcombine.low %v3325_v20, %v3332_v39 }
  0xab   : > { %v2095_v47 = vrot.slane %v2073_v10, %v14369_v23  ;;  %v2103_v28 = vcombine.high %v2081_v17, %v2081_v17  ;;  %v2522_v38 = vcombine.high %v649_v19, %v649_v19  ;;  %v3350_v6 = vcombine.low %v3342_v40, %v3349_v60 }
  0xac   : > { %17861 = vst [vmem:[#allocation11_spill] sm:$0xff] %v14871_v31  ;;  %12356 = vmatmul.mubr.msk.bf16.gmra.mrb[8].mxu0 %vm408_vm0, %v14871_v31  ;;  %12223 = vmatprep.mubr.msk.bf16.mxu1 %vm408_vm0, %v14871_v31  ;;  %v2102_v58 = vrot.slane %v2074_v56, %v14369_v23  ;;  %v2104_v43 = vcombine.high %v2088_v32, %v2088_v32  ;;  %v578_v5 = vsel %vm570_vm10, %v14877_v48, 0.0  ;;  %3510 = vst.msk [vmem:[#allocation2 + $0xa9] sm:$0xff] %vm408_vm0, %v3333_v18 }
  0xad   : > { %v2105_v44 = vcombine.high %v2095_v47, %v2095_v47  ;;  %v2529_v63 = vrot.slane %v649_v19, %v14369_v23  ;;  %v2536_v15 = vrot.slane %v2522_v38, %v14369_v23  ;;  %vm594_vm11 = vcmp.eq.s32.totalorder %v14830_v7, %v14825_v59  ;;  %3511 = vst.msk [vmem:[#allocation2 + $0xb1] sm:$0xff] %vm408_vm0, %v3350_v6 }
  0xae   : > { %v2106_v16 = vcombine.high %v2102_v58, %v2102_v58  ;;  %v14895_v62 = vsel %vm594_vm11, %v14877_v48, 0.0  ;;  %v858_v4 = vcombine.high %v578_v5, %v578_v5  ;;  %v865_v20 = vrot.slane %v578_v5, %v14369_v23 }
  0xaf   : > { %v2537_v52 = vcombine.high %v2529_v63, %v2529_v63  ;;  %v2538_v40 = vcombine.high %v2536_v15, %v2536_v15  ;;  %v2545_v34 = vrot.slane %v2529_v63, %v14369_v23  ;;  %v2552_v19 = vrot.slane %v2536_v15, %v14369_v23 }
  0xb0   : > { %v872_v10 = vrot.slane %v858_v4, %v14369_v23  ;;  %v873_v41 = vcombine.high %v865_v20, %v865_v20  ;;  %v14902_v59 = vrot.slane %v865_v20, %v14369_v23  ;;  %v1322_v0 = vcombine.high %v14895_v62, %v14895_v62 }
  0xb1   : > { %v2559_v39 = vrot.slane %v2537_v52, %v14369_v23  ;;  %v2566_v60 = vrot.slane %v2538_v40, %v14369_v23  ;;  %v2567_v56 = vcombine.high %v2545_v34, %v2545_v34  ;;  %v2568_v18 = vcombine.high %v2552_v19, %v2552_v19 }
  0xb2   : > { %v2866_v38 = vrot.slane %v2545_v34, %v14372_v27  ;;  %v2882_v6 = vrot.slane %v2552_v19, %v14372_v27  ;;  %v874_v5 = vcombine.high %v872_v10, %v872_v10  ;;  %v14911_v63 = vrot.slane %v872_v10, %v14369_v23 }
  0xb3   : > { %v2569_v15 = vcombine.high %v2559_v39, %v2559_v39  ;;  %v2570_v4 = vcombine.high %v2566_v60, %v2566_v60  ;;  %v2870_v20 = vrot.slane %v2559_v39, %v14372_v27  ;;  %v2874_v49 = vrot.slane %v2567_v56, %v14372_v27  ;;  %v14915_v13 = vld [vmem:[#allocation2 + $0xa8] sm:$0xff] }
  0xb4   : > { %v2886_v52 = vrot.slane %v2566_v60, %v14372_v27  ;;  %v2890_v40 = vrot.slane %v2568_v18, %v14372_v27  ;;  %v3111_v34 = vsel %vm1838_vm8, %v2081_v17, %v2866_v38  ;;  %v3115_v19 = vsel %vm1838_vm8, %v2088_v32, %v2882_v6  ;;  %v14921_v24 = vld [vmem:[#allocation2 + $0xb0] sm:$0xff]  ;;  %v14923_v10 = vld [vmem:[#allocation2 + $0xb8] sm:$0x3] }
  0xb5   : > { %v4051_v14 = vrot.slane %v14915_v13, 1  ;;  %v2878_v39 = vrot.slane %v2569_v15, %v14372_v27  ;;  %v2894_v56 = vrot.slane %v2570_v4, %v14372_v27  ;;  %v3112_v31 = vsel %vm1838_vm8, %v2095_v47, %v2870_v20 }
  0xb6   : > { %v4052_v60 = vrot.slane %v14921_v24, 1  ;;  %v4054_v18 = vrot.slane %v14923_v10, 1  ;;  %v3113_v17 = vsel %vm1838_vm8, %v2103_v28, %v2874_v49  ;;  %v3116_v32 = vsel %vm1838_vm8, %v2102_v58, %v2886_v52 }
  0xb7   : > { %v3114_v38 = vsel %vm1838_vm8, %v2105_v44, %v2878_v39  ;;  %v3117_v6 = vsel %vm1838_vm8, %v2104_v43, %v2890_v40  ;;  %v3118_v46 = vsel %vm1838_vm8, %v2106_v16, %v2894_v56  ;;  %v3686_v51 = vcombine.low %v3111_v34, %v3112_v31 }
  0xb8   : > { %v4053_v15 = vsel %vm4015_vm4, %v4051_v14, %v4052_v60  ;;  %v4055_v4 = vsel %vm4015_vm4, %v4052_v60, %v4054_v18  ;;  %v3687_v47 = vcombine.low %v3113_v17, %v3114_v38  ;;  %v3703_v20 = vcombine.low %v3115_v19, %v3116_v32 }
  0xb9   : > { %v14938_v26 = vpack.c.bf16 %v4055_v4, %v4053_v15  ;;  %v3694_v2 = vrot.slane %v3686_v51, %v14379_v37  ;;  %v3704_v49 = vcombine.low %v3117_v6, %v3118_v46  ;;  %v895_v28 = vrot.slane %v873_v41, %v14369_v23 }
  0xba   : > { %v3701_v58 = vrot.slane %v3687_v47, %v14379_v37  ;;  %v3711_v43 = vrot.slane %v3703_v20, %v14379_v37  ;;  %v902_v44 = vrot.slane %v874_v5, %v14369_v23  ;;  %v903_v14 = vcombine.high %v14902_v59, %v14902_v59 }
  0xbb   : > { %17862 = vst [vmem:[#allocation12_spill] sm:$0xff] %v14938_v26  ;;  %12224 = vmatmul.mubr.msk.bf16.gmra.mrb[12].mxu1 %vm408_vm0, %v14938_v26  ;;  %12359 = vmatprep.mubr.msk.bf16.mxu0 %vm408_vm0, %v14938_v26  ;;  %v3718_v51 = vrot.slane %v3704_v49, %v14379_v37  ;;  %v904_v46 = vcombine.high %v14911_v63, %v14911_v63  ;;  %v4579_v16 = vrot.slane %v14472_v22, 2  ;;  %v4580_v19 = vrot.slane %v14483_v33, 2 }
  0xbc   : > { %v905_v31 = vcombine.high %v895_v28, %v895_v28  ;;  %v3702_v41 = vcombine.low %v3694_v2, %v3701_v58  ;;  %v906_v52 = vcombine.high %v902_v44, %v902_v44  ;;  %v1329_v5 = vrot.slane %v14895_v62, %v14369_v23 }
  0xbd   : > { %v1336_v40 = vrot.slane %v1322_v0, %v14369_v23  ;;  %v3719_v34 = vcombine.low %v3711_v43, %v3718_v51  ;;  %v4582_v39 = vrot.slane %v14485_v35, 2  ;;  %v11404_v56 = vcombine.low %v14574_v53, %v14574_v53 }
  0xbe   : > { %3879 = vst.msk [vmem:[#allocation2 + $0xc1] sm:$0xff] %vm408_vm0, %v3702_v41  ;;  %v1337_v60 = vcombine.high %v1329_v5, %v1329_v5  ;;  %v1345_v22 = vrot.slane %v1329_v5, %v14369_v23  ;;  %v4581_v62 = vsel %vm4573_vm12, %v4579_v16, %v4580_v19  ;;  %v17863_v35 = vrot.slane %v14548_v42, 2 }
  0xbf   : > { %v1338_v18 = vcombine.high %v1336_v40, %v1336_v40  ;;  %v1352_v2 = vrot.slane %v1336_v40, %v14369_v23  ;;  %3880 = vst.msk [vmem:[#allocation2 + $0xc9] sm:$0xff] %vm408_vm0, %v3719_v34  ;;  %v4583_v0 = vsel %vm4573_vm12, %v4580_v19, %v4582_v39  ;;  %v14968_v33 = vrot.slane %v11404_v56, 2 }
  0xc0   : > { %v17864_v17 = vrot.slane %v14539_v29, 2  ;;  %v1359_v38 = vrot.slane %v1337_v60, %v14369_v23  ;;  %v1367_v15 = vcombine.high %v1345_v22, %v1345_v22  ;;  %v1649_v47 = vrot.slane %v1345_v22, %v14372_v27 }
  0xc1   : > { %v1366_v6 = vrot.slane %v1338_v18, %v14369_v23  ;;  %v1368_v4 = vcombine.high %v1352_v2, %v1352_v2  ;;  %v1665_v20 = vrot.slane %v1352_v2, %v14372_v27  ;;  %v14979_v49 = vpack.c.bf16 %v4583_v0, %v4581_v62 }
  0xc2   : > { %v4586_v32 = vsel %vm4573_vm12, %v17864_v17, %v17863_v35  ;;  %v17866_v58 = vrot.slane %v14550_v45, 2  ;;  %v17867_v43 = vmov %v17863_v35  ;;  %v1369_v51 = vcombine.high %v1359_v38, %v1359_v38 }
  0xc3   : > { %17865 = vst [vmem:[#allocation13_spill] sm:$0xff] %v14979_v49  ;;  %v1370_v16 = vcombine.high %v1366_v6, %v1366_v6  ;;  %v1653_v41 = vrot.slane %v1359_v38, %v14372_v27  ;;  %v1657_v5 = vrot.slane %v1367_v15, %v14372_v27  ;;  %v1669_v40 = vrot.slane %v1366_v6, %v14372_v27 }
  0xc4   : > { %v4588_v29 = vsel %vm4573_vm12, %v17867_v43, %v17866_v58  ;;  %v1673_v34 = vrot.slane %v1368_v4, %v14372_v27  ;;  %v1871_v19 = vsel %vm1838_vm8, %v14902_v59, %v1649_v47  ;;  %v1875_v45 = vsel %vm1838_vm8, %v14911_v63, %v1665_v20 }
  0xc5   : > { %v1661_v42 = vrot.slane %v1369_v51, %v14372_v27  ;;  %v1677_v39 = vrot.slane %v1370_v16, %v14372_v27  ;;  %v1872_v56 = vsel %vm1838_vm8, %v895_v28, %v1653_v41  ;;  %v1873_v60 = vsel %vm1838_vm8, %v903_v14, %v1657_v5  ;;  %v14998_v18 = vld [vmem:[#allocation2 + $0xc0] sm:$0xff]  ;;  %v15035_v41 = vld [vmem:[%s14352_s29 + $0x28] sm:$0xff] }
  0xc6   : > { %v1876_v22 = vsel %vm1838_vm8, %v902_v44, %v1669_v40  ;;  %v1877_v2 = vsel %vm1838_vm8, %v904_v46, %v1673_v34  ;;  %v3351_v62 = vcombine.low %v1871_v19, %v1872_v56  ;;  %v15002_v0 = vpack.c.bf16 %v4588_v29, %v4586_v32  ;;  %v15004_v59 = vld [vmem:[#allocation2 + $0xc8] sm:$0xff]  ;;  %v15006_v63 = vld [vmem:[#allocation2 + $0xd0] sm:$0x3] }
  0xc7   : > { %v4056_v35 = vrot.slane %v14998_v18, 1  ;;  %v1874_v17 = vsel %vm1838_vm8, %v905_v31, %v1661_v42  ;;  %v1878_v28 = vsel %vm1838_vm8, %v906_v52, %v1677_v39  ;;  %v3368_v14 = vcombine.low %v1875_v45, %v1876_v22  ;;  %v15049_v45 = vld [vmem:[%s17763_s2 + $0x4] sm:$0x3] }
  0xc8   : > { %17868 = vst [vmem:[#allocation14_spill] sm:$0xff] %v15002_v0  ;;  %v4057_v38 = vrot.slane %v15004_v59, 1  ;;  %v4059_v44 = vrot.slane %v15006_v63, 1  ;;  %v3352_v46 = vcombine.low %v1873_v60, %v1874_v17  ;;  %v3359_v32 = vrot.slane %v3351_v62, %v14379_v37  ;;  %13899 = vmatprep.subr.msk.bf16.mxu1 %vm4196_vm2, %v15049_v45 }
  0xc9   : > { %v3369_v6 = vcombine.low %v1877_v2, %v1878_v28  ;;  %v3376_v15 = vrot.slane %v3368_v14, %v14379_v37  ;;  %v15017_v4 = vsel %vm4196_vm2, %v14574_v53, 0  ;;  %v610_v31 = vadd.s32 16, %v14816_v55  ;;  %v15031_v53 = vld [vmem:[%s14357_s13 + $0x28] sm:$0xff] }
  0xca   : > { %v4058_v52 = vsel %vm4015_vm4, %v4056_v35, %v4057_v38  ;;  %v4060_v47 = vsel %vm4015_vm4, %v4057_v38, %v4059_v44  ;;  %v3366_v20 = vrot.slane %v3352_v46, %v14379_v37  ;;  %v15024_v58 = vadd.s32 160, %v14330_v11 }
  0xcb   : > { %v15026_v43 = vpack.c.bf16 %v4060_v47, %v4058_v52  ;;  %v3383_v29 = vrot.slane %v3369_v6, %v14379_v37  ;;  %vm618_vm13 = vcmp.eq.s32.totalorder %v14830_v7, %v610_v31  ;;  %v634_v51 = vadd.s32 1, %v610_v31 }
  0xcc   : > { %v3367_v16 = vcombine.low %v3359_v32, %v3366_v20  ;;  %v626_v55 = vsel %vm618_vm13, %v14877_v48, 0.0  ;;  %vm571_vm14 = vcmp.eq.s32.totalorder %v15031_v53, %v15024_v58  ;;  %v587_v5 = vadd.s32 1, %v15024_v58 }
  0xcd   : > { %17869 = vst [vmem:[#allocation15_spill] sm:$0xff] %v15026_v43  ;;  %12360 = vmatmul.mubr.msk.bf16.gmra.mrb[12].mxu0 %vm408_vm0, %v15026_v43  ;;  %12227 = vmatprep.mubr.msk.bf16.mxu1 %vm408_vm0, %v15026_v43  ;;  %v3384_v40 = vcombine.low %v3376_v15, %v3383_v29  ;;  %vm642_vm15 = vcmp.eq.s32.totalorder %v14830_v7, %v634_v51  ;;  %v579_v19 = vsel %vm571_vm14, %v15035_v41, 0.0 }
  0xce   : > { %v2107_v34 = vcombine.high %v626_v55, %v626_v55  ;;  %3512 = vst.msk [vmem:[#allocation2 + $0xd9] sm:$0xff] %vm408_vm0, %v3367_v16  ;;  %12381 = vmatprep.mubr.msk.bf16.mxu0 %vm408_vm0, %v14979_v49  ;;  %v650_v42 = vsel %vm642_vm15, %v14877_v48, 0.0  ;;  %v2114_v39 = vrot.slane %v626_v55, %v14369_v23  ;;  %vm595_vm1 = vcmp.eq.s32.totalorder %v15031_v53, %v587_v5 }
  0xcf   : > { %v907_v7 = vcombine.high %v579_v19, %v579_v19  ;;  %3513 = vst.msk [vmem:[#allocation2 + $0xe1] sm:$0xff] %vm408_vm0, %v3384_v40  ;;  %v2571_v60 = vcombine.high %v650_v42, %v650_v42  ;;  %v2578_v22 = vrot.slane %v650_v42, %v14369_v23  ;;  %v15063_v2 = vsel %vm595_vm1, %v15035_v41, 0.0 }
  0xd0   : > { %v2121_v56 = vrot.slane %v2107_v34, %v14369_v23  ;;  %v2122_v62 = vcombine.high %v2114_v39, %v2114_v39  ;;  %v2130_v48 = vrot.slane %v2114_v39, %v14369_v23  ;;  %v914_v35 = vrot.slane %v579_v19, %v14369_v23 }
  0xd1   : > { %v15068_v17 = vrot.slane %v907_v7, %v14369_v23  ;;  %v2585_v38 = vrot.slane %v2571_v60, %v14369_v23  ;;  %v2586_v44 = vcombine.high %v2578_v22, %v2578_v22  ;;  %v2594_v6 = vrot.slane %v2578_v22, %v14369_v23 }
  0xd2   : > { %v2123_v28 = vcombine.high %v2121_v56, %v2121_v56  ;;  %v2137_v14 = vrot.slane %v2121_v56, %v14369_v23  ;;  %v2144_v46 = vrot.slane %v2122_v62, %v14369_v23  ;;  %v2152_v32 = vcombine.high %v2130_v48, %v2130_v48 }
  0xd3   : > { %v922_v15 = vcombine.high %v914_v35, %v914_v35  ;;  %v2587_v47 = vcombine.high %v2585_v38, %v2585_v38  ;;  %v2601_v20 = vrot.slane %v2585_v38, %v14369_v23  ;;  %v2608_v51 = vrot.slane %v2586_v44, %v14369_v23 }
  0xd4   : > { %v2151_v31 = vrot.slane %v2123_v28, %v14369_v23  ;;  %v2153_v52 = vcombine.high %v2137_v14, %v2137_v14  ;;  %v2154_v29 = vcombine.high %v2144_v46, %v2144_v46  ;;  %v2616_v16 = vcombine.high %v2594_v6, %v2594_v6 }
  0xd5   : > { %v2898_v55 = vrot.slane %v2594_v6, %v14372_v27  ;;  %v15078_v5 = vld [vmem:[#allocation2 + $0xd8] sm:$0xff]  ;;  %12382 = vmatmul.mubr.msk.bf16.vlgmr.msra.gmra.mrb[0].mxu0 %vm408_vm0, %v15002_v0  ;;  %v2615_v34 = vrot.slane %v2587_v47, %v14369_v23  ;;  %v2617_v19 = vcombine.high %v2601_v20, %v2601_v20  ;;  %v2914_v42 = vrot.slane %v2601_v20, %v14372_v27 }
  0xd6   : > { %v2155_v40 = vcombine.high %v2151_v31, %v2151_v31  ;;  %v15084_v39 = vld [vmem:[#allocation2 + $0xe0] sm:$0xff]  ;;  %v15086_v7 = vld [vmem:[#allocation2 + $0xe8] sm:$0x3]  ;;  %v4061_v56 = vrot.slane %v15078_v5, 1  ;;  %12414 = vmatpush3.bf16.msra.mxu0 %v15017_v4  ;;  %v2618_v60 = vcombine.high %v2608_v51, %v2608_v51  ;;  %v2902_v22 = vrot.slane %v2608_v51, %v14372_v27 }
  0xd7   : > { %v2906_v62 = vrot.slane %v2616_v16, %v14372_v27  ;;  %v4062_v28 = vrot.slane %v15084_v39, 1  ;;  %v4064_v38 = vrot.slane %v15086_v7, 1  ;;  %v2619_v44 = vcombine.high %v2615_v34, %v2615_v34  ;;  %13905 = vmatprep.subr.msk.bf16.mxu0 %vm4196_vm2, %v14968_v33 }
  0xd8   : > { %v2918_v6 = vrot.slane %v2615_v34, %v14372_v27  ;;  %v2910_v47 = vrot.slane %v2618_v60, %v14372_v27  ;;  %v2922_v20 = vrot.slane %v2617_v19, %v14372_v27  ;;  %v3119_v4 = vsel %vm1838_vm8, %v2130_v48, %v2898_v55 }
  0xd9   : > { %v3120_v51 = vsel %vm1838_vm8, %v2144_v46, %v2902_v22  ;;  %v4063_v16 = vsel %vm4015_vm4, %v4061_v56, %v4062_v28  ;;  %v4065_v43 = vsel %vm4015_vm4, %v4062_v28, %v4064_v38  ;;  %v2926_v26 = vrot.slane %v2619_v44, %v14372_v27 }
  0xda   : > { %v3121_v8 = vsel %vm1838_vm8, %v2152_v32, %v2906_v62  ;;  %v15105_v34 = vpack.c.bf16 %v4065_v43, %v4063_v16  ;;  %v3122_v0 = vsel %vm1838_vm8, %v2154_v29, %v2910_v47  ;;  %v3123_v60 = vsel %vm1838_vm8, %v2137_v14, %v2914_v42 }
  0xdb   : > { %v3124_v19 = vsel %vm1838_vm8, %v2151_v31, %v2918_v6  ;;  %v3125_v48 = vsel %vm1838_vm8, %v2153_v52, %v2922_v20  ;;  %v3126_v46 = vsel %vm1838_vm8, %v2155_v40, %v2926_v26  ;;  %v3720_v55 = vcombine.low %v3119_v4, %v3120_v51 }
  0xdc   : > { %17870 = vst [vmem:[#allocation16_spill] sm:$0xff] %v15105_v34  ;;  %v3721_v56 = vcombine.low %v3121_v8, %v3122_v0  ;;  %12228 = vmatmul.mubr.msk.bf16.gmra.mrb[16].mxu1 %vm408_vm0, %v15105_v34  ;;  %v3737_v22 = vcombine.low %v3123_v60, %v3124_v19  ;;  %v3738_v28 = vcombine.low %v3125_v48, %v3126_v46  ;;  %v4590_v20 = vrot.slane %v14630_v61, 2 }
  0xdd   : > { %v923_v43 = vcombine.high %v15068_v17, %v15068_v17  ;;  %v930_v32 = vrot.slane %v914_v35, %v14369_v23  ;;  %v3728_v14 = vrot.slane %v3720_v55, %v14379_v37  ;;  %v937_v52 = vrot.slane %v15068_v17, %v14369_v23 }
  0xde   : > { %v3735_v31 = vrot.slane %v3721_v56, %v14379_v37  ;;  %v944_v26 = vrot.slane %v922_v15, %v14369_v23  ;;  %v3745_v8 = vrot.slane %v3737_v22, %v14379_v37  ;;  %v3752_v0 = vrot.slane %v3738_v28, %v14379_v37 }
  0xdf   : > { %v951_v29 = vrot.slane %v923_v43, %v14369_v23  ;;  %v952_v40 = vcombine.high %v930_v32, %v930_v32  ;;  %v953_v62 = vcombine.high %v937_v52, %v937_v52  ;;  %v1371_v35 = vcombine.high %v15063_v2, %v15063_v2 }
  0xe0   : > { %v3736_v42 = vcombine.low %v3728_v14, %v3735_v31  ;;  %v954_v38 = vcombine.high %v944_v26, %v944_v26  ;;  %v3753_v44 = vcombine.low %v3745_v8, %v3752_v0  ;;  %v1378_v17 = vrot.slane %v15063_v2, %v14369_v23 }
  0xe1   : > { %v955_v6 = vcombine.high %v951_v29, %v951_v29  ;;  %v4589_v15 = vrot.slane %v14628_v1, 2  ;;  %v1385_v47 = vrot.slane %v1371_v35, %v14369_v23  ;;  %v4592_v4 = vrot.slane %v14632_v12, 2 }
  0xe2   : > { %3881 = vst.msk [vmem:[#allocation2 + $0xf1] sm:$0xff] %vm408_vm0, %v3736_v42  ;;  %v4594_v51 = vrot.slane %v14692_v30, 2  ;;  %3882 = vst.msk [vmem:[#allocation2 + $0xf9] sm:$0xff] %vm408_vm0, %v3753_v44  ;;  %v1386_v16 = vcombine.high %v1378_v17, %v1378_v17  ;;  %v1394_v60 = vrot.slane %v1378_v17, %v14369_v23  ;;  %v4595_v19 = vrot.slane %v14698_v36, 2 }
  0xe3   : > { %v4597_v2 = vrot.slane %v14700_v57, 2  ;;  %v1387_v1 = vcombine.high %v1385_v47, %v1385_v47  ;;  %v1401_v48 = vrot.slane %v1385_v47, %v14369_v23  ;;  %v4591_v46 = vsel %vm4573_vm12, %v4589_v15, %v4590_v20 }
  0xe4   : > { %v4593_v61 = vsel %vm4573_vm12, %v4590_v20, %v4592_v4  ;;  %v1408_v12 = vrot.slane %v1386_v16, %v14369_v23  ;;  %v1416_v55 = vcombine.high %v1394_v60, %v1394_v60  ;;  %v1681_v30 = vrot.slane %v1394_v60, %v14372_v27 }
  0xe5   : > { %v15144_v56 = vpack.c.bf16 %v4593_v61, %v4591_v46  ;;  %v1415_v22 = vrot.slane %v1387_v1, %v14369_v23  ;;  %v1417_v28 = vcombine.high %v1401_v48, %v1401_v48  ;;  %v1697_v36 = vrot.slane %v1401_v48, %v14372_v27 }
  0xe6   : > { %v4596_v57 = vsel %vm4573_vm12, %v4594_v51, %v4595_v19  ;;  %v1418_v43 = vcombine.high %v1408_v12, %v1408_v12  ;;  %v1685_v14 = vrot.slane %v1408_v12, %v14372_v27  ;;  %v1689_v31 = vrot.slane %v1416_v55, %v14372_v27 }
  0xe7   : > { %17871 = vst [vmem:[#allocation17_spill] sm:$0xff] %v15144_v56  ;;  %v1879_v8 = vsel %vm1838_vm8, %v930_v32, %v1681_v30  ;;  %12385 = vmatprep.mubr.msk.bf16.mxu0 %vm408_vm0, %v15144_v56  ;;  %v1419_v0 = vcombine.high %v1415_v22, %v1415_v22  ;;  %v1701_v42 = vrot.slane %v1415_v22, %v14372_v27 }
  0xe8   : > { %v1705_v35 = vrot.slane %v1417_v28, %v14372_v27  ;;  %v1883_v44 = vsel %vm1838_vm8, %v937_v52, %v1697_v36  ;;  %v1693_v15 = vrot.slane %v1418_v43, %v14372_v27  ;;  %v1880_v47 = vsel %vm1838_vm8, %v944_v26, %v1685_v14 }
  0xe9   : > { %v15157_v17 = vld [vmem:[#allocation2 + $0xf0] sm:$0xff]  ;;  %v1881_v20 = vsel %vm1838_vm8, %v952_v40, %v1689_v31  ;;  %v4598_v32 = vsel %vm4573_vm12, %v4595_v19, %v4597_v2  ;;  %v15163_v4 = vld [vmem:[#allocation2 + $0xf8] sm:$0xff]  ;;  %v15165_v51 = vld [vmem:[#allocation2 + $0x100] sm:$0x3]  ;;  %v1709_v60 = vrot.slane %v1419_v0, %v14372_v27  ;;  %v1884_v52 = vsel %vm1838_vm8, %v951_v29, %v1701_v42 }
  0xea   : > { %v4066_v16 = vrot.slane %v15157_v17, 1  ;;  %v1885_v1 = vsel %vm1838_vm8, %v953_v62, %v1705_v35  ;;  %v4067_v48 = vrot.slane %v15163_v4, 1  ;;  %v4069_v26 = vrot.slane %v15165_v51, 1  ;;  %v15197_v0 = vld [vmem:[%s14357_s13 + $0x30] sm:$0xff] }
  0xeb   : > { %v1882_v40 = vsel %vm1838_vm8, %v954_v38, %v1693_v15  ;;  %v3385_v46 = vcombine.low %v1879_v8, %v1880_v47  ;;  %v1886_v19 = vsel %vm1838_vm8, %v955_v6, %v1709_v60  ;;  %v3402_v61 = vcombine.low %v1883_v44, %v1884_v52  ;;  %v15202_v44 = vld [vmem:[%s14352_s29 + $0x30] sm:$0xff] }
  0xec   : > { %v3386_v2 = vcombine.low %v1881_v20, %v1882_v40  ;;  %v15175_v12 = vpack.c.bf16 %v4598_v32, %v4596_v57  ;;  %v4068_v55 = vsel %vm4015_vm4, %v4066_v16, %v4067_v48  ;;  %v4070_v30 = vsel %vm4015_vm4, %v4067_v48, %v4069_v26 }
  0xed   : > { %v3393_v29 = vrot.slane %v3385_v46, %v14379_v37  ;;  %v3403_v62 = vcombine.low %v1885_v1, %v1886_v19  ;;  %v15180_v22 = vpack.c.bf16 %v4070_v30, %v4068_v55  ;;  %v3410_v38 = vrot.slane %v3402_v61, %v14379_v37 }
  0xee   : > { %17872 = vst [vmem:[#allocation18_spill] sm:$0xff] %v15175_v12  ;;  %v3400_v28 = vrot.slane %v3386_v2, %v14379_v37  ;;  %12386 = vmatmul.mubr.msk.bf16.gmra.mrb[4].mxu0 %vm408_vm0, %v15175_v12  ;;  %v611_v6 = vadd.s32 16, %v15024_v58  ;;  %v15189_v57 = vadd.s32 192, %v14330_v11 }
  0xef   : > { %17873 = vst [vmem:[#allocation19_spill] sm:$0xff] %v15180_v22  ;;  %v3417_v36 = vrot.slane %v3403_v62, %v14379_v37  ;;  %12231 = vmatprep.mubr.msk.bf16.mxu1 %vm408_vm0, %v15180_v22 }
  0xf0   : > { %v3401_v31 = vcombine.low %v3393_v29, %v3400_v28  ;;  %vm619_vm3 = vcmp.eq.s32.totalorder %v15031_v53, %v611_v6  ;;  %v635_v8 = vadd.s32 1, %v611_v6  ;;  %vm572_vm5 = vcmp.eq.s32.totalorder %v15197_v0, %v15189_v57 }
  0xf1   : > { %v3418_v42 = vcombine.low %v3410_v38, %v3417_v36  ;;  %v627_v35 = vsel %vm619_vm3, %v15035_v41, 0.0  ;;  %v588_v15 = vadd.s32 1, %v15189_v57  ;;  %v580_v32 = vsel %vm572_vm5, %v15202_v44, 0.0 }
  0xf2   : > { %3514 = vst.msk [vmem:[#allocation2 + $0x109] sm:$0xff] %vm408_vm0, %v3401_v31  ;;  %vm643_vm6 = vcmp.eq.s32.totalorder %v15031_v53, %v635_v8  ;;  %v2156_v47 = vcombine.high %v627_v35, %v627_v35  ;;  %v2163_v20 = vrot.slane %v627_v35, %v14369_v23  ;;  %v956_v60 = vcombine.high %v580_v32, %v580_v32 }
  0xf3   : > { %3515 = vst.msk [vmem:[#allocation2 + $0x111] sm:$0xff] %vm408_vm0, %v3418_v42  ;;  %v651_v16 = vsel %vm643_vm6, %v15035_v41, 0.0  ;;  %vm596_vm7 = vcmp.eq.s32.totalorder %v15197_v0, %v588_v15  ;;  %v963_v52 = vrot.slane %v580_v32, %v14369_v23 }
  0xf4   : > { %v2170_v1 = vrot.slane %v2156_v47, %v14369_v23  ;;  %v2171_v48 = vcombine.high %v2163_v20, %v2163_v20  ;;  %v2179_v26 = vrot.slane %v2163_v20, %v14369_v23  ;;  %v2620_v53 = vcombine.high %v651_v16, %v651_v16 }
  0xf5   : > { %v2627_v40 = vrot.slane %v651_v16, %v14369_v23  ;;  %v15219_v46 = vsel %vm596_vm7, %v15202_v44, 0.0  ;;  %v970_v19 = vrot.slane %v956_v60, %v14369_v23  ;;  %v971_v2 = vcombine.high %v963_v52, %v963_v52 }
  0xf6   : > { %v2172_v41 = vcombine.high %v2170_v1, %v2170_v1  ;;  %v2186_v61 = vrot.slane %v2170_v1, %v14369_v23  ;;  %v2193_v55 = vrot.slane %v2171_v48, %v14369_v23  ;;  %v2201_v30 = vcombine.high %v2179_v26, %v2179_v26 }
  0xf7   : > { %v2634_v29 = vrot.slane %v2620_v53, %v14369_v23  ;;  %v2635_v62 = vcombine.high %v2627_v40, %v2627_v40  ;;  %v2643_v28 = vrot.slane %v2627_v40, %v14369_v23  ;;  %v972_v38 = vcombine.high %v970_v19, %v970_v19 }
  0xf8   : > { %v2200_v6 = vrot.slane %v2172_v41, %v14369_v23  ;;  %v2202_v36 = vcombine.high %v2186_v61, %v2186_v61  ;;  %v2203_v31 = vcombine.high %v2193_v55, %v2193_v55  ;;  %v15228_v8 = vrot.slane %v963_v52, %v14369_v23 }
  0xf9   : > { %v15230_v42 = vld [vmem:[#allocation2 + $0x108] sm:$0xff]  ;;  %v2636_v35 = vcombine.high %v2634_v29, %v2634_v29  ;;  %v2650_v15 = vrot.slane %v2634_v29, %v14369_v23  ;;  %v2657_v47 = vrot.slane %v2635_v62, %v14369_v23  ;;  %v2665_v20 = vcombine.high %v2643_v28, %v2643_v28 }
  0xfa   : > { %v15234_v32 = vld [vmem:[#allocation2 + $0x110] sm:$0xff]  ;;  %v15236_v16 = vld [vmem:[#allocation2 + $0x118] sm:$0x3]  ;;  %v4071_v60 = vrot.slane %v15230_v42, 1  ;;  %v2204_v1 = vcombine.high %v2200_v6, %v2200_v6  ;;  %v2930_v48 = vrot.slane %v2643_v28, %v14372_v27  ;;  %v15241_v52 = vrot.slane %v970_v19, %v14369_v23 }
  0xfb   : > { %v4072_v53 = vrot.slane %v15234_v32, 1  ;;  %v4074_v40 = vrot.slane %v15236_v16, 1  ;;  %v2664_v41 = vrot.slane %v2636_v35, %v14369_v23  ;;  %v2666_v29 = vcombine.high %v2650_v15, %v2650_v15 }
  0xfc   : > { %v2667_v62 = vcombine.high %v2657_v47, %v2657_v47  ;;  %v2934_v58 = vrot.slane %v2657_v47, %v14372_v27  ;;  %v2938_v43 = vrot.slane %v2665_v20, %v14372_v27  ;;  %v2946_v14 = vrot.slane %v2650_v15, %v14372_v27 }
  0xfd   : > { %v4073_v22 = vsel %vm4015_vm4, %v4071_v60, %v4072_v53  ;;  %v4075_v28 = vsel %vm4015_vm4, %v4072_v53, %v4074_v40  ;;  %v2668_v19 = vcombine.high %v2664_v41, %v2664_v41  ;;  %v2950_v34 = vrot.slane %v2664_v41, %v14372_v27 }
  0xfe   : > { %v15252_v12 = vpack.c.bf16 %v4075_v28, %v4073_v22  ;;  %v2942_v56 = vrot.slane %v2667_v62, %v14372_v27  ;;  %v2954_v35 = vrot.slane %v2666_v29, %v14372_v27  ;;  %v3127_v49 = vsel %vm1838_vm8, %v2179_v26, %v2930_v48 }
  0xff   : > { %v2958_v47 = vrot.slane %v2668_v19, %v14372_v27  ;;  %v3128_v20 = vsel %vm1838_vm8, %v2193_v55, %v2934_v58  ;;  %v3129_v15 = vsel %vm1838_vm8, %v2201_v30, %v2938_v43  ;;  %v3131_v60 = vsel %vm1838_vm8, %v2186_v61, %v2946_v14 }
 0x100   : > { %12232 = vmatmul.mubr.msk.bf16.gmra.mrb[20].mxu1 %vm408_vm0, %v15252_v12  ;;  %v3130_v22 = vsel %vm1838_vm8, %v2203_v31, %v2942_v56  ;;  %v3132_v53 = vsel %vm1838_vm8, %v2200_v6, %v2950_v34  ;;  %v3133_v40 = vsel %vm1838_vm8, %v2202_v36, %v2954_v35  ;;  %v3754_v41 = vcombine.low %v3127_v49, %v3128_v20 }
 0x101   : > { %v3134_v26 = vsel %vm1838_vm8, %v2204_v1, %v2958_v47  ;;  %v3755_v48 = vcombine.low %v3129_v15, %v3130_v22  ;;  %v3771_v29 = vcombine.low %v3131_v60, %v3132_v53  ;;  %v993_v58 = vrot.slane %v971_v2, %v14369_v23 }
 0x102   : > { %v3762_v43 = vrot.slane %v3754_v41, %v14379_v37  ;;  %v3772_v55 = vcombine.low %v3133_v40, %v3134_v26  ;;  %v15270_v14 = vrot.slane %v972_v38, %v14369_v23  ;;  %v1001_v56 = vcombine.high %v15228_v8, %v15228_v8 }
 0x103   : > { %v3769_v34 = vrot.slane %v3755_v48, %v14379_v37  ;;  %v3779_v61 = vrot.slane %v3771_v29, %v14379_v37  ;;  %v1002_v49 = vcombine.high %v15241_v52, %v15241_v52  ;;  %v1003_v30 = vcombine.high %v993_v58, %v993_v58 }
 0x104   : > { %v3786_v6 = vrot.slane %v3772_v55, %v14379_v37  ;;  %v1004_v2 = vcombine.high %v15270_v14, %v15270_v14  ;;  %v1420_v38 = vcombine.high %v15219_v46, %v15219_v46  ;;  %v1427_v36 = vrot.slane %v15219_v46, %v14369_v23 }
 0x105   : > { %v3770_v31 = vcombine.low %v3762_v43, %v3769_v34  ;;  %v17874_v1 = vrot.slane %v14774_v54, 2  ;;  %v17875_v62 = vrot.slane %v14768_v21, 2  ;;  %v17876_v19 = vrot.slane %v14776_v25, 2 }
 0x106   : > { %v4604_v20 = vrot.slane %v14850_v9, 2  ;;  %v3787_v15 = vcombine.low %v3779_v61, %v3786_v6  ;;  %v1434_v60 = vrot.slane %v1420_v38, %v14369_v23  ;;  %v1435_v22 = vcombine.high %v1427_v36, %v1427_v36 }
 0x107   : > { %v4601_v28 = vsel %vm4573_vm12, %v17875_v62, %v17874_v1  ;;  %v17877_v35 = vmov %v17874_v1  ;;  %v1443_v46 = vrot.slane %v1427_v36, %v14369_v23  ;;  %3883 = vst.msk [vmem:[#allocation2 + $0x121] sm:$0xff] %vm408_vm0, %v3770_v31  ;;  %v4605_v21 = vrot.slane %v14855_v3, 2 }
 0x108   : > { %v4603_v47 = vsel %vm4573_vm12, %v17877_v35, %v17876_v19  ;;  %v4607_v25 = vrot.slane %v14857_v50, 2  ;;  %v612_v54 = vadd.s32 16, %v15189_v57  ;;  %3884 = vst.msk [vmem:[#allocation2 + $0x129] sm:$0xff] %vm408_vm0, %v3787_v15  ;;  %v1436_v40 = vcombine.high %v1434_v60, %v1434_v60 }
 0x109   : > { %v15299_v53 = vpack.c.bf16 %v4603_v47, %v4601_v28  ;;  %v1450_v9 = vrot.slane %v1434_v60, %v14369_v23  ;;  %v1457_v41 = vrot.slane %v1435_v22, %v14369_v23  ;;  %v1465_v26 = vcombine.high %v1443_v46, %v1443_v46 }
 0x10a   : > { %v1713_v48 = vrot.slane %v1443_v46, %v14372_v27  ;;  %v4606_v29 = vsel %vm4573_vm12, %v4604_v20, %v4605_v21  ;;  %v4608_v3 = vsel %vm4573_vm12, %v4605_v21, %v4607_v25  ;;  %vm620_vm9 = vcmp.eq.s32.totalorder %v15197_v0, %v612_v54 }
 0x10b   : > { %12389 = vmatprep.mubr.msk.bf16.mxu0 %vm408_vm0, %v15299_v53  ;;  %v1464_v50 = vrot.slane %v1436_v40, %v14369_v23  ;;  %v1466_v57 = vcombine.high %v1450_v9, %v1450_v9  ;;  %v1467_v43 = vcombine.high %v1457_v41, %v1457_v41  ;;  %v1717_v55 = vrot.slane %v1457_v41, %v14372_v27 }
 0x10c   : > { %v1721_v34 = vrot.slane %v1465_v26, %v14372_v27  ;;  %v1729_v61 = vrot.slane %v1450_v9, %v14372_v27  ;;  %v1887_v6 = vsel %vm1838_vm8, %v15228_v8, %v1713_v48  ;;  %v15319_v38 = vpack.c.bf16 %v4608_v3, %v4606_v29 }
 0x10d   : > { %v1468_v36 = vcombine.high %v1464_v50, %v1464_v50  ;;  %v1725_v31 = vrot.slane %v1467_v43, %v14372_v27  ;;  %v1733_v1 = vrot.slane %v1464_v50, %v14372_v27  ;;  %v1737_v62 = vrot.slane %v1466_v57, %v14372_v27 }
 0x10e   : > { %v1888_v28 = vsel %vm1838_vm8, %v993_v58, %v1717_v55  ;;  %v1889_v19 = vsel %vm1838_vm8, %v1001_v56, %v1721_v34  ;;  %v1891_v35 = vsel %vm1838_vm8, %v15241_v52, %v1729_v61  ;;  %12390 = vmatmul.mubr.msk.bf16.gmra.mrb[8].mxu0 %vm408_vm0, %v15319_v38  ;;  %v628_v8 = vsel %vm620_vm9, %v15202_v44, 0.0  ;;  %v15333_v47 = vld [vmem:[#allocation2 + $0x120] sm:$0xff] }
 0x10f   : > { %v1741_v20 = vrot.slane %v1468_v36, %v14372_v27  ;;  %v1890_v15 = vsel %vm1838_vm8, %v1003_v30, %v1725_v31  ;;  %v1892_v58 = vsel %vm1838_vm8, %v15270_v14, %v1733_v1  ;;  %v1893_v56 = vsel %vm1838_vm8, %v1002_v49, %v1737_v62  ;;  %v15340_v60 = vld [vmem:[#allocation2 + $0x128] sm:$0xff]  ;;  %v15342_v52 = vld [vmem:[#allocation2 + $0x130] sm:$0x3] }
 0x110   : > { %v4076_v22 = vrot.slane %v15333_v47, 1  ;;  %v3419_v46 = vcombine.low %v1887_v6, %v1888_v28  ;;  %v3420_v21 = vcombine.low %v1889_v19, %v1890_v15  ;;  %v3436_v25 = vcombine.low %v1891_v35, %v1892_v58  ;;  %v15372_v35 = vld [vmem:[%s14357_s13 + $0x38] sm:$0xff] }
 0x111   : > { %v4077_v40 = vrot.slane %v15340_v60, 1  ;;  %v4079_v9 = vrot.slane %v15342_v52, 1  ;;  %v1894_v30 = vsel %vm1838_vm8, %v1004_v2, %v1741_v20  ;;  %v636_v41 = vadd.s32 1, %v612_v54 }
 0x112   : > { %v3427_v14 = vrot.slane %v3419_v46, %v14379_v37  ;;  %v3434_v49 = vrot.slane %v3420_v21, %v14379_v37  ;;  %v3437_v26 = vcombine.low %v1893_v56, %v1894_v30  ;;  %v3444_v48 = vrot.slane %v3436_v25, %v14379_v37 }
 0x113   : > { %v4078_v29 = vsel %vm4015_vm4, %v4076_v22, %v4077_v40  ;;  %v4080_v3 = vsel %vm4015_vm4, %v4077_v40, %v4079_v9  ;;  %vm644_vm10 = vcmp.eq.s32.totalorder %v15197_v0, %v636_v41  ;;  %v2205_v50 = vcombine.high %v628_v8, %v628_v8  ;;  %v15384_v9 = vld [vmem:[%s14352_s29 + $0x38] sm:$0xff]  ;;  %s17632_s29 = scalar_lea.vmem %s17772_s11, %s11749_s26 }
 0x114   : > { %v15354_v57 = vpack.c.bf16 %v4080_v3, %v4078_v29  ;;  %v3435_v43 = vcombine.low %v3427_v14, %v3434_v49  ;;  %v3451_v2 = vrot.slane %v3437_v26, %v14379_v37  ;;  %v652_v54 = vsel %vm644_vm10, %v15202_v44, 0.0 }
 0x115   : > { %v2212_v55 = vrot.slane %v628_v8, %v14369_v23  ;;  %v2219_v34 = vrot.slane %v2205_v50, %v14369_v23  ;;  %v2669_v61 = vcombine.high %v652_v54, %v652_v54  ;;  %v2676_v6 = vrot.slane %v652_v54, %v14369_v23 }
 0x116   : > { %12235 = vmatprep.mubr.msk.bf16.mxu1 %vm408_vm0, %v15354_v57  ;;  %v3452_v0 = vcombine.low %v3444_v48, %v3451_v2  ;;  %3516 = vst.msk [vmem:[#allocation2 + $0x139] sm:$0xff] %vm408_vm0, %v3435_v43  ;;  %v15365_v36 = vadd.s32 224, %v14330_v11  ;;  %v4609_v31 = vrot.slane %v14915_v13, 2  ;;  %v4610_v44 = vrot.slane %v14921_v24, 2 }
 0x117   : > { %v2220_v1 = vcombine.high %v2212_v55, %v2212_v55  ;;  %v2221_v62 = vcombine.high %v2219_v34, %v2219_v34  ;;  %v2228_v28 = vrot.slane %v2212_v55, %v14369_v23  ;;  %v2235_v19 = vrot.slane %v2219_v34, %v14369_v23 }
 0x118   : > { %3517 = vst.msk [vmem:[#allocation2 + $0x141] sm:$0xff] %vm408_vm0, %v3452_v0  ;;  %v2683_v8 = vrot.slane %v2669_v61, %v14369_v23  ;;  %v2684_v20 = vcombine.high %v2676_v6, %v2676_v6  ;;  %v2692_v11 = vrot.slane %v2676_v6, %v14369_v23  ;;  %vm573_vm11 = vcmp.eq.s32.totalorder %v15372_v35, %v15365_v36 }
 0x119   : > { %v2242_v15 = vrot.slane %v2220_v1, %v14369_v23  ;;  %v2249_v58 = vrot.slane %v2221_v62, %v14369_v23  ;;  %v2250_v56 = vcombine.high %v2228_v28, %v2228_v28  ;;  %v2251_v22 = vcombine.high %v2235_v19, %v2235_v19 }
 0x11a   : > { %v2685_v46 = vcombine.high %v2683_v8, %v2683_v8  ;;  %v2699_v21 = vrot.slane %v2683_v8, %v14369_v23  ;;  %v2706_v25 = vrot.slane %v2684_v20, %v14369_v23  ;;  %v2714_v40 = vcombine.high %v2692_v11, %v2692_v11 }
 0x11b   : > { %v2252_v30 = vcombine.high %v2242_v15, %v2242_v15  ;;  %v2253_v41 = vcombine.high %v2249_v58, %v2249_v58  ;;  %v2962_v14 = vrot.slane %v2692_v11, %v14372_v27  ;;  %v581_v49 = vsel %vm573_vm11, %v15384_v9, 0.0 }
 0x11c   : > { %v2713_v26 = vrot.slane %v2685_v46, %v14369_v23  ;;  %v2715_v48 = vcombine.high %v2699_v21, %v2699_v21  ;;  %v2716_v29 = vcombine.high %v2706_v25, %v2706_v25  ;;  %v2966_v3 = vrot.slane %v2706_v25, %v14372_v27 }
 0x11d   : > { %v15390_v50 = vld [vmem:[#allocation2 + $0x138] sm:$0xff]  ;;  %v2970_v43 = vrot.slane %v2714_v40, %v14372_v27  ;;  %v2978_v2 = vrot.slane %v2699_v21, %v14372_v27  ;;  %v3135_v54 = vsel %vm1838_vm8, %v2228_v28, %v2962_v14  ;;  %v589_v55 = vadd.s32 1, %v15365_v36 }
 0x11e   : > { %v4081_v34 = vrot.slane %v15390_v50, 1  ;;  %v2717_v61 = vcombine.high %v2713_v26, %v2713_v26  ;;  %v2974_v6 = vrot.slane %v2716_v29, %v14372_v27  ;;  %v2982_v0 = vrot.slane %v2713_v26, %v14372_v27 }
 0x11f   : > { %v15399_v1 = vld [vmem:[#allocation2 + $0x140] sm:$0xff]  ;;  %v15401_v62 = vld [vmem:[#allocation2 + $0x148] sm:$0x3]  ;;  %v2986_v8 = vrot.slane %v2715_v48, %v14372_v27  ;;  %v3136_v20 = vsel %vm1838_vm8, %v2242_v15, %v2966_v3  ;;  %v3137_v11 = vsel %vm1838_vm8, %v2250_v56, %v2970_v43  ;;  %v3139_v28 = vsel %vm1838_vm8, %v2235_v19, %v2978_v2 }
 0x120   : > { %v4082_v46 = vrot.slane %v15399_v1, 1  ;;  %v4084_v21 = vrot.slane %v15401_v62, 1  ;;  %v2990_v25 = vrot.slane %v2717_v61, %v14372_v27  ;;  %v3138_v40 = vsel %vm1838_vm8, %v2252_v30, %v2974_v6 }
 0x121   : > { %v3140_v14 = vsel %vm1838_vm8, %v2249_v58, %v2982_v0  ;;  %v3141_v26 = vsel %vm1838_vm8, %v2251_v22, %v2986_v8  ;;  %v3788_v29 = vcombine.low %v3135_v54, %v3136_v20  ;;  %v3789_v48 = vcombine.low %v3137_v11, %v3138_v40 }
 0x122   : > { %v4083_v15 = vsel %vm4015_vm4, %v4081_v34, %v4082_v46  ;;  %v4085_v56 = vsel %vm4015_vm4, %v4082_v46, %v4084_v21  ;;  %v3142_v19 = vsel %vm1838_vm8, %v2253_v41, %v2990_v25  ;;  %v3805_v3 = vcombine.low %v3139_v28, %v3140_v14 }
 0x123   : > { %v15416_v43 = vpack.c.bf16 %v4085_v56, %v4083_v15  ;;  %v3796_v2 = vrot.slane %v3788_v29, %v14379_v37  ;;  %v3803_v61 = vrot.slane %v3789_v48, %v14379_v37  ;;  %v3806_v30 = vcombine.low %v3141_v26, %v3142_v19 }
 0x124   : > { %v3813_v58 = vrot.slane %v3805_v3, %v14379_v37  ;;  %vm597_vm13 = vcmp.eq.s32.totalorder %v15372_v35, %v589_v55  ;;  %v1005_v22 = vcombine.high %v581_v49, %v581_v49  ;;  %v1012_v54 = vrot.slane %v581_v49, %v14369_v23 }
 0x125   : > { %12236 = vmatmul.mubr.msk.bf16.gmra.mrb[24].mxu1 %vm408_vm0, %v15416_v43  ;;  %v3804_v34 = vcombine.low %v3796_v2, %v3803_v61  ;;  %v3820_v41 = vrot.slane %v3806_v30, %v14379_v37  ;;  %v605_v6 = vsel %vm597_vm13, %v15384_v9, 0.0  ;;  %v4611_v0 = vsel %vm4573_vm12, %v4609_v31, %v4610_v44 }
 0x126   : > { %v1019_v8 = vrot.slane %v1005_v22, %v14369_v23  ;;  %v1020_v55 = vcombine.high %v1012_v54, %v1012_v54  ;;  %v1028_v20 = vrot.slane %v1012_v54, %v14369_v23  ;;  %v1469_v49 = vcombine.high %v605_v6, %v605_v6 }
 0x127   : > { %v3821_v11 = vcombine.low %v3813_v58, %v3820_v41  ;;  %3885 = vst.msk [vmem:[#allocation2 + $0x151] sm:$0xff] %vm408_vm0, %v3804_v34  ;;  %v1476_v28 = vrot.slane %v605_v6, %v14369_v23  ;;  %v4612_v46 = vrot.slane %v14923_v10, 2  ;;  %v4614_v21 = vrot.slane %v14998_v18, 2 }
 0x128   : > { %v1021_v25 = vcombine.high %v1019_v8, %v1019_v8  ;;  %v1035_v13 = vrot.slane %v1019_v8, %v14369_v23  ;;  %v1042_v31 = vrot.slane %v1020_v55, %v14369_v23  ;;  %v1050_v40 = vcombine.high %v1028_v20, %v1028_v20 }
 0x129   : > { %3886 = vst.msk [vmem:[#allocation2 + $0x159] sm:$0xff] %vm408_vm0, %v3821_v11  ;;  %v1483_v14 = vrot.slane %v1469_v49, %v14369_v23  ;;  %v1484_v26 = vcombine.high %v1476_v28, %v1476_v28  ;;  %v1492_v29 = vrot.slane %v1476_v28, %v14369_v23  ;;  %v4613_v48 = vsel %vm4573_vm12, %v4610_v44, %v4612_v46 }
 0x12a   : > { %v1049_v10 = vrot.slane %v1021_v25, %v14369_v23  ;;  %v1051_v18 = vcombine.high %v1035_v13, %v1035_v13  ;;  %v1052_v15 = vcombine.high %v1042_v31, %v1042_v31  ;;  %v15447_v56 = vpack.c.bf16 %v4613_v48, %v4611_v0 }
 0x12b   : > { %v1485_v19 = vcombine.high %v1483_v14, %v1483_v14  ;;  %v1499_v3 = vrot.slane %v1483_v14, %v14369_v23  ;;  %v1506_v2 = vrot.slane %v1484_v26, %v14369_v23  ;;  %v1514_v61 = vcombine.high %v1492_v29, %v1492_v29 }
 0x12c   : > { %v1053_v30 = vcombine.high %v1049_v10, %v1049_v10  ;;  %v1745_v58 = vrot.slane %v1492_v29, %v14372_v27  ;;  %12393 = vmatprep.mubr.msk.bf16.mxu0 %vm408_vm0, %v15447_v56  ;;  %v4615_v24 = vrot.slane %v15004_v59, 2  ;;  %v4617_v44 = vrot.slane %v15006_v63, 2 }
 0x12d   : > { %v1513_v22 = vrot.slane %v1485_v19, %v14369_v23  ;;  %v1515_v54 = vcombine.high %v1499_v3, %v1499_v3  ;;  %v1516_v34 = vcombine.high %v1506_v2, %v1506_v2  ;;  %v1749_v41 = vrot.slane %v1506_v2, %v14372_v27 }
 0x12e   : > { %v15458_v6 = vld [vmem:[#allocation2 + $0x150] sm:$0xff]  ;;  %v1753_v0 = vrot.slane %v1514_v61, %v14372_v27  ;;  %v1761_v8 = vrot.slane %v1499_v3, %v14372_v27  ;;  %v1895_v55 = vsel %vm1838_vm8, %v1028_v20, %v1745_v58  ;;  %v4616_v49 = vsel %vm4573_vm12, %v4614_v21, %v4615_v24 }
 0x12f   : > { %v4086_v59 = vrot.slane %v15458_v6, 1  ;;  %v1517_v11 = vcombine.high %v1513_v22, %v1513_v22  ;;  %v1757_v63 = vrot.slane %v1516_v34, %v14372_v27  ;;  %v1765_v28 = vrot.slane %v1513_v22, %v14372_v27 }
 0x130   : > { %v15467_v46 = vld [vmem:[#allocation2 + $0x158] sm:$0xff]  ;;  %v15469_v25 = vld [vmem:[#allocation2 + $0x160] sm:$0x3]  ;;  %v1769_v14 = vrot.slane %v1515_v54, %v14372_v27  ;;  %v1896_v26 = vsel %vm1838_vm8, %v1042_v31, %v1749_v41  ;;  %v1897_v29 = vsel %vm1838_vm8, %v1050_v40, %v1753_v0  ;;  %v1899_v20 = vsel %vm1838_vm8, %v1035_v13, %v1761_v8 }
 0x131   : > { %v4087_v21 = vrot.slane %v15467_v46, 1  ;;  %v4089_v48 = vrot.slane %v15469_v25, 1  ;;  %v1773_v19 = vrot.slane %v1517_v11, %v14372_v27  ;;  %v1898_v3 = vsel %vm1838_vm8, %v1052_v15, %v1757_v63 }
 0x132   : > { %v1900_v2 = vsel %vm1838_vm8, %v1049_v10, %v1765_v28  ;;  %v1901_v61 = vsel %vm1838_vm8, %v1051_v18, %v1769_v14  ;;  %v3453_v58 = vcombine.low %v1895_v55, %v1896_v26  ;;  %v3454_v22 = vcombine.low %v1897_v29, %v1898_v3 }
 0x133   : > { %v4088_v31 = vsel %vm4015_vm4, %v4086_v59, %v4087_v21  ;;  %v4090_v40 = vsel %vm4015_vm4, %v4087_v21, %v4089_v48  ;;  %v1902_v13 = vsel %vm1838_vm8, %v1053_v30, %v1773_v19  ;;  %v3470_v54 = vcombine.low %v1899_v20, %v1900_v2 }
 0x134   : > { %v15484_v34 = vpack.c.bf16 %v4090_v40, %v4088_v31  ;;  %v3461_v41 = vrot.slane %v3453_v58, %v14379_v37  ;;  %v3468_v0 = vrot.slane %v3454_v22, %v14379_v37  ;;  %v3471_v15 = vcombine.low %v1901_v61, %v1902_v13 }
 0x135   : > { %v3478_v10 = vrot.slane %v3470_v54, %v14379_v37  ;;  %v4618_v18 = vsel %vm4573_vm12, %v4615_v24, %v4617_v44  ;;  %v4619_v30 = vrot.slane %v15078_v5, 2  ;;  %v4620_v11 = vrot.slane %v15084_v39, 2 }
 0x136   : > { %12239 = vmatprep.mubr.msk.bf16.mxu1 %vm408_vm0, %v15484_v34  ;;  %v3469_v8 = vcombine.low %v3461_v41, %v3468_v0  ;;  %v3485_v55 = vrot.slane %v3471_v15, %v14379_v37  ;;  %v15493_v59 = vpack.c.bf16 %v4618_v18, %v4616_v49  ;;  %v4622_v63 = vrot.slane %v15086_v7, 2 }
 0x137   : > { %v4624_v28 = vrot.slane %v15157_v17, 2  ;;  %v4625_v24 = vrot.slane %v15163_v4, 2  ;;  %v4627_v44 = vrot.slane %v15165_v51, 2  ;;  %v4621_v49 = vsel %vm4573_vm12, %v4619_v30, %v4620_v11  ;;  %v15538_v30 = vld [vmem:[#allocation2 + $0x8] sm:$0xff] }
 0x138   : > { %v3486_v14 = vcombine.low %v3478_v10, %v3485_v55  ;;  %3518 = vst.msk [vmem:[#allocation2 + $0x169] sm:$0xff] %vm408_vm0, %v3469_v8  ;;  %12394 = vmatmul.mubr.msk.bf16.gmra.mrb[12].mxu0 %vm408_vm0, %v15493_v59  ;;  %v4623_v5 = vsel %vm4573_vm12, %v4620_v11, %v4622_v63  ;;  %v4629_v39 = vrot.slane %v15230_v42, 2  ;;  %v4630_v20 = vrot.slane %v15234_v32, 2  ;;  %v15540_v11 = vld [vmem:[#allocation2] sm:$0xff] }
 0x139   : > { %v15508_v7 = vpack.c.bf16 %v4623_v5, %v4621_v49  ;;  %v4626_v26 = vsel %vm4573_vm12, %v4624_v28, %v4625_v24  ;;  %v4628_v29 = vsel %vm4573_vm12, %v4625_v24, %v4627_v44  ;;  %v4632_v51 = vrot.slane %v15236_v16, 2  ;;  %v13947_v28 = vld [vmem:[#allocation2 + $0x18] sm:$0xff] }
 0x13a   : > { %3519 = vst.msk [vmem:[#allocation2 + $0x171] sm:$0xff] %vm408_vm0, %v3486_v14  ;;  %v15513_v21 = vpack.c.bf16 %v4628_v29, %v4626_v26  ;;  %v4631_v48 = vsel %vm4573_vm12, %v4629_v39, %v4630_v20  ;;  %v4634_v19 = vrot.slane %v15333_v47, 2  ;;  %v4635_v3 = vrot.slane %v15340_v60, 2  ;;  %v13948_v14 = vld [vmem:[#allocation2 + $0x20] sm:$0xff] }
 0x13b   : > { %12397 = vmatprep.mubr.msk.bf16.mxu0 %vm408_vm0, %v15508_v7  ;;  %v4637_v2 = vrot.slane %v15342_v52, 2  ;;  %v4633_v61 = vsel %vm4573_vm12, %v4630_v20, %v4632_v51  ;;  %v4639_v58 = vrot.slane %v15390_v50, 2  ;;  %v4640_v22 = vrot.slane %v15399_v1, 2 }
 0x13c   : > { %v15525_v31 = vpack.c.bf16 %v4633_v61, %v4631_v48  ;;  %v4642_v16 = vrot.slane %v15401_v62, 2  ;;  %v4636_v54 = vsel %vm4573_vm12, %v4634_v19, %v4635_v3  ;;  %v4644_v62 = vrot.slane %v15458_v6, 2 }
 0x13d   : > { %v4638_v41 = vsel %vm4573_vm12, %v4635_v3, %v4637_v2  ;;  %v4641_v15 = vsel %vm4573_vm12, %v4639_v58, %v4640_v22  ;;  %v4645_v18 = vrot.slane %v15467_v46, 2  ;;  %v3951_v63 = vpack.c.bf16 %v15538_v30, %v15540_v11 }
 0x13e   : > { %v4643_v10 = vsel %vm4573_vm12, %v4640_v22, %v4642_v16  ;;  %v15544_v24 = vpack.c.bf16 %v13948_v14, %v13947_v28  ;;  %v4751_v44 = vsel %vm4196_vm2, %v15049_v45, 0  ;;  %v15548_v49 = vpack.c.bf16 %v4638_v41, %v4636_v54 }
 0x13f   : > { %v3940_v40 = vld [vmem:[#allocation2 + $0x168] sm:$0xff]  ;;  %v613_v5 = vadd.s32 16, %v15365_v36  ;;  %v15553_v29 = vpack.c.bf16 %v4643_v10, %v4641_v15  ;;  %v4647_v20 = vrot.slane %v15469_v25, 2  ;;  %v4646_v48 = vsel %vm4573_vm12, %v4644_v62, %v4645_v18 }
 0x140   : > { %v4091_v13 = vrot.slane %v3940_v40, 1  ;;  %12398 = vmatmul.mubr.msk.bf16.gmra.mrb[16].mxu0 %vm408_vm0, %v15513_v21  ;;  %v4649_v45 = vrot.slane %v3940_v40, 2  ;;  %v15567_v58 = vpack.c.bf16 %v15340_v60, %v15333_v47  ;;  %v15575_v16 = vpack.c.bf16 %v15399_v1, %v15390_v50  ;;  %v13951_v62 = vld [vmem:[#allocation2 + $0x48] sm:$0xff] }
 0x141   : > { %v3941_v52 = vld [vmem:[#allocation2 + $0x170] sm:$0xff]  ;;  %v3942_v0 = vld [vmem:[#allocation2 + $0x178] sm:$0x3]  ;;  %12401 = vmatprep.mubr.msk.bf16.mxu0 %vm408_vm0, %v15525_v31  ;;  %vm621_vm14 = vcmp.eq.s32.totalorder %v15372_v35, %v613_v5  ;;  %v637_v19 = vadd.s32 1, %v613_v5 }
 0x142   : > { %v4092_v8 = vrot.slane %v3941_v52, 1  ;;  %v4094_v55 = vrot.slane %v3942_v0, 1  ;;  %v4650_v3 = vrot.slane %v3941_v52, 2  ;;  %v4652_v2 = vrot.slane %v3942_v0, 2 }
 0x143   : > { %v629_v36 = vsel %vm621_vm14, %v15384_v9, 0.0  ;;  %vm645_vm15 = vcmp.eq.s32.totalorder %v15372_v35, %v637_v19  ;;  %v15579_v35 = vpack.c.bf16 %v15467_v46, %v15458_v6  ;;  %v13949_v46 = vld [vmem:[#allocation2 + $0x30] sm:$0xff] }
 0x144   : > { %v4093_v39 = vsel %vm4015_vm4, %v4091_v13, %v4092_v8  ;;  %v4095_v26 = vsel %vm4015_vm4, %v4092_v8, %v4094_v55  ;;  %v2254_v61 = vcombine.high %v629_v36, %v629_v36  ;;  %v2261_v25 = vrot.slane %v629_v36, %v14369_v23  ;;  %v13952_v8 = vld [vmem:[#allocation2 + $0x50] sm:$0xff] }
 0x145   : > { %v15556_v51 = vpack.c.bf16 %v4095_v26, %v4093_v39  ;;  %v653_v22 = vsel %vm645_vm15, %v15384_v9, 0.0  ;;  %v15581_v13 = vpack.c.bf16 %v3941_v52, %v3940_v40  ;;  %v4648_v9 = vsel %vm4573_vm12, %v4645_v18, %v4647_v20  ;;  %v13950_v40 = vld [vmem:[#allocation2 + $0x38] sm:$0xff] }
 0x146   : > { %v2268_v47 = vrot.slane %v2254_v61, %v14369_v23  ;;  %v2269_v60 = vcombine.high %v2261_v25, %v2261_v25  ;;  %v2277_v54 = vrot.slane %v2261_v25, %v14369_v23  ;;  %v2718_v41 = vcombine.high %v653_v22, %v653_v22 }
 0x147   : > { %12240 = vmatmul.mubr.msk.bf16.gmra.mrb[28].mxu1 %vm408_vm0, %v15556_v51  ;;  %v4651_v50 = vsel %vm4573_vm12, %v4649_v45, %v4650_v3  ;;  %v4653_v1 = vsel %vm4573_vm12, %v4650_v3, %v4652_v2  ;;  %v2725_v6 = vrot.slane %v653_v22, %v14369_v23  ;;  %v15591_v52 = vpack.c.bf16 %v13950_v40, %v13949_v46  ;;  %v13953_v46 = vld [vmem:[#allocation2 + $0x60] sm:$0xff]  ;;  %v13954_v40 = vld [vmem:[#allocation2 + $0x68] sm:$0xff] }
 0x148   : > { %12245 = vmatprep.mubr.msk.bf16.mxu1 %vm408_vm0, %v3951_v63  ;;  %12402 = vmatmul.mubr.msk.bf16.gmra.mrb[20].mxu0 %vm408_vm0, %v15548_v49  ;;  %v2270_v0 = vcombine.high %v2268_v47, %v2268_v47  ;;  %v2284_v15 = vrot.slane %v2268_v47, %v14369_v23  ;;  %v2291_v10 = vrot.slane %v2269_v60, %v14369_v23 }
 0x149   : > { %12405 = vmatprep.mubr.msk.bf16.mxu0 %vm408_vm0, %v15553_v29  ;;  %v15595_v55 = vpack.c.bf16 %v13952_v8, %v13951_v62  ;;  %v2732_v18 = vrot.slane %v2718_v41, %v14369_v23  ;;  %v2733_v63 = vcombine.high %v2725_v6, %v2725_v6  ;;  %v2741_v28 = vrot.slane %v2725_v6, %v14369_v23 }
 0x14a   : > { %v15599_v14 = vpack.c.bf16 %v4648_v9, %v4646_v48  ;;  %v15601_v5 = vpack.c.bf16 %v4653_v1, %v4651_v50  ;;  %v2298_v39 = vrot.slane %v2270_v0, %v14369_v23  ;;  %v2299_v26 = vcombine.high %v2277_v54, %v2277_v54 }
 0x14b   : > { %v2734_v20 = vcombine.high %v2732_v18, %v2732_v18  ;;  %v2748_v19 = vrot.slane %v2732_v18, %v14369_v23  ;;  %v2755_v45 = vrot.slane %v2733_v63, %v14369_v23  ;;  %v2763_v3 = vcombine.high %v2741_v28, %v2741_v28  ;;  %v15631_v18 = vld [vmem:[%s17763_s2 + $0x8] sm:$0xf] }
 0x14c   : > { %v2300_v2 = vcombine.high %v2284_v15, %v2284_v15  ;;  %v2301_v36 = vcombine.high %v2291_v10, %v2291_v10  ;;  %v2302_v61 = vcombine.high %v2298_v39, %v2298_v39  ;;  %v2994_v48 = vrot.slane %v2741_v28, %v14372_v27 }
 0x14d   : > { %v2762_v25 = vrot.slane %v2734_v20, %v14369_v23  ;;  %v2764_v22 = vcombine.high %v2748_v19, %v2748_v19  ;;  %v2765_v47 = vcombine.high %v2755_v45, %v2755_v45  ;;  %v2998_v60 = vrot.slane %v2755_v45, %v14372_v27 }
 0x14e   : > { %v3002_v41 = vrot.slane %v2763_v3, %v14372_v27  ;;  %v3010_v9 = vrot.slane %v2748_v19, %v14372_v27  ;;  %v3143_v50 = vsel %vm1838_vm8, %v2277_v54, %v2994_v48  ;;  %v15623_v0 = vpack.c.bf16 %v13954_v40, %v13953_v46  ;;  %v13962_v40 = vld [vmem:[#allocation2 + $0xc0] sm:$0xff] }
 0x14f   : > { %12246 = vmatmul.mubr.msk.bf16.vlgmr.msra.gmra.mrb[0].mxu1 %vm408_vm0, %v15544_v24  ;;  %v3006_v1 = vrot.slane %v2765_v47, %v14372_v27  ;;  %v3014_v23 = vrot.slane %v2762_v25, %v14372_v27  ;;  %v3018_v6 = vrot.slane %v2764_v22, %v14372_v27  ;;  %v3144_v62 = vsel %vm1838_vm8, %v2291_v10, %v2998_v60  ;;  %v13957_v22 = vld [vmem:[#allocation2 + $0x80] sm:$0xff]  ;;  %v13958_v60 = vld [vmem:[#allocation2 + $0x90] sm:$0xff] }
 0x150   : > { %12278 = vmatpush3.bf16.msra.mxu1 %v4751_v44  ;;  %12249 = vmatprep.mubr.msk.bf16.mxu1 %vm408_vm0, %v15591_v52  ;;  %v2766_v44 = vcombine.high %v2762_v25, %v2762_v25  ;;  %v3145_v8 = vsel %vm1838_vm8, %v2299_v26, %v3002_v41  ;;  %v3147_v54 = vsel %vm1838_vm8, %v2284_v15, %v3010_v9  ;;  %v13959_v41 = vld [vmem:[#allocation2 + $0x98] sm:$0xff] }
 0x151   : > { %12406 = vmatmul.mubr.msk.bf16.gmra.mrb[24].mxu0 %vm408_vm0, %v15599_v14  ;;  %13900 = vmatprep.subr.msk.bf16.mxu1 %vm4196_vm2, %v15631_v18  ;;  %v3146_v28 = vsel %vm1838_vm8, %v2301_v36, %v3006_v1  ;;  %v3148_v20 = vsel %vm1838_vm8, %v2298_v39, %v3014_v23  ;;  %v3149_v10 = vsel %vm1838_vm8, %v2300_v2, %v3018_v6  ;;  %v13956_v36 = vld [vmem:[#allocation2 + $0x78] sm:$0xff] }
 0x152   : > { %12409 = vmatprep.mubr.msk.bf16.mxu0 %vm408_vm0, %v15601_v5  ;;  %v3022_v63 = vrot.slane %v2766_v44, %v14372_v27  ;;  %v3822_v19 = vcombine.low %v3143_v50, %v3144_v62  ;;  %v3823_v26 = vcombine.low %v3145_v8, %v3146_v28  ;;  %v3839_v45 = vcombine.low %v3147_v54, %v3148_v20  ;;  %v13960_v50 = vld [vmem:[#allocation2 + $0xa8] sm:$0xff]  ;;  %v13961_v44 = vld [vmem:[#allocation2 + $0xb0] sm:$0xff] }
 0x153   : > { %v15648_v47 = vpack.c.bf16 %v13957_v22, %v13956_v36  ;;  %v15651_v9 = vpack.c.bf16 %v13959_v41, %v13958_v60  ;;  %v15660_v1 = vpack.c.bf16 %v13961_v44, %v13960_v50  ;;  %v13963_v62 = vld [vmem:[#allocation2 + $0xc8] sm:$0xff]  ;;  %v5792_v36 = vsel %vm4196_vm2, %v14968_v33, 0  ;;  %v11387_v22 = vld [vmem:[%s17763_s2 + $0x14] sm:$0x3]  ;;  %v17879_v50 = vld [vmem:[#allocation14_spill] sm:$0xff] }
 0x154   : > { %v3150_v15 = vsel %vm1838_vm8, %v2302_v61, %v3022_v63  ;;  %v3830_v3 = vrot.slane %v3822_v19, %v14379_v37  ;;  %v3837_v48 = vrot.slane %v3823_v26, %v14379_v37  ;;  %v3847_v27 = vrot.slane %v3839_v45, %v14379_v37  ;;  %v17878_v41 = vld [vmem:[#allocation13_spill] sm:$0xff] }
 0x155   : > { %v3840_v25 = vcombine.low %v3149_v10, %v3150_v15  ;;  %v15665_v8 = vpack.c.bf16 %v13963_v62, %v13962_v40  ;;  %v4574_v33 = vrot.slane %v15540_v11, 2  ;;  %v17880_v44 = vld [vmem:[#allocation5_spill] sm:$0xff]  ;;  %v3946_v40 = vld [vmem:[#allocation2 + $0x198] sm:$0xff]  ;;  %v3947_v62 = vld [vmem:[#allocation2 + $0x1a0] sm:$0xff] }
 0x156   : > { %v3838_v39 = vcombine.low %v3830_v3, %v3837_v48 }
 0x157   : > { %12250 = vmatmul.mubr.msk.bf16.gmra.mrb[4].mxu1 %vm408_vm0, %v15595_v55  ;;  %v3854_v2 = vrot.slane %v3840_v25, %v14379_v37  ;;  %v13964_v25 = vld [vmem:[#allocation2 + $0xd8] sm:$0xff] }
 0x158   : > { %12253 = vmatprep.mubr.msk.bf16.mxu1 %vm408_vm0, %v15623_v0  ;;  %3887 = vst.msk [vmem:[#allocation2 + $0x181] sm:$0xff] %vm408_vm0, %v3838_v39 }
 0x159   : > { %v3855_v61 = vcombine.low %v3847_v27, %v3854_v2  ;;  %v13965_v27 = vld [vmem:[#allocation2 + $0xe0] sm:$0xff]  ;;  %v15690_v2 = vpack.c.bf16 %v15163_v4, %v15157_v17  ;;  %v15705_v17 = vpack.c.bf16 %v15234_v32, %v15230_v42  ;;  %v4575_v4 = vrot.slane %v15538_v30, 2  ;;  %v13966_v42 = vld [vmem:[#allocation2 + $0x10] sm:$0x3] }
 0x15a   : > { %v15684_v39 = vpack.c.bf16 %v13965_v27, %v13964_v25  ;;  %v4577_v32 = vrot.slane %v13966_v42, 2  ;;  %v4954_v30 = vsel %vm4196_vm2, %v15631_v18, 0  ;;  %v17882_v18 = vld [vmem:[#allocation18_spill] sm:$0xff]  ;;  %v17885_v25 = vld [vmem:[#allocation9_spill] sm:$0xff]  ;;  %v17891_v42 = vld [vmem:[#allocation19_spill] sm:$0xff] }
 0x15b   : > { %3888 = vst.msk [vmem:[#allocation2 + $0x189] sm:$0xff] %vm408_vm0, %v3855_v61  ;;  %v4576_v61 = vsel %vm4573_vm12, %v4574_v33, %v4575_v4  ;;  %v17886_v27 = vld [vmem:[#allocation10_spill] sm:$0xff]  ;;  %v17889_v33 = vld [vmem:[#allocation15_spill] sm:$0xff] }
 0x15c   : > { %v4578_v60 = vsel %vm4573_vm12, %v4575_v4, %v4577_v32  ;;  %v17890_v4 = vld [vmem:[#allocation16_spill] sm:$0xff]  ;;  %v17892_v32 = vld [vmem:[#allocation6_spill] sm:$0xff] }
 0x15d   : > { %v4686_v11 = vpack.c.bf16 %v4578_v60, %v4576_v61 }
 0x15f   : > { %12254 = vmatmul.mubr.msk.bf16.gmra.mrb[8].mxu1 %vm408_vm0, %v15648_v47  ;;  %v15658_v37 = vld [vmem:[#allocation2 + $0x180] sm:$0xff] }
 0x160   : > { %12257 = vmatprep.mubr.msk.bf16.mxu1 %vm408_vm0, %v15651_v9  ;;  %v5363_v23 = vrot.slane %v15658_v37, 2  ;;  %v5152_v54 = vrot.slane %v15658_v37, 1 }
 0x162   : > { %v15663_v6 = vld [vmem:[#allocation2 + $0x188] sm:$0xff]  ;;  %v3945_v46 = vld [vmem:[#allocation2 + $0x190] sm:$0x3] }
 0x163   : > { %v5364_v63 = vrot.slane %v15663_v6, 2  ;;  %v5366_v28 = vrot.slane %v3945_v46, 2  ;;  %v5153_v20 = vrot.slane %v15663_v6, 1  ;;  %v5155_v10 = vrot.slane %v3945_v46, 1 }
 0x164   : > { %v15761_v46 = vpack.c.bf16 %v15663_v6, %v15658_v37 }
 0x165   : > { %v5365_v19 = vsel %vm4573_vm12, %v5363_v23, %v5364_v63  ;;  %v5367_v26 = vsel %vm4573_vm12, %v5364_v63, %v5366_v28  ;;  %v5154_v45 = vsel %vm4015_vm4, %v5152_v54, %v5153_v20  ;;  %v5156_v3 = vsel %vm4015_vm4, %v5153_v20, %v5155_v10  ;;  %v17881_v23 = vld [vmem:[#allocation17_spill] sm:$0xff]  ;;  %v3948_v28 = vld [vmem:[#allocation2 + $0x1a8] sm:$0x3] }
 0x166   : > { %v15675_v15 = vpack.c.bf16 %v5367_v26, %v5365_v19  ;;  %v15680_v48 = vpack.c.bf16 %v5156_v3, %v5154_v45  ;;  %v5987_v54 = vrot.slane %v3946_v40, 2  ;;  %v5988_v63 = vrot.slane %v3947_v62, 2  ;;  %v17883_v26 = vld [vmem:[#allocation7_spill] sm:$0xff]  ;;  %v17884_v3 = vld [vmem:[#allocation8_spill] sm:$0xff] }
 0x167   : > { %12258 = vmatmul.mubr.msk.bf16.gmra.mrb[12].mxu1 %vm408_vm0, %v15660_v1  ;;  %v5990_v20 = vrot.slane %v3948_v28, 2  ;;  %v5573_v10 = vpack.c.bf16 %v3947_v62, %v3946_v40  ;;  %v5999_v45 = vsel %vm4196_vm2, %v11387_v22, 0 }
 0x168   : > { %12261 = vmatprep.mubr.msk.bf16.mxu1 %vm408_vm0, %v15665_v8  ;;  %12410 = vmatmul.mubr.msk.bf16.gmra.mrb[28].mxu0 %vm408_vm0, %v15675_v15  ;;  %v15772_v37 = vsel %vm4573_vm12, %v5987_v54, %v5988_v63 }
 0x169   : > { %12415 = vmatprep.mubr.msk.bf16.mxu0 %vm408_vm0, %v15591_v52  ;;  %v15775_v6 = vsel %vm4573_vm12, %v5988_v63, %v5990_v20 }
 0x16a   : > { %v5994_v19 = vpack.c.bf16 %v15775_v6, %v15772_v37 }
 0x16f   : > { %12262 = vmatmul.mubr.msk.bf16.gmra.mrb[16].mxu1 %vm408_vm0, %v15684_v39 }
 0x170   : > { %12265 = vmatprep.mubr.msk.bf16.mxu1 %vm408_vm0, %v15690_v2  ;;  %12416 = vmatmul.mubr.msk.bf16.vlgmr.msra.gmra.mrb[0].mxu0 %vm408_vm0, %v15595_v55 }
 0x171   : > { %12448 = vmatpush3.bf16.msra.mxu0 %v5792_v36  ;;  %12419 = vmatprep.mubr.msk.bf16.mxu0 %vm408_vm0, %v15623_v0  ;;  %v17887_v36 = vld [vmem:[#allocation11_spill] sm:$0xff] }
 0x172   : > { %13906 = vmatprep.subr.msk.bf16.mxu0 %vm4196_vm2, %v11387_v22  ;;  %v17888_v22 = vld [vmem:[#allocation12_spill] sm:$0xff] }
 0x177   : > { %12266 = vmatmul.mubr.msk.bf16.gmra.mrb[20].mxu1 %vm408_vm0, %v15705_v17 }
 0x178   : > { %12269 = vmatprep.mubr.msk.bf16.mxu1 %vm408_vm0, %v15567_v58  ;;  %12420 = vmatmul.mubr.msk.bf16.gmra.mrb[4].mxu0 %vm408_vm0, %v15648_v47 }
 0x179   : > { %12423 = vmatprep.mubr.msk.bf16.mxu0 %vm408_vm0, %v15651_v9 }
 0x17f   : > { %12270 = vmatmul.mubr.msk.bf16.gmra.mrb[24].mxu1 %vm408_vm0, %v15575_v16 }
 0x180   : > { %12273 = vmatprep.mubr.msk.bf16.mxu1 %vm408_vm0, %v15579_v35  ;;  %12424 = vmatmul.mubr.msk.bf16.gmra.mrb[8].mxu0 %vm408_vm0, %v15660_v1 }
 0x181   : > { %12427 = vmatprep.mubr.msk.bf16.mxu0 %vm408_vm0, %v15665_v8 }
 0x187   : > { %12274 = vmatmul.mubr.msk.bf16.gmra.mrb[28].mxu1 %vm408_vm0, %v15581_v13 }
 0x188   : > { %12279 = vmatprep.mubr.msk.bf16.mxu1 %vm408_vm0, %v4686_v11  ;;  %12428 = vmatmul.mubr.msk.bf16.gmra.mrb[12].mxu0 %vm408_vm0, %v15684_v39  ;;  %v15948_v11 = vld [vmem:[%s17764_s3] ss:$0 sm:$0xff] }
 0x189   : > { %12431 = vmatprep.mubr.msk.bf16.mxu0 %vm408_vm0, %v15690_v2 }
 0x18f   : > { %12280 = vmatmul.mubr.msk.bf16.vlgmr.msra.gmra.mrb[0].mxu1 %vm408_vm0, %v17878_v41 }
 0x190   : > { %12312 = vmatpush3.bf16.msra.mxu1 %v4954_v30  ;;  %12283 = vmatprep.mubr.msk.bf16.mxu1 %vm408_vm0, %v17879_v50 }
 0x191   : > { %13902 = vmatprep.subr.msk.bf16.mxu1 %vm4196_vm2, %v17880_v44  ;;  %12432 = vmatmul.mubr.msk.bf16.gmra.mrb[16].mxu0 %vm408_vm0, %v15705_v17  ;;  %v15953_v44 = vld [vmem:[%s17765_s4] ss:$0 sm:$0xff] }
 0x192   : > { %12435 = vmatprep.mubr.msk.bf16.mxu0 %vm408_vm0, %v15567_v58 }
 0x197   : > { %12284 = vmatmul.mubr.msk.bf16.gmra.mrb[4].mxu1 %vm408_vm0, %v17881_v23 }
 0x198   : > { %12287 = vmatprep.mubr.msk.bf16.mxu1 %vm408_vm0, %v17882_v18 }
 0x199   : > { %12436 = vmatmul.mubr.msk.bf16.gmra.mrb[20].mxu0 %vm408_vm0, %v15575_v16 }
 0x19a   : > { %12439 = vmatprep.mubr.msk.bf16.mxu0 %vm408_vm0, %v15579_v35 }
 0x19f   : > { %12288 = vmatmul.mubr.msk.bf16.gmra.mrb[8].mxu1 %vm408_vm0, %v15299_v53 }
 0x1a0   : > { %12291 = vmatprep.mubr.msk.bf16.mxu1 %vm408_vm0, %v15319_v38 }
 0x1a1   : > { %12440 = vmatmul.mubr.msk.bf16.gmra.mrb[24].mxu0 %vm408_vm0, %v15581_v13 }
 0x1a2   : > { %12443 = vmatprep.mubr.msk.bf16.mxu0 %vm408_vm0, %v15761_v46 }
 0x1a7   : > { %12292 = vmatmul.mubr.msk.bf16.gmra.mrb[12].mxu1 %vm408_vm0, %v15447_v56 }
 0x1a8   : > { %12295 = vmatprep.mubr.msk.bf16.mxu1 %vm408_vm0, %v15493_v59 }
 0x1a9   : > { %12444 = vmatmul.mubr.msk.bf16.gmra.mrb[28].mxu0 %vm408_vm0, %v5573_v10 }
 0x1aa   : > { %12449 = vmatprep.mubr.msk.bf16.mxu0 %vm408_vm0, %v17883_v26 }
 0x1af   : > { %12296 = vmatmul.mubr.msk.bf16.gmra.mrb[16].mxu1 %vm408_vm0, %v15508_v7 }
 0x1b0   : > { %12299 = vmatprep.mubr.msk.bf16.mxu1 %vm408_vm0, %v15513_v21 }
 0x1b1   : > { %12450 = vmatmul.mubr.msk.bf16.vlgmr.msra.gmra.mrb[0].mxu0 %vm408_vm0, %v17884_v3 }
 0x1b2   : > { %12482 = vmatpush3.bf16.msra.mxu0 %v5999_v45  ;;  %12453 = vmatprep.mubr.msk.bf16.mxu0 %vm408_vm0, %v17885_v25 }
 0x1b7   : > { %12300 = vmatmul.mubr.msk.bf16.gmra.mrb[20].mxu1 %vm408_vm0, %v15525_v31 }
 0x1b8   : > { %12303 = vmatprep.mubr.msk.bf16.mxu1 %vm408_vm0, %v15548_v49 }
 0x1b9   : > { %12454 = vmatmul.mubr.msk.bf16.gmra.mrb[4].mxu0 %vm408_vm0, %v17886_v27 }
 0x1ba   : > { %12457 = vmatprep.mubr.msk.bf16.mxu0 %vm408_vm0, %v17887_v36 }
 0x1bf   : > { %12304 = vmatmul.mubr.msk.bf16.gmra.mrb[24].mxu1 %vm408_vm0, %v15553_v29 }
 0x1c0   : > { %12307 = vmatprep.mubr.msk.bf16.mxu1 %vm408_vm0, %v15599_v14 }
 0x1c1   : > { %12458 = vmatmul.mubr.msk.bf16.gmra.mrb[8].mxu0 %vm408_vm0, %v17888_v22 }
 0x1c2   : > { %12461 = vmatprep.mubr.msk.bf16.mxu0 %vm408_vm0, %v17889_v33 }
 0x1c7   : > { %12308 = vmatmul.mubr.msk.bf16.gmra.mrb[28].mxu1 %vm408_vm0, %v15601_v5 }
 0x1c8   : > { %12313 = vmatprep.mubr.msk.bf16.mxu1 %vm408_vm0, %v15544_v24  ;;  %v5776_v24 = vrot.slane %v3946_v40, 1 }
 0x1c9   : > { %12462 = vmatmul.mubr.msk.bf16.gmra.mrb[12].mxu0 %vm408_vm0, %v17890_v4 }
 0x1ca   : > { %12465 = vmatprep.mubr.msk.bf16.mxu0 %vm408_vm0, %v17891_v42 }
 0x1cf   : > { %12314 = vmatmul.mubr.msk.bf16.vlgmr.msra.gmra.mrb[0].mxu1 %vm408_vm0, %v15591_v52  ;;  %v5777_v52 = vrot.slane %v3947_v62, 1 }
 0x1d0   : > { %13128 = vmatpush3.bf16.msra.mxu1 %v17892_v32  ;;  %12317 = vmatprep.mubr.msk.bf16.mxu1 %vm408_vm0, %v15595_v55  ;;  %v5779_v55 = vrot.slane %v3948_v28, 1 }
 0x1d1   : > { %12466 = vmatmul.mubr.msk.bf16.gmra.mrb[16].mxu0 %vm408_vm0, %v15252_v12 }
 0x1d2   : > { %12469 = vmatprep.mubr.msk.bf16.mxu0 %vm408_vm0, %v15354_v57 }
 0x1d7   : > { %12318 = vmatmul.mubr.msk.bf16.gmra.mrb[4].mxu1 %vm408_vm0, %v15623_v0  ;;  %v5778_v0 = vsel %vm4015_vm4, %v5776_v24, %v5777_v52 }
 0x1d8   : > { %12321 = vmatprep.mubr.msk.bf16.mxu1 %vm408_vm0, %v15648_v47  ;;  %v5780_v47 = vsel %vm4015_vm4, %v5777_v52, %v5779_v55 }
 0x1d9   : > { %12470 = vmatmul.mubr.msk.bf16.gmra.mrb[20].mxu0 %vm408_vm0, %v15416_v43  ;;  %v5783_v61 = vpack.c.bf16 %v5780_v47, %v5778_v0 }
 0x1da   : > { %12473 = vmatprep.mubr.msk.bf16.mxu0 %vm408_vm0, %v15484_v34 }
 0x1df   : > { %12322 = vmatmul.mubr.msk.bf16.gmra.mrb[8].mxu1 %vm408_vm0, %v15651_v9 }
 0x1e0   : > { %12325 = vmatprep.mubr.msk.bf16.mxu1 %vm408_vm0, %v15660_v1 }
 0x1e1   : > { %12474 = vmatmul.mubr.msk.bf16.gmra.mrb[24].mxu0 %vm408_vm0, %v15556_v51 }
 0x1e2   : > { %12477 = vmatprep.mubr.msk.bf16.mxu0 %vm408_vm0, %v15680_v48 }
 0x1e7   : > { %12326 = vmatmul.mubr.msk.bf16.gmra.mrb[12].mxu1 %vm408_vm0, %v15665_v8 }
 0x1e8   : > { %12329 = vmatprep.mubr.msk.bf16.mxu1 %vm408_vm0, %v15684_v39 }
 0x1e9   : > { %12478 = vmatmul.mubr.msk.bf16.gmra.mrb[28].mxu0 %vm408_vm0, %v5783_v61 }
 0x1ea   : > { %12483 = vmatprep.mubr.msk.bf16.mxu0 %vm408_vm0, %v17879_v50 }
 0x1ef   : > { %12330 = vmatmul.mubr.msk.bf16.gmra.mrb[16].mxu1 %vm408_vm0, %v15690_v2 }
 0x1f0   : > { %12333 = vmatprep.mubr.msk.bf16.mxu1 %vm408_vm0, %v15705_v17 }
 0x1f1   : > { %12484 = vmatmul.mubr.msk.bf16.vlgmr.msra.gmra.mrb[0].mxu0 %vm408_vm0, %v17881_v23 }
 0x1f2   : > { %12487 = vmatprep.mubr.msk.bf16.mxu0 %vm408_vm0, %v17882_v18 }
 0x1f7   : > { %12334 = vmatmul.mubr.msk.bf16.gmra.mrb[20].mxu1 %vm408_vm0, %v15567_v58 }
 0x1f8   : > { %12337 = vmatprep.mubr.msk.bf16.mxu1 %vm408_vm0, %v15575_v16 }
 0x1f9   : > { %12488 = vmatmul.mubr.msk.bf16.gmra.mrb[4].mxu0 %vm408_vm0, %v15299_v53 }
 0x1fa   : > { %12491 = vmatprep.mubr.msk.bf16.mxu0 %vm408_vm0, %v15319_v38 }
 0x1ff   : > { %12338 = vmatmul.mubr.msk.bf16.gmra.mrb[24].mxu1 %vm408_vm0, %v15579_v35 }
 0x200   : > { %12341 = vmatprep.mubr.msk.bf16.mxu1 %vm408_vm0, %v15581_v13 }
 0x201   : > { %12492 = vmatmul.mubr.msk.bf16.gmra.mrb[8].mxu0 %vm408_vm0, %v15447_v56  ;;  %v15926_v56 = vld [vmem:[#allocation3 + $0x8] sm:$0xff] }
 0x202   : > { %12495 = vmatprep.mubr.msk.bf16.mxu0 %vm408_vm0, %v15493_v59 }
 0x207   : > { %12342 = vmatmul.mubr.msk.bf16.gmra.mrb[28].mxu1 %vm408_vm0, %v15761_v46 }
 0x208   : > { %12363 = vmatprep.mubr.msk.bf16.mxu1 %vm408_vm0, %v17890_v4 }
 0x209   : > { %12496 = vmatmul.mubr.msk.bf16.gmra.mrb[12].mxu0 %vm408_vm0, %v15508_v7  ;;  %v6456_v7 = vrot.slane %v15926_v56, 1 }
 0x20a   : > { %12499 = vmatprep.mubr.msk.bf16.mxu0 %vm408_vm0, %v15513_v21 }
 0x20f   : > { %12364 = vmatmul.mubr.msk.bf16.vlgmr.msra.gmra.mrb[16].mxu1 %vm408_vm0, %v17891_v42 }
 0x210   : > { %12367 = vmatprep.mubr.msk.bf16.mxu1 %vm408_vm0, %v15252_v12  ;;  %v15916_v12 = vld [vmem:[%s17766_s5] sm:$0xf] }
 0x211   : > { %12500 = vmatmul.mubr.msk.bf16.gmra.mrb[16].mxu0 %vm408_vm0, %v15525_v31  ;;  %v11439_v53 = vcombine.low %v15916_v12, %v15916_v12 }
 0x212   : > { %12503 = vmatprep.mubr.msk.bf16.mxu0 %vm408_vm0, %v15548_v49 }
 0x213   : > { %v6586_v38 = vrot.slane %v11439_v53, 2 }
 0x215   : > { %13907 = vmatprep.subr.msk.bf16.mxu1 %vm4196_vm2, %v6586_v38 }
 0x217   : > { %12368 = vmatmul.mubr.msk.bf16.gmra.mrb[20].mxu1 %vm408_vm0, %v15354_v57  ;;  %v6636_v57 = vsel %vm4196_vm2, %v6586_v38, 0 }
 0x218   : > { %12371 = vmatprep.mubr.msk.bf16.mxu1 %vm408_vm0, %v15416_v43  ;;  %12516 = vmatpush3.bf16.msra.mxu1 %v6636_v57  ;;  %v15924_v43 = vld [vmem:[#allocation3] sm:$0xff] }
 0x219   : > { %12504 = vmatmul.mubr.msk.bf16.gmra.mrb[20].mxu0 %vm408_vm0, %v15553_v29  ;;  %13908 = vmatprep.subr.msk.bf16.mxu1 %vm4196_vm2, %v15916_v12  ;;  %v6455_v59 = vrot.slane %v15924_v43, 1 }
 0x21a   : > { %12507 = vmatprep.mubr.msk.bf16.mxu0 %vm408_vm0, %v15599_v14 }
 0x21b   : > { %v6457_v31 = vsel %vm4015_vm4, %v6455_v59, %v6456_v7 }
 0x21f   : > { %12372 = vmatmul.mubr.msk.bf16.gmra.mrb[24].mxu1 %vm408_vm0, %v15484_v34  ;;  %v6337_v34 = vld [vmem:[#allocation3 + $0x10] sm:$0x3] }
 0x220   : > { %12375 = vmatprep.mubr.msk.bf16.mxu1 %vm408_vm0, %v15556_v51  ;;  %v6458_v21 = vrot.slane %v6337_v34, 1 }
 0x221   : > { %12508 = vmatmul.mubr.msk.bf16.gmra.mrb[24].mxu0 %vm408_vm0, %v15601_v5 }
 0x222   : > { %12511 = vmatprep.mubr.msk.bf16.mxu0 %vm408_vm0, %v15675_v15  ;;  %v6459_v49 = vsel %vm4015_vm4, %v6456_v7, %v6458_v21 }
 0x223   : > { %v6567_v29 = vpack.c.bf16 %v6459_v49, %v6457_v31 }
 0x227   : > { %12376 = vmatmul.mubr.msk.bf16.gmra.mrb[28].mxu1 %vm408_vm0, %v15680_v48 }
 0x228   : > { %12517 = vmatprep.mubr.msk.bf16.mxu1 %vm408_vm0, %v6567_v29 }
 0x229   : > { %12512 = vmatmul.mubr.msk.bf16.gmra.mrb[28].mxu0 %vm408_vm0, %v5994_v19 }
 0x2a2   : > { %v12315_v51 = vpop.f32.mrb[0].mxu1 }
 0x2a3   : > { %v4990_v58 = vpop.f32.mrb[1].mxu1 }
 0x2a4   : > { %v12316_v16 = vpop.f32.mrb[2].mxu1 }
 0x2a5   : > { %v4993_v35 = vpop.f32.mrb[3].mxu1 }
 0x2aa   : > { %v12319_v13 = vpop.f32.mrb[4].mxu1 }
 0x2ab   : > { %v5006_v14 = vpop.f32.mrb[5].mxu1 }
 0x2ac   : > { %v12320_v5 = vpop.f32.mrb[6].mxu1 }
 0x2ad   : > { %v5009_v9 = vpop.f32.mrb[7].mxu1 }
 0x2b2   : > { %v12323_v1 = vpop.f32.mrb[8].mxu1 }
 0x2b3   : > { %v5022_v8 = vpop.f32.mrb[9].mxu1 }
 0x2b4   : > { %v15933_v15 = vpop.f32.mrb[10].mxu1 }
 0x2b5   : > { %v15935_v48 = vpop.f32.mrb[11].mxu1 }
 0x2ba   : > { %v15937_v39 = vpop.f32.mrb[12].mxu1 }
 0x2bb   : > { %v15939_v2 = vpop.f32.mrb[13].mxu1 }
 0x2bc   : > { %v15941_v17 = vpop.f32.mrb[14].mxu1 }
 0x2bd   : > { %v15943_v60 = vpop.f32.mrb[15].mxu1 }
 0x2c4   : > { %v12485_v30 = vpop.f32.mrb[0].mxu0 }
 0x2c5   : > { %v13129_v41 = vadd.f32 %v12485_v30, %v12315_v51  ;;  %v6035_v50 = vpop.f32.mrb[1].mxu0 }
 0x2c6   : > { %v13130_v23 = vadd.f32 %v6035_v50, %v4990_v58  ;;  %v12486_v18 = vpop.f32.mrb[2].mxu0  ;;  %v6848_v58 = vsel %vm4196_vm2, %v15916_v12, 0 }
 0x2c7   : > { %v6202_v46 = vmul.f32 %v13129_v41, %v15948_v11  ;;  %v13131_v40 = vadd.f32 %v12486_v18, %v12316_v16  ;;  %v6038_v62 = vpop.f32.mrb[3].mxu0 }
 0x2c8   : > { %v6200_v54 = vmul.f32 %v13130_v23, %v15948_v11  ;;  %v13132_v63 = vadd.f32 %v6038_v62, %v4993_v35 }
 0x2c9   : > { %v6240_v28 = vadd.f32 %v15953_v44, %v6202_v46  ;;  %v6203_v20 = vmul.f32 %v13131_v40, %v15948_v11 }
 0x2ca   : > { %v6238_v10 = vadd.f32 %v15953_v44, %v6200_v54  ;;  %v6201_v37 = vmul.f32 %v13132_v63, %v15948_v11 }
 0x2cb   : > { %v6272_v6 = vmax.f32 %v6240_v28, 0.0  ;;  %v6241_v19 = vadd.f32 %v15953_v44, %v6203_v20 }
 0x2cc   : > { %v6270_v26 = vmax.f32 %v6238_v10, 0.0  ;;  %v6239_v45 = vadd.f32 %v15953_v44, %v6201_v37  ;;  %v12489_v3 = vpop.f32.mrb[4].mxu0 }
 0x2cd   : > { %6305 = vst.msk [vmem:[#allocation3 + $0x31] sm:$0xff] %vm408_vm0, %v6272_v6  ;;  %v6273_v25 = vmax.f32 %v6241_v19, 0.0  ;;  %v13133_v27 = vadd.f32 %v12489_v3, %v12319_v13  ;;  %v6051_v36 = vpop.f32.mrb[5].mxu0 }
 0x2ce   : > { %6303 = vst.msk [vmem:[#allocation3 + $0x19] sm:$0xff] %vm408_vm0, %v6270_v26  ;;  %v6271_v22 = vmax.f32 %v6239_v45, 0.0  ;;  %v13134_v33 = vadd.f32 %v6051_v36, %v5006_v14  ;;  %v12490_v4 = vpop.f32.mrb[6].mxu0 }
 0x2cf   : > { %6306 = vst.msk [vmem:[#allocation3 + $0x39] sm:$0xff] %vm408_vm0, %v6273_v25  ;;  %v6206_v42 = vmul.f32 %v13133_v27, %v15948_v11  ;;  %v13135_v32 = vadd.f32 %v12490_v4, %v12320_v5  ;;  %v6054_v24 = vpop.f32.mrb[7].mxu0 }
 0x2d0   : > { %6304 = vst.msk [vmem:[#allocation3 + $0x21] sm:$0xff] %vm408_vm0, %v6271_v22  ;;  %v6204_v52 = vmul.f32 %v13134_v33, %v15948_v11  ;;  %v13136_v55 = vadd.f32 %v6054_v24, %v5009_v9  ;;  %v16022_v33 = vld [vmem:[%s17766_s5 + $0x4] sm:$0x3] }
 0x2d1   : > { %v6244_v0 = vadd.f32 %v15953_v44, %v6206_v42  ;;  %v6207_v47 = vmul.f32 %v13135_v32, %v15948_v11 }
 0x2d2   : > { %v6242_v61 = vadd.f32 %v15953_v44, %v6204_v52  ;;  %v6205_v53 = vmul.f32 %v13136_v55, %v15948_v11 }
 0x2d3   : > { %v6276_v38 = vmax.f32 %v6244_v0, 0.0  ;;  %v6245_v57 = vadd.f32 %v15953_v44, %v6207_v47 }
 0x2d4   : > { %v6274_v34 = vmax.f32 %v6242_v61, 0.0  ;;  %v6243_v59 = vadd.f32 %v15953_v44, %v6205_v53  ;;  %v12493_v7 = vpop.f32.mrb[8].mxu0  ;;  %v15975_v21 = vld [vmem:[#allocation3 + $0x30] sm:$0xff] }
 0x2d5   : > { %6309 = vst.msk [vmem:[#allocation3 + $0x61] sm:$0xff] %vm408_vm0, %v6276_v38  ;;  %v6277_v31 = vmax.f32 %v6245_v57, 0.0  ;;  %v13137_v49 = vadd.f32 %v12493_v7, %v12323_v1  ;;  %v6067_v29 = vpop.f32.mrb[9].mxu0  ;;  %v15978_v51 = vld [vmem:[#allocation3 + $0x18] sm:$0xff]  ;;  %v6465_v16 = vrot.slane %v15975_v21, 1 }
 0x2d6   : > { %6307 = vst.msk [vmem:[#allocation3 + $0x49] sm:$0xff] %vm408_vm0, %v6274_v34  ;;  %v6275_v35 = vmax.f32 %v6243_v59, 0.0  ;;  %v13138_v13 = vadd.f32 %v6067_v29, %v5022_v8  ;;  %v12494_v14 = vpop.f32.mrb[10].mxu0  ;;  %v6460_v5 = vrot.slane %v15978_v51, 1  ;;  %v15985_v9 = vld [vmem:[#allocation3 + $0x38] sm:$0xff] }
 0x2d7   : > { %v15987_v30 = vld [vmem:[#allocation3 + $0x40] sm:$0x3]  ;;  %6310 = vst.msk [vmem:[#allocation3 + $0x69] sm:$0xff] %vm408_vm0, %v6277_v31  ;;  %v6210_v1 = vmul.f32 %v13137_v49, %v15948_v11  ;;  %v13139_v41 = vadd.f32 %v12494_v14, %v15933_v15  ;;  %v6070_v12 = vpop.f32.mrb[11].mxu0  ;;  %v15994_v23 = vld [vmem:[#allocation3 + $0x28] sm:$0x3]  ;;  %v16030_v42 = vpack.c.bf16 %v15985_v9, %v15975_v21 }
 0x2d8   : > { %v15992_v50 = vld [vmem:[#allocation3 + $0x20] sm:$0xff]  ;;  %v6466_v8 = vrot.slane %v15985_v9, 1  ;;  %v6468_v18 = vrot.slane %v15987_v30, 1  ;;  %6308 = vst.msk [vmem:[#allocation3 + $0x51] sm:$0xff] %vm408_vm0, %v6275_v35  ;;  %v6208_v46 = vmul.f32 %v13138_v13, %v15948_v11  ;;  %v13140_v40 = vadd.f32 %v6070_v12, %v15935_v48 }
 0x2d9   : > { %v6461_v62 = vrot.slane %v15992_v50, 1  ;;  %v6463_v54 = vrot.slane %v15994_v23, 1  ;;  %v6248_v15 = vadd.f32 %v15953_v44, %v6210_v1  ;;  %v6211_v63 = vmul.f32 %v13139_v41, %v15948_v11  ;;  %17895 = vst [vmem:[#allocation5_spill] sm:$0xff] %v16030_v42 }
 0x2da   : > { %v6467_v28 = vsel %vm4015_vm4, %v6465_v16, %v6466_v8  ;;  %v6469_v20 = vsel %vm4015_vm4, %v6466_v8, %v6468_v18  ;;  %v6246_v10 = vadd.f32 %v15953_v44, %v6208_v46  ;;  %v6209_v37 = vmul.f32 %v13140_v40, %v15948_v11 }
 0x2db   : > { %v6462_v6 = vsel %vm4015_vm4, %v6460_v5, %v6461_v62  ;;  %v6464_v48 = vsel %vm4015_vm4, %v6461_v62, %v6463_v54  ;;  %v6280_v19 = vmax.f32 %v6248_v15, 0.0  ;;  %v6249_v26 = vadd.f32 %v15953_v44, %v6211_v63 }
 0x2dc   : > { %v16012_v45 = vpack.c.bf16 %v6464_v48, %v6462_v6  ;;  %v16014_v3 = vpack.c.bf16 %v6469_v20, %v6467_v28  ;;  %v6278_v25 = vmax.f32 %v6246_v10, 0.0  ;;  %v6247_v27 = vadd.f32 %v15953_v44, %v6209_v37  ;;  %v12497_v36 = vpop.f32.mrb[12].mxu0  ;;  %v16017_v22 = vld [vmem:[#allocation3 + $0x60] sm:$0xff] }
 0x2dd   : > { %v16026_v4 = vpack.c.bf16 %v15992_v50, %v15978_v51  ;;  %6313 = vst.msk [vmem:[#allocation3 + $0x91] sm:$0xff] %vm408_vm0, %v6280_v19  ;;  %v6281_v32 = vmax.f32 %v6249_v26, 0.0  ;;  %v13141_v24 = vadd.f32 %v12497_v36, %v15937_v39  ;;  %v6083_v52 = vpop.f32.mrb[13].mxu0  ;;  %v16036_v55 = vld [vmem:[#allocation3 + $0x48] sm:$0xff]  ;;  %v6475_v0 = vrot.slane %v16017_v22, 1 }
 0x2de   : > { %17893 = vst [vmem:[#allocation13_spill] sm:$0xff] %v16012_v45  ;;  %17894 = vst [vmem:[#allocation14_spill] sm:$0xff] %v16014_v3  ;;  %12518 = vmatmul.mubr.msk.bf16.vlgmr.msra.gmra.mrb[32].mxu1 %vm408_vm0, %v16012_v45  ;;  %v6279_v47 = vmax.f32 %v6247_v27, 0.0  ;;  %v13142_v61 = vadd.f32 %v6083_v52, %v15939_v2  ;;  %v12498_v53 = vpop.f32.mrb[14].mxu0  ;;  %v6470_v39 = vrot.slane %v16036_v55, 1  ;;  %v16044_v38 = vld [vmem:[#allocation3 + $0x68] sm:$0xff] }
 0x2df   : > { %6311 = vst.msk [vmem:[#allocation3 + $0x79] sm:$0xff] %vm408_vm0, %v6278_v25  ;;  %12550 = vmatpush3.bf16.msra.mxu1 %v6848_v58  ;;  %12521 = vmatprep.mubr.msk.bf16.mxu1 %vm408_vm0, %v16014_v3  ;;  %v16046_v57 = vld [vmem:[#allocation3 + $0x70] sm:$0x3]  ;;  %6314 = vst.msk [vmem:[#allocation3 + $0x99] sm:$0xff] %vm408_vm0, %v6281_v32  ;;  %v6214_v34 = vmul.f32 %v13141_v24, %v15948_v11  ;;  %v13143_v59 = vadd.f32 %v12498_v53, %v15941_v17  ;;  %v6086_v7 = vpop.f32.mrb[15].mxu0  ;;  %v6476_v49 = vrot.slane %v16044_v38, 1 }
 0x2e0   : > { %v16051_v31 = vld [vmem:[#allocation3 + $0x50] sm:$0xff]  ;;  %v16053_v2 = vld [vmem:[#allocation3 + $0x58] sm:$0x3]  ;;  %v6478_v29 = vrot.slane %v16046_v57, 1  ;;  %13909 = vmatprep.subr.msk.bf16.mxu1 %vm4196_vm2, %v16022_v33  ;;  %6312 = vst.msk [vmem:[#allocation3 + $0x81] sm:$0xff] %vm408_vm0, %v6279_v47  ;;  %v6212_v58 = vmul.f32 %v13142_v61, %v15948_v11  ;;  %v13144_v16 = vadd.f32 %v6086_v7, %v15943_v60  ;;  %v16086_v19 = vpack.c.bf16 %v16044_v38, %v16017_v22 }
 0x2e1   : > { %v6471_v17 = vrot.slane %v16051_v31, 1  ;;  %v6473_v35 = vrot.slane %v16053_v2, 1  ;;  %v6252_v13 = vadd.f32 %v15953_v44, %v6214_v34  ;;  %v6215_v14 = vmul.f32 %v13143_v59, %v15948_v11 }
 0x2e2   : > { %v12365_v5 = vpop.f32.mrb[16].mxu1  ;;  %v6477_v1 = vsel %vm4015_vm4, %v6475_v0, %v6476_v49  ;;  %v6479_v41 = vsel %vm4015_vm4, %v6476_v49, %v6478_v29  ;;  %v6250_v12 = vadd.f32 %v15953_v44, %v6212_v58  ;;  %v6213_v8 = vmul.f32 %v13144_v16, %v15948_v11  ;;  %17899 = vst [vmem:[#allocation8_spill] sm:$0xff] %v16086_v19 }
 0x2e3   : > { %v5268_v18 = vpop.f32.mrb[17].mxu1  ;;  %v6472_v60 = vsel %vm4015_vm4, %v6470_v39, %v6471_v17  ;;  %v6474_v46 = vsel %vm4015_vm4, %v6471_v17, %v6473_v35  ;;  %v6284_v40 = vmax.f32 %v6252_v13, 0.0  ;;  %v6253_v62 = vadd.f32 %v15953_v44, %v6215_v14 }
 0x2e4   : > { %v12366_v54 = vpop.f32.mrb[18].mxu1  ;;  %v16073_v15 = vpack.c.bf16 %v6474_v46, %v6472_v60  ;;  %v16075_v63 = vpack.c.bf16 %v6479_v41, %v6477_v1  ;;  %v6282_v28 = vmax.f32 %v6250_v12, 0.0  ;;  %v6251_v20 = vadd.f32 %v15953_v44, %v6213_v8  ;;  %v12501_v10 = vpop.f32.mrb[16].mxu0  ;;  %v16078_v6 = vld [vmem:[#allocation3 + $0x90] sm:$0xff] }
 0x2e5   : > { %v5271_v37 = vpop.f32.mrb[19].mxu1  ;;  %v16082_v48 = vpack.c.bf16 %v16051_v31, %v16036_v55  ;;  %6317 = vst.msk [vmem:[#allocation3 + $0xc1] sm:$0xff] %vm408_vm0, %v6284_v40  ;;  %v6285_v26 = vmax.f32 %v6253_v62, 0.0  ;;  %v13145_v25 = vadd.f32 %v12501_v10, %v12365_v5  ;;  %v6099_v27 = vpop.f32.mrb[17].mxu0  ;;  %v6485_v32 = vrot.slane %v16078_v6, 1 }
 0x2e6   : > { %17896 = vst [vmem:[#allocation17_spill] sm:$0xff] %v16073_v15  ;;  %17897 = vst [vmem:[#allocation18_spill] sm:$0xff] %v16075_v63  ;;  %12522 = vmatmul.mubr.msk.bf16.gmra.mrb[36].mxu1 %vm408_vm0, %v16073_v15  ;;  %v16091_v36 = vld [vmem:[#allocation3 + $0x78] sm:$0xff]  ;;  %v6283_v24 = vmax.f32 %v6251_v20, 0.0  ;;  %v13146_v52 = vadd.f32 %v6099_v27, %v5268_v18  ;;  %v12502_v0 = vpop.f32.mrb[18].mxu0 }
 0x2e7   : > { %17898 = vst [vmem:[#allocation7_spill] sm:$0xff] %v16082_v48  ;;  %6315 = vst.msk [vmem:[#allocation3 + $0xa9] sm:$0xff] %vm408_vm0, %v6282_v28  ;;  %12525 = vmatprep.mubr.msk.bf16.mxu1 %vm408_vm0, %v16075_v63  ;;  %v6480_v47 = vrot.slane %v16091_v36, 1  ;;  %v16098_v61 = vld [vmem:[#allocation3 + $0x98] sm:$0xff]  ;;  %v16100_v53 = vld [vmem:[#allocation3 + $0xa0] sm:$0x3]  ;;  %v6218_v39 = vmul.f32 %v13145_v25, %v15948_v11  ;;  %v13147_v34 = vadd.f32 %v12502_v0, %v12366_v54 }
 0x2e8   : > { %6318 = vst.msk [vmem:[#allocation3 + $0xc9] sm:$0xff] %vm408_vm0, %v6285_v26  ;;  %v6102_v59 = vpop.f32.mrb[19].mxu0  ;;  %v16104_v7 = vld [vmem:[#allocation3 + $0x80] sm:$0xff]  ;;  %v16106_v49 = vld [vmem:[#allocation3 + $0x88] sm:$0x3]  ;;  %v6486_v29 = vrot.slane %v16098_v61, 1  ;;  %v6216_v16 = vmul.f32 %v13146_v52, %v15948_v11  ;;  %v16136_v52 = vpack.c.bf16 %v16098_v61, %v16078_v6 }
 0x2e9   : > { %v6488_v58 = vrot.slane %v16100_v53, 1  ;;  %6316 = vst.msk [vmem:[#allocation3 + $0xb1] sm:$0xff] %vm408_vm0, %v6283_v24  ;;  %v13148_v17 = vadd.f32 %v6102_v59, %v5271_v37  ;;  %v6481_v35 = vrot.slane %v16104_v7, 1  ;;  %v6483_v13 = vrot.slane %v16106_v49, 1 }
 0x2ea   : > { %v6256_v14 = vadd.f32 %v15953_v44, %v6218_v39  ;;  %v6219_v5 = vmul.f32 %v13147_v34, %v15948_v11  ;;  %v12369_v1 = vpop.f32.mrb[20].mxu1  ;;  %v6487_v41 = vsel %vm4015_vm4, %v6485_v32, %v6486_v29  ;;  %v6254_v8 = vadd.f32 %v15953_v44, %v6216_v16  ;;  %17903 = vst [vmem:[#allocation12_spill] sm:$0xff] %v16136_v52 }
 0x2eb   : > { %v6489_v12 = vsel %vm4015_vm4, %v6486_v29, %v6488_v58  ;;  %v6217_v18 = vmul.f32 %v13148_v17, %v15948_v11  ;;  %v5284_v60 = vpop.f32.mrb[21].mxu1  ;;  %v6482_v46 = vsel %vm4015_vm4, %v6480_v47, %v6481_v35  ;;  %v6484_v40 = vsel %vm4015_vm4, %v6481_v35, %v6483_v13 }
 0x2ec   : > { %v6288_v62 = vmax.f32 %v6256_v14, 0.0  ;;  %v6257_v54 = vadd.f32 %v15953_v44, %v6219_v5  ;;  %v12370_v28 = vpop.f32.mrb[22].mxu1  ;;  %v16123_v20 = vpack.c.bf16 %v6484_v40, %v6482_v46  ;;  %v16125_v10 = vpack.c.bf16 %v6489_v12, %v6487_v41  ;;  %v12505_v25 = vpop.f32.mrb[20].mxu0  ;;  %v16128_v32 = vld [vmem:[#allocation3 + $0xc0] sm:$0xff] }
 0x2ed   : > { %v6286_v37 = vmax.f32 %v6254_v8, 0.0  ;;  %v6255_v26 = vadd.f32 %v15953_v44, %v6217_v18  ;;  %v5287_v27 = vpop.f32.mrb[23].mxu1  ;;  %v16132_v24 = vpack.c.bf16 %v16104_v7, %v16091_v36  ;;  %v13149_v47 = vadd.f32 %v12505_v25, %v12369_v1  ;;  %v6115_v39 = vpop.f32.mrb[21].mxu0 }
 0x2ee   : > { %17900 = vst [vmem:[#allocation9_spill] sm:$0xff] %v16123_v20  ;;  %17901 = vst [vmem:[#allocation10_spill] sm:$0xff] %v16125_v10  ;;  %v6289_v0 = vmax.f32 %v6257_v54, 0.0  ;;  %12526 = vmatmul.mubr.msk.bf16.gmra.mrb[40].mxu1 %vm408_vm0, %v16123_v20  ;;  %v16141_v34 = vld [vmem:[#allocation3 + $0xa8] sm:$0xff]  ;;  %v6495_v59 = vrot.slane %v16128_v32, 1  ;;  %v13150_v58 = vadd.f32 %v6115_v39, %v5284_v60  ;;  %v12506_v16 = vpop.f32.mrb[22].mxu0 }
 0x2ef   : > { %17902 = vst [vmem:[#allocation11_spill] sm:$0xff] %v16132_v24  ;;  %6321 = vst.msk [vmem:[#allocation3 + $0xf1] sm:$0xff] %vm408_vm0, %v6288_v62  ;;  %v6287_v29 = vmax.f32 %v6255_v26, 0.0  ;;  %12529 = vmatprep.mubr.msk.bf16.mxu1 %vm408_vm0, %v16125_v10  ;;  %v6490_v17 = vrot.slane %v16141_v34, 1  ;;  %v16148_v35 = vld [vmem:[#allocation3 + $0xc8] sm:$0xff]  ;;  %v6222_v14 = vmul.f32 %v13149_v47, %v15948_v11  ;;  %v13151_v5 = vadd.f32 %v12506_v16, %v12370_v28  ;;  %v6118_v1 = vpop.f32.mrb[23].mxu0 }
 0x2f0   : > { %6319 = vst.msk [vmem:[#allocation3 + $0xd9] sm:$0xff] %vm408_vm0, %v6286_v37  ;;  %v16150_v13 = vld [vmem:[#allocation3 + $0xd0] sm:$0x3]  ;;  %6322 = vst.msk [vmem:[#allocation3 + $0xf9] sm:$0xff] %vm408_vm0, %v6289_v0  ;;  %v16156_v12 = vld [vmem:[#allocation3 + $0xb8] sm:$0x3]  ;;  %v6220_v60 = vmul.f32 %v13150_v58, %v15948_v11  ;;  %v13152_v46 = vadd.f32 %v6118_v1, %v5287_v27 }
 0x2f1   : > { %v16154_v41 = vld [vmem:[#allocation3 + $0xb0] sm:$0xff]  ;;  %v6496_v8 = vrot.slane %v16148_v35, 1  ;;  %v6498_v18 = vrot.slane %v16150_v13, 1  ;;  %6320 = vst.msk [vmem:[#allocation3 + $0xe1] sm:$0xff] %vm408_vm0, %v6287_v29  ;;  %v6493_v62 = vrot.slane %v16156_v12, 1  ;;  %v6260_v54 = vadd.f32 %v15953_v44, %v6222_v14 }
 0x2f2   : > { %v6491_v40 = vrot.slane %v16154_v41, 1  ;;  %v6223_v28 = vmul.f32 %v13151_v5, %v15948_v11  ;;  %v12373_v37 = vpop.f32.mrb[24].mxu1  ;;  %v6258_v0 = vadd.f32 %v15953_v44, %v6220_v60  ;;  %v6221_v47 = vmul.f32 %v13152_v46, %v15948_v11 }
 0x2f3   : > { %v6497_v26 = vsel %vm4015_vm4, %v6495_v59, %v6496_v8  ;;  %v6499_v25 = vsel %vm4015_vm4, %v6496_v8, %v6498_v18  ;;  %v5300_v39 = vpop.f32.mrb[25].mxu1  ;;  %v6292_v58 = vmax.f32 %v6260_v54, 0.0  ;;  %v16186_v46 = vpack.c.bf16 %v16148_v35, %v16128_v32 }
 0x2f4   : > { %v6492_v27 = vsel %vm4015_vm4, %v6490_v17, %v6491_v40  ;;  %v6494_v29 = vsel %vm4015_vm4, %v6491_v40, %v6493_v62  ;;  %v6261_v16 = vadd.f32 %v15953_v44, %v6223_v28  ;;  %v12374_v14 = vpop.f32.mrb[26].mxu1  ;;  %v16175_v5 = vpack.c.bf16 %v6499_v25, %v6497_v26  ;;  %v12509_v18 = vpop.f32.mrb[24].mxu0 }
 0x2f5   : > { %v16173_v1 = vpack.c.bf16 %v6494_v29, %v6492_v27  ;;  %v6290_v59 = vmax.f32 %v6258_v0, 0.0  ;;  %v6259_v8 = vadd.f32 %v15953_v44, %v6221_v47  ;;  %v5303_v60 = vpop.f32.mrb[27].mxu1  ;;  %v16182_v17 = vpack.c.bf16 %v16154_v41, %v16141_v34  ;;  %17907 = vst [vmem:[#allocation6_spill] sm:$0xff] %v16186_v46  ;;  %6325 = vst.msk [vmem:[#allocation3 + $0x121] sm:$0xff] %vm408_vm0, %v6292_v58  ;;  %v6131_v54 = vpop.f32.mrb[25].mxu0 }
 0x2f6   : > { %17905 = vst [vmem:[#allocation16_spill] sm:$0xff] %v16175_v5  ;;  %v16178_v10 = vld [vmem:[#allocation3 + $0xf0] sm:$0xff]  ;;  %v6293_v40 = vmax.f32 %v6261_v16, 0.0  ;;  %v13153_v62 = vadd.f32 %v12509_v18, %v12373_v37  ;;  %v13154_v0 = vadd.f32 %v6131_v54, %v5300_v39  ;;  %v12510_v47 = vpop.f32.mrb[26].mxu0 }
 0x2f7   : > { %17904 = vst [vmem:[#allocation15_spill] sm:$0xff] %v16173_v1  ;;  %17906 = vst [vmem:[#allocation19_spill] sm:$0xff] %v16182_v17  ;;  %12530 = vmatmul.mubr.msk.bf16.gmra.mrb[44].mxu1 %vm408_vm0, %v16173_v1  ;;  %v16191_v28 = vld [vmem:[#allocation3 + $0xd8] sm:$0xff]  ;;  %v6505_v26 = vrot.slane %v16178_v10, 1  ;;  %v6291_v25 = vmax.f32 %v6259_v8, 0.0  ;;  %v13155_v16 = vadd.f32 %v12510_v47, %v12374_v14  ;;  %v6134_v18 = vpop.f32.mrb[27].mxu0 }
 0x2f8   : > { %6323 = vst.msk [vmem:[#allocation3 + $0x109] sm:$0xff] %vm408_vm0, %v6290_v59  ;;  %12533 = vmatprep.mubr.msk.bf16.mxu1 %vm408_vm0, %v16175_v5  ;;  %v6500_v27 = vrot.slane %v16191_v28, 1  ;;  %v16198_v29 = vld [vmem:[#allocation3 + $0xf8] sm:$0xff]  ;;  %v16200_v37 = vld [vmem:[#allocation3 + $0x100] sm:$0x3]  ;;  %6326 = vst.msk [vmem:[#allocation3 + $0x129] sm:$0xff] %vm408_vm0, %v6293_v40  ;;  %v6226_v58 = vmul.f32 %v13153_v62, %v15948_v11  ;;  %v6224_v54 = vmul.f32 %v13154_v0, %v15948_v11 }
 0x2f9   : > { %v16204_v1 = vld [vmem:[#allocation3 + $0xe0] sm:$0xff]  ;;  %v16206_v59 = vld [vmem:[#allocation3 + $0xe8] sm:$0x3]  ;;  %v6506_v39 = vrot.slane %v16198_v29, 1  ;;  %v6508_v8 = vrot.slane %v16200_v37, 1  ;;  %6324 = vst.msk [vmem:[#allocation3 + $0x111] sm:$0xff] %vm408_vm0, %v6291_v25  ;;  %v13156_v5 = vadd.f32 %v6134_v18, %v5303_v60  ;;  %v6227_v62 = vmul.f32 %v13155_v16, %v15948_v11 }
 0x2fa   : > { %v6501_v20 = vrot.slane %v16204_v1, 1  ;;  %v6503_v40 = vrot.slane %v16206_v59, 1  ;;  %v6264_v14 = vadd.f32 %v15953_v44, %v6226_v58  ;;  %v12377_v47 = vpop.f32.mrb[28].mxu1  ;;  %v6262_v3 = vadd.f32 %v15953_v44, %v6224_v54 }
 0x2fb   : > { %v6507_v63 = vsel %vm4015_vm4, %v6505_v26, %v6506_v39  ;;  %v6509_v15 = vsel %vm4015_vm4, %v6506_v39, %v6508_v8  ;;  %v6225_v25 = vmul.f32 %v13156_v5, %v15948_v11  ;;  %v5316_v45 = vpop.f32.mrb[29].mxu1  ;;  %v6265_v46 = vadd.f32 %v15953_v44, %v6227_v62 }
 0x2fc   : > { %v6502_v60 = vsel %vm4015_vm4, %v6500_v27, %v6501_v20  ;;  %v6504_v0 = vsel %vm4015_vm4, %v6501_v20, %v6503_v40  ;;  %v6296_v18 = vmax.f32 %v6264_v14, 0.0  ;;  %v12378_v58 = vpop.f32.mrb[30].mxu1  ;;  %v16225_v16 = vpack.c.bf16 %v6509_v15, %v6507_v63  ;;  %v12513_v8 = vpop.f32.mrb[28].mxu0  ;;  %v16228_v52 = vld [vmem:[#allocation3 + $0x120] sm:$0xff] }
 0x2fd   : > { %v16223_v17 = vpack.c.bf16 %v6504_v0, %v6502_v60  ;;  %v6294_v26 = vmax.f32 %v6262_v3, 0.0  ;;  %v6263_v39 = vadd.f32 %v15953_v44, %v6225_v25  ;;  %v5319_v54 = vpop.f32.mrb[31].mxu1  ;;  %v16232_v5 = vpack.c.bf16 %v16204_v1, %v16191_v28  ;;  %v6147_v63 = vpop.f32.mrb[29].mxu0 }
 0x2fe   : > { %17909 = vst [vmem:[#allocation21_spill] sm:$0xff] %v16225_v16  ;;  %v16236_v20 = vpack.c.bf16 %v16198_v29, %v16178_v10  ;;  %6329 = vst.msk [vmem:[#allocation3 + $0x151] sm:$0xff] %vm408_vm0, %v6296_v18  ;;  %v6297_v27 = vmax.f32 %v6265_v46, 0.0  ;;  %v13157_v15 = vadd.f32 %v12513_v8, %v12377_v47  ;;  %v6515_v40 = vrot.slane %v16228_v52, 1  ;;  %v12514_v25 = vpop.f32.mrb[30].mxu0 }
 0x2ff   : > { %17908 = vst [vmem:[#allocation20_spill] sm:$0xff] %v16223_v17  ;;  %17910 = vst [vmem:[#allocation22_spill] sm:$0xff] %v16232_v5  ;;  %12534 = vmatmul.mubr.msk.bf16.gmra.mrb[48].mxu1 %vm408_vm0, %v16223_v17  ;;  %v16241_v3 = vld [vmem:[#allocation3 + $0x108] sm:$0xff]  ;;  %v6295_v14 = vmax.f32 %v6263_v39, 0.0  ;;  %v13158_v62 = vadd.f32 %v6147_v63, %v5316_v45  ;;  %v16250_v47 = vld [vmem:[#allocation3 + $0x130] sm:$0x3]  ;;  %v13159_v18 = vadd.f32 %v12514_v25, %v12378_v58 }
 0x300   : > { %17911 = vst [vmem:[#allocation23_spill] sm:$0xff] %v16236_v20  ;;  %6327 = vst.msk [vmem:[#allocation3 + $0x139] sm:$0xff] %vm408_vm0, %v6294_v26  ;;  %12537 = vmatprep.mubr.msk.bf16.mxu1 %vm408_vm0, %v16225_v16  ;;  %v6510_v60 = vrot.slane %v16241_v3, 1  ;;  %v16248_v46 = vld [vmem:[#allocation3 + $0x128] sm:$0xff]  ;;  %v6230_v0 = vmul.f32 %v13157_v15, %v15948_v11  ;;  %v6150_v8 = vpop.f32.mrb[31].mxu0  ;;  %v16254_v17 = vld [vmem:[#allocation3 + $0x110] sm:$0xff] }
 0x301   : > { %6330 = vst.msk [vmem:[#allocation3 + $0x159] sm:$0xff] %vm408_vm0, %v6297_v27  ;;  %v16256_v26 = vld [vmem:[#allocation3 + $0x118] sm:$0x3]  ;;  %v6516_v45 = vrot.slane %v16248_v46, 1  ;;  %v6518_v39 = vrot.slane %v16250_v47, 1  ;;  %6328 = vst.msk [vmem:[#allocation3 + $0x141] sm:$0xff] %vm408_vm0, %v6295_v14  ;;  %v6228_v63 = vmul.f32 %v13158_v62, %v15948_v11  ;;  %v13160_v16 = vadd.f32 %v6150_v8, %v5319_v54 }
 0x302   : > { %v6511_v20 = vrot.slane %v16254_v17, 1  ;;  %v6513_v27 = vrot.slane %v16256_v26, 1  ;;  %v6268_v58 = vadd.f32 %v15953_v44, %v6230_v0  ;;  %v6231_v15 = vmul.f32 %v13159_v18, %v15948_v11 }
 0x303   : > { %v6517_v25 = vsel %vm4015_vm4, %v6515_v40, %v6516_v45  ;;  %v6519_v5 = vsel %vm4015_vm4, %v6516_v45, %v6518_v39  ;;  %v6266_v24 = vadd.f32 %v15953_v44, %v6228_v63  ;;  %v6229_v19 = vmul.f32 %v13160_v16, %v15948_v11 }
 0x304   : > { %v6512_v14 = vsel %vm4015_vm4, %v6510_v60, %v6511_v20  ;;  %v6514_v54 = vsel %vm4015_vm4, %v6511_v20, %v6513_v27  ;;  %v6300_v62 = vmax.f32 %v6268_v58, 0.0  ;;  %v6269_v8 = vadd.f32 %v15953_v44, %v6231_v15 }
 0x305   : > { %v16273_v48 = vpack.c.bf16 %v6514_v54, %v6512_v14  ;;  %v16275_v0 = vpack.c.bf16 %v6519_v5, %v6517_v25  ;;  %v6298_v18 = vmax.f32 %v6266_v24, 0.0  ;;  %v6267_v40 = vadd.f32 %v15953_v44, %v6229_v19  ;;  %v16278_v42 = vld [vmem:[#allocation3 + $0x150] sm:$0xff] }
 0x306   : > { %v16282_v45 = vpack.c.bf16 %v16254_v17, %v16241_v3  ;;  %v16286_v11 = vpack.c.bf16 %v16248_v46, %v16228_v52  ;;  %6333 = vst.msk [vmem:[#allocation3 + $0x181] sm:$0xff] %vm408_vm0, %v6300_v62  ;;  %v6301_v16 = vmax.f32 %v6269_v8, 0.0  ;;  %v6525_v44 = vrot.slane %v16278_v42, 1 }
 0x307   : > { %17912 = vst [vmem:[#allocation24_spill] sm:$0xff] %v16273_v48  ;;  %17913 = vst [vmem:[#allocation25_spill] sm:$0xff] %v16275_v0  ;;  %12538 = vmatmul.mubr.msk.bf16.gmra.mrb[52].mxu1 %vm408_vm0, %v16273_v48  ;;  %v16291_v5 = vld [vmem:[#allocation3 + $0x138] sm:$0xff]  ;;  %v7016_v19 = vrot.slane %v15978_v51, 2  ;;  %v7017_v24 = vrot.slane %v15992_v50, 2  ;;  %v6299_v20 = vmax.f32 %v6267_v40, 0.0 }
 0x308   : > { %6331 = vst.msk [vmem:[#allocation3 + $0x169] sm:$0xff] %vm408_vm0, %v6298_v18  ;;  %12541 = vmatprep.mubr.msk.bf16.mxu1 %vm408_vm0, %v16275_v0  ;;  %v6520_v60 = vrot.slane %v16291_v5, 1  ;;  %v16300_v39 = vld [vmem:[#allocation3 + $0x158] sm:$0xff]  ;;  %v16302_v63 = vld [vmem:[#allocation3 + $0x160] sm:$0x3]  ;;  %v7019_v58 = vrot.slane %v15994_v23, 2 }
 0x309   : > { %6334 = vst.msk [vmem:[#allocation3 + $0x189] sm:$0xff] %vm408_vm0, %v6301_v16  ;;  %v16308_v51 = vld [vmem:[#allocation3 + $0x140] sm:$0xff]  ;;  %v16310_v50 = vld [vmem:[#allocation3 + $0x148] sm:$0x3]  ;;  %v6526_v15 = vrot.slane %v16300_v39, 1  ;;  %v6528_v25 = vrot.slane %v16302_v63, 1  ;;  %v16316_v14 = vpack.c.bf16 %v16300_v39, %v16278_v42  ;;  %v7018_v54 = vsel %vm4573_vm12, %v7016_v19, %v7017_v24 }
 0x30a   : > { %6332 = vst.msk [vmem:[#allocation3 + $0x171] sm:$0xff] %vm408_vm0, %v6299_v20  ;;  %v6521_v23 = vrot.slane %v16308_v51, 1  ;;  %v6523_v62 = vrot.slane %v16310_v50, 1  ;;  %v16324_v8 = vpack.c.bf16 %v16308_v51, %v16291_v5  ;;  %v7020_v18 = vsel %vm4573_vm12, %v7017_v24, %v7019_v58 }
 0x30b   : > { %17914 = vst [vmem:[#allocation26_spill] sm:$0xff] %v16316_v14  ;;  %v6527_v40 = vsel %vm4015_vm4, %v6525_v44, %v6526_v15  ;;  %v6529_v16 = vsel %vm4015_vm4, %v6526_v15, %v6528_v25  ;;  %v16331_v27 = vsel %vm4196_vm2, %v16022_v33, 0  ;;  %v16333_v19 = vpack.c.bf16 %v7020_v18, %v7018_v54 }
 0x30c   : > { %17915 = vst [vmem:[#allocation27_spill] sm:$0xff] %v16324_v8  ;;  %v6522_v20 = vsel %vm4015_vm4, %v6520_v60, %v6521_v23  ;;  %v6524_v0 = vsel %vm4015_vm4, %v6521_v23, %v6523_v62  ;;  %v16337_v48 = vpack.c.bf16 %v6529_v16, %v6527_v40  ;;  %v7021_v14 = vrot.slane %v15975_v21, 2 }
 0x30d   : > { %v16340_v8 = vpack.c.bf16 %v6524_v0, %v6522_v20  ;;  %v7022_v44 = vrot.slane %v15985_v9, 2  ;;  %v7024_v24 = vrot.slane %v15987_v30, 2  ;;  %v7026_v58 = vrot.slane %v16036_v55, 2 }
 0x30e   : > { %v7027_v33 = vrot.slane %v16051_v31, 2  ;;  %v7029_v15 = vrot.slane %v16053_v2, 2  ;;  %v7031_v60 = vrot.slane %v16017_v22, 2  ;;  %v7032_v25 = vrot.slane %v16044_v38, 2 }
 0x30f   : > { %12542 = vmatmul.mubr.msk.bf16.gmra.mrb[56].mxu1 %vm408_vm0, %v16340_v8  ;;  %v16351_v21 = vld [vmem:[#allocation3 + $0x168] sm:$0xff]  ;;  %v7023_v0 = vsel %vm4573_vm12, %v7021_v14, %v7022_v44  ;;  %v7025_v9 = vsel %vm4573_vm12, %v7022_v44, %v7024_v24  ;;  %v7034_v30 = vrot.slane %v16046_v57, 2  ;;  %v7036_v55 = vrot.slane %v16091_v36, 2 }
 0x310   : > { %12545 = vmatprep.mubr.msk.bf16.mxu1 %vm408_vm0, %v16337_v48  ;;  %v6530_v22 = vrot.slane %v16351_v21, 1  ;;  %v16360_v31 = vpack.c.bf16 %v7025_v9, %v7023_v0  ;;  %v7028_v38 = vsel %vm4573_vm12, %v7026_v58, %v7027_v33  ;;  %v7030_v2 = vsel %vm4573_vm12, %v7027_v33, %v7029_v15 }
 0x311   : > { %v16364_v54 = vld [vmem:[#allocation3 + $0x170] sm:$0xff]  ;;  %v16366_v14 = vld [vmem:[#allocation3 + $0x178] sm:$0x3]  ;;  %v16368_v23 = vpack.c.bf16 %v7030_v2, %v7028_v38  ;;  %v7033_v57 = vsel %vm4573_vm12, %v7031_v60, %v7032_v25  ;;  %v7035_v36 = vsel %vm4573_vm12, %v7032_v25, %v7034_v30  ;;  %v7037_v62 = vrot.slane %v16104_v7, 2 }
 0x312   : > { %v6531_v18 = vrot.slane %v16364_v54, 1  ;;  %v6533_v40 = vrot.slane %v16366_v14, 1  ;;  %v16377_v16 = vpack.c.bf16 %v16364_v54, %v16351_v21  ;;  %v16379_v20 = vpack.c.bf16 %v7035_v36, %v7033_v57 }
 0x313   : > { %v7038_v44 = vsel %vm4573_vm12, %v7036_v55, %v7037_v62  ;;  %v7039_v24 = vrot.slane %v16106_v49, 2  ;;  %v7041_v58 = vrot.slane %v16078_v6, 2  ;;  %v7042_v33 = vrot.slane %v16098_v61, 2 }
 0x314   : > { %v6532_v7 = vsel %vm4015_vm4, %v6530_v22, %v6531_v18  ;;  %v6534_v15 = vsel %vm4015_vm4, %v6531_v18, %v6533_v40  ;;  %v7044_v60 = vrot.slane %v16100_v53, 2  ;;  %v7046_v25 = vrot.slane %v16141_v34, 2 }
 0x315   : > { %v16389_v0 = vpack.c.bf16 %v6534_v15, %v6532_v7  ;;  %v7040_v9 = vsel %vm4573_vm12, %v7037_v62, %v7039_v24  ;;  %v7043_v30 = vsel %vm4573_vm12, %v7041_v58, %v7042_v33  ;;  %v7047_v49 = vrot.slane %v16154_v41, 2 }
 0x316   : > { %v16394_v55 = vpack.c.bf16 %v7040_v9, %v7038_v44  ;;  %v7045_v6 = vsel %vm4573_vm12, %v7042_v33, %v7044_v60  ;;  %v7049_v61 = vrot.slane %v16156_v12, 2  ;;  %v7051_v22 = vrot.slane %v16128_v32, 2 }
 0x317   : > { %12546 = vmatmul.mubr.msk.bf16.gmra.mrb[60].mxu1 %vm408_vm0, %v16389_v0  ;;  %v16401_v53 = vpack.c.bf16 %v7045_v6, %v7043_v30  ;;  %v7048_v34 = vsel %vm4573_vm12, %v7046_v25, %v7047_v49  ;;  %v7052_v38 = vrot.slane %v16148_v35, 2  ;;  %v7054_v2 = vrot.slane %v16150_v13, 2  ;;  %v17917_v30 = vld [vmem:[#allocation5_spill] sm:$0xff] }
 0x318   : > { %v17916_v41 = vpack.c.bf16 %v15926_v56, %v15924_v43  ;;  %v7050_v12 = vsel %vm4573_vm12, %v7047_v49, %v7049_v61  ;;  %v7056_v32 = vrot.slane %v16191_v28, 2  ;;  %v7057_v57 = vrot.slane %v16204_v1, 2 }
 0x319   : > { %v7059_v36 = vrot.slane %v16206_v59, 2  ;;  %v16414_v62 = vpack.c.bf16 %v7050_v12, %v7048_v34  ;;  %v7053_v18 = vsel %vm4573_vm12, %v7051_v22, %v7052_v38  ;;  %v7055_v35 = vsel %vm4573_vm12, %v7052_v38, %v7054_v2 }
 0x31a   : > { %12551 = vmatprep.mubr.msk.bf16.mxu1 %vm408_vm0, %v17916_v41  ;;  %v7061_v13 = vrot.slane %v16178_v10, 2  ;;  %v16419_v40 = vpack.c.bf16 %v7055_v35, %v7053_v18  ;;  %v7058_v43 = vsel %vm4573_vm12, %v7056_v32, %v7057_v57  ;;  %v7062_v28 = vrot.slane %v16198_v29, 2  ;;  %v16469_v41 = vld [vmem:[#allocation3 + $0x180] sm:$0xff]  ;;  %v17918_v18 = vld [vmem:[#allocation7_spill] sm:$0xff] }
 0x31b   : > { %v7060_v56 = vsel %vm4573_vm12, %v7057_v57, %v7059_v36  ;;  %v7064_v1 = vrot.slane %v16200_v37, 2  ;;  %v7066_v59 = vrot.slane %v16241_v3, 2  ;;  %v7067_v24 = vrot.slane %v16254_v17, 2  ;;  %v11488_v17 = vld [vmem:[%s17766_s5 + $0x8] sm:$0xf] }
 0x31c   : > { %v16424_v44 = vpack.c.bf16 %v7060_v56, %v7058_v43  ;;  %v7063_v58 = vsel %vm4573_vm12, %v7061_v13, %v7062_v28  ;;  %v7069_v10 = vrot.slane %v16256_v26, 2  ;;  %v7071_v33 = vrot.slane %v16228_v52, 2  ;;  %v17919_v43 = vld [vmem:[#allocation8_spill] sm:$0xff] }
 0x31d   : > { %v7072_v7 = vrot.slane %v16248_v46, 2  ;;  %v7065_v15 = vsel %vm4573_vm12, %v7062_v28, %v7064_v1  ;;  %v7068_v29 = vsel %vm4573_vm12, %v7066_v59, %v7067_v24  ;;  %v7074_v60 = vrot.slane %v16250_v47, 2  ;;  %v17920_v28 = vld [vmem:[#allocation11_spill] sm:$0xff]  ;;  %v17921_v1 = vld [vmem:[#allocation12_spill] sm:$0xff] }
 0x31e   : > { %v7076_v37 = vrot.slane %v16291_v5, 2  ;;  %v16440_v3 = vpack.c.bf16 %v7065_v15, %v7063_v58  ;;  %v7070_v26 = vsel %vm4573_vm12, %v7067_v24, %v7069_v10  ;;  %v7077_v46 = vrot.slane %v16308_v51, 2  ;;  %v17922_v59 = vld [vmem:[#allocation19_spill] sm:$0xff]  ;;  %v17923_v24 = vld [vmem:[#allocation6_spill] sm:$0xff] }
 0x31f   : > { %v7073_v52 = vsel %vm4573_vm12, %v7071_v33, %v7072_v7  ;;  %12552 = vmatmul.mubr.msk.bf16.vlgmr.msra.gmra.mrb[32].mxu1 %vm408_vm0, %v16026_v4  ;;  %v16447_v25 = vpack.c.bf16 %v7070_v26, %v7068_v29  ;;  %v7075_v47 = vsel %vm4573_vm12, %v7072_v7, %v7074_v60  ;;  %v7079_v5 = vrot.slane %v16310_v50, 2  ;;  %v17924_v58 = vld [vmem:[#allocation22_spill] sm:$0xff]  ;;  %v17925_v10 = vld [vmem:[#allocation23_spill] sm:$0xff]  ;;  %v13967_v33 = vld [vmem:[#allocation3] sm:$0xff] }
 0x320   : > { %v7081_v9 = vrot.slane %v16278_v42, 2  ;;  %12584 = vmatpush3.bf16.msra.mxu1 %v16331_v27  ;;  %12555 = vmatprep.mubr.msk.bf16.mxu1 %vm408_vm0, %v17917_v30  ;;  %v16455_v49 = vpack.c.bf16 %v7075_v47, %v7073_v52  ;;  %v7078_v51 = vsel %vm4573_vm12, %v7076_v37, %v7077_v46  ;;  %v7082_v6 = vrot.slane %v16300_v39, 2  ;;  %v16471_v39 = vld [vmem:[#allocation3 + $0x188] sm:$0xff]  ;;  %v13969_v60 = vld [vmem:[#allocation3 + $0x10] sm:$0x3] }
 0x321   : > { %v7084_v61 = vrot.slane %v16302_v63, 2  ;;  %13910 = vmatprep.subr.msk.bf16.mxu1 %vm4196_vm2, %v11488_v17  ;;  %v7080_v22 = vsel %vm4573_vm12, %v7077_v46, %v7079_v5  ;;  %v7086_v50 = vrot.slane %v16351_v21, 2  ;;  %v7087_v42 = vrot.slane %v16364_v54, 2  ;;  %v16473_v63 = vld [vmem:[#allocation3 + $0x190] sm:$0x3]  ;;  %v13968_v15 = vld [vmem:[#allocation3 + $0x8] sm:$0xff] }
 0x322   : > { %v7089_v27 = vrot.slane %v16366_v14, 2  ;;  %v16465_v34 = vpack.c.bf16 %v7080_v22, %v7078_v51  ;;  %v7083_v38 = vsel %vm4573_vm12, %v7081_v9, %v7082_v6  ;;  %v7800_v14 = vrot.slane %v16469_v41, 2  ;;  %v17926_v26 = vld [vmem:[#allocation27_spill] sm:$0xff]  ;;  %v17927_v52 = vld [vmem:[#allocation26_spill] sm:$0xff]  ;;  %v17928_v22 = vld [vmem:[#allocation13_spill] sm:$0xff] }
 0x323   : > { %v7085_v2 = vsel %vm4573_vm12, %v7082_v6, %v7084_v61  ;;  %v7088_v21 = vsel %vm4573_vm12, %v7086_v50, %v7087_v42  ;;  %v7801_v57 = vrot.slane %v16471_v39, 2  ;;  %v7803_v36 = vrot.slane %v16473_v63, 2  ;;  %v11489_v61 = vld [vmem:[%s17766_s5 + $0xc] sm:$0x3] }
 0x324   : > { %v16475_v12 = vpack.c.bf16 %v7085_v2, %v7083_v38  ;;  %v7090_v54 = vsel %vm4573_vm12, %v7087_v42, %v7089_v27  ;;  %v7011_v7 = vrot.slane %v13967_v33, 2  ;;  %v7012_v29 = vrot.slane %v13968_v15, 2  ;;  %v11539_v42 = vld [vmem:[%s17766_s5 + $0x10] sm:$0xf]  ;;  %v17929_v27 = vld [vmem:[#allocation14_spill] sm:$0xff] }
 0x325   : > { %v16479_v32 = vpack.c.bf16 %v7090_v54, %v7088_v21  ;;  %v7802_v35 = vsel %vm4573_vm12, %v7800_v14, %v7801_v57  ;;  %v7804_v13 = vsel %vm4573_vm12, %v7801_v57, %v7803_v36  ;;  %v7014_v37 = vrot.slane %v13969_v60, 2  ;;  %v17930_v38 = vld [vmem:[#allocation17_spill] sm:$0xff]  ;;  %v17931_v2 = vld [vmem:[#allocation18_spill] sm:$0xff]  ;;  %v17934_v14 = vld [vmem:[#allocation15_spill] sm:$0xff] }
 0x326   : > { %v16490_v56 = vpack.c.bf16 %v7804_v13, %v7802_v35  ;;  %v7013_v46 = vsel %vm4573_vm12, %v7011_v7, %v7012_v29  ;;  %v11506_v9 = vcombine.low %v11488_v17, %v11488_v17  ;;  %v7391_v6 = vsel %vm4196_vm2, %v11488_v17, 0  ;;  %v17932_v21 = vld [vmem:[#allocation9_spill] sm:$0xff]  ;;  %v17933_v54 = vld [vmem:[#allocation10_spill] sm:$0xff]  ;;  %v17935_v57 = vld [vmem:[#allocation16_spill] sm:$0xff] }
 0x327   : > { %12556 = vmatmul.mubr.msk.bf16.gmra.mrb[36].mxu1 %vm408_vm0, %v17918_v18  ;;  %v7015_v47 = vsel %vm4573_vm12, %v7012_v29, %v7014_v37  ;;  %v7812_v50 = vsel %vm4196_vm2, %v11489_v61, 0  ;;  %v17936_v36 = vld [vmem:[#allocation20_spill] sm:$0xff]  ;;  %v17937_v35 = vld [vmem:[#allocation21_spill] sm:$0xff]  ;;  %v7590_v7 = vrot.slane %v16471_v39, 1  ;;  %v7592_v15 = vrot.slane %v16473_v63, 1 }
 0x328   : > { %12559 = vmatprep.mubr.msk.bf16.mxu1 %vm408_vm0, %v17919_v43  ;;  %v7123_v5 = vpack.c.bf16 %v7015_v47, %v7013_v46  ;;  %v7600_v51 = vrot.slane %v11506_v9, 2  ;;  %v17938_v13 = vld [vmem:[#allocation24_spill] sm:$0xff]  ;;  %v17939_v33 = vld [vmem:[#allocation25_spill] sm:$0xff]  ;;  %v7589_v29 = vrot.slane %v16469_v41, 1  ;;  %v8015_v47 = vsel %vm4196_vm2, %v11539_v42, 0 }
 0x329   : > { %v7593_v37 = vsel %vm4015_vm4, %v7590_v7, %v7592_v15 }
 0x32a   : > { %v7605_v17 = vsel %vm4196_vm2, %v7600_v51, 0  ;;  %v7591_v60 = vsel %vm4015_vm4, %v7589_v29, %v7590_v7 }
 0x32b   : > { %v16630_v46 = vpack.c.bf16 %v7593_v37, %v7591_v60 }
 0x32f   : > { %12560 = vmatmul.mubr.msk.bf16.gmra.mrb[40].mxu1 %vm408_vm0, %v17920_v28 }
 0x330   : > { %12563 = vmatprep.mubr.msk.bf16.mxu1 %vm408_vm0, %v17921_v1 }
 0x337   : > { %12564 = vmatmul.mubr.msk.bf16.gmra.mrb[44].mxu1 %vm408_vm0, %v17922_v59 }
 0x338   : > { %12567 = vmatprep.mubr.msk.bf16.mxu1 %vm408_vm0, %v17923_v24 }
 0x33f   : > { %12568 = vmatmul.mubr.msk.bf16.gmra.mrb[48].mxu1 %vm408_vm0, %v17924_v58 }
 0x340   : > { %12571 = vmatprep.mubr.msk.bf16.mxu1 %vm408_vm0, %v17925_v10 }
 0x347   : > { %12572 = vmatmul.mubr.msk.bf16.gmra.mrb[52].mxu1 %vm408_vm0, %v16282_v45 }
 0x348   : > { %12575 = vmatprep.mubr.msk.bf16.mxu1 %vm408_vm0, %v16286_v11 }
 0x34f   : > { %12576 = vmatmul.mubr.msk.bf16.gmra.mrb[56].mxu1 %vm408_vm0, %v17926_v26 }
 0x350   : > { %12579 = vmatprep.mubr.msk.bf16.mxu1 %vm408_vm0, %v17927_v52 }
 0x357   : > { %12580 = vmatmul.mubr.msk.bf16.gmra.mrb[60].mxu1 %vm408_vm0, %v16377_v16 }
 0x358   : > { %12585 = vmatprep.mubr.msk.bf16.mxu1 %vm408_vm0, %v7123_v5 }
 0x35f   : > { %12586 = vmatmul.mubr.msk.bf16.vlgmr.msra.gmra.mrb[32].mxu1 %vm408_vm0, %v16333_v19 }
 0x360   : > { %12618 = vmatpush3.bf16.msra.mxu1 %v7391_v6  ;;  %12589 = vmatprep.mubr.msk.bf16.mxu1 %vm408_vm0, %v16360_v31 }
 0x361   : > { %13911 = vmatprep.subr.msk.bf16.mxu1 %vm4196_vm2, %v7600_v51 }
 0x367   : > { %12590 = vmatmul.mubr.msk.bf16.gmra.mrb[36].mxu1 %vm408_vm0, %v16368_v23 }
 0x368   : > { %12593 = vmatprep.mubr.msk.bf16.mxu1 %vm408_vm0, %v16379_v20 }
 0x36f   : > { %12594 = vmatmul.mubr.msk.bf16.gmra.mrb[40].mxu1 %vm408_vm0, %v16394_v55 }
 0x370   : > { %12597 = vmatprep.mubr.msk.bf16.mxu1 %vm408_vm0, %v16401_v53 }
 0x377   : > { %12598 = vmatmul.mubr.msk.bf16.gmra.mrb[44].mxu1 %vm408_vm0, %v16414_v62 }
 0x378   : > { %12601 = vmatprep.mubr.msk.bf16.mxu1 %vm408_vm0, %v16419_v40 }
 0x37f   : > { %12602 = vmatmul.mubr.msk.bf16.gmra.mrb[48].mxu1 %vm408_vm0, %v16424_v44 }
 0x380   : > { %12605 = vmatprep.mubr.msk.bf16.mxu1 %vm408_vm0, %v16440_v3 }
 0x387   : > { %12606 = vmatmul.mubr.msk.bf16.gmra.mrb[52].mxu1 %vm408_vm0, %v16447_v25 }
 0x388   : > { %12609 = vmatprep.mubr.msk.bf16.mxu1 %vm408_vm0, %v16455_v49 }
 0x38f   : > { %12610 = vmatmul.mubr.msk.bf16.gmra.mrb[56].mxu1 %vm408_vm0, %v16465_v34 }
 0x390   : > { %12613 = vmatprep.mubr.msk.bf16.mxu1 %vm408_vm0, %v16475_v12 }
 0x397   : > { %12614 = vmatmul.mubr.msk.bf16.gmra.mrb[60].mxu1 %vm408_vm0, %v16479_v32 }
 0x398   : > { %12619 = vmatprep.mubr.msk.bf16.mxu1 %vm408_vm0, %v16026_v4  ;;  %v16586_v4 = vpack.c.bf16 %v16471_v39, %v16469_v41  ;;  %v11557_v39 = vcombine.low %v11539_v42, %v11539_v42  ;;  %v11540_v41 = vld [vmem:[%s17766_s5 + $0x14] sm:$0x3] }
 0x399   : > { %v8436_v5 = vsel %vm4196_vm2, %v11540_v41, 0 }
 0x39a   : > { %v8224_v63 = vrot.slane %v11557_v39, 2 }
 0x39f   : > { %12620 = vmatmul.mubr.msk.bf16.vlgmr.msra.gmra.mrb[32].mxu1 %vm408_vm0, %v17917_v30 }
 0x3a0   : > { %12652 = vmatpush3.bf16.msra.mxu1 %v7605_v17  ;;  %12623 = vmatprep.mubr.msk.bf16.mxu1 %vm408_vm0, %v17918_v18 }
 0x3a1   : > { %13912 = vmatprep.subr.msk.bf16.mxu1 %vm4196_vm2, %v11489_v61 }
 0x3a7   : > { %12624 = vmatmul.mubr.msk.bf16.gmra.mrb[36].mxu1 %vm408_vm0, %v17919_v43 }
 0x3a8   : > { %12627 = vmatprep.mubr.msk.bf16.mxu1 %vm408_vm0, %v17920_v28 }
 0x3af   : > { %12628 = vmatmul.mubr.msk.bf16.gmra.mrb[40].mxu1 %vm408_vm0, %v17921_v1 }
 0x3b0   : > { %12631 = vmatprep.mubr.msk.bf16.mxu1 %vm408_vm0, %v17922_v59 }
 0x3b7   : > { %12632 = vmatmul.mubr.msk.bf16.gmra.mrb[44].mxu1 %vm408_vm0, %v17923_v24 }
 0x3b8   : > { %12635 = vmatprep.mubr.msk.bf16.mxu1 %vm408_vm0, %v17924_v58 }
 0x3bf   : > { %12636 = vmatmul.mubr.msk.bf16.gmra.mrb[48].mxu1 %vm408_vm0, %v17925_v10 }
 0x3c0   : > { %12639 = vmatprep.mubr.msk.bf16.mxu1 %vm408_vm0, %v16282_v45 }
 0x3c7   : > { %12640 = vmatmul.mubr.msk.bf16.gmra.mrb[52].mxu1 %vm408_vm0, %v16286_v11 }
 0x3c8   : > { %12643 = vmatprep.mubr.msk.bf16.mxu1 %vm408_vm0, %v17926_v26 }
 0x3cf   : > { %12644 = vmatmul.mubr.msk.bf16.gmra.mrb[56].mxu1 %vm408_vm0, %v17927_v52 }
 0x3d0   : > { %12647 = vmatprep.mubr.msk.bf16.mxu1 %vm408_vm0, %v16377_v16 }
 0x3d7   : > { %12648 = vmatmul.mubr.msk.bf16.gmra.mrb[60].mxu1 %vm408_vm0, %v16586_v4 }
 0x3d8   : > { %12653 = vmatprep.mubr.msk.bf16.mxu1 %vm408_vm0, %v17928_v22 }
 0x3df   : > { %12654 = vmatmul.mubr.msk.bf16.vlgmr.msra.gmra.mrb[32].mxu1 %vm408_vm0, %v17929_v27 }
 0x3e0   : > { %12686 = vmatpush3.bf16.msra.mxu1 %v7812_v50  ;;  %12657 = vmatprep.mubr.msk.bf16.mxu1 %vm408_vm0, %v17930_v38 }
 0x3e1   : > { %13913 = vmatprep.subr.msk.bf16.mxu1 %vm4196_vm2, %v11539_v42 }
 0x3e7   : > { %12658 = vmatmul.mubr.msk.bf16.gmra.mrb[36].mxu1 %vm408_vm0, %v17931_v2 }
 0x3e8   : > { %12661 = vmatprep.mubr.msk.bf16.mxu1 %vm408_vm0, %v17932_v21 }
 0x3ef   : > { %12662 = vmatmul.mubr.msk.bf16.gmra.mrb[40].mxu1 %vm408_vm0, %v17933_v54 }
 0x3f0   : > { %12665 = vmatprep.mubr.msk.bf16.mxu1 %vm408_vm0, %v17934_v14 }
 0x3f7   : > { %12666 = vmatmul.mubr.msk.bf16.gmra.mrb[44].mxu1 %vm408_vm0, %v17935_v57 }
 0x3f8   : > { %12669 = vmatprep.mubr.msk.bf16.mxu1 %vm408_vm0, %v17936_v36 }
 0x3ff   : > { %12670 = vmatmul.mubr.msk.bf16.gmra.mrb[48].mxu1 %vm408_vm0, %v17937_v35 }
 0x400   : > { %12673 = vmatprep.mubr.msk.bf16.mxu1 %vm408_vm0, %v17938_v13 }
 0x407   : > { %12674 = vmatmul.mubr.msk.bf16.gmra.mrb[52].mxu1 %vm408_vm0, %v17939_v33 }
 0x408   : > { %12677 = vmatprep.mubr.msk.bf16.mxu1 %vm408_vm0, %v16340_v8 }
 0x40f   : > { %12678 = vmatmul.mubr.msk.bf16.gmra.mrb[56].mxu1 %vm408_vm0, %v16337_v48 }
 0x410   : > { %12681 = vmatprep.mubr.msk.bf16.mxu1 %vm408_vm0, %v16389_v0 }
 0x417   : > { %12682 = vmatmul.mubr.msk.bf16.gmra.mrb[60].mxu1 %vm408_vm0, %v16630_v46 }
 0x418   : > { %12687 = vmatprep.mubr.msk.bf16.mxu1 %vm408_vm0, %v16333_v19  ;;  %v8229_v19 = vsel %vm4196_vm2, %v8224_v63, 0 }
 0x41f   : > { %12688 = vmatmul.mubr.msk.bf16.vlgmr.msra.gmra.mrb[32].mxu1 %vm408_vm0, %v16360_v31 }
 0x420   : > { %12720 = vmatpush3.bf16.msra.mxu1 %v8015_v47  ;;  %12691 = vmatprep.mubr.msk.bf16.mxu1 %vm408_vm0, %v16368_v23 }
 0x421   : > { %13914 = vmatprep.subr.msk.bf16.mxu1 %vm4196_vm2, %v8224_v63 }
 0x427   : > { %12692 = vmatmul.mubr.msk.bf16.gmra.mrb[36].mxu1 %vm408_vm0, %v16379_v20 }
 0x428   : > { %12695 = vmatprep.mubr.msk.bf16.mxu1 %vm408_vm0, %v16394_v55 }
 0x42f   : > { %12696 = vmatmul.mubr.msk.bf16.gmra.mrb[40].mxu1 %vm408_vm0, %v16401_v53 }
 0x430   : > { %12699 = vmatprep.mubr.msk.bf16.mxu1 %vm408_vm0, %v16414_v62 }
 0x437   : > { %12700 = vmatmul.mubr.msk.bf16.gmra.mrb[44].mxu1 %vm408_vm0, %v16419_v40 }
 0x438   : > { %12703 = vmatprep.mubr.msk.bf16.mxu1 %vm408_vm0, %v16424_v44 }
 0x43f   : > { %12704 = vmatmul.mubr.msk.bf16.gmra.mrb[48].mxu1 %vm408_vm0, %v16440_v3 }
 0x440   : > { %12707 = vmatprep.mubr.msk.bf16.mxu1 %vm408_vm0, %v16447_v25 }
 0x447   : > { %12708 = vmatmul.mubr.msk.bf16.gmra.mrb[52].mxu1 %vm408_vm0, %v16455_v49 }
 0x448   : > { %12711 = vmatprep.mubr.msk.bf16.mxu1 %vm408_vm0, %v16465_v34 }
 0x44f   : > { %12712 = vmatmul.mubr.msk.bf16.gmra.mrb[56].mxu1 %vm408_vm0, %v16475_v12 }
 0x450   : > { %12715 = vmatprep.mubr.msk.bf16.mxu1 %vm408_vm0, %v16479_v32 }
 0x457   : > { %12716 = vmatmul.mubr.msk.bf16.gmra.mrb[60].mxu1 %vm408_vm0, %v16490_v56 }
 0x458   : > { %12721 = vmatprep.mubr.msk.bf16.mxu1 %vm408_vm0, %v17917_v30  ;;  %v6386_v30 = vld [vmem:[#allocation3 + $0x198] sm:$0xff] }
 0x459   : > { %v8213_v9 = vrot.slane %v6386_v30, 1 }
 0x45f   : > { %12722 = vmatmul.mubr.msk.bf16.vlgmr.msra.gmra.mrb[32].mxu1 %vm408_vm0, %v17918_v18  ;;  %v6387_v18 = vld [vmem:[#allocation3 + $0x1a0] sm:$0xff] }
 0x460   : > { %12754 = vmatpush3.bf16.msra.mxu1 %v8229_v19  ;;  %12725 = vmatprep.mubr.msk.bf16.mxu1 %vm408_vm0, %v17919_v43  ;;  %v8424_v43 = vrot.slane %v6386_v30, 2  ;;  %v8214_v51 = vrot.slane %v6387_v18, 1 }
 0x461   : > { %13915 = vmatprep.subr.msk.bf16.mxu1 %vm4196_vm2, %v11540_v41 }
 0x462   : > { %v8215_v17 = vsel %vm4015_vm4, %v8213_v9, %v8214_v51 }
 0x467   : > { %12726 = vmatmul.mubr.msk.bf16.gmra.mrb[36].mxu1 %vm408_vm0, %v17920_v28  ;;  %v8425_v28 = vrot.slane %v6387_v18, 2 }
 0x468   : > { %12729 = vmatprep.mubr.msk.bf16.mxu1 %vm408_vm0, %v17921_v1  ;;  %v6388_v1 = vld [vmem:[#allocation3 + $0x1a8] sm:$0x3] }
 0x469   : > { %v8216_v6 = vrot.slane %v6388_v1, 1 }
 0x46b   : > { %v8217_v61 = vsel %vm4015_vm4, %v8214_v51, %v8216_v6 }
 0x46f   : > { %12730 = vmatmul.mubr.msk.bf16.gmra.mrb[40].mxu1 %vm408_vm0, %v17922_v59 }
 0x470   : > { %12733 = vmatprep.mubr.msk.bf16.mxu1 %vm408_vm0, %v17923_v24  ;;  %v8010_v24 = vpack.c.bf16 %v6387_v18, %v6386_v30 }
 0x477   : > { %12734 = vmatmul.mubr.msk.bf16.gmra.mrb[44].mxu1 %vm408_vm0, %v17924_v58 }
 0x478   : > { %12737 = vmatprep.mubr.msk.bf16.mxu1 %vm408_vm0, %v17925_v10  ;;  %v16709_v10 = vld [vmem:[%s17769_s8] sm:$0xf] }
 0x47f   : > { %12738 = vmatmul.mubr.msk.bf16.gmra.mrb[48].mxu1 %vm408_vm0, %v16282_v45  ;;  %v8426_v45 = vsel %vm4573_vm12, %v8424_v43, %v8425_v28 }
 0x480   : > { %12741 = vmatprep.mubr.msk.bf16.mxu1 %vm408_vm0, %v16286_v11  ;;  %v8427_v11 = vrot.slane %v6388_v1, 2 }
 0x482   : > { %v8428_v59 = vsel %vm4573_vm12, %v8425_v28, %v8427_v11 }
 0x483   : > { %v8431_v58 = vpack.c.bf16 %v8428_v59, %v8426_v45 }
 0x487   : > { %12742 = vmatmul.mubr.msk.bf16.gmra.mrb[52].mxu1 %vm408_vm0, %v17926_v26 }
 0x488   : > { %12745 = vmatprep.mubr.msk.bf16.mxu1 %vm408_vm0, %v17927_v52 }
 0x48f   : > { %12746 = vmatmul.mubr.msk.bf16.gmra.mrb[56].mxu1 %vm408_vm0, %v16377_v16  ;;  %v11592_v16 = vcombine.low %v16709_v10, %v16709_v10 }
 0x490   : > { %12749 = vmatprep.mubr.msk.bf16.mxu1 %vm408_vm0, %v16586_v4  ;;  %v8220_v4 = vpack.c.bf16 %v8217_v61, %v8215_v17 }
 0x491   : > { %v9023_v26 = vrot.slane %v11592_v16, 2 }
 0x493   : > { %13916 = vmatprep.subr.msk.bf16.mxu0 %vm4196_vm2, %v9023_v26  ;;  %v9073_v52 = vsel %vm4196_vm2, %v9023_v26, 0 }
 0x494   : > { %12822 = vmatpush3.bf16.msra.mxu0 %v9073_v52 }
 0x495   : > { %13917 = vmatprep.subr.msk.bf16.mxu0 %vm4196_vm2, %v16709_v10 }
 0x497   : > { %12750 = vmatmul.mubr.msk.bf16.gmra.mrb[60].mxu1 %vm408_vm0, %v8010_v24 }
 0x498   : > { %12755 = vmatprep.mubr.msk.bf16.mxu1 %vm408_vm0, %v17929_v27 }
 0x49f   : > { %12756 = vmatmul.mubr.msk.bf16.vlgmr.msra.gmra.mrb[32].mxu1 %vm408_vm0, %v17930_v38 }
 0x4a0   : > { %12788 = vmatpush3.bf16.msra.mxu1 %v8436_v5  ;;  %12759 = vmatprep.mubr.msk.bf16.mxu1 %vm408_vm0, %v17931_v2 }
 0x4a7   : > { %12760 = vmatmul.mubr.msk.bf16.gmra.mrb[36].mxu1 %vm408_vm0, %v17932_v21 }
 0x4a8   : > { %12763 = vmatprep.mubr.msk.bf16.mxu1 %vm408_vm0, %v17933_v54 }
 0x4af   : > { %12764 = vmatmul.mubr.msk.bf16.gmra.mrb[40].mxu1 %vm408_vm0, %v17934_v14 }
 0x4b0   : > { %12767 = vmatprep.mubr.msk.bf16.mxu1 %vm408_vm0, %v17935_v57 }
 0x4b7   : > { %12768 = vmatmul.mubr.msk.bf16.gmra.mrb[44].mxu1 %vm408_vm0, %v17936_v36 }
 0x4b8   : > { %12771 = vmatprep.mubr.msk.bf16.mxu1 %vm408_vm0, %v17937_v35 }
 0x4bf   : > { %12772 = vmatmul.mubr.msk.bf16.gmra.mrb[48].mxu1 %vm408_vm0, %v17938_v13 }
 0x4c0   : > { %12775 = vmatprep.mubr.msk.bf16.mxu1 %vm408_vm0, %v17939_v33 }
 0x4c7   : > { %12776 = vmatmul.mubr.msk.bf16.gmra.mrb[52].mxu1 %vm408_vm0, %v16340_v8  ;;  %v16784_v8 = vld [vmem:[#allocation4 + $0x8] sm:$0xff] }
 0x4c8   : > { %12779 = vmatprep.mubr.msk.bf16.mxu1 %vm408_vm0, %v16337_v48  ;;  %v16782_v48 = vld [vmem:[#allocation4] sm:$0xff] }
 0x4cf   : > { %12780 = vmatmul.mubr.msk.bf16.gmra.mrb[56].mxu1 %vm408_vm0, %v16389_v0 }
 0x4d0   : > { %12783 = vmatprep.mubr.msk.bf16.mxu1 %vm408_vm0, %v16630_v46 }
 0x4d7   : > { %12784 = vmatmul.mubr.msk.bf16.gmra.mrb[60].mxu1 %vm408_vm0, %v8220_v4 }
 0x4d8   : > { %12789 = vmatprep.mubr.msk.bf16.mxu1 %vm408_vm0, %v16360_v31  ;;  %v16786_v31 = vld [vmem:[#allocation4 + $0x10] sm:$0x3] }
 0x4d9   : > { %17940 = vst [vmem:[#allocation5_spill] sm:$0xff] %v16786_v31  ;;  %v8895_v0 = vrot.slane %v16786_v31, 1 }
 0x4df   : > { %12790 = vmatmul.mubr.msk.bf16.vlgmr.msra.gmra.mrb[32].mxu1 %vm408_vm0, %v16368_v23  ;;  %v8892_v23 = vrot.slane %v16782_v48, 1 }
 0x4e0   : > { %12793 = vmatprep.mubr.msk.bf16.mxu1 %vm408_vm0, %v16379_v20  ;;  %v8893_v20 = vrot.slane %v16784_v8, 1 }
 0x4e7   : > { %12794 = vmatmul.mubr.msk.bf16.gmra.mrb[36].mxu1 %vm408_vm0, %v16394_v55  ;;  %v8894_v55 = vsel %vm4015_vm4, %v8892_v23, %v8893_v20 }
 0x4e8   : > { %12797 = vmatprep.mubr.msk.bf16.mxu1 %vm408_vm0, %v16401_v53  ;;  %v8896_v53 = vsel %vm4015_vm4, %v8893_v20, %v8895_v0 }
 0x4ef   : > { %12798 = vmatmul.mubr.msk.bf16.gmra.mrb[40].mxu1 %vm408_vm0, %v16414_v62  ;;  %v9004_v62 = vpack.c.bf16 %v8896_v53, %v8894_v55 }
 0x4f0   : > { %12801 = vmatprep.mubr.msk.bf16.mxu1 %vm408_vm0, %v16419_v40  ;;  %v16797_v40 = vld [vmem:[%s17767_s6] ss:$0 sm:$0xff] }
 0x4f1   : > { %12823 = vmatprep.mubr.msk.bf16.mxu0 %vm408_vm0, %v9004_v62 }
 0x4f7   : > { %12802 = vmatmul.mubr.msk.bf16.gmra.mrb[44].mxu1 %vm408_vm0, %v16424_v44  ;;  %v16802_v44 = vld [vmem:[%s17768_s7] ss:$0 sm:$0xff] }
 0x4f8   : > { %12805 = vmatprep.mubr.msk.bf16.mxu1 %vm408_vm0, %v16440_v3 }
 0x4ff   : > { %12806 = vmatmul.mubr.msk.bf16.gmra.mrb[48].mxu1 %vm408_vm0, %v16447_v25 }
 0x500   : > { %12809 = vmatprep.mubr.msk.bf16.mxu1 %vm408_vm0, %v16455_v49 }
 0x507   : > { %12810 = vmatmul.mubr.msk.bf16.gmra.mrb[52].mxu1 %vm408_vm0, %v16465_v34 }
 0x508   : > { %12813 = vmatprep.mubr.msk.bf16.mxu1 %vm408_vm0, %v16475_v12 }
 0x50f   : > { %12814 = vmatmul.mubr.msk.bf16.gmra.mrb[56].mxu1 %vm408_vm0, %v16479_v32 }
 0x510   : > { %12817 = vmatprep.mubr.msk.bf16.mxu1 %vm408_vm0, %v16490_v56 }
 0x517   : > { %12818 = vmatmul.mubr.msk.bf16.gmra.mrb[60].mxu1 %vm408_vm0, %v8431_v58 }
 0x5b2   : > { %v12791_v3 = vpop.f32.mrb[32].mxu1 }
 0x5b3   : > { %v8639_v25 = vmul.f32 %v12791_v3, %v16797_v40  ;;  %v8472_v49 = vpop.f32.mrb[33].mxu1 }
 0x5b4   : > { %v8637_v34 = vmul.f32 %v16797_v40, %v8472_v49  ;;  %v12792_v12 = vpop.f32.mrb[34].mxu1 }
 0x5b5   : > { %v8677_v32 = vadd.f32 %v16802_v44, %v8639_v25  ;;  %v8640_v56 = vmul.f32 %v12792_v12, %v16797_v40  ;;  %v8475_v22 = vpop.f32.mrb[35].mxu1 }
 0x5b6   : > { %v8675_v50 = vadd.f32 %v16802_v44, %v8637_v34  ;;  %v8638_v42 = vmul.f32 %v16797_v40, %v8475_v22 }
 0x5b7   : > { %v8709_v27 = vmax.f32 %v8677_v32, 0.0  ;;  %v8678_v38 = vadd.f32 %v16802_v44, %v8640_v56  ;;  %v9285_v32 = vsel %vm4196_vm2, %v16709_v10, 0 }
 0x5b8   : > { %v8707_v2 = vmax.f32 %v8675_v50, 0.0  ;;  %v8676_v21 = vadd.f32 %v16802_v44, %v8638_v42 }
 0x5b9   : > { %8742 = vst.msk [vmem:[#allocation4 + $0x31] sm:$0xff] %vm408_vm0, %v8709_v27  ;;  %v8710_v54 = vmax.f32 %v8678_v38, 0.0  ;;  %v16877_v27 = vld [vmem:[%s17769_s8 + $0x4] sm:$0x3] }
 0x5ba   : > { %8740 = vst.msk [vmem:[#allocation4 + $0x19] sm:$0xff] %vm408_vm0, %v8707_v2  ;;  %v8708_v14 = vmax.f32 %v8676_v21, 0.0  ;;  %v12795_v57 = vpop.f32.mrb[36].mxu1 }
 0x5bb   : > { %8743 = vst.msk [vmem:[#allocation4 + $0x39] sm:$0xff] %vm408_vm0, %v8710_v54  ;;  %v8643_v36 = vmul.f32 %v12795_v57, %v16797_v40  ;;  %v8488_v35 = vpop.f32.mrb[37].mxu1 }
 0x5bc   : > { %8741 = vst.msk [vmem:[#allocation4 + $0x21] sm:$0xff] %vm408_vm0, %v8708_v14  ;;  %v8641_v13 = vmul.f32 %v16797_v40, %v8488_v35  ;;  %v12796_v33 = vpop.f32.mrb[38].mxu1 }
 0x5bd   : > { %v8681_v7 = vadd.f32 %v16802_v44, %v8643_v36  ;;  %v8644_v15 = vmul.f32 %v12796_v33, %v16797_v40  ;;  %v8491_v29 = vpop.f32.mrb[39].mxu1 }
 0x5be   : > { %v8679_v60 = vadd.f32 %v16802_v44, %v8641_v13  ;;  %v8642_v37 = vmul.f32 %v16797_v40, %v8491_v29 }
 0x5bf   : > { %v8713_v46 = vmax.f32 %v8681_v7, 0.0  ;;  %v8682_v39 = vadd.f32 %v16802_v44, %v8644_v15 }
 0x5c0   : > { %v8711_v63 = vmax.f32 %v8679_v60, 0.0  ;;  %v8680_v47 = vadd.f32 %v16802_v44, %v8642_v37  ;;  %v16824_v19 = vld [vmem:[#allocation4 + $0x30] sm:$0xff] }
 0x5c1   : > { %8746 = vst.msk [vmem:[#allocation4 + $0x61] sm:$0xff] %vm408_vm0, %v8713_v46  ;;  %v8714_v41 = vmax.f32 %v8682_v39, 0.0  ;;  %v16827_v30 = vld [vmem:[#allocation4 + $0x18] sm:$0xff]  ;;  %v8902_v18 = vrot.slane %v16824_v19, 1 }
 0x5c2   : > { %8744 = vst.msk [vmem:[#allocation4 + $0x49] sm:$0xff] %vm408_vm0, %v8711_v63  ;;  %v8712_v43 = vmax.f32 %v8680_v47, 0.0  ;;  %v12799_v28 = vpop.f32.mrb[40].mxu1  ;;  %v8897_v1 = vrot.slane %v16827_v30, 1  ;;  %v16832_v45 = vld [vmem:[#allocation4 + $0x38] sm:$0xff] }
 0x5c3   : > { %v16834_v11 = vld [vmem:[#allocation4 + $0x40] sm:$0x3]  ;;  %8747 = vst.msk [vmem:[#allocation4 + $0x69] sm:$0xff] %vm408_vm0, %v8714_v41  ;;  %v8647_v59 = vmul.f32 %v12799_v28, %v16797_v40  ;;  %v8504_v24 = vpop.f32.mrb[41].mxu1  ;;  %v16840_v16 = vld [vmem:[#allocation4 + $0x28] sm:$0x3]  ;;  %v16846_v5 = vpack.c.bf16 %v16832_v45, %v16824_v19 }
 0x5c4   : > { %v16838_v58 = vld [vmem:[#allocation4 + $0x20] sm:$0xff]  ;;  %v8903_v26 = vrot.slane %v16832_v45, 1  ;;  %v8905_v52 = vrot.slane %v16834_v11, 1  ;;  %8745 = vst.msk [vmem:[#allocation4 + $0x51] sm:$0xff] %vm408_vm0, %v8712_v43  ;;  %v8645_v9 = vmul.f32 %v16797_v40, %v8504_v24  ;;  %v12800_v51 = vpop.f32.mrb[42].mxu1  ;;  %v8900_v17 = vrot.slane %v16840_v16, 1 }
 0x5c5   : > { %v8898_v6 = vrot.slane %v16838_v58, 1  ;;  %v16854_v61 = vpack.c.bf16 %v16838_v58, %v16827_v30  ;;  %v8685_v4 = vadd.f32 %v16802_v44, %v8647_v59  ;;  %v8648_v23 = vmul.f32 %v12800_v51, %v16797_v40  ;;  %v8507_v20 = vpop.f32.mrb[43].mxu1 }
 0x5c6   : > { %v8904_v0 = vsel %vm4015_vm4, %v8902_v18, %v8903_v26  ;;  %v8906_v55 = vsel %vm4015_vm4, %v8903_v26, %v8905_v52  ;;  %v8683_v53 = vadd.f32 %v16802_v44, %v8645_v9  ;;  %v8646_v62 = vmul.f32 %v16797_v40, %v8507_v20 }
 0x5c7   : > { %v8899_v3 = vsel %vm4015_vm4, %v8897_v1, %v8898_v6  ;;  %v8901_v25 = vsel %vm4015_vm4, %v8898_v6, %v8900_v17  ;;  %v8717_v49 = vmax.f32 %v8685_v4, 0.0  ;;  %v8686_v34 = vadd.f32 %v16802_v44, %v8648_v23 }
 0x5c8   : > { %v16865_v12 = vpack.c.bf16 %v8901_v25, %v8899_v3  ;;  %v8715_v56 = vmax.f32 %v8683_v53, 0.0  ;;  %v8684_v22 = vadd.f32 %v16802_v44, %v8646_v62  ;;  %v16870_v50 = vpack.c.bf16 %v8906_v55, %v8904_v0  ;;  %v16872_v42 = vld [vmem:[#allocation4 + $0x60] sm:$0xff] }
 0x5c9   : > { %8750 = vst.msk [vmem:[#allocation4 + $0x91] sm:$0xff] %vm408_vm0, %v8717_v49  ;;  %v8718_v38 = vmax.f32 %v8686_v34, 0.0  ;;  %v16882_v2 = vld [vmem:[#allocation4 + $0x48] sm:$0xff]  ;;  %v8912_v10 = vrot.slane %v16872_v42, 1  ;;  %v9453_v0 = vrot.slane %v16827_v30, 2  ;;  %v9454_v3 = vrot.slane %v16838_v58, 2 }
 0x5ca   : > { %17941 = vst [vmem:[#allocation7_spill] sm:$0xff] %v16865_v12  ;;  %17942 = vst [vmem:[#allocation8_spill] sm:$0xff] %v16870_v50  ;;  %12824 = vmatmul.mubr.msk.bf16.vlgmr.msra.gmra.mrb[32].mxu0 %vm408_vm0, %v16865_v12  ;;  %v8716_v21 = vmax.f32 %v8684_v22, 0.0  ;;  %v12803_v54 = vpop.f32.mrb[44].mxu1  ;;  %v8907_v14 = vrot.slane %v16882_v2, 1  ;;  %v16889_v57 = vld [vmem:[#allocation4 + $0x68] sm:$0xff] }
 0x5cb   : > { %8748 = vst.msk [vmem:[#allocation4 + $0x79] sm:$0xff] %vm408_vm0, %v8715_v56  ;;  %12856 = vmatpush3.bf16.msra.mxu0 %v9285_v32  ;;  %12827 = vmatprep.mubr.msk.bf16.mxu0 %vm408_vm0, %v16870_v50  ;;  %v16891_v36 = vld [vmem:[#allocation4 + $0x70] sm:$0x3]  ;;  %8751 = vst.msk [vmem:[#allocation4 + $0x99] sm:$0xff] %vm408_vm0, %v8718_v38  ;;  %v8651_v35 = vmul.f32 %v12803_v54, %v16797_v40  ;;  %v8520_v13 = vpop.f32.mrb[45].mxu1  ;;  %v8913_v15 = vrot.slane %v16889_v57, 1  ;;  %v16905_v60 = vpack.c.bf16 %v16889_v57, %v16872_v42 }
 0x5cc   : > { %v16895_v33 = vld [vmem:[#allocation4 + $0x50] sm:$0xff]  ;;  %v16897_v7 = vld [vmem:[#allocation4 + $0x58] sm:$0x3]  ;;  %v8915_v29 = vrot.slane %v16891_v36, 1  ;;  %13918 = vmatprep.subr.msk.bf16.mxu0 %vm4196_vm2, %v16877_v27  ;;  %8749 = vst.msk [vmem:[#allocation4 + $0x81] sm:$0xff] %vm408_vm0, %v8716_v21  ;;  %v8649_v37 = vmul.f32 %v16797_v40, %v8520_v13  ;;  %v12804_v46 = vpop.f32.mrb[46].mxu1 }
 0x5cd   : > { %v8908_v39 = vrot.slane %v16895_v33, 1  ;;  %v8910_v63 = vrot.slane %v16897_v7, 1  ;;  %v16913_v47 = vpack.c.bf16 %v16895_v33, %v16882_v2  ;;  %v8689_v41 = vadd.f32 %v16802_v44, %v8651_v35  ;;  %v8523_v43 = vpop.f32.mrb[47].mxu1 }
 0x5ce   : > { %v8652_v18 = vmul.f32 %v12804_v46, %v16797_v40  ;;  %v8914_v28 = vsel %vm4015_vm4, %v8912_v10, %v8913_v15  ;;  %v8916_v1 = vsel %vm4015_vm4, %v8913_v15, %v8915_v29  ;;  %v8687_v59 = vadd.f32 %v16802_v44, %v8649_v37 }
 0x5cf   : > { %v8650_v24 = vmul.f32 %v16797_v40, %v8523_v43  ;;  %v8909_v26 = vsel %vm4015_vm4, %v8907_v14, %v8908_v39  ;;  %v8911_v52 = vsel %vm4015_vm4, %v8908_v39, %v8910_v63  ;;  %v8721_v9 = vmax.f32 %v8689_v41, 0.0 }
 0x5d0   : > { %v8690_v51 = vadd.f32 %v16802_v44, %v8652_v18  ;;  %v16924_v6 = vpack.c.bf16 %v8911_v52, %v8909_v26  ;;  %v8719_v17 = vmax.f32 %v8687_v59, 0.0  ;;  %v16927_v23 = vpack.c.bf16 %v8916_v1, %v8914_v28  ;;  %v16929_v20 = vld [vmem:[#allocation4 + $0x90] sm:$0xff] }
 0x5d1   : > { %v8688_v4 = vadd.f32 %v16802_v44, %v8650_v24  ;;  %8754 = vst.msk [vmem:[#allocation4 + $0xc1] sm:$0xff] %vm408_vm0, %v8721_v9  ;;  %v8922_v62 = vrot.slane %v16929_v20, 1  ;;  %v9456_v25 = vrot.slane %v16840_v16, 2 }
 0x5d2   : > { %17943 = vst [vmem:[#allocation11_spill] sm:$0xff] %v16924_v6  ;;  %17944 = vst [vmem:[#allocation12_spill] sm:$0xff] %v16927_v23  ;;  %v8722_v55 = vmax.f32 %v8690_v51, 0.0  ;;  %12828 = vmatmul.mubr.msk.bf16.gmra.mrb[36].mxu0 %vm408_vm0, %v16924_v6  ;;  %v16935_v53 = vld [vmem:[#allocation4 + $0x78] sm:$0xff]  ;;  %v12807_v34 = vpop.f32.mrb[48].mxu1 }
 0x5d3   : > { %8752 = vst.msk [vmem:[#allocation4 + $0xa9] sm:$0xff] %vm408_vm0, %v8719_v17  ;;  %v8720_v49 = vmax.f32 %v8688_v4, 0.0  ;;  %12831 = vmatprep.mubr.msk.bf16.mxu0 %vm408_vm0, %v16927_v23  ;;  %v8917_v30 = vrot.slane %v16935_v53, 1  ;;  %v16944_v32 = vld [vmem:[#allocation4 + $0x98] sm:$0xff]  ;;  %v16946_v56 = vld [vmem:[#allocation4 + $0xa0] sm:$0x3]  ;;  %v8655_v22 = vmul.f32 %v12807_v34, %v16797_v40  ;;  %v9455_v4 = vsel %vm4573_vm12, %v9453_v0, %v9454_v3 }
 0x5d4   : > { %8755 = vst.msk [vmem:[#allocation4 + $0xc9] sm:$0xff] %vm408_vm0, %v8722_v55  ;;  %v8536_v58 = vpop.f32.mrb[49].mxu1  ;;  %v16950_v38 = vld [vmem:[#allocation4 + $0x80] sm:$0xff]  ;;  %v16952_v16 = vld [vmem:[#allocation4 + $0x88] sm:$0x3]  ;;  %v8923_v10 = vrot.slane %v16944_v32, 1  ;;  %v16958_v54 = vpack.c.bf16 %v16944_v32, %v16929_v20  ;;  %v9457_v55 = vsel %vm4573_vm12, %v9454_v3, %v9456_v25 }
 0x5d5   : > { %v8925_v21 = vrot.slane %v16946_v56, 1  ;;  %8753 = vst.msk [vmem:[#allocation4 + $0xb1] sm:$0xff] %vm408_vm0, %v8720_v49  ;;  %v8653_v14 = vmul.f32 %v16797_v40, %v8536_v58  ;;  %v12808_v35 = vpop.f32.mrb[50].mxu1  ;;  %v8918_v13 = vrot.slane %v16950_v38, 1  ;;  %v8920_v15 = vrot.slane %v16952_v16, 1 }
 0x5d6   : > { %v16966_v29 = vpack.c.bf16 %v16950_v38, %v16935_v53  ;;  %v8693_v37 = vadd.f32 %v16802_v44, %v8655_v22  ;;  %v8656_v46 = vmul.f32 %v12808_v35, %v16797_v40  ;;  %v8539_v39 = vpop.f32.mrb[51].mxu1  ;;  %v8924_v63 = vsel %vm4015_vm4, %v8922_v62, %v8923_v10 }
 0x5d7   : > { %v8926_v41 = vsel %vm4015_vm4, %v8923_v10, %v8925_v21  ;;  %v8691_v18 = vadd.f32 %v16802_v44, %v8653_v14  ;;  %v8654_v43 = vmul.f32 %v16797_v40, %v8539_v39  ;;  %v8919_v28 = vsel %vm4015_vm4, %v8917_v30, %v8918_v13 }
 0x5d8   : > { %v8921_v1 = vsel %vm4015_vm4, %v8918_v13, %v8920_v15  ;;  %v8725_v59 = vmax.f32 %v8693_v37, 0.0  ;;  %v8694_v24 = vadd.f32 %v16802_v44, %v8656_v46  ;;  %v16979_v52 = vpack.c.bf16 %v8926_v41, %v8924_v63  ;;  %v16982_v17 = vld [vmem:[#allocation4 + $0xc0] sm:$0xff] }
 0x5d9   : > { %v16977_v26 = vpack.c.bf16 %v8921_v1, %v8919_v28  ;;  %v8723_v9 = vmax.f32 %v8691_v18, 0.0  ;;  %v8692_v51 = vadd.f32 %v16802_v44, %v8654_v43  ;;  %v8932_v34 = vrot.slane %v16982_v17, 1 }
 0x5da   : > { %17946 = vst [vmem:[#allocation6_spill] sm:$0xff] %v16979_v52  ;;  %8758 = vst.msk [vmem:[#allocation4 + $0xf1] sm:$0xff] %vm408_vm0, %v8725_v59  ;;  %v8726_v62 = vmax.f32 %v8694_v24, 0.0  ;;  %v16989_v49 = vld [vmem:[#allocation4 + $0xa8] sm:$0xff]  ;;  %v16992_v30 = vpack.c.bf16 %v9457_v55, %v9455_v4  ;;  %v12811_v58 = vpop.f32.mrb[52].mxu1 }
 0x5db   : > { %17945 = vst [vmem:[#allocation19_spill] sm:$0xff] %v16977_v26  ;;  %12832 = vmatmul.mubr.msk.bf16.gmra.mrb[40].mxu0 %vm408_vm0, %v16977_v26  ;;  %8756 = vst.msk [vmem:[#allocation4 + $0xd9] sm:$0xff] %vm408_vm0, %v8723_v9  ;;  %v8724_v22 = vmax.f32 %v8692_v51, 0.0  ;;  %v8927_v0 = vrot.slane %v16989_v49, 1  ;;  %v16998_v3 = vld [vmem:[#allocation4 + $0xc8] sm:$0xff]  ;;  %v8659_v10 = vmul.f32 %v12811_v58, %v16797_v40  ;;  %v8552_v21 = vpop.f32.mrb[53].mxu1 }
 0x5dc   : > { %17947 = vst [vmem:[#allocation22_spill] sm:$0xff] %v16992_v30  ;;  %12835 = vmatprep.mubr.msk.bf16.mxu0 %vm408_vm0, %v16979_v52  ;;  %v17000_v25 = vld [vmem:[#allocation4 + $0xd0] sm:$0x3]  ;;  %8759 = vst.msk [vmem:[#allocation4 + $0xf9] sm:$0xff] %vm408_vm0, %v8726_v62  ;;  %v17006_v35 = vld [vmem:[#allocation4 + $0xb8] sm:$0x3]  ;;  %v17012_v37 = vpack.c.bf16 %v16998_v3, %v16982_v17  ;;  %v8657_v46 = vmul.f32 %v16797_v40, %v8552_v21 }
 0x5dd   : > { %v17004_v14 = vld [vmem:[#allocation4 + $0xb0] sm:$0xff]  ;;  %v8933_v13 = vrot.slane %v16998_v3, 1  ;;  %v8935_v15 = vrot.slane %v17000_v25, 1  ;;  %8757 = vst.msk [vmem:[#allocation4 + $0xe1] sm:$0xff] %vm408_vm0, %v8724_v22  ;;  %v12812_v39 = vpop.f32.mrb[54].mxu1  ;;  %v8930_v41 = vrot.slane %v17006_v35, 1  ;;  %v8697_v43 = vadd.f32 %v16802_v44, %v8659_v10 }
 0x5de   : > { %17948 = vst [vmem:[#allocation23_spill] sm:$0xff] %v17012_v37  ;;  %v8928_v63 = vrot.slane %v17004_v14, 1  ;;  %v17020_v18 = vpack.c.bf16 %v17004_v14, %v16989_v49  ;;  %v8660_v28 = vmul.f32 %v12812_v39, %v16797_v40  ;;  %v8555_v1 = vpop.f32.mrb[55].mxu1  ;;  %v8695_v9 = vadd.f32 %v16802_v44, %v8657_v46 }
 0x5df   : > { %v8934_v59 = vsel %vm4015_vm4, %v8932_v34, %v8933_v13  ;;  %v8936_v24 = vsel %vm4015_vm4, %v8933_v13, %v8935_v15  ;;  %v8658_v51 = vmul.f32 %v16797_v40, %v8555_v1  ;;  %v8729_v62 = vmax.f32 %v8697_v43, 0.0 }
 0x5e0   : > { %v8929_v4 = vsel %vm4015_vm4, %v8927_v0, %v8928_v63  ;;  %v8931_v55 = vsel %vm4015_vm4, %v8928_v63, %v8930_v41  ;;  %v8698_v22 = vadd.f32 %v16802_v44, %v8660_v28  ;;  %v17033_v10 = vpack.c.bf16 %v8936_v24, %v8934_v59 }
 0x5e1   : > { %v17031_v58 = vpack.c.bf16 %v8931_v55, %v8929_v4  ;;  %v8727_v21 = vmax.f32 %v8695_v9, 0.0  ;;  %v8696_v34 = vadd.f32 %v16802_v44, %v8658_v51  ;;  %v17036_v39 = vld [vmem:[#allocation4 + $0xf0] sm:$0xff]  ;;  %v9458_v13 = vrot.slane %v16824_v19, 2  ;;  %8762 = vst.msk [vmem:[#allocation4 + $0x121] sm:$0xff] %vm408_vm0, %v8729_v62 }
 0x5e2   : > { %17950 = vst [vmem:[#allocation26_spill] sm:$0xff] %v17033_v10  ;;  %v9459_v15 = vrot.slane %v16832_v45, 2  ;;  %v8730_v0 = vmax.f32 %v8698_v22, 0.0  ;;  %v17043_v46 = vld [vmem:[#allocation4 + $0xd8] sm:$0xff]  ;;  %v8942_v63 = vrot.slane %v17036_v39, 1  ;;  %v9461_v41 = vrot.slane %v16834_v11, 2 }
 0x5e3   : > { %17949 = vst [vmem:[#allocation27_spill] sm:$0xff] %v17031_v58  ;;  %12836 = vmatmul.mubr.msk.bf16.gmra.mrb[44].mxu0 %vm408_vm0, %v17031_v58  ;;  %v9463_v43 = vrot.slane %v16882_v2, 2  ;;  %8760 = vst.msk [vmem:[#allocation4 + $0x109] sm:$0xff] %vm408_vm0, %v8727_v21  ;;  %v8728_v28 = vmax.f32 %v8696_v34, 0.0  ;;  %v12815_v19 = vpop.f32.mrb[56].mxu1  ;;  %v8937_v45 = vrot.slane %v17043_v46, 1 }
 0x5e4   : > { %12839 = vmatprep.mubr.msk.bf16.mxu0 %vm408_vm0, %v17033_v10  ;;  %v17052_v1 = vld [vmem:[#allocation4 + $0xf8] sm:$0xff]  ;;  %v17054_v59 = vld [vmem:[#allocation4 + $0x100] sm:$0x3]  ;;  %v9460_v24 = vsel %vm4573_vm12, %v9458_v13, %v9459_v15  ;;  %8763 = vst.msk [vmem:[#allocation4 + $0x129] sm:$0xff] %vm408_vm0, %v8730_v0  ;;  %v8663_v11 = vmul.f32 %v12815_v19, %v16797_v40  ;;  %v8568_v2 = vpop.f32.mrb[57].mxu1 }
 0x5e5   : > { %v17059_v9 = vld [vmem:[#allocation4 + $0xe0] sm:$0xff]  ;;  %v17061_v51 = vld [vmem:[#allocation4 + $0xe8] sm:$0x3]  ;;  %v8943_v4 = vrot.slane %v17052_v1, 1  ;;  %v8945_v55 = vrot.slane %v17054_v59, 1  ;;  %v17067_v62 = vpack.c.bf16 %v17052_v1, %v17036_v39  ;;  %8761 = vst.msk [vmem:[#allocation4 + $0x111] sm:$0xff] %vm408_vm0, %v8728_v28  ;;  %v8661_v22 = vmul.f32 %v16797_v40, %v8568_v2 }
 0x5e6   : > { %v12816_v21 = vpop.f32.mrb[58].mxu1  ;;  %v8938_v34 = vrot.slane %v17059_v9, 1  ;;  %v8940_v13 = vrot.slane %v17061_v51, 1  ;;  %v17075_v0 = vpack.c.bf16 %v17059_v9, %v17043_v46  ;;  %v8701_v19 = vadd.f32 %v16802_v44, %v8663_v11 }
 0x5e7   : > { %17951 = vst [vmem:[#allocation13_spill] sm:$0xff] %v17067_v62  ;;  %v8664_v10 = vmul.f32 %v12816_v21, %v16797_v40  ;;  %v8571_v58 = vpop.f32.mrb[59].mxu1  ;;  %v8944_v52 = vsel %vm4015_vm4, %v8942_v63, %v8943_v4  ;;  %v8946_v28 = vsel %vm4015_vm4, %v8943_v4, %v8945_v55  ;;  %v8699_v2 = vadd.f32 %v16802_v44, %v8661_v22 }
 0x5e8   : > { %17952 = vst [vmem:[#allocation14_spill] sm:$0xff] %v17075_v0  ;;  %v8662_v26 = vmul.f32 %v16797_v40, %v8571_v58  ;;  %v8939_v23 = vsel %vm4015_vm4, %v8937_v45, %v8938_v34  ;;  %v8941_v6 = vsel %vm4015_vm4, %v8938_v34, %v8940_v13  ;;  %v8733_v50 = vmax.f32 %v8701_v19, 0.0  ;;  %v17091_v31 = vld [vmem:[#allocation4 + $0x120] sm:$0xff] }
 0x5e9   : > { %v8702_v12 = vadd.f32 %v16802_v44, %v8664_v10  ;;  %v17086_v30 = vpack.c.bf16 %v8941_v6, %v8939_v23  ;;  %v17088_v11 = vpack.c.bf16 %v8946_v28, %v8944_v52  ;;  %v8731_v21 = vmax.f32 %v8699_v2, 0.0 }
 0x5ea   : > { %v8700_v63 = vadd.f32 %v16802_v44, %v8662_v26  ;;  %v9462_v4 = vsel %vm4573_vm12, %v9459_v15, %v9461_v41  ;;  %v9464_v58 = vrot.slane %v16895_v33, 2  ;;  %8766 = vst.msk [vmem:[#allocation4 + $0x151] sm:$0xff] %vm408_vm0, %v8733_v50  ;;  %v17098_v10 = vld [vmem:[#allocation4 + $0x108] sm:$0xff]  ;;  %v8952_v6 = vrot.slane %v17091_v31, 1  ;;  %v12819_v15 = vpop.f32.mrb[60].mxu1 }
 0x5eb   : > { %17953 = vst [vmem:[#allocation17_spill] sm:$0xff] %v17086_v30  ;;  %17954 = vst [vmem:[#allocation18_spill] sm:$0xff] %v17088_v11  ;;  %v8734_v45 = vmax.f32 %v8702_v12, 0.0  ;;  %12840 = vmatmul.mubr.msk.bf16.gmra.mrb[48].mxu0 %vm408_vm0, %v17086_v30  ;;  %v17101_v23 = vpack.c.bf16 %v9462_v4, %v9460_v24  ;;  %v9466_v26 = vrot.slane %v16897_v7, 2  ;;  %v8947_v12 = vrot.slane %v17098_v10, 1  ;;  %v17108_v50 = vld [vmem:[#allocation4 + $0x128] sm:$0xff] }
 0x5ec   : > { %8764 = vst.msk [vmem:[#allocation4 + $0x139] sm:$0xff] %vm408_vm0, %v8731_v21  ;;  %v8732_v52 = vmax.f32 %v8700_v63, 0.0  ;;  %12843 = vmatprep.mubr.msk.bf16.mxu0 %vm408_vm0, %v17088_v11  ;;  %v17110_v33 = vld [vmem:[#allocation4 + $0x130] sm:$0x3]  ;;  %v9465_v41 = vsel %vm4573_vm12, %v9463_v43, %v9464_v58  ;;  %v8667_v24 = vmul.f32 %v12819_v15, %v16797_v40  ;;  %v8584_v7 = vpop.f32.mrb[61].mxu1  ;;  %v8953_v34 = vrot.slane %v17108_v50, 1 }
 0x5ed   : > { %17955 = vst [vmem:[#allocation9_spill] sm:$0xff] %v17101_v23  ;;  %8767 = vst.msk [vmem:[#allocation4 + $0x159] sm:$0xff] %vm408_vm0, %v8734_v45  ;;  %v17115_v55 = vld [vmem:[#allocation4 + $0x110] sm:$0xff]  ;;  %v17117_v22 = vld [vmem:[#allocation4 + $0x118] sm:$0x3]  ;;  %v8955_v13 = vrot.slane %v17110_v33, 1  ;;  %v17123_v19 = vpack.c.bf16 %v17108_v50, %v17091_v31  ;;  %v8665_v43 = vmul.f32 %v16797_v40, %v8584_v7 }
 0x5ee   : > { %8765 = vst.msk [vmem:[#allocation4 + $0x141] sm:$0xff] %vm408_vm0, %v8732_v52  ;;  %v12820_v28 = vpop.f32.mrb[62].mxu1  ;;  %v8948_v2 = vrot.slane %v17115_v55, 1  ;;  %v8950_v21 = vrot.slane %v17117_v22, 1  ;;  %v17131_v63 = vpack.c.bf16 %v17115_v55, %v17098_v10  ;;  %v8705_v4 = vadd.f32 %v16802_v44, %v8667_v24 }
 0x5ef   : > { %17956 = vst [vmem:[#allocation10_spill] sm:$0xff] %v17123_v19  ;;  %v8668_v45 = vmul.f32 %v12820_v28, %v16797_v40  ;;  %v8587_v15 = vpop.f32.mrb[63].mxu1  ;;  %v8954_v11 = vsel %vm4015_vm4, %v8952_v6, %v8953_v34  ;;  %v8956_v52 = vsel %vm4015_vm4, %v8953_v34, %v8955_v13  ;;  %v8703_v7 = vadd.f32 %v16802_v44, %v8665_v43 }
 0x5f0   : > { %17957 = vst [vmem:[#allocation15_spill] sm:$0xff] %v17131_v63  ;;  %v8666_v30 = vmul.f32 %v16797_v40, %v8587_v15  ;;  %v8949_v23 = vsel %vm4015_vm4, %v8947_v12, %v8948_v2  ;;  %v8951_v19 = vsel %vm4015_vm4, %v8948_v2, %v8950_v21  ;;  %v8737_v62 = vmax.f32 %v8705_v4, 0.0 }
 0x5f1   : > { %v8706_v63 = vadd.f32 %v16802_v44, %v8668_v45  ;;  %v17142_v0 = vpack.c.bf16 %v8951_v19, %v8949_v23  ;;  %v17144_v24 = vpack.c.bf16 %v8956_v52, %v8954_v11  ;;  %v8735_v28 = vmax.f32 %v8703_v7, 0.0  ;;  %v17147_v37 = vld [vmem:[#allocation4 + $0x150] sm:$0xff] }
 0x5f2   : > { %v8704_v6 = vadd.f32 %v16802_v44, %v8666_v30  ;;  %v9467_v34 = vsel %vm4573_vm12, %v9464_v58, %v9466_v26  ;;  %v9468_v40 = vrot.slane %v16872_v42, 2  ;;  %8770 = vst.msk [vmem:[#allocation4 + $0x181] sm:$0xff] %vm408_vm0, %v8737_v62  ;;  %v8962_v11 = vrot.slane %v17147_v37, 1 }
 0x5f3   : > { %v8738_v12 = vmax.f32 %v8706_v63, 0.0  ;;  %12844 = vmatmul.mubr.msk.bf16.gmra.mrb[52].mxu0 %vm408_vm0, %v17142_v0  ;;  %v17154_v13 = vld [vmem:[#allocation4 + $0x138] sm:$0xff]  ;;  %v17157_v23 = vpack.c.bf16 %v9467_v34, %v9465_v41  ;;  %v9469_v44 = vrot.slane %v16889_v57, 2  ;;  %8768 = vst.msk [vmem:[#allocation4 + $0x169] sm:$0xff] %vm408_vm0, %v8735_v28  ;;  %v9471_v41 = vrot.slane %v16891_v36, 2 }
 0x5f4   : > { %v8736_v30 = vmax.f32 %v8704_v6, 0.0  ;;  %12847 = vmatprep.mubr.msk.bf16.mxu0 %vm408_vm0, %v17144_v24  ;;  %v8957_v42 = vrot.slane %v17154_v13, 1  ;;  %v17164_v62 = vld [vmem:[#allocation4 + $0x158] sm:$0xff]  ;;  %v17166_v58 = vld [vmem:[#allocation4 + $0x160] sm:$0x3]  ;;  %v9473_v6 = vrot.slane %v16935_v53, 2 }
 0x5f5   : > { %8771 = vst.msk [vmem:[#allocation4 + $0x189] sm:$0xff] %vm408_vm0, %v8738_v12  ;;  %v17172_v57 = vld [vmem:[#allocation4 + $0x140] sm:$0xff]  ;;  %v17174_v19 = vld [vmem:[#allocation4 + $0x148] sm:$0x3]  ;;  %v8963_v43 = vrot.slane %v17164_v62, 1  ;;  %v8965_v2 = vrot.slane %v17166_v58, 1  ;;  %v17180_v21 = vpack.c.bf16 %v17164_v62, %v17147_v37  ;;  %v9470_v63 = vsel %vm4573_vm12, %v9468_v40, %v9469_v44 }
 0x5f6   : > { %8769 = vst.msk [vmem:[#allocation4 + $0x171] sm:$0xff] %vm408_vm0, %v8736_v30  ;;  %v8958_v36 = vrot.slane %v17172_v57, 1  ;;  %v8960_v4 = vrot.slane %v17174_v19, 1  ;;  %v17188_v45 = vpack.c.bf16 %v17172_v57, %v17154_v13  ;;  %v9472_v15 = vsel %vm4573_vm12, %v9469_v44, %v9471_v41 }
 0x5f7   : > { %v8964_v52 = vsel %vm4015_vm4, %v8962_v11, %v8963_v43  ;;  %v8966_v7 = vsel %vm4015_vm4, %v8963_v43, %v8965_v2  ;;  %v17193_v28 = vpack.c.bf16 %v9472_v15, %v9470_v63  ;;  %v9474_v30 = vrot.slane %v16950_v38, 2 }
 0x5f8   : > { %v8959_v34 = vsel %vm4015_vm4, %v8957_v42, %v8958_v36  ;;  %v8961_v40 = vsel %vm4015_vm4, %v8958_v36, %v8960_v4  ;;  %v17198_v12 = vpack.c.bf16 %v8966_v7, %v8964_v52  ;;  %v9476_v44 = vrot.slane %v16952_v16, 2 }
 0x5f9   : > { %v17201_v26 = vpack.c.bf16 %v8961_v40, %v8959_v34  ;;  %v9478_v11 = vrot.slane %v16929_v20, 2  ;;  %v9479_v41 = vrot.slane %v16944_v32, 2  ;;  %v9475_v43 = vsel %vm4573_vm12, %v9473_v6, %v9474_v30 }
 0x5fa   : > { %v9481_v53 = vrot.slane %v16946_v56, 2  ;;  %v9483_v42 = vrot.slane %v16989_v49, 2  ;;  %v9484_v2 = vrot.slane %v17004_v14, 2  ;;  %v17212_v38 = vld [vmem:[#allocation4 + $0x168] sm:$0xff]  ;;  %v9477_v63 = vsel %vm4573_vm12, %v9474_v30, %v9476_v44 }
 0x5fb   : > { %12848 = vmatmul.mubr.msk.bf16.gmra.mrb[56].mxu0 %vm408_vm0, %v17201_v26  ;;  %v9480_v16 = vsel %vm4573_vm12, %v9478_v11, %v9479_v41  ;;  %v9486_v20 = vrot.slane %v17006_v35, 2  ;;  %v9488_v32 = vrot.slane %v16982_v17, 2  ;;  %v8967_v56 = vrot.slane %v17212_v38, 1 }
 0x5fc   : > { %12851 = vmatprep.mubr.msk.bf16.mxu0 %vm408_vm0, %v17198_v12  ;;  %v17221_v49 = vpack.c.bf16 %v9477_v63, %v9475_v43  ;;  %v9482_v14 = vsel %vm4573_vm12, %v9479_v41, %v9481_v53  ;;  %v9485_v36 = vsel %vm4573_vm12, %v9483_v42, %v9484_v2  ;;  %v9489_v17 = vrot.slane %v16998_v3, 2 }
 0x5fd   : > { %v17225_v4 = vld [vmem:[#allocation4 + $0x170] sm:$0xff]  ;;  %v17227_v15 = vld [vmem:[#allocation4 + $0x178] sm:$0x3]  ;;  %v17229_v52 = vpack.c.bf16 %v9482_v14, %v9480_v16  ;;  %v9487_v35 = vsel %vm4573_vm12, %v9484_v2, %v9486_v20  ;;  %v9491_v7 = vrot.slane %v17000_v25, 2  ;;  %v9493_v41 = vrot.slane %v17043_v46, 2 }
 0x5fe   : > { %v8968_v6 = vrot.slane %v17225_v4, 1  ;;  %v8970_v34 = vrot.slane %v17227_v15, 1  ;;  %v17238_v40 = vpack.c.bf16 %v17225_v4, %v17212_v38  ;;  %v17240_v30 = vpack.c.bf16 %v9487_v35, %v9485_v36 }
 0x5ff   : > { %v9490_v44 = vsel %vm4573_vm12, %v9488_v32, %v9489_v17  ;;  %v9492_v11 = vsel %vm4573_vm12, %v9489_v17, %v9491_v7  ;;  %v9494_v3 = vrot.slane %v17059_v9, 2  ;;  %v9496_v42 = vrot.slane %v17061_v51, 2 }
 0x600   : > { %v8969_v25 = vsel %vm4015_vm4, %v8967_v56, %v8968_v6  ;;  %v8971_v43 = vsel %vm4015_vm4, %v8968_v6, %v8970_v34  ;;  %v17248_v53 = vpack.c.bf16 %v9492_v11, %v9490_v44  ;;  %v9498_v16 = vrot.slane %v17036_v39, 2 }
 0x601   : > { %v17251_v2 = vpack.c.bf16 %v8971_v43, %v8969_v25  ;;  %v9495_v63 = vsel %vm4573_vm12, %v9493_v41, %v9494_v3  ;;  %v9499_v20 = vrot.slane %v17052_v1, 2  ;;  %v9497_v46 = vsel %vm4573_vm12, %v9494_v3, %v9496_v42 }
 0x602   : > { %v9501_v9 = vrot.slane %v17054_v59, 2  ;;  %v9503_v32 = vrot.slane %v17098_v10, 2  ;;  %v9504_v56 = vrot.slane %v17115_v55, 2  ;;  %v17262_v51 = vpack.c.bf16 %v9497_v46, %v9495_v63 }
 0x603   : > { %12852 = vmatmul.mubr.msk.bf16.gmra.mrb[60].mxu0 %vm408_vm0, %v17251_v2  ;;  %v9500_v14 = vsel %vm4573_vm12, %v9498_v16, %v9499_v20  ;;  %v9506_v36 = vrot.slane %v17117_v22, 2  ;;  %v9508_v39 = vrot.slane %v17091_v31, 2  ;;  %v17958_v1 = vpack.c.bf16 %v16784_v8, %v16782_v48 }
 0x604   : > { %v9502_v59 = vsel %vm4573_vm12, %v9499_v20, %v9501_v9  ;;  %v9505_v10 = vsel %vm4573_vm12, %v9503_v32, %v9504_v56  ;;  %v9509_v55 = vrot.slane %v17108_v50, 2  ;;  %v9511_v35 = vrot.slane %v17110_v33, 2  ;;  %v17309_v20 = vld [vmem:[#allocation4 + $0x190] sm:$0x3] }
 0x605   : > { %12857 = vmatprep.mubr.msk.bf16.mxu0 %vm408_vm0, %v17958_v1  ;;  %v17275_v17 = vpack.c.bf16 %v9502_v59, %v9500_v14  ;;  %v9507_v7 = vsel %vm4573_vm12, %v9504_v56, %v9506_v36  ;;  %v9513_v22 = vrot.slane %v17154_v13, 2  ;;  %v9514_v31 = vrot.slane %v17172_v57, 2  ;;  %v17959_v1 = vld [vmem:[#allocation23_spill] sm:$0xff]  ;;  %v17960_v59 = vld [vmem:[#allocation14_spill] sm:$0xff] }
 0x606   : > { %v17280_v6 = vpack.c.bf16 %v9507_v7, %v9505_v10  ;;  %v9510_v34 = vsel %vm4573_vm12, %v9508_v39, %v9509_v55  ;;  %v9512_v44 = vsel %vm4573_vm12, %v9509_v55, %v9511_v35  ;;  %v9516_v11 = vrot.slane %v17174_v19, 2  ;;  %v17961_v10 = vld [vmem:[#allocation13_spill] sm:$0xff]  ;;  %v17962_v55 = vld [vmem:[#allocation15_spill] sm:$0xff]  ;;  %v17963_v35 = vld [vmem:[#allocation10_spill] sm:$0xff] }
 0x607   : > { %v17285_v41 = vpack.c.bf16 %v9512_v44, %v9510_v34  ;;  %v9515_v50 = vsel %vm4573_vm12, %v9513_v22, %v9514_v31  ;;  %v9518_v33 = vrot.slane %v17147_v37, 2  ;;  %v9519_v3 = vrot.slane %v17164_v62, 2  ;;  %v17300_v37 = vld [vmem:[#allocation4 + $0x180] sm:$0xff]  ;;  %v17302_v62 = vld [vmem:[#allocation4 + $0x188] sm:$0xff] }
 0x608   : > { %v9517_v13 = vsel %vm4573_vm12, %v9514_v31, %v9516_v11  ;;  %v9521_v57 = vrot.slane %v17166_v58, 2  ;;  %v9523_v25 = vrot.slane %v17212_v38, 2  ;;  %v9524_v43 = vrot.slane %v17225_v4, 2  ;;  %v11641_v58 = vld [vmem:[%s17769_s8 + $0x8] sm:$0xf]  ;;  %v17964_v31 = vld [vmem:[#allocation5_spill] sm:$0xff] }
 0x609   : > { %v9625_v42 = vsel %vm4196_vm2, %v16877_v27, 0  ;;  %v17296_v19 = vpack.c.bf16 %v9517_v13, %v9515_v50  ;;  %v9520_v63 = vsel %vm4573_vm12, %v9518_v33, %v9519_v3  ;;  %v9526_v16 = vrot.slane %v17227_v15, 2  ;;  %v17966_v13 = vld [vmem:[#allocation9_spill] sm:$0xff] }
 0x60a   : > { %v9522_v38 = vsel %vm4573_vm12, %v9519_v3, %v9521_v57  ;;  %v9525_v4 = vsel %vm4573_vm12, %v9523_v25, %v9524_v43  ;;  %v10237_v9 = vrot.slane %v17300_v37, 2  ;;  %v10238_v32 = vrot.slane %v17302_v62, 2  ;;  %v17965_v3 = vld [vmem:[#allocation22_spill] sm:$0xff]  ;;  %v11642_v25 = vld [vmem:[%s17769_s8 + $0xc] sm:$0x3] }
 0x60b   : > { %12858 = vmatmul.mubr.msk.bf16.vlgmr.msra.gmra.mrb[32].mxu0 %vm408_vm0, %v16854_v61  ;;  %v17313_v27 = vpack.c.bf16 %v9522_v38, %v9520_v63  ;;  %v9527_v15 = vsel %vm4573_vm12, %v9524_v43, %v9526_v16  ;;  %v10240_v56 = vrot.slane %v17309_v20, 2  ;;  %v9448_v7 = vrot.slane %v16782_v48, 2  ;;  %v17967_v43 = vld [vmem:[#allocation7_spill] sm:$0xff]  ;;  %v11692_v63 = vld [vmem:[%s17769_s8 + $0x10] sm:$0xf]  ;;  %v17968_v16 = vld [vmem:[#allocation8_spill] sm:$0xff] }
 0x60c   : > { %12890 = vmatpush3.bf16.msra.mxu0 %v9625_v42  ;;  %12861 = vmatprep.mubr.msk.bf16.mxu0 %vm408_vm0, %v16846_v5  ;;  %v17318_v46 = vpack.c.bf16 %v9527_v15, %v9525_v4  ;;  %v10239_v14 = vsel %vm4573_vm12, %v10237_v9, %v10238_v32  ;;  %v9449_v22 = vrot.slane %v16784_v8, 2  ;;  %v9451_v34 = vrot.slane %v17964_v31, 2  ;;  %v17970_v38 = vld [vmem:[#allocation12_spill] sm:$0xff]  ;;  %v17971_v4 = vld [vmem:[#allocation19_spill] sm:$0xff]  ;;  %v17972_v15 = vld [vmem:[#allocation6_spill] sm:$0xff] }
 0x60d   : > { %13919 = vmatprep.subr.msk.bf16.mxu0 %vm4196_vm2, %v11641_v58  ;;  %v10241_v36 = vsel %vm4573_vm12, %v10238_v32, %v10240_v56  ;;  %v11659_v48 = vcombine.low %v11641_v58, %v11641_v58  ;;  %v9828_v33 = vsel %vm4196_vm2, %v11641_v58, 0  ;;  %v10249_v42 = vsel %vm4196_vm2, %v11642_v25, 0  ;;  %v17969_v58 = vld [vmem:[#allocation11_spill] sm:$0xff]  ;;  %v17974_v32 = vld [vmem:[#allocation26_spill] sm:$0xff]  ;;  %v17975_v56 = vld [vmem:[#allocation17_spill] sm:$0xff] }
 0x60e   : > { %v17326_v39 = vpack.c.bf16 %v10241_v36, %v10239_v14  ;;  %v9450_v44 = vsel %vm4573_vm12, %v9448_v7, %v9449_v22  ;;  %v9452_v11 = vsel %vm4573_vm12, %v9449_v22, %v9451_v34  ;;  %v17973_v9 = vld [vmem:[#allocation27_spill] sm:$0xff]  ;;  %v17976_v14 = vld [vmem:[#allocation18_spill] sm:$0xff]  ;;  %v10027_v36 = vrot.slane %v17302_v62, 1 }
 0x60f   : > { %v9560_v50 = vpack.c.bf16 %v9452_v11, %v9450_v44  ;;  %v10037_v8 = vrot.slane %v11659_v48, 2  ;;  %v10029_v7 = vrot.slane %v17309_v20, 1  ;;  %v10026_v22 = vrot.slane %v17300_v37, 1 }
 0x610   : > { %v10452_v11 = vsel %vm4196_vm2, %v11692_v63, 0 }
 0x611   : > { %v10042_v57 = vsel %vm4196_vm2, %v10037_v8, 0  ;;  %v10028_v31 = vsel %vm4015_vm4, %v10026_v22, %v10027_v36  ;;  %v10030_v34 = vsel %vm4015_vm4, %v10027_v36, %v10029_v7 }
 0x612   : > { %v17473_v44 = vpack.c.bf16 %v10030_v34, %v10028_v31 }
 0x613   : > { %12862 = vmatmul.mubr.msk.bf16.gmra.mrb[36].mxu0 %vm408_vm0, %v16913_v47 }
 0x614   : > { %12865 = vmatprep.mubr.msk.bf16.mxu0 %vm408_vm0, %v16905_v60 }
 0x61b   : > { %12866 = vmatmul.mubr.msk.bf16.gmra.mrb[40].mxu0 %vm408_vm0, %v16966_v29 }
 0x61c   : > { %12869 = vmatprep.mubr.msk.bf16.mxu0 %vm408_vm0, %v16958_v54 }
 0x623   : > { %12870 = vmatmul.mubr.msk.bf16.gmra.mrb[44].mxu0 %vm408_vm0, %v17020_v18 }
 0x624   : > { %12873 = vmatprep.mubr.msk.bf16.mxu0 %vm408_vm0, %v17959_v1 }
 0x62b   : > { %12874 = vmatmul.mubr.msk.bf16.gmra.mrb[48].mxu0 %vm408_vm0, %v17960_v59 }
 0x62c   : > { %12877 = vmatprep.mubr.msk.bf16.mxu0 %vm408_vm0, %v17961_v10 }
 0x633   : > { %12878 = vmatmul.mubr.msk.bf16.gmra.mrb[52].mxu0 %vm408_vm0, %v17962_v55 }
 0x634   : > { %12881 = vmatprep.mubr.msk.bf16.mxu0 %vm408_vm0, %v17963_v35 }
 0x63b   : > { %12882 = vmatmul.mubr.msk.bf16.gmra.mrb[56].mxu0 %vm408_vm0, %v17188_v45 }
 0x63c   : > { %12885 = vmatprep.mubr.msk.bf16.mxu0 %vm408_vm0, %v17180_v21 }
 0x643   : > { %12886 = vmatmul.mubr.msk.bf16.gmra.mrb[60].mxu0 %vm408_vm0, %v17238_v40 }
 0x644   : > { %12891 = vmatprep.mubr.msk.bf16.mxu0 %vm408_vm0, %v9560_v50  ;;  %v11693_v50 = vld [vmem:[%s17769_s8 + $0x14] sm:$0x3] }
 0x64b   : > { %12892 = vmatmul.mubr.msk.bf16.vlgmr.msra.gmra.mrb[32].mxu0 %vm408_vm0, %v17965_v3 }
 0x64c   : > { %12924 = vmatpush3.bf16.msra.mxu0 %v9828_v33  ;;  %12895 = vmatprep.mubr.msk.bf16.mxu0 %vm408_vm0, %v17966_v13 }
 0x64d   : > { %13920 = vmatprep.subr.msk.bf16.mxu0 %vm4196_vm2, %v10037_v8 }
 0x653   : > { %12896 = vmatmul.mubr.msk.bf16.gmra.mrb[36].mxu0 %vm408_vm0, %v17157_v23 }
 0x654   : > { %12899 = vmatprep.mubr.msk.bf16.mxu0 %vm408_vm0, %v17193_v28 }
 0x65b   : > { %12900 = vmatmul.mubr.msk.bf16.gmra.mrb[40].mxu0 %vm408_vm0, %v17221_v49 }
 0x65c   : > { %12903 = vmatprep.mubr.msk.bf16.mxu0 %vm408_vm0, %v17229_v52 }
 0x663   : > { %12904 = vmatmul.mubr.msk.bf16.gmra.mrb[44].mxu0 %vm408_vm0, %v17240_v30 }
 0x664   : > { %12907 = vmatprep.mubr.msk.bf16.mxu0 %vm408_vm0, %v17248_v53 }
 0x66b   : > { %12908 = vmatmul.mubr.msk.bf16.gmra.mrb[48].mxu0 %vm408_vm0, %v17262_v51 }
 0x66c   : > { %12911 = vmatprep.mubr.msk.bf16.mxu0 %vm408_vm0, %v17275_v17 }
 0x673   : > { %12912 = vmatmul.mubr.msk.bf16.gmra.mrb[52].mxu0 %vm408_vm0, %v17280_v6 }
 0x674   : > { %12915 = vmatprep.mubr.msk.bf16.mxu0 %vm408_vm0, %v17285_v41 }
 0x67b   : > { %12916 = vmatmul.mubr.msk.bf16.gmra.mrb[56].mxu0 %vm408_vm0, %v17296_v19 }
 0x67c   : > { %12919 = vmatprep.mubr.msk.bf16.mxu0 %vm408_vm0, %v17313_v27 }
 0x683   : > { %12920 = vmatmul.mubr.msk.bf16.gmra.mrb[60].mxu0 %vm408_vm0, %v17318_v46 }
 0x684   : > { %12925 = vmatprep.mubr.msk.bf16.mxu0 %vm408_vm0, %v16854_v61  ;;  %v17429_v61 = vpack.c.bf16 %v17302_v62, %v17300_v37  ;;  %v11710_v62 = vcombine.low %v11692_v63, %v11692_v63 }
 0x686   : > { %v10661_v20 = vrot.slane %v11710_v62, 2 }
 0x688   : > { %v10666_v37 = vsel %vm4196_vm2, %v10661_v20, 0 }
 0x68b   : > { %12926 = vmatmul.mubr.msk.bf16.vlgmr.msra.gmra.mrb[32].mxu0 %vm408_vm0, %v16846_v5 }
 0x68c   : > { %12958 = vmatpush3.bf16.msra.mxu0 %v10042_v57  ;;  %12929 = vmatprep.mubr.msk.bf16.mxu0 %vm408_vm0, %v16913_v47 }
 0x68d   : > { %13921 = vmatprep.subr.msk.bf16.mxu0 %vm4196_vm2, %v11642_v25 }
 0x693   : > { %12930 = vmatmul.mubr.msk.bf16.gmra.mrb[36].mxu0 %vm408_vm0, %v16905_v60 }
 0x694   : > { %12933 = vmatprep.mubr.msk.bf16.mxu0 %vm408_vm0, %v16966_v29 }
 0x69b   : > { %12934 = vmatmul.mubr.msk.bf16.gmra.mrb[40].mxu0 %vm408_vm0, %v16958_v54 }
 0x69c   : > { %12937 = vmatprep.mubr.msk.bf16.mxu0 %vm408_vm0, %v17020_v18 }
 0x6a3   : > { %12938 = vmatmul.mubr.msk.bf16.gmra.mrb[44].mxu0 %vm408_vm0, %v17959_v1 }
 0x6a4   : > { %12941 = vmatprep.mubr.msk.bf16.mxu0 %vm408_vm0, %v17960_v59 }
 0x6ab   : > { %12942 = vmatmul.mubr.msk.bf16.gmra.mrb[48].mxu0 %vm408_vm0, %v17961_v10 }
 0x6ac   : > { %12945 = vmatprep.mubr.msk.bf16.mxu0 %vm408_vm0, %v17962_v55 }
 0x6b3   : > { %12946 = vmatmul.mubr.msk.bf16.gmra.mrb[52].mxu0 %vm408_vm0, %v17963_v35 }
 0x6b4   : > { %12949 = vmatprep.mubr.msk.bf16.mxu0 %vm408_vm0, %v17188_v45 }
 0x6bb   : > { %12950 = vmatmul.mubr.msk.bf16.gmra.mrb[56].mxu0 %vm408_vm0, %v17180_v21 }
 0x6bc   : > { %12953 = vmatprep.mubr.msk.bf16.mxu0 %vm408_vm0, %v17238_v40 }
 0x6c3   : > { %12954 = vmatmul.mubr.msk.bf16.gmra.mrb[60].mxu0 %vm408_vm0, %v17429_v61 }
 0x6c4   : > { %12959 = vmatprep.mubr.msk.bf16.mxu0 %vm408_vm0, %v17967_v43 }
 0x6cb   : > { %12960 = vmatmul.mubr.msk.bf16.vlgmr.msra.gmra.mrb[32].mxu0 %vm408_vm0, %v17968_v16 }
 0x6cc   : > { %12992 = vmatpush3.bf16.msra.mxu0 %v10249_v42  ;;  %12963 = vmatprep.mubr.msk.bf16.mxu0 %vm408_vm0, %v17969_v58 }
 0x6cd   : > { %13922 = vmatprep.subr.msk.bf16.mxu0 %vm4196_vm2, %v11692_v63 }
 0x6d3   : > { %12964 = vmatmul.mubr.msk.bf16.gmra.mrb[36].mxu0 %vm408_vm0, %v17970_v38 }
 0x6d4   : > { %12967 = vmatprep.mubr.msk.bf16.mxu0 %vm408_vm0, %v17971_v4 }
 0x6db   : > { %12968 = vmatmul.mubr.msk.bf16.gmra.mrb[40].mxu0 %vm408_vm0, %v17972_v15 }
 0x6dc   : > { %12971 = vmatprep.mubr.msk.bf16.mxu0 %vm408_vm0, %v17973_v9 }
 0x6e3   : > { %12972 = vmatmul.mubr.msk.bf16.gmra.mrb[44].mxu0 %vm408_vm0, %v17974_v32 }
 0x6e4   : > { %12975 = vmatprep.mubr.msk.bf16.mxu0 %vm408_vm0, %v17975_v56 }
 0x6eb   : > { %12976 = vmatmul.mubr.msk.bf16.gmra.mrb[48].mxu0 %vm408_vm0, %v17976_v14 }
 0x6ec   : > { %12979 = vmatprep.mubr.msk.bf16.mxu0 %vm408_vm0, %v17142_v0 }
 0x6f3   : > { %12980 = vmatmul.mubr.msk.bf16.gmra.mrb[52].mxu0 %vm408_vm0, %v17144_v24 }
 0x6f4   : > { %12983 = vmatprep.mubr.msk.bf16.mxu0 %vm408_vm0, %v17201_v26 }
 0x6fb   : > { %12984 = vmatmul.mubr.msk.bf16.gmra.mrb[56].mxu0 %vm408_vm0, %v17198_v12 }
 0x6fc   : > { %12987 = vmatprep.mubr.msk.bf16.mxu0 %vm408_vm0, %v17251_v2 }
 0x703   : > { %12988 = vmatmul.mubr.msk.bf16.gmra.mrb[60].mxu0 %vm408_vm0, %v17473_v44 }
 0x704   : > { %12993 = vmatprep.mubr.msk.bf16.mxu0 %vm408_vm0, %v17965_v3 }
 0x70b   : > { %12994 = vmatmul.mubr.msk.bf16.vlgmr.msra.gmra.mrb[32].mxu0 %vm408_vm0, %v17966_v13 }
 0x70c   : > { %13026 = vmatpush3.bf16.msra.mxu0 %v10452_v11  ;;  %12997 = vmatprep.mubr.msk.bf16.mxu0 %vm408_vm0, %v17157_v23 }
 0x70d   : > { %13923 = vmatprep.subr.msk.bf16.mxu0 %vm4196_vm2, %v10661_v20 }
 0x713   : > { %12998 = vmatmul.mubr.msk.bf16.gmra.mrb[36].mxu0 %vm408_vm0, %v17193_v28 }
 0x714   : > { %13001 = vmatprep.mubr.msk.bf16.mxu0 %vm408_vm0, %v17221_v49 }
 0x71b   : > { %13002 = vmatmul.mubr.msk.bf16.gmra.mrb[40].mxu0 %vm408_vm0, %v17229_v52 }
 0x71c   : > { %13005 = vmatprep.mubr.msk.bf16.mxu0 %vm408_vm0, %v17240_v30 }
 0x723   : > { %13006 = vmatmul.mubr.msk.bf16.gmra.mrb[44].mxu0 %vm408_vm0, %v17248_v53 }
 0x724   : > { %13009 = vmatprep.mubr.msk.bf16.mxu0 %vm408_vm0, %v17262_v51 }
 0x72b   : > { %13010 = vmatmul.mubr.msk.bf16.gmra.mrb[48].mxu0 %vm408_vm0, %v17275_v17 }
 0x72c   : > { %13013 = vmatprep.mubr.msk.bf16.mxu0 %vm408_vm0, %v17280_v6 }
 0x733   : > { %13014 = vmatmul.mubr.msk.bf16.gmra.mrb[52].mxu0 %vm408_vm0, %v17285_v41 }
 0x734   : > { %13017 = vmatprep.mubr.msk.bf16.mxu0 %vm408_vm0, %v17296_v19 }
 0x73b   : > { %13018 = vmatmul.mubr.msk.bf16.gmra.mrb[56].mxu0 %vm408_vm0, %v17313_v27 }
 0x73c   : > { %13021 = vmatprep.mubr.msk.bf16.mxu0 %vm408_vm0, %v17318_v46 }
 0x743   : > { %13022 = vmatmul.mubr.msk.bf16.gmra.mrb[60].mxu0 %vm408_vm0, %v17326_v39 }
 0x744   : > { %13027 = vmatprep.mubr.msk.bf16.mxu0 %vm408_vm0, %v16846_v5  ;;  %v8823_v5 = vld [vmem:[#allocation4 + $0x198] sm:$0xff] }
 0x74b   : > { %13028 = vmatmul.mubr.msk.bf16.vlgmr.msra.gmra.mrb[32].mxu0 %vm408_vm0, %v16913_v47  ;;  %v10861_v47 = vrot.slane %v8823_v5, 2 }
 0x74c   : > { %13060 = vmatpush3.bf16.msra.mxu0 %v10666_v37  ;;  %13031 = vmatprep.mubr.msk.bf16.mxu0 %vm408_vm0, %v16905_v60  ;;  %v8824_v60 = vld [vmem:[#allocation4 + $0x1a0] sm:$0xff] }
 0x74d   : > { %13924 = vmatprep.subr.msk.bf16.mxu0 %vm4196_vm2, %v11693_v50 }
 0x753   : > { %13032 = vmatmul.mubr.msk.bf16.gmra.mrb[36].mxu0 %vm408_vm0, %v16966_v29  ;;  %v8825_v29 = vld [vmem:[#allocation4 + $0x1a8] sm:$0x3] }
 0x754   : > { %13035 = vmatprep.mubr.msk.bf16.mxu0 %vm408_vm0, %v16958_v54  ;;  %v10862_v54 = vrot.slane %v8824_v60, 2 }
 0x75b   : > { %13036 = vmatmul.mubr.msk.bf16.gmra.mrb[40].mxu0 %vm408_vm0, %v17020_v18  ;;  %v10863_v18 = vsel %vm4573_vm12, %v10861_v47, %v10862_v54 }
 0x75c   : > { %13039 = vmatprep.mubr.msk.bf16.mxu0 %vm408_vm0, %v17959_v1  ;;  %v10864_v1 = vrot.slane %v8825_v29, 2 }
 0x763   : > { %13040 = vmatmul.mubr.msk.bf16.gmra.mrb[44].mxu0 %vm408_vm0, %v17960_v59  ;;  %v10865_v59 = vsel %vm4573_vm12, %v10862_v54, %v10864_v1 }
 0x764   : > { %13043 = vmatprep.mubr.msk.bf16.mxu0 %vm408_vm0, %v17961_v10  ;;  %v10868_v10 = vpack.c.bf16 %v10865_v59, %v10863_v18 }
 0x76b   : > { %13044 = vmatmul.mubr.msk.bf16.gmra.mrb[48].mxu0 %vm408_vm0, %v17962_v55  ;;  %v10651_v55 = vrot.slane %v8824_v60, 1 }
 0x76c   : > { %13047 = vmatprep.mubr.msk.bf16.mxu0 %vm408_vm0, %v17963_v35  ;;  %v10653_v35 = vrot.slane %v8825_v29, 1 }
 0x76e   : > { %v10654_v48 = vsel %vm4015_vm4, %v10651_v55, %v10653_v35 }
 0x773   : > { %13048 = vmatmul.mubr.msk.bf16.gmra.mrb[52].mxu0 %vm408_vm0, %v17188_v45  ;;  %v10447_v45 = vpack.c.bf16 %v8824_v60, %v8823_v5 }
 0x774   : > { %13051 = vmatprep.mubr.msk.bf16.mxu0 %vm408_vm0, %v17180_v21  ;;  %v10873_v21 = vsel %vm4196_vm2, %v11693_v50, 0 }
 0x77b   : > { %13052 = vmatmul.mubr.msk.bf16.gmra.mrb[56].mxu0 %vm408_vm0, %v17238_v40  ;;  %v10650_v40 = vrot.slane %v8823_v5, 1 }
 0x77c   : > { %13055 = vmatprep.mubr.msk.bf16.mxu0 %vm408_vm0, %v17429_v61 }
 0x783   : > { %13056 = vmatmul.mubr.msk.bf16.gmra.mrb[60].mxu0 %vm408_vm0, %v10447_v45 }
 0x784   : > { %13061 = vmatprep.mubr.msk.bf16.mxu0 %vm408_vm0, %v17968_v16 }
 0x78b   : > { %13062 = vmatmul.mubr.msk.bf16.vlgmr.msra.gmra.mrb[32].mxu0 %vm408_vm0, %v17969_v58 }
 0x78c   : > { %13094 = vmatpush3.bf16.msra.mxu0 %v10873_v21  ;;  %13065 = vmatprep.mubr.msk.bf16.mxu0 %vm408_vm0, %v17970_v38 }
 0x793   : > { %13066 = vmatmul.mubr.msk.bf16.gmra.mrb[36].mxu0 %vm408_vm0, %v17971_v4 }
 0x794   : > { %13069 = vmatprep.mubr.msk.bf16.mxu0 %vm408_vm0, %v17972_v15 }
 0x79b   : > { %13070 = vmatmul.mubr.msk.bf16.gmra.mrb[40].mxu0 %vm408_vm0, %v17973_v9 }
 0x79c   : > { %13073 = vmatprep.mubr.msk.bf16.mxu0 %vm408_vm0, %v17974_v32 }
 0x7a3   : > { %13074 = vmatmul.mubr.msk.bf16.gmra.mrb[44].mxu0 %vm408_vm0, %v17975_v56 }
 0x7a4   : > { %13077 = vmatprep.mubr.msk.bf16.mxu0 %vm408_vm0, %v17976_v14 }
 0x7ab   : > { %13078 = vmatmul.mubr.msk.bf16.gmra.mrb[48].mxu0 %vm408_vm0, %v17142_v0  ;;  %v10652_v0 = vsel %vm4015_vm4, %v10650_v40, %v10651_v55 }
 0x7ac   : > { %13081 = vmatprep.mubr.msk.bf16.mxu0 %vm408_vm0, %v17144_v24  ;;  %v10657_v24 = vpack.c.bf16 %v10654_v48, %v10652_v0 }
 0x7b3   : > { %13082 = vmatmul.mubr.msk.bf16.gmra.mrb[52].mxu0 %vm408_vm0, %v17201_v26  ;;  %v17622_v26 = vld [vmem:[%s17771_s10] ss:$0 sm:$0xff] }
 0x7b4   : > { %13085 = vmatprep.mubr.msk.bf16.mxu0 %vm408_vm0, %v17198_v12 }
 0x7bb   : > { %13086 = vmatmul.mubr.msk.bf16.gmra.mrb[56].mxu0 %vm408_vm0, %v17251_v2 }
 0x7bc   : > { %13089 = vmatprep.mubr.msk.bf16.mxu0 %vm408_vm0, %v17473_v44 }
 0x7c3   : > { %13090 = vmatmul.mubr.msk.bf16.gmra.mrb[60].mxu0 %vm408_vm0, %v10657_v24 }
 0x7c4   : > { %13095 = vmatprep.mubr.msk.bf16.mxu0 %vm408_vm0, %v17966_v13 }
 0x7cb   : > { %13096 = vmatmul.mubr.msk.bf16.vlgmr.msra.gmra.mrb[32].mxu0 %vm408_vm0, %v17157_v23  ;;  %v17617_v23 = vld [vmem:[%s17770_s9] ss:$0 sm:$0xff] }
 0x7cc   : > { %13099 = vmatprep.mubr.msk.bf16.mxu0 %vm408_vm0, %v17193_v28 }
 0x7d3   : > { %13100 = vmatmul.mubr.msk.bf16.gmra.mrb[36].mxu0 %vm408_vm0, %v17221_v49 }
 0x7d4   : > { %13103 = vmatprep.mubr.msk.bf16.mxu0 %vm408_vm0, %v17229_v52 }
 0x7db   : > { %13104 = vmatmul.mubr.msk.bf16.gmra.mrb[40].mxu0 %vm408_vm0, %v17240_v30 }
 0x7dc   : > { %13107 = vmatprep.mubr.msk.bf16.mxu0 %vm408_vm0, %v17248_v53 }
 0x7e3   : > { %13108 = vmatmul.mubr.msk.bf16.gmra.mrb[44].mxu0 %vm408_vm0, %v17262_v51 }
 0x7e4   : > { %13111 = vmatprep.mubr.msk.bf16.mxu0 %vm408_vm0, %v17275_v17 }
 0x7eb   : > { %13112 = vmatmul.mubr.msk.bf16.gmra.mrb[48].mxu0 %vm408_vm0, %v17280_v6 }
 0x7ec   : > { %13115 = vmatprep.mubr.msk.bf16.mxu0 %vm408_vm0, %v17285_v41 }
 0x7f3   : > { %13116 = vmatmul.mubr.msk.bf16.gmra.mrb[52].mxu0 %vm408_vm0, %v17296_v19 }
 0x7f4   : > { %13119 = vmatprep.mubr.msk.bf16.mxu0 %vm408_vm0, %v17313_v27 }
 0x7fb   : > { %13120 = vmatmul.mubr.msk.bf16.gmra.mrb[56].mxu0 %vm408_vm0, %v17318_v46 }
 0x7fc   : > { %13123 = vmatprep.mubr.msk.bf16.mxu0 %vm408_vm0, %v17326_v39 }
 0x803   : > { %13124 = vmatmul.mubr.msk.bf16.gmra.mrb[60].mxu0 %vm408_vm0, %v10868_v10 }
 0x89e   : > { %v13097_v28 = vpop.f32.mrb[32].mxu0 }
 0x89f   : > { %v11076_v12 = vmul.f32 %v13097_v28, %v17617_v23  ;;  %v10909_v49 = vpop.f32.mrb[33].mxu0 }
 0x8a0   : > { %v11074_v52 = vmul.f32 %v17617_v23, %v10909_v49  ;;  %v13098_v30 = vpop.f32.mrb[34].mxu0 }
 0x8a1   : > { %v11114_v53 = vadd.f32 %v17622_v26, %v11076_v12  ;;  %v11077_v2 = vmul.f32 %v13098_v30, %v17617_v23  ;;  %v10912_v51 = vpop.f32.mrb[35].mxu0 }
 0x8a2   : > { %v11112_v17 = vadd.f32 %v17622_v26, %v11074_v52  ;;  %v11075_v6 = vmul.f32 %v17617_v23, %v10912_v51 }
 0x8a3   : > { %v11146_v41 = vmax.f32 %v11114_v53, 0.0  ;;  %v11115_v19 = vadd.f32 %v17622_v26, %v11077_v2 }
 0x8a4   : > { %v11144_v27 = vmax.f32 %v11112_v17, 0.0  ;;  %v11113_v46 = vadd.f32 %v17622_v26, %v11075_v6 }
 0x8a5   : > { %11178 = vst.msk [vmem:[%s17632_s29 + $0x10] sm:$0xff] %vm408_vm0, %v11146_v41  ;;  %v11147_v39 = vmax.f32 %v11115_v19, 0.0 }
 0x8a6   : > { %11176 = vst.msk [vmem:[%s17632_s29] sm:$0xff] %vm408_vm0, %v11144_v27  ;;  %v11145_v8 = vmax.f32 %v11113_v46, 0.0  ;;  %v13101_v33 = vpop.f32.mrb[36].mxu0 }
 0x8a7   : > { %11179 = vst.msk [vmem:[%s17632_s29 + $0x18] sm:$0xff] %vm408_vm0, %v11147_v39  ;;  %v11080_v3 = vmul.f32 %v13101_v33, %v17617_v23  ;;  %v10925_v13 = vpop.f32.mrb[37].mxu0 }
 0x8a8   : > { %11177 = vst.msk [vmem:[%s17632_s29 + $0x8] sm:$0xff] %vm408_vm0, %v11145_v8  ;;  %v11078_v57 = vmul.f32 %v17617_v23, %v10925_v13  ;;  %v13102_v25 = vpop.f32.mrb[38].mxu0 }
 0x8a9   : > { %v11118_v61 = vadd.f32 %v17622_v26, %v11080_v3  ;;  %v11081_v43 = vmul.f32 %v13102_v25, %v17617_v23  ;;  %v10928_v42 = vpop.f32.mrb[39].mxu0 }
 0x8aa   : > { %v11116_v63 = vadd.f32 %v17622_v26, %v11078_v57  ;;  %v11079_v16 = vmul.f32 %v17617_v23, %v10928_v42 }
 0x8ab   : > { %v11150_v58 = vmax.f32 %v11118_v61, 0.0  ;;  %v11119_v38 = vadd.f32 %v17622_v26, %v11081_v43 }
 0x8ac   : > { %v11148_v4 = vmax.f32 %v11116_v63, 0.0  ;;  %v11117_v15 = vadd.f32 %v17622_v26, %v11079_v16 }
 0x8ad   : > { %11182 = vst.msk [vmem:[%s17632_s29 + $0x30] sm:$0xff] %vm408_vm0, %v11150_v58  ;;  %v11151_v9 = vmax.f32 %v11119_v38, 0.0 }
 0x8ae   : > { %11180 = vst.msk [vmem:[%s17632_s29 + $0x20] sm:$0xff] %vm408_vm0, %v11148_v4  ;;  %v11149_v32 = vmax.f32 %v11117_v15, 0.0  ;;  %v13105_v56 = vpop.f32.mrb[40].mxu0 }
 0x8af   : > { %11183 = vst.msk [vmem:[%s17632_s29 + $0x38] sm:$0xff] %vm408_vm0, %v11151_v9  ;;  %v11084_v14 = vmul.f32 %v13105_v56, %v17617_v23  ;;  %v10941_v36 = vpop.f32.mrb[41].mxu0 }
 0x8b0   : > { %11181 = vst.msk [vmem:[%s17632_s29 + $0x28] sm:$0xff] %vm408_vm0, %v11149_v32  ;;  %v11082_v7 = vmul.f32 %v17617_v23, %v10941_v36  ;;  %v13106_v22 = vpop.f32.mrb[42].mxu0 }
 0x8b1   : > { %v11122_v31 = vadd.f32 %v17622_v26, %v11084_v14  ;;  %v11085_v34 = vmul.f32 %v13106_v22, %v17617_v23  ;;  %v10944_v44 = vpop.f32.mrb[43].mxu0 }
 0x8b2   : > { %v11120_v62 = vadd.f32 %v17622_v26, %v11082_v7  ;;  %v11083_v20 = vmul.f32 %v17617_v23, %v10944_v44 }
 0x8b3   : > { %v11154_v11 = vmax.f32 %v11122_v31, 0.0  ;;  %v11123_v37 = vadd.f32 %v17622_v26, %v11085_v34 }
 0x8b4   : > { %v11152_v50 = vmax.f32 %v11120_v62, 0.0  ;;  %v11121_v5 = vadd.f32 %v17622_v26, %v11083_v20 }
 0x8b5   : > { %11186 = vst.msk [vmem:[%s17632_s29 + $0x50] sm:$0xff] %vm408_vm0, %v11154_v11  ;;  %v11155_v60 = vmax.f32 %v11123_v37, 0.0 }
 0x8b6   : > { %11184 = vst.msk [vmem:[%s17632_s29 + $0x40] sm:$0xff] %vm408_vm0, %v11152_v50  ;;  %v11153_v47 = vmax.f32 %v11121_v5, 0.0  ;;  %v13109_v54 = vpop.f32.mrb[44].mxu0 }
 0x8b7   : > { %11187 = vst.msk [vmem:[%s17632_s29 + $0x58] sm:$0xff] %vm408_vm0, %v11155_v60  ;;  %v11088_v29 = vmul.f32 %v13109_v54, %v17617_v23  ;;  %v10957_v18 = vpop.f32.mrb[45].mxu0 }
 0x8b8   : > { %11185 = vst.msk [vmem:[%s17632_s29 + $0x48] sm:$0xff] %vm408_vm0, %v11153_v47  ;;  %v11086_v1 = vmul.f32 %v17617_v23, %v10957_v18  ;;  %v13110_v59 = vpop.f32.mrb[46].mxu0 }
 0x8b9   : > { %v11126_v45 = vadd.f32 %v17622_v26, %v11088_v29  ;;  %v11089_v10 = vmul.f32 %v13110_v59, %v17617_v23  ;;  %v10960_v21 = vpop.f32.mrb[47].mxu0 }
 0x8ba   : > { %v11124_v40 = vadd.f32 %v17622_v26, %v11086_v1  ;;  %v11087_v55 = vmul.f32 %v17617_v23, %v10960_v21 }
 0x8bb   : > { %v11158_v35 = vmax.f32 %v11126_v45, 0.0  ;;  %v11127_v0 = vadd.f32 %v17622_v26, %v11089_v10 }
 0x8bc   : > { %v11156_v48 = vmax.f32 %v11124_v40, 0.0  ;;  %v11125_v24 = vadd.f32 %v17622_v26, %v11087_v55 }
 0x8bd   : > { %11190 = vst.msk [vmem:[%s17632_s29 + $0x70] sm:$0xff] %vm408_vm0, %v11158_v35  ;;  %v11159_v28 = vmax.f32 %v11127_v0, 0.0 }
 0x8be   : > { %11188 = vst.msk [vmem:[%s17632_s29 + $0x60] sm:$0xff] %vm408_vm0, %v11156_v48  ;;  %v11157_v12 = vmax.f32 %v11125_v24, 0.0  ;;  %v13113_v49 = vpop.f32.mrb[48].mxu0 }
 0x8bf   : > { %11191 = vst.msk [vmem:[%s17632_s29 + $0x78] sm:$0xff] %vm408_vm0, %v11159_v28  ;;  %v11092_v52 = vmul.f32 %v13113_v49, %v17617_v23  ;;  %v10973_v30 = vpop.f32.mrb[49].mxu0 }
 0x8c0   : > { %11189 = vst.msk [vmem:[%s17632_s29 + $0x68] sm:$0xff] %vm408_vm0, %v11157_v12  ;;  %v11090_v53 = vmul.f32 %v17617_v23, %v10973_v30  ;;  %v13114_v2 = vpop.f32.mrb[50].mxu0 }
 0x8c1   : > { %v11130_v51 = vadd.f32 %v17622_v26, %v11092_v52  ;;  %v11093_v17 = vmul.f32 %v13114_v2, %v17617_v23  ;;  %v10976_v6 = vpop.f32.mrb[51].mxu0 }
 0x8c2   : > { %v11128_v41 = vadd.f32 %v17622_v26, %v11090_v53  ;;  %v11091_v19 = vmul.f32 %v17617_v23, %v10976_v6 }
 0x8c3   : > { %v11162_v27 = vmax.f32 %v11130_v51, 0.0  ;;  %v11131_v46 = vadd.f32 %v17622_v26, %v11093_v17 }
 0x8c4   : > { %v11160_v39 = vmax.f32 %v11128_v41, 0.0  ;;  %v11129_v8 = vadd.f32 %v17622_v26, %v11091_v19 }
 0x8c5   : > { %11194 = vst.msk [vmem:[%s17632_s29 + $0x90] sm:$0xff] %vm408_vm0, %v11162_v27  ;;  %v11163_v33 = vmax.f32 %v11131_v46, 0.0 }
 0x8c6   : > { %11192 = vst.msk [vmem:[%s17632_s29 + $0x80] sm:$0xff] %vm408_vm0, %v11160_v39  ;;  %v11161_v3 = vmax.f32 %v11129_v8, 0.0  ;;  %v13117_v13 = vpop.f32.mrb[52].mxu0 }
 0x8c7   : > { %11195 = vst.msk [vmem:[%s17632_s29 + $0x98] sm:$0xff] %vm408_vm0, %v11163_v33  ;;  %v11096_v57 = vmul.f32 %v13117_v13, %v17617_v23  ;;  %v10989_v25 = vpop.f32.mrb[53].mxu0 }
 0x8c8   : > { %11193 = vst.msk [vmem:[%s17632_s29 + $0x88] sm:$0xff] %vm408_vm0, %v11161_v3  ;;  %v11094_v61 = vmul.f32 %v17617_v23, %v10989_v25  ;;  %v13118_v43 = vpop.f32.mrb[54].mxu0 }
 0x8c9   : > { %v11134_v42 = vadd.f32 %v17622_v26, %v11096_v57  ;;  %v11097_v63 = vmul.f32 %v13118_v43, %v17617_v23  ;;  %v10992_v16 = vpop.f32.mrb[55].mxu0 }
 0x8ca   : > { %v11132_v58 = vadd.f32 %v17622_v26, %v11094_v61  ;;  %v11095_v38 = vmul.f32 %v17617_v23, %v10992_v16 }
 0x8cb   : > { %v11166_v4 = vmax.f32 %v11134_v42, 0.0  ;;  %v11135_v15 = vadd.f32 %v17622_v26, %v11097_v63 }
 0x8cc   : > { %v11164_v9 = vmax.f32 %v11132_v58, 0.0  ;;  %v11133_v32 = vadd.f32 %v17622_v26, %v11095_v38 }
 0x8cd   : > { %11198 = vst.msk [vmem:[%s17632_s29 + $0xb0] sm:$0xff] %vm408_vm0, %v11166_v4  ;;  %v11167_v56 = vmax.f32 %v11135_v15, 0.0 }
 0x8ce   : > { %11196 = vst.msk [vmem:[%s17632_s29 + $0xa0] sm:$0xff] %vm408_vm0, %v11164_v9  ;;  %v11165_v14 = vmax.f32 %v11133_v32, 0.0  ;;  %v13121_v36 = vpop.f32.mrb[56].mxu0 }
 0x8cf   : > { %11199 = vst.msk [vmem:[%s17632_s29 + $0xb8] sm:$0xff] %vm408_vm0, %v11167_v56  ;;  %v11100_v7 = vmul.f32 %v13121_v36, %v17617_v23  ;;  %v11005_v22 = vpop.f32.mrb[57].mxu0 }
 0x8d0   : > { %11197 = vst.msk [vmem:[%s17632_s29 + $0xa8] sm:$0xff] %vm408_vm0, %v11165_v14  ;;  %v11098_v31 = vmul.f32 %v17617_v23, %v11005_v22  ;;  %v13122_v34 = vpop.f32.mrb[58].mxu0 }
 0x8d1   : > { %v11138_v44 = vadd.f32 %v17622_v26, %v11100_v7  ;;  %v11101_v62 = vmul.f32 %v13122_v34, %v17617_v23  ;;  %v11008_v20 = vpop.f32.mrb[59].mxu0 }
 0x8d2   : > { %v11136_v11 = vadd.f32 %v17622_v26, %v11098_v31  ;;  %v11099_v37 = vmul.f32 %v17617_v23, %v11008_v20 }
 0x8d3   : > { %v11170_v50 = vmax.f32 %v11138_v44, 0.0  ;;  %v11139_v5 = vadd.f32 %v17622_v26, %v11101_v62 }
 0x8d4   : > { %v11168_v60 = vmax.f32 %v11136_v11, 0.0  ;;  %v11137_v47 = vadd.f32 %v17622_v26, %v11099_v37 }
 0x8d5   : > { %11202 = vst.msk [vmem:[%s17632_s29 + $0xd0] sm:$0xff] %vm408_vm0, %v11170_v50  ;;  %v11171_v54 = vmax.f32 %v11139_v5, 0.0 }
 0x8d6   : > { %11200 = vst.msk [vmem:[%s17632_s29 + $0xc0] sm:$0xff] %vm408_vm0, %v11168_v60  ;;  %v11169_v29 = vmax.f32 %v11137_v47, 0.0  ;;  %v13125_v18 = vpop.f32.mrb[60].mxu0 }
 0x8d7   : > { %11203 = vst.msk [vmem:[%s17632_s29 + $0xd8] sm:$0xff] %vm408_vm0, %v11171_v54  ;;  %v11104_v1 = vmul.f32 %v13125_v18, %v17617_v23  ;;  %v11021_v59 = vpop.f32.mrb[61].mxu0 }
 0x8d8   : > { %11201 = vst.msk [vmem:[%s17632_s29 + $0xc8] sm:$0xff] %vm408_vm0, %v11169_v29  ;;  %v11102_v45 = vmul.f32 %v17617_v23, %v11021_v59  ;;  %v13126_v10 = vpop.f32.mrb[62].mxu0 }
 0x8d9   : > { %v11142_v21 = vadd.f32 %v17622_v26, %v11104_v1  ;;  %v11105_v40 = vmul.f32 %v13126_v10, %v17617_v23  ;;  %v11024_v55 = vpop.f32.mrb[63].mxu0 }
 0x8da   : > { %v11140_v35 = vadd.f32 %v17622_v26, %v11102_v45  ;;  %v11103_v0 = vmul.f32 %v17617_v23, %v11024_v55 }
 0x8db   : > { %v11174_v48 = vmax.f32 %v11142_v21, 0.0  ;;  %v11143_v24 = vadd.f32 %v17622_v26, %v11105_v40 }
 0x8dc   : > { %v11172_v28 = vmax.f32 %v11140_v35, 0.0  ;;  %v11141_v12 = vadd.f32 %v17622_v26, %v11103_v0 }
 0x8dd   : > { %11206 = vst.msk [vmem:[%s17632_s29 + $0xf0] sm:$0xff] %vm408_vm0, %v11174_v48  ;;  %v11175_v49 = vmax.f32 %v11143_v24, 0.0 }
 0x8de   : > { %11204 = vst.msk [vmem:[%s17632_s29 + $0xe0] sm:$0xff] %vm408_vm0, %v11172_v28  ;;  %v11173_v52 = vmax.f32 %v11141_v12, 0.0 }
 0x8df   : > { %11207 = vst.msk [vmem:[%s17632_s29 + $0xf8] sm:$0xff] %vm408_vm0, %v11175_v49 }
 0x8e0   : > { %11205 = vst.msk [vmem:[%s17632_s29 + $0xe8] sm:$0xff] %vm408_vm0, %v11173_v52 }
 0x8e1 PF: > { %s21_s17 = sadd.s32 1, %s13976_s17  }
 0x8e2   : > { %p18_p4 = scmp.ge.s32.totalorder %s21_s17, 4  }
 0x8e4   :  { %20 = sbr.rel (!%p18_p4) target bundleno = 1 (0x1), region = 110 }

</bundles_post_ra>
